<compile_context>
chip_gen: v7x
topology: tpu7x:2x2x1
jax: 0.10.0
libtpu: 0.0.40
codegen_flags: <defaults>
</compile_context>

<pallas_src>
import math
from functools import partial

import numpy as np
import jax
import jax.numpy as jnp
from jax.experimental import pallas as pl
from jax.experimental.pallas import tpu as pltpu


# -------------------------- small in-kernel helpers --------------------------

def _bf16(x):
    return x.astype(jnp.bfloat16)


def _ln(x, g, b, eps):
    mu = jnp.mean(x, axis=-1, keepdims=True)
    var = jnp.mean((x - mu) ** 2, axis=-1, keepdims=True)
    return (x - mu) * jax.lax.rsqrt(var + eps) * g + b


def _full_spec(shape):
    # whole-array block, constant index map (weights stay resident across steps)
    return pl.BlockSpec(shape, lambda *args: (0,) * len(shape))


# -------------------------- Pallas kernels --------------------------

def _patch_embed_kernel(xp_ref, w_ref, b_ref, g_ref, nb_ref, mw_ref, tok_ref,
                        o_ref, *, eps):
    # patchify-matmul + LayerNorm + mask-token blend, fused (single grid step).
    y = jnp.dot(_bf16(xp_ref[...]), w_ref[...],
                preferred_element_type=jnp.float32) + b_ref[...]
    y = _ln(y, g_ref[...], nb_ref[...], eps)
    w = mw_ref[...]
    o_ref[...] = y * (1.0 - w) + tok_ref[...] * w


def pallas_patch_embed(xp, pe, mask_w, token):
    M, K = xp.shape
    D = pe["w"].shape[1]
    return pl.pallas_call(
        partial(_patch_embed_kernel, eps=1e-5),
        out_shape=jax.ShapeDtypeStruct((M, D), jnp.float32),
        grid=(1,),
        in_specs=[_full_spec((M, K)), _full_spec((K, D)), _full_spec((1, D)),
                  _full_spec((1, D)), _full_spec((1, D)), _full_spec((M, 1)),
                  _full_spec((1, D))],
        out_specs=_full_spec((M, D)),
    )(xp, pe["w"], pe["b"], pe["ng"], pe["nb"], mask_w, token)


def _linear_ln_kernel(x_ref, w_ref, b_ref, g_ref, nb_ref, o_ref, *, eps):
    y = jnp.dot(_bf16(x_ref[...]), w_ref[...],
                preferred_element_type=jnp.float32) + b_ref[...]
    o_ref[...] = _ln(y, g_ref[...], nb_ref[...], eps)


def pallas_linear_ln(x, w, b, g, nb):
    # PatchMerge downsample: Linear(4*Cprev -> C) + LayerNorm, fused, 1 step.
    M, K = x.shape
    D = w.shape[1]
    return pl.pallas_call(
        partial(_linear_ln_kernel, eps=1e-5),
        out_shape=jax.ShapeDtypeStruct((M, D), jnp.float32),
        grid=(1,),
        in_specs=[_full_spec((M, K)), _full_spec((K, D)), _full_spec((1, D)),
                  _full_spec((1, D)), _full_spec((1, D))],
        out_specs=_full_spec((M, D)),
    )(x, w, b, g, nb)


def _swin_block_kernel(x_ref, n1g_ref, n1b_ref,
                       qw_ref, qb_ref, kw_ref, kb_ref, vw_ref, vb_ref,
                       pw_ref, pb_ref, bias_ref,
                       n2g_ref, n2b_ref, w1_ref, b1_ref, w2_ref, b2_ref,
                       o_ref, *, num_heads, head_dim, num_windows, eps):
    # One whole Swin block for one image (all its windows), fully fused.
    nH, d, nW = num_heads, head_dim, num_windows
    T = x_ref.shape[1]                       # nW * Lw tokens (windowed order)
    Lw = T // nW
    C = nH * d

    x = x_ref[0]                             # (T, C) f32 residual stream

    # ---- LayerNorm 1 + Q/K/V projections (bf16 operands, f32 accumulate) ----
    h = _bf16(_ln(x, n1g_ref[...], n1b_ref[...], eps))
    q = jnp.dot(h, qw_ref[...], preferred_element_type=jnp.float32) + qb_ref[...]
    k = jnp.dot(h, kw_ref[...], preferred_element_type=jnp.float32) + kb_ref[...]
    v = jnp.dot(h, vw_ref[...], preferred_element_type=jnp.float32) + vb_ref[...]
    q, k, v = _bf16(q), _bf16(k), _bf16(v)

    bias = bias_ref[...]                     # (nH, nW, Lw, Lw) pos-bias(+mask)

    # ---- windowed MHSA: window-batched matmuls, tiny static head loop ----
    heads = []
    for hd in range(nH):
        c0 = hd * d
        qh = q[:, c0:c0 + d].reshape(nW, Lw, d)
        kh = k[:, c0:c0 + d].reshape(nW, Lw, d)
        vh = v[:, c0:c0 + d].reshape(nW, Lw, d)
        s = jnp.einsum("wqd,wkd->wqk", qh, kh,
                       preferred_element_type=jnp.float32)
        s = s + bias[hd]
        s = s - jnp.max(s, axis=-1, keepdims=True)
        p = jnp.exp(s)
        p = p / jnp.sum(p, axis=-1, keepdims=True)
        oh = jnp.einsum("wqk,wkd->wqd", _bf16(p), vh,
                        preferred_element_type=jnp.float32)
        heads.append(_bf16(oh.reshape(T, d)))
    attn = jnp.concatenate(heads, axis=-1)                       # (T, C) bf16
    attn = jnp.dot(attn, pw_ref[...],
                   preferred_element_type=jnp.float32) + pb_ref[...]

    # ---- residual 1 ----
    x1 = x + attn

    # ---- LayerNorm 2 + MLP + residual 2 ----
    m = _bf16(_ln(x1, n2g_ref[...], n2b_ref[...], eps))
    m = jnp.dot(m, w1_ref[...], preferred_element_type=jnp.float32) + b1_ref[...]
    # TODO(synk): torch nn.GELU defaults to the erf form; tanh approximation
    # kept here for a robust Mosaic lowering.
    m = jax.nn.gelu(m, approximate=True)
    m = jnp.dot(_bf16(m), w2_ref[...],
                preferred_element_type=jnp.float32) + b2_ref[...]

    o_ref[0] = x1 + m


def pallas_swin_block(xf, bias, prm, *, num_heads, head_dim, num_windows):
    N, T, C = xf.shape
    hid = prm["fc1_w"].shape[1]
    nW, Lw = num_windows, T // num_windows

    in_specs = [
        pl.BlockSpec((1, T, C), lambda n: (n, 0, 0)),            # tokens
        _full_spec((1, C)), _full_spec((1, C)),                  # LN1
        _full_spec((C, C)), _full_spec((1, C)),                  # q proj
        _full_spec((C, C)), _full_spec((1, C)),                  # k proj
        _full_spec((C, C)), _full_spec((1, C)),                  # v proj
        _full_spec((C, C)), _full_spec((1, C)),                  # out proj
        _full_spec((num_heads, nW, Lw, Lw)),                     # bias table
        _full_spec((1, C)), _full_spec((1, C)),                  # LN2
        _full_spec((C, hid)), _full_spec((1, hid)),              # fc1
        _full_spec((hid, C)), _full_spec((1, C)),                # fc2
    ]
    return pl.pallas_call(
        partial(_swin_block_kernel, num_heads=num_heads, head_dim=head_dim,
                num_windows=num_windows, eps=1e-5),
        out_shape=jax.ShapeDtypeStruct((N, T, C), jnp.float32),
        grid=(N,),
        in_specs=in_specs,
        out_specs=pl.BlockSpec((1, T, C), lambda n: (n, 0, 0)),
        compiler_params=pltpu.CompilerParams(
            dimension_semantics=("parallel",)),
    )(xf, prm["n1g"], prm["n1b"],
      prm["q_w"], prm["q_b"], prm["k_w"], prm["k_b"], prm["v_w"], prm["v_b"],
      prm["proj_w"], prm["proj_b"], bias,
      prm["n2g"], prm["n2b"], prm["fc1_w"], prm["fc1_b"],
      prm["fc2_w"], prm["fc2_b"])


def _norm_decoder_kernel(x_ref, g_ref, nb_ref, w_ref, b_ref, o_ref, *, eps):
    h = _ln(x_ref[...], g_ref[...], nb_ref[...], eps)
    o_ref[...] = jnp.dot(_bf16(h), w_ref[...],
                         preferred_element_type=jnp.float32) + b_ref[...]


def pallas_norm_decoder(x, g, nb, w, b):
    M, C = x.shape
    D = w.shape[1]
    return pl.pallas_call(
        partial(_norm_decoder_kernel, eps=1e-5),
        out_shape=jax.ShapeDtypeStruct((M, D), jnp.float32),
        grid=(1,),
        in_specs=[_full_spec((M, C)), _full_spec((1, C)), _full_spec((1, C)),
                  _full_spec((C, D)), _full_spec((1, D))],
        out_specs=_full_spec((M, D)),
    )(x, g, nb, w, b)


def _l1_masked_loss_kernel(p_ref, t_ref, w_ref, o_ref):
    w = w_ref[...]
    diff = jnp.abs(p_ref[...] - t_ref[...]) * w
    o_ref[0] = jnp.sum(diff) / (jnp.sum(w) * p_ref.shape[-1])


def pallas_l1_masked_loss(pred, target, w):
    # scalar result written to SMEM — no lane-masked VMEM store
    return pl.pallas_call(
        _l1_masked_loss_kernel,
        out_shape=jax.ShapeDtypeStruct((1,), jnp.float32),
        in_specs=[pl.BlockSpec(memory_space=pltpu.MemorySpace.VMEM)] * 3,
        out_specs=pl.BlockSpec(memory_space=pltpu.MemorySpace.SMEM),
    )(pred, target, w)


# -------------------------- model config --------------------------

# Small but self-consistent SimMIM-Swin configuration:
#   img 32, patch 4 -> 8x8 tokens; 2 stages (dims 64, 128); decoder stride 4.
CFG = dict(
    img_size=32, patch_size=4, in_chans=3, stride=4, embed_dim=64,
    depths=(2, 2), num_heads=(2, 4), mlp_ratio=4, window_size=4,
    posmlp_dim=32,
)


def build_block_configs(cfg):
    embed_h = cfg["img_size"] // cfg["patch_size"]
    blocks = []
    for i_layer in range(len(cfg["depths"])):
        dim = cfg["embed_dim"] * 2 ** i_layer
        res = embed_h // 2 ** i_layer
        for dep in range(cfg["depths"][i_layer]):
            ws = cfg["window_size"]
            shift = 0 if dep % 2 == 0 else ws // 2
            if res <= ws:
                # standard Swin clamp: window covers whole map, no shift
                ws = res
                shift = 0
            blocks.append(dict(
                dim=dim, resolution=res, num_heads=cfg["num_heads"][i_layer],
                window=ws, shift=shift,
                downsample=(i_layer > 0 and dep == 0),
            ))
    return blocks


def init_params(key, cfg):
    """Kernel-ready params: matmul weights stored bf16 (f32 accumulate on the
    MXU), LayerNorm params / biases f32.  The attention q-scale is folded into
    both the q weight and the q bias (exact in general)."""
    def nrm(k, shape, std=0.02):
        return std * jax.random.normal(k, shape, jnp.float32)

    keys = iter(jax.random.split(key, 256))
    p = {}
    ed, ps, cin = cfg["embed_dim"], cfg["patch_size"], cfg["in_chans"]
    p["mask_token"] = nrm(next(keys), (1, ed))
    p["patch_embed"] = dict(
        w=nrm(next(keys), (cin * ps * ps, ed)).astype(jnp.bfloat16),
        b=jnp.zeros((1, ed), jnp.float32),
        ng=jnp.ones((1, ed), jnp.float32), nb=jnp.zeros((1, ed), jnp.float32))
    blocks = []
    for bc in build_block_configs(cfg):
        C, nH = bc["dim"], bc["num_heads"]
        d = C // nH
        hidden = C * cfg["mlp_ratio"]
        scale = d ** -0.5
        blk = dict(
            n1g=jnp.ones((1, C)), n1b=jnp.zeros((1, C)),
            q_w=(nrm(next(keys), (C, C)) * scale).astype(jnp.bfloat16),
            q_b=jnp.zeros((1, C)) * scale,         # scale folded into bias too
            k_w=nrm(next(keys), (C, C)).astype(jnp.bfloat16),
            k_b=jnp.zeros((1, C)),
            v_w=nrm(next(keys), (C, C)).astype(jnp.bfloat16),
            v_b=jnp.zeros((1, C)),
            proj_w=nrm(next(keys), (C, C)).astype(jnp.bfloat16),
            proj_b=jnp.zeros((1, C)),
            pm_w1=nrm(next(keys), (2, cfg["posmlp_dim"])),
            pm_b1=jnp.zeros((cfg["posmlp_dim"],)),
            pm_w2=nrm(next(keys), (cfg["posmlp_dim"], nH)),
            pm_b2=jnp.zeros((nH,)),
            n2g=jnp.ones((1, C)), n2b=jnp.zeros((1, C)),
            fc1_w=nrm(next(keys), (C, hidden)).astype(jnp.bfloat16),
            fc1_b=jnp.zeros((1, hidden)),
            fc2_w=nrm(next(keys), (hidden, C)).astype(jnp.bfloat16),
            fc2_b=jnp.zeros((1, C)),
        )
        if bc["downsample"]:
            Cprev = C // 2
            blk["down"] = dict(
                w=nrm(next(keys), (4 * Cprev, C)).astype(jnp.bfloat16),
                b=jnp.zeros((1, C)),
                ng=jnp.ones((1, C)), nb=jnp.zeros((1, C)))
        blocks.append(blk)
    p["blocks"] = blocks
    enc_out = cfg["embed_dim"] * 2 ** (len(cfg["depths"]) - 1)
    p["norm_g"] = jnp.ones((1, enc_out))
    p["norm_b"] = jnp.zeros((1, enc_out))
    dec_out = 4 * cfg["stride"] ** 2 * cin
    p["dec_w"] = nrm(next(keys), (enc_out, dec_out)).astype(jnp.bfloat16)
    p["dec_b"] = jnp.zeros((1, dec_out))
    return p


# -------------------------- glue helpers (XLA, data-independent) ------------

def _shift_attn_mask(H, W, ws, shift):
    img = np.zeros((H, W), np.float32)
    cnt = 0
    for hs in (slice(0, -ws), slice(-ws, -shift), slice(-shift, None)):
        for wsl in (slice(0, -ws), slice(-ws, -shift), slice(-shift, None)):
            img[hs, wsl] = cnt
            cnt += 1
    win = img.reshape(H // ws, ws, W // ws, ws).transpose(0, 2, 1, 3)
    win = win.reshape(-1, ws * ws)
    diff = win[:, None, :] - win[:, :, None]
    return jnp.asarray(np.where(diff != 0, -100.0, 0.0).astype(np.float32))


def _pos_bias(prm, pos_hw, ws, num_heads):
    # TODO(synk): posmlp relative-position bias assumed as a 2-layer MLP
    # (2 -> posmlp_dim -> num_heads) over in-window relative coordinates.
    # Data-independent -> hoisted out of the Pallas hot path (plain jnp).
    coords = pos_hw[0, :ws, :ws, :].reshape(ws * ws, 2)
    rel = (coords[:, None, :] - coords[None, :, :]).reshape(ws * ws * ws * ws, 2)
    pb = jnp.maximum(rel @ prm["pm_w1"] + prm["pm_b1"], 0.0)
    pb = pb @ prm["pm_w2"] + prm["pm_b2"]
    return pb.reshape(ws * ws, ws * ws, num_heads).transpose(2, 0, 1)


def _attn_bias(prm, pos_hw, bc):
    # pos-bias (+ static shift mask) pre-combined into one (nH, nW, Lw, Lw)
    # table, added once per head inside the kernel.
    H = W = bc["resolution"]
    ws, shift, nH = bc["window"], bc["shift"], bc["num_heads"]
    nW = (H // ws) * (W // ws)
    posb = _pos_bias(prm, pos_hw, ws, nH)                    # (nH, Lw, Lw)
    bias = jnp.broadcast_to(posb[:, None], (nH, nW, ws * ws, ws * ws))
    if shift > 0:
        bias = bias + _shift_attn_mask(H, W, ws, shift)[None]
    return bias


# -------------------------- model forward --------------------------

def swin_block(x, pos_hw, prm, bc):
    N = x.shape[0]
    if bc["downsample"]:
        # TODO(synk): PatchMerge / pos_hw downsampling semantics assumed
        # (2x2 conv-style merge + LayerNorm; stride-2 subsample of positions)
        # since the submodule source is not provided.
        H_in = bc["resolution"] * 2
        C_prev = bc["dim"] // 2
        xm = x.reshape(N, H_in, H_in, C_prev)
        xm = xm.reshape(N, H_in // 2, 2, H_in // 2, 2, C_prev)
        xm = xm.transpose(0, 1, 3, 5, 2, 4)
        xm = xm.reshape(N * (H_in // 2) ** 2, C_prev * 4)
        xm = pallas_linear_ln(xm, prm["down"]["w"], prm["down"]["b"],
                              prm["down"]["ng"], prm["down"]["nb"])
        x = xm.reshape(N, (H_in // 2) ** 2, bc["dim"])
        pos_hw = pos_hw[:, ::2, ::2, :]

    H = W = bc["resolution"]
    C, ws, shift, nH = bc["dim"], bc["window"], bc["shift"], bc["num_heads"]
    d = C // nH
    L = H * W
    nW = (H // ws) * (W // ws)
    Lw = ws * ws

    # shift + window partition: pure index bookkeeping (XLA glue)
    h = x.reshape(N, H, W, C)
    if shift > 0:
        h = jnp.roll(h, shift=(-shift, -shift), axis=(1, 2))
    xw = h.reshape(N, H // ws, ws, W // ws, ws, C).transpose(0, 1, 3, 2, 4, 5)
    xf = xw.reshape(N, nW * Lw, C)                 # flattened token stream

    bias = _attn_bias(prm, pos_hw, bc)

    # the whole Swin block (attention + MLP + both residuals) in one kernel
    yf = pallas_swin_block(xf, bias, prm, num_heads=nH, head_dim=d,
                           num_windows=nW)

    # window reverse + un-shift (XLA glue)
    y = yf.reshape(N, H // ws, W // ws, ws, ws, C).transpose(0, 1, 3, 2, 4, 5)
    y = y.reshape(N, H, W, C)
    if shift > 0:
        y = jnp.roll(y, shift=(shift, shift), axis=(1, 2))
    return y.reshape(N, L, C), pos_hw


def forward_encoder(params, imgs, mask, cfg):
    N, Cimg, Himg, Wimg = imgs.shape
    ps = cfg["patch_size"]
    Hp, Wp = Himg // ps, Wimg // ps
    ed = cfg["embed_dim"]

    # patchify: conv(k=ps, s=ps) == unfold + matmul (index bookkeeping)
    xp = imgs.reshape(N, Cimg, Hp, ps, Wp, ps).transpose(0, 2, 4, 1, 3, 5)
    xp = xp.reshape(N * Hp * Wp, Cimg * ps * ps)

    # upsample mask to token resolution
    L = mask.shape[1]
    M = int(round(math.sqrt(L)))
    scale = Hp // M
    m = mask.reshape(N, M, M)
    m = jnp.repeat(jnp.repeat(m, scale, axis=1), scale, axis=2)
    w = m.reshape(N * Hp * Wp, 1).astype(jnp.float32)

    # fused patch-embed linear + LayerNorm + mask-token blend (one grid step)
    x = pallas_patch_embed(xp, params["patch_embed"], w, params["mask_token"])
    x = x.reshape(N, Hp * Wp, ed)

    # positional grid (1, H, W, 2): [...,0]=row, [...,1]=col
    pos = jnp.arange(Hp, dtype=jnp.float32)
    pos_hw = jnp.stack(jnp.meshgrid(pos, pos, indexing="ij"), axis=-1)[None]

    for prm, bc in zip(params["blocks"], build_block_configs(cfg)):
        x, pos_hw = swin_block(x, pos_hw, prm, bc)
    return x


def forward_decoder(params, x, cfg):
    N, L, C = x.shape
    # final encoder LayerNorm fused with the decoder prediction head
    y = pallas_norm_decoder(x.reshape(N * L, C), params["norm_g"],
                            params["norm_b"], params["dec_w"], params["dec_b"])
    D = y.shape[-1]
    y = y.reshape(N, L, D)
    M = int(round(math.sqrt(L)))
    t = y.transpose(0, 2, 1).reshape(N, D, M, M)
    r = 2
    Cs = D // (r * r)
    # torch.nn.PixelShuffle(2) semantics (index bookkeeping)
    t = t.reshape(N, Cs, r, r, M, M).transpose(0, 1, 4, 2, 5, 3)
    t = t.reshape(N, Cs, M * r, M * r)
    t = t.reshape(N, Cs, (M * r) * (M * r)).transpose(0, 2, 1)
    return t


def forward_loss(params, imgs, pred, mask, cfg):
    p = cfg["stride"]
    N, Cimg, H, W = imgs.shape
    h = H // p
    tgt = imgs.reshape(N, Cimg, h, p, h, p).transpose(0, 2, 4, 3, 5, 1)
    tgt = tgt.reshape(N, h * h, p * p * Cimg)
    # TODO(synk): norm_pix_loss=False path only (module default).
    # torch's boolean indexing target[mask].reshape(N,-1,D) followed by .mean()
    # equals this mask-weighted mean over all masked patch elements (torch
    # itself requires equal masked counts per sample for that reshape).
    Lm, D = tgt.shape[1], tgt.shape[2]
    w = mask.reshape(N * Lm, 1).astype(jnp.float32)
    loss = pallas_l1_masked_loss(pred.reshape(N * Lm, D),
                                 tgt.reshape(N * Lm, D), w)
    return loss[0]


def simmim_forward(params, imgs, mask):
    latent = forward_encoder(params, imgs, mask, CFG)
    pred = forward_decoder(params, latent, CFG)
    loss = forward_loss(params, imgs, pred, mask, CFG)
    return loss, pred, mask


# -------------------------- main --------------------------

if __name__ == "__main__":
    key = jax.random.PRNGKey(0)
    kp, ki, km = jax.random.split(key, 3)
    params = init_params(kp, CFG)

    N = 2
    imgs = jax.random.normal(
        ki, (N, CFG["in_chans"], CFG["img_size"], CFG["img_size"]), jnp.float32)

    L = (CFG["img_size"] // CFG["stride"]) ** 2  # 64 mask patches
    n_masked = L // 2                            # equal count per sample
    scores = jax.random.uniform(km, (N, L))
    order = jnp.argsort(scores, axis=1)
    mask = jnp.zeros((N, L), bool).at[
        jnp.arange(N)[:, None], order[:, :n_masked]].set(True)

    loss, pred, mask_out = jax.jit(simmim_forward)(params, imgs, mask)
    jax.block_until_ready((loss, pred, mask_out))
    assert pred.shape == (N, L, CFG["stride"] ** 2 * CFG["in_chans"])
    assert loss.shape == ()
    print("KERNEL_OK")
</pallas_src>

<mosaic_0001>
module attributes {stable_mosaic.version = 11 : i64} {
  func.func @_patch_embed_kernel(%arg0: i32, %arg1: memref<128x48xf32, #tpu.memory_space<vmem>>, %arg2: memref<48x64xbf16, #tpu.memory_space<vmem>>, %arg3: memref<1x64xf32, #tpu.memory_space<vmem>>, %arg4: memref<1x64xf32, #tpu.memory_space<vmem>>, %arg5: memref<1x64xf32, #tpu.memory_space<vmem>>, %arg6: memref<128x1xf32, #tpu.memory_space<vmem>>, %arg7: memref<1x64xf32, #tpu.memory_space<vmem>>, %arg8: memref<128x64xf32, #tpu.memory_space<vmem>>) attributes {dimension_semantics = [#tpu.dimension_semantics<arbitrary>], iteration_bounds = array<i64: 1>, scalar_prefetch = 0 : i64, scratch_operands = 0 : i64, tpu.core_type = #tpu.core_type<tc>, window_params = [{pipeline_mode = #tpu.pipeline_mode<synchronous>, transform_indices = @transform_0, window_bounds = array<i64: 128, 48>}, {pipeline_mode = #tpu.pipeline_mode<synchronous>, transform_indices = @transform_1, window_bounds = array<i64: 48, 64>}, {pipeline_mode = #tpu.pipeline_mode<synchronous>, transform_indices = @transform_2, window_bounds = array<i64: 1, 64>}, {pipeline_mode = #tpu.pipeline_mode<synchronous>, transform_indices = @transform_3, window_bounds = array<i64: 1, 64>}, {pipeline_mode = #tpu.pipeline_mode<synchronous>, transform_indices = @transform_4, window_bounds = array<i64: 1, 64>}, {pipeline_mode = #tpu.pipeline_mode<synchronous>, transform_indices = @transform_5, window_bounds = array<i64: 128, 1>}, {pipeline_mode = #tpu.pipeline_mode<synchronous>, transform_indices = @transform_6, window_bounds = array<i64: 1, 64>}, {pipeline_mode = #tpu.pipeline_mode<synchronous>, transform_indices = @transform_7, window_bounds = array<i64: 128, 64>}]} {
    %c0 = arith.constant 0 : index
    %c0_0 = arith.constant 0 : index
    %0 = vector.load %arg1[%c0, %c0_0] : memref<128x48xf32, #tpu.memory_space<vmem>>, vector<128x48xf32>
    %1 = arith.truncf %0 : vector<128x48xf32> to vector<128x48xbf16>
    %c0_1 = arith.constant 0 : index
    %c0_2 = arith.constant 0 : index
    %2 = vector.load %arg2[%c0_1, %c0_2] : memref<48x64xbf16, #tpu.memory_space<vmem>>, vector<48x64xbf16>
    %cst = arith.constant dense<0.000000e+00> : vector<128x64xf32>
    %3 = tpu.matmul %1, %2, %cst {dimension_numbers = #tpu.dot_dimension_numbers<[1], [0], [0], [1], [0, 0, 1, 1], [], []>} : vector<128x48xbf16>, vector<48x64xbf16>, vector<128x64xf32> -> vector<128x64xf32>
    %c0_3 = arith.constant 0 : index
    %c0_4 = arith.constant 0 : index
    %4 = vector.load %arg3[%c0_3, %c0_4] : memref<1x64xf32, #tpu.memory_space<vmem>>, vector<1x64xf32>
    %5 = vector.broadcast %4 : vector<1x64xf32> to vector<128x64xf32>
    %6 = arith.addf %3, %5 : vector<128x64xf32>
    %c0_5 = arith.constant 0 : index
    %c0_6 = arith.constant 0 : index
    %7 = vector.load %arg4[%c0_5, %c0_6] : memref<1x64xf32, #tpu.memory_space<vmem>>, vector<1x64xf32>
    %c0_7 = arith.constant 0 : index
    %c0_8 = arith.constant 0 : index
    %8 = vector.load %arg5[%c0_7, %c0_8] : memref<1x64xf32, #tpu.memory_space<vmem>>, vector<1x64xf32>
    %cst_9 = arith.constant dense<0.000000e+00> : vector<128xf32>
    %9 = vector.multi_reduction <add>, %6, %cst_9 [1] : vector<128x64xf32> to vector<128xf32>
    %10 = vector.shape_cast %9 : vector<128xf32> to vector<128x1xf32>
    %cst_10 = arith.constant 6.400000e+01 : f32
    %11 = vector.broadcast %cst_10 : f32 to vector<128x1xf32>
    %12 = arith.divf %10, %11 : vector<128x1xf32>
    %13 = vector.broadcast %12 : vector<128x1xf32> to vector<128x64xf32>
    %14 = arith.subf %6, %13 : vector<128x64xf32>
    %15 = arith.mulf %14, %14 : vector<128x64xf32>
    %cst_11 = arith.constant dense<0.000000e+00> : vector<128xf32>
    %16 = vector.multi_reduction <add>, %15, %cst_11 [1] : vector<128x64xf32> to vector<128xf32>
    %17 = vector.shape_cast %16 : vector<128xf32> to vector<128x1xf32>
    %cst_12 = arith.constant 6.400000e+01 : f32
    %18 = vector.broadcast %cst_12 : f32 to vector<128x1xf32>
    %19 = arith.divf %17, %18 : vector<128x1xf32>
    %20 = vector.broadcast %12 : vector<128x1xf32> to vector<128x64xf32>
    %21 = arith.subf %6, %20 : vector<128x64xf32>
    %cst_13 = arith.constant 9.99999974E-6 : f32
    %22 = vector.broadcast %cst_13 : f32 to vector<128x1xf32>
    %23 = arith.addf %19, %22 : vector<128x1xf32>
    %24 = math.rsqrt %23 : vector<128x1xf32>
    %25 = vector.broadcast %24 : vector<128x1xf32> to vector<128x64xf32>
    %26 = arith.mulf %21, %25 : vector<128x64xf32>
    %27 = vector.broadcast %7 : vector<1x64xf32> to vector<128x64xf32>
    %28 = arith.mulf %26, %27 : vector<128x64xf32>
    %29 = vector.broadcast %8 : vector<1x64xf32> to vector<128x64xf32>
    %30 = arith.addf %28, %29 : vector<128x64xf32>
    %c0_14 = arith.constant 0 : index
    %c0_15 = arith.constant 0 : index
    %31 = vector.load %arg6[%c0_14, %c0_15] : memref<128x1xf32, #tpu.memory_space<vmem>>, vector<128x1xf32>
    %cst_16 = arith.constant 1.000000e+00 : f32
    %32 = vector.broadcast %cst_16 : f32 to vector<128x1xf32>
    %33 = arith.subf %32, %31 : vector<128x1xf32>
    %34 = vector.broadcast %33 : vector<128x1xf32> to vector<128x64xf32>
    %35 = arith.mulf %30, %34 : vector<128x64xf32>
    %c0_17 = arith.constant 0 : index
    %c0_18 = arith.constant 0 : index
    %36 = vector.load %arg7[%c0_17, %c0_18] : memref<1x64xf32, #tpu.memory_space<vmem>>, vector<1x64xf32>
    %37 = vector.broadcast %36 : vector<1x64xf32> to vector<128x64xf32>
    %38 = vector.broadcast %31 : vector<128x1xf32> to vector<128x64xf32>
    %39 = arith.mulf %37, %38 : vector<128x64xf32>
    %40 = arith.addf %35, %39 : vector<128x64xf32>
    %c0_19 = arith.constant 0 : index
    %c0_20 = arith.constant 0 : index
    %41 = vector.load %arg8[%c0_19, %c0_20] : memref<128x64xf32, #tpu.memory_space<vmem>>, vector<128x64xf32>
    tpu.vector_store %arg8[%c0_19, %c0_20], %40 {strides = array<i32>} : memref<128x64xf32, #tpu.memory_space<vmem>>, vector<128x64xf32>,
    return
  }
  func.func @transform_0(%arg0: i32) -> (i32, i32) {
    %c0_i32 = arith.constant 0 : i32
    %c0_i32_0 = arith.constant 0 : i32
    %c0_i32_1 = arith.constant 0 : i32
    return %c0_i32, %c0_i32_0 : i32, i32
  }
  func.func @transform_1(%arg0: i32) -> (i32, i32) {
    %c0_i32 = arith.constant 0 : i32
    %c0_i32_0 = arith.constant 0 : i32
    %c0_i32_1 = arith.constant 0 : i32
    return %c0_i32, %c0_i32_0 : i32, i32
  }
  func.func @transform_2(%arg0: i32) -> (i32, i32) {
    %c0_i32 = arith.constant 0 : i32
    %c0_i32_0 = arith.constant 0 : i32
    %c0_i32_1 = arith.constant 0 : i32
    return %c0_i32, %c0_i32_0 : i32, i32
  }
  func.func @transform_3(%arg0: i32) -> (i32, i32) {
    %c0_i32 = arith.constant 0 : i32
    %c0_i32_0 = arith.constant 0 : i32
    %c0_i32_1 = arith.constant 0 : i32
    return %c0_i32, %c0_i32_0 : i32, i32
  }
  func.func @transform_4(%arg0: i32) -> (i32, i32) {
    %c0_i32 = arith.constant 0 : i32
    %c0_i32_0 = arith.constant 0 : i32
    %c0_i32_1 = arith.constant 0 : i32
    return %c0_i32, %c0_i32_0 : i32, i32
  }
  func.func @transform_5(%arg0: i32) -> (i32, i32) {
    %c0_i32 = arith.constant 0 : i32
    %c0_i32_0 = arith.constant 0 : i32
    %c0_i32_1 = arith.constant 0 : i32
    return %c0_i32, %c0_i32_0 : i32, i32
  }
  func.func @transform_6(%arg0: i32) -> (i32, i32) {
    %c0_i32 = arith.constant 0 : i32
    %c0_i32_0 = arith.constant 0 : i32
    %c0_i32_1 = arith.constant 0 : i32
    return %c0_i32, %c0_i32_0 : i32, i32
  }
  func.func @transform_7(%arg0: i32) -> (i32, i32) {
    %c0_i32 = arith.constant 0 : i32
    %c0_i32_0 = arith.constant 0 : i32
    %c0_i32_1 = arith.constant 0 : i32
    return %c0_i32, %c0_i32_0 : i32, i32
  }
}

module attributes {stable_mosaic.version = 11 : i64} {
  func.func @_swin_block_kernel(%arg0: i32, %arg1: memref<1x64x64xf32, #tpu.memory_space<vmem>>, %arg2: memref<1x64xf32, #tpu.memory_space<vmem>>, %arg3: memref<1x64xf32, #tpu.memory_space<vmem>>, %arg4: memref<64x64xbf16, #tpu.memory_space<vmem>>, %arg5: memref<1x64xf32, #tpu.memory_space<vmem>>, %arg6: memref<64x64xbf16, #tpu.memory_space<vmem>>, %arg7: memref<1x64xf32, #tpu.memory_space<vmem>>, %arg8: memref<64x64xbf16, #tpu.memory_space<vmem>>, %arg9: memref<1x64xf32, #tpu.memory_space<vmem>>, %arg10: memref<64x64xbf16, #tpu.memory_space<vmem>>, %arg11: memref<1x64xf32, #tpu.memory_space<vmem>>, %arg12: memref<2x4x16x16xf32, #tpu.memory_space<vmem>>, %arg13: memref<1x64xf32, #tpu.memory_space<vmem>>, %arg14: memref<1x64xf32, #tpu.memory_space<vmem>>, %arg15: memref<64x256xbf16, #tpu.memory_space<vmem>>, %arg16: memref<1x256xf32, #tpu.memory_space<vmem>>, %arg17: memref<256x64xbf16, #tpu.memory_space<vmem>>, %arg18: memref<1x64xf32, #tpu.memory_space<vmem>>, %arg19: memref<1x64x64xf32, #tpu.memory_space<vmem>>) attributes {dimension_semantics = [#tpu.dimension_semantics<parallel>], iteration_bounds = array<i64: 2>, scalar_prefetch = 0 : i64, scratch_operands = 0 : i64, tpu.core_type = #tpu.core_type<tc>, window_params = [{transform_indices = @transform_0, window_bounds = array<i64: 1, 64, 64>}, {pipeline_mode = #tpu.pipeline_mode<synchronous>, transform_indices = @transform_1, window_bounds = array<i64: 1, 64>}, {pipeline_mode = #tpu.pipeline_mode<synchronous>, transform_indices = @transform_2, window_bounds = array<i64: 1, 64>}, {pipeline_mode = #tpu.pipeline_mode<synchronous>, transform_indices = @transform_3, window_bounds = array<i64: 64, 64>}, {pipeline_mode = #tpu.pipeline_mode<synchronous>, transform_indices = @transform_4, window_bounds = array<i64: 1, 64>}, {pipeline_mode = #tpu.pipeline_mode<synchronous>, transform_indices = @transform_5, window_bounds = array<i64: 64, 64>}, {pipeline_mode = #tpu.pipeline_mode<synchronous>, transform_indices = @transform_6, window_bounds = array<i64: 1, 64>}, {pipeline_mode = #tpu.pipeline_mode<synchronous>, transform_indices = @transform_7, window_bounds = array<i64: 64, 64>}, {pipeline_mode = #tpu.pipeline_mode<synchronous>, transform_indices = @transform_8, window_bounds = array<i64: 1, 64>}, {pipeline_mode = #tpu.pipeline_mode<synchronous>, transform_indices = @transform_9, window_bounds = array<i64: 64, 64>}, {pipeline_mode = #tpu.pipeline_mode<synchronous>, transform_indices = @transform_10, window_bounds = array<i64: 1, 64>}, {pipeline_mode = #tpu.pipeline_mode<synchronous>, transform_indices = @transform_11, window_bounds = array<i64: 2, 4, 16, 16>}, {pipeline_mode = #tpu.pipeline_mode<synchronous>, transform_indices = @transform_12, window_bounds = array<i64: 1, 64>}, {pipeline_mode = #tpu.pipeline_mode<synchronous>, transform_indices = @transform_13, window_bounds = array<i64: 1, 64>}, {pipeline_mode = #tpu.pipeline_mode<synchronous>, transform_indices = @transform_14, window_bounds = array<i64: 64, 256>}, {pipeline_mode = #tpu.pipeline_mode<synchronous>, transform_indices = @transform_15, window_bounds = array<i64: 1, 256>}, {pipeline_mode = #tpu.pipeline_mode<synchronous>, transform_indices = @transform_16, window_bounds = array<i64: 256, 64>}, {pipeline_mode = #tpu.pipeline_mode<synchronous>, transform_indices = @transform_17, window_bounds = array<i64: 1, 64>}, {transform_indices = @transform_18, window_bounds = array<i64: 1, 64, 64>}]} {
    %c0 = arith.constant 0 : index
    %c0_0 = arith.constant 0 : index
    %c0_1 = arith.constant 0 : index
    %0 = vector.load %arg1[%c0, %c0_0, %c0_1] : memref<1x64x64xf32, #tpu.memory_space<vmem>>, vector<1x64x64xf32>
    %1 = vector.shape_cast %0 : vector<1x64x64xf32> to vector<64x64xf32>
    %c0_2 = arith.constant 0 : index
    %c0_3 = arith.constant 0 : index
    %2 = vector.load %arg2[%c0_2, %c0_3] : memref<1x64xf32, #tpu.memory_space<vmem>>, vector<1x64xf32>
    %c0_4 = arith.constant 0 : index
    %c0_5 = arith.constant 0 : index
    %3 = vector.load %arg3[%c0_4, %c0_5] : memref<1x64xf32, #tpu.memory_space<vmem>>, vector<1x64xf32>
    %cst = arith.constant dense<0.000000e+00> : vector<64xf32>
    %4 = vector.multi_reduction <add>, %1, %cst [1] : vector<64x64xf32> to vector<64xf32>
    %5 = vector.shape_cast %4 : vector<64xf32> to vector<64x1xf32>
    %cst_6 = arith.constant 6.400000e+01 : f32
    %6 = vector.broadcast %cst_6 : f32 to vector<64x1xf32>
    %7 = arith.divf %5, %6 : vector<64x1xf32>
    %8 = vector.broadcast %7 : vector<64x1xf32> to vector<64x64xf32>
    %9 = arith.subf %1, %8 : vector<64x64xf32>
    %10 = arith.mulf %9, %9 : vector<64x64xf32>
    %cst_7 = arith.constant dense<0.000000e+00> : vector<64xf32>
    %11 = vector.multi_reduction <add>, %10, %cst_7 [1] : vector<64x64xf32> to vector<64xf32>
    %12 = vector.shape_cast %11 : vector<64xf32> to vector<64x1xf32>
    %cst_8 = arith.constant 6.400000e+01 : f32
    %13 = vector.broadcast %cst_8 : f32 to vector<64x1xf32>
    %14 = arith.divf %12, %13 : vector<64x1xf32>
    %15 = vector.broadcast %7 : vector<64x1xf32> to vector<64x64xf32>
    %16 = arith.subf %1, %15 : vector<64x64xf32>
    %cst_9 = arith.constant 9.99999974E-6 : f32
    %17 = vector.broadcast %cst_9 : f32 to vector<64x1xf32>
    %18 = arith.addf %14, %17 : vector<64x1xf32>
    %19 = math.rsqrt %18 : vector<64x1xf32>
    %20 = vector.broadcast %19 : vector<64x1xf32> to vector<64x64xf32>
    %21 = arith.mulf %16, %20 : vector<64x64xf32>
    %22 = vector.broadcast %2 : vector<1x64xf32> to vector<64x64xf32>
    %23 = arith.mulf %21, %22 : vector<64x64xf32>
    %24 = vector.broadcast %3 : vector<1x64xf32> to vector<64x64xf32>
    %25 = arith.addf %23, %24 : vector<64x64xf32>
    %26 = arith.truncf %25 : vector<64x64xf32> to vector<64x64xbf16>
    %c0_10 = arith.constant 0 : index
    %c0_11 = arith.constant 0 : index
    %27 = vector.load %arg4[%c0_10, %c0_11] : memref<64x64xbf16, #tpu.memory_space<vmem>>, vector<64x64xbf16>
    %cst_12 = arith.constant dense<0.000000e+00> : vector<64x64xf32>
    %28 = tpu.matmul %26, %27, %cst_12 {dimension_numbers = #tpu.dot_dimension_numbers<[1], [0], [0], [1], [0, 0, 1, 1], [], []>} : vector<64x64xbf16>, vector<64x64xbf16>, vector<64x64xf32> -> vector<64x64xf32>
    %c0_13 = arith.constant 0 : index
    %c0_14 = arith.constant 0 : index
    %29 = vector.load %arg5[%c0_13, %c0_14] : memref<1x64xf32, #tpu.memory_space<vmem>>, vector<1x64xf32>
    %30 = vector.broadcast %29 : vector<1x64xf32> to vector<64x64xf32>
    %31 = arith.addf %28, %30 : vector<64x64xf32>
    %c0_15 = arith.constant 0 : index
    %c0_16 = arith.constant 0 : index
    %32 = vector.load %arg6[%c0_15, %c0_16] : memref<64x64xbf16, #tpu.memory_space<vmem>>, vector<64x64xbf16>
    %cst_17 = arith.constant dense<0.000000e+00> : vector<64x64xf32>
    %33 = tpu.matmul %26, %32, %cst_17 {dimension_numbers = #tpu.dot_dimension_numbers<[1], [0], [0], [1], [0, 0, 1, 1], [], []>} : vector<64x64xbf16>, vector<64x64xbf16>, vector<64x64xf32> -> vector<64x64xf32>
    %c0_18 = arith.constant 0 : index
    %c0_19 = arith.constant 0 : index
    %34 = vector.load %arg7[%c0_18, %c0_19] : memref<1x64xf32, #tpu.memory_space<vmem>>, vector<1x64xf32>
    %35 = vector.broadcast %34 : vector<1x64xf32> to vector<64x64xf32>
    %36 = arith.addf %33, %35 : vector<64x64xf32>
    %c0_20 = arith.constant 0 : index
    %c0_21 = arith.constant 0 : index
    %37 = vector.load %arg8[%c0_20, %c0_21] : memref<64x64xbf16, #tpu.memory_space<vmem>>, vector<64x64xbf16>
    %cst_22 = arith.constant dense<0.000000e+00> : vector<64x64xf32>
    %38 = tpu.matmul %26, %37, %cst_22 {dimension_numbers = #tpu.dot_dimension_numbers<[1], [0], [0], [1], [0, 0, 1, 1], [], []>} : vector<64x64xbf16>, vector<64x64xbf16>, vector<64x64xf32> -> vector<64x64xf32>
    %c0_23 = arith.constant 0 : index
    %c0_24 = arith.constant 0 : index
    %39 = vector.load %arg9[%c0_23, %c0_24] : memref<1x64xf32, #tpu.memory_space<vmem>>, vector<1x64xf32>
    %40 = vector.broadcast %39 : vector<1x64xf32> to vector<64x64xf32>
    %41 = arith.addf %38, %40 : vector<64x64xf32>
    %42 = arith.truncf %31 : vector<64x64xf32> to vector<64x64xbf16>
    %43 = arith.truncf %36 : vector<64x64xf32> to vector<64x64xbf16>
    %44 = arith.truncf %41 : vector<64x64xf32> to vector<64x64xbf16>
    %c0_25 = arith.constant 0 : index
    %c0_26 = arith.constant 0 : index
    %c0_27 = arith.constant 0 : index
    %c0_28 = arith.constant 0 : index
    %45 = vector.load %arg12[%c0_25, %c0_26, %c0_27, %c0_28] : memref<2x4x16x16xf32, #tpu.memory_space<vmem>>, vector<2x4x16x16xf32>
    %46 = vector.extract_strided_slice %42 {offsets = [0, 0], sizes = [64, 32], strides = [1, 1]} : vector<64x64xbf16> to vector<64x32xbf16>
    %47 = vector.shape_cast %46 : vector<64x32xbf16> to vector<4x16x32xbf16>
    %48 = vector.extract_strided_slice %43 {offsets = [0, 0], sizes = [64, 32], strides = [1, 1]} : vector<64x64xbf16> to vector<64x32xbf16>
    %49 = vector.shape_cast %48 : vector<64x32xbf16> to vector<4x16x32xbf16>
    %50 = vector.extract_strided_slice %44 {offsets = [0, 0], sizes = [64, 32], strides = [1, 1]} : vector<64x64xbf16> to vector<64x32xbf16>
    %51 = vector.shape_cast %50 : vector<64x32xbf16> to vector<4x16x32xbf16>
    "tpu.trace_start"() <{level = 10 : i32, message = "wqd,wkd->wqk"}> : () -> ()
    %cst_29 = arith.constant dense<0.000000e+00> : vector<4x16x16xf32>
    %52 = tpu.matmul %47, %49, %cst_29 {dimension_numbers = #tpu.dot_dimension_numbers<[2], [2], [1], [1], [0, 0, 0, 1, 1, 1], [0], [0]>} : vector<4x16x32xbf16>, vector<4x16x32xbf16>, vector<4x16x16xf32> -> vector<4x16x16xf32>
    "tpu.trace_stop"() : () -> ()
    %53 = vector.extract_strided_slice %45 {offsets = [0, 0, 0, 0], sizes = [1, 4, 16, 16], strides = [1, 1, 1, 1]} : vector<2x4x16x16xf32> to vector<1x4x16x16xf32>
    %54 = vector.shape_cast %53 : vector<1x4x16x16xf32> to vector<4x16x16xf32>
    %55 = arith.addf %52, %54 : vector<4x16x16xf32>
    %cst_30 = arith.constant dense<0xFF800000> : vector<4x16xf32>
    %56 = vector.multi_reduction <maximumf>, %55, %cst_30 [2] : vector<4x16x16xf32> to vector<4x16xf32>
    %57 = vector.shape_cast %56 : vector<4x16xf32> to vector<4x16x1xf32>
    %58 = vector.broadcast %57 : vector<4x16x1xf32> to vector<4x16x16xf32>
    %59 = arith.subf %55, %58 : vector<4x16x16xf32>
    %60 = math.exp %59 : vector<4x16x16xf32>
    %cst_31 = arith.constant dense<0.000000e+00> : vector<4x16xf32>
    %61 = vector.multi_reduction <add>, %60, %cst_31 [2] : vector<4x16x16xf32> to vector<4x16xf32>
    %62 = vector.shape_cast %61 : vector<4x16xf32> to vector<4x16x1xf32>
    %63 = vector.broadcast %62 : vector<4x16x1xf32> to vector<4x16x16xf32>
    %64 = arith.divf %60, %63 : vector<4x16x16xf32>
    %65 = arith.truncf %64 : vector<4x16x16xf32> to vector<4x16x16xbf16>
    "tpu.trace_start"() <{level = 10 : i32, message = "wqk,wkd->wqd"}> : () -> ()
    %cst_32 = arith.constant dense<0.000000e+00> : vector<4x16x32xf32>
    %66 = tpu.matmul %65, %51, %cst_32 {dimension_numbers = #tpu.dot_dimension_numbers<[2], [1], [1], [2], [0, 0, 0, 1, 1, 2], [0], [0]>} : vector<4x16x16xbf16>, vector<4x16x32xbf16>, vector<4x16x32xf32> -> vector<4x16x32xf32>
    "tpu.trace_stop"() : () -> ()
    %67 = vector.shape_cast %66 : vector<4x16x32xf32> to vector<64x32xf32>
    %68 = arith.truncf %67 : vector<64x32xf32> to vector<64x32xbf16>
    %69 = vector.extract_strided_slice %42 {offsets = [0, 32], sizes = [64, 32], strides = [1, 1]} : vector<64x64xbf16> to vector<64x32xbf16>
    %70 = vector.shape_cast %69 : vector<64x32xbf16> to vector<4x16x32xbf16>
    %71 = vector.extract_strided_slice %43 {offsets = [0, 32], sizes = [64, 32], strides = [1, 1]} : vector<64x64xbf16> to vector<64x32xbf16>
    %72 = vector.shape_cast %71 : vector<64x32xbf16> to vector<4x16x32xbf16>
    %73 = vector.extract_strided_slice %44 {offsets = [0, 32], sizes = [64, 32], strides = [1, 1]} : vector<64x64xbf16> to vector<64x32xbf16>
    %74 = vector.shape_cast %73 : vector<64x32xbf16> to vector<4x16x32xbf16>
    "tpu.trace_start"() <{level = 10 : i32, message = "wqd,wkd->wqk"}> : () -> ()
    %cst_33 = arith.constant dense<0.000000e+00> : vector<4x16x16xf32>
    %75 = tpu.matmul %70, %72, %cst_33 {dimension_numbers = #tpu.dot_dimension_numbers<[2], [2], [1], [1], [0, 0, 0, 1, 1, 1], [0], [0]>} : vector<4x16x32xbf16>, vector<4x16x32xbf16>, vector<4x16x16xf32> -> vector<4x16x16xf32>
    "tpu.trace_stop"() : () -> ()
    %76 = vector.extract_strided_slice %45 {offsets = [1, 0, 0, 0], sizes = [1, 4, 16, 16], strides = [1, 1, 1, 1]} : vector<2x4x16x16xf32> to vector<1x4x16x16xf32>
    %77 = vector.shape_cast %76 : vector<1x4x16x16xf32> to vector<4x16x16xf32>
    %78 = arith.addf %75, %77 : vector<4x16x16xf32>
    %cst_34 = arith.constant dense<0xFF800000> : vector<4x16xf32>
    %79 = vector.multi_reduction <maximumf>, %78, %cst_34 [2] : vector<4x16x16xf32> to vector<4x16xf32>
    %80 = vector.shape_cast %79 : vector<4x16xf32> to vector<4x16x1xf32>
    %81 = vector.broadcast %80 : vector<4x16x1xf32> to vector<4x16x16xf32>
    %82 = arith.subf %78, %81 : vector<4x16x16xf32>
    %83 = math.exp %82 : vector<4x16x16xf32>
    %cst_35 = arith.constant dense<0.000000e+00> : vector<4x16xf32>
    %84 = vector.multi_reduction <add>, %83, %cst_35 [2] : vector<4x16x16xf32> to vector<4x16xf32>
    %85 = vector.shape_cast %84 : vector<4x16xf32> to vector<4x16x1xf32>
    %86 = vector.broadcast %85 : vector<4x16x1xf32> to vector<4x16x16xf32>
    %87 = arith.divf %83, %86 : vector<4x16x16xf32>
    %88 = arith.truncf %87 : vector<4x16x16xf32> to vector<4x16x16xbf16>
    "tpu.trace_start"() <{level = 10 : i32, message = "wqk,wkd->wqd"}> : () -> ()
    %cst_36 = arith.constant dense<0.000000e+00> : vector<4x16x32xf32>
    %89 = tpu.matmul %88, %74, %cst_36 {dimension_numbers = #tpu.dot_dimension_numbers<[2], [1], [1], [2], [0, 0, 0, 1, 1, 2], [0], [0]>} : vector<4x16x16xbf16>, vector<4x16x32xbf16>, vector<4x16x32xf32> -> vector<4x16x32xf32>
    "tpu.trace_stop"() : () -> ()
    %90 = vector.shape_cast %89 : vector<4x16x32xf32> to vector<64x32xf32>
    %91 = arith.truncf %90 : vector<64x32xf32> to vector<64x32xbf16>
    %92 = tpu.concatenate %68, %91 in 1 : vector<64x32xbf16>, vector<64x32xbf16> -> vector<64x64xbf16>
    %c0_37 = arith.constant 0 : index
    %c0_38 = arith.constant 0 : index
    %93 = vector.load %arg10[%c0_37, %c0_38] : memref<64x64xbf16, #tpu.memory_space<vmem>>, vector<64x64xbf16>
    %cst_39 = arith.constant dense<0.000000e+00> : vector<64x64xf32>
    %94 = tpu.matmul %92, %93, %cst_39 {dimension_numbers = #tpu.dot_dimension_numbers<[1], [0], [0], [1], [0, 0, 1, 1], [], []>} : vector<64x64xbf16>, vector<64x64xbf16>, vector<64x64xf32> -> vector<64x64xf32>
    %c0_40 = arith.constant 0 : index
    %c0_41 = arith.constant 0 : index
    %95 = vector.load %arg11[%c0_40, %c0_41] : memref<1x64xf32, #tpu.memory_space<vmem>>, vector<1x64xf32>
    %96 = vector.broadcast %95 : vector<1x64xf32> to vector<64x64xf32>
    %97 = arith.addf %94, %96 : vector<64x64xf32>
    %98 = arith.addf %1, %97 : vector<64x64xf32>
    %c0_42 = arith.constant 0 : index
    %c0_43 = arith.constant 0 : index
    %99 = vector.load %arg13[%c0_42, %c0_43] : memref<1x64xf32, #tpu.memory_space<vmem>>, vector<1x64xf32>
    %c0_44 = arith.constant 0 : index
    %c0_45 = arith.constant 0 : index
    %100 = vector.load %arg14[%c0_44, %c0_45] : memref<1x64xf32, #tpu.memory_space<vmem>>, vector<1x64xf32>
    %cst_46 = arith.constant dense<0.000000e+00> : vector<64xf32>
    %101 = vector.multi_reduction <add>, %98, %cst_46 [1] : vector<64x64xf32> to vector<64xf32>
    %102 = vector.shape_cast %101 : vector<64xf32> to vector<64x1xf32>
    %cst_47 = arith.constant 6.400000e+01 : f32
    %103 = vector.broadcast %cst_47 : f32 to vector<64x1xf32>
    %104 = arith.divf %102, %103 : vector<64x1xf32>
    %105 = vector.broadcast %104 : vector<64x1xf32> to vector<64x64xf32>
    %106 = arith.subf %98, %105 : vector<64x64xf32>
    %107 = arith.mulf %106, %106 : vector<64x64xf32>
    %cst_48 = arith.constant dense<0.000000e+00> : vector<64xf32>
    %108 = vector.multi_reduction <add>, %107, %cst_48 [1] : vector<64x64xf32> to vector<64xf32>
    %109 = vector.shape_cast %108 : vector<64xf32> to vector<64x1xf32>
    %cst_49 = arith.constant 6.400000e+01 : f32
    %110 = vector.broadcast %cst_49 : f32 to vector<64x1xf32>
    %111 = arith.divf %109, %110 : vector<64x1xf32>
    %112 = vector.broadcast %104 : vector<64x1xf32> to vector<64x64xf32>
    %113 = arith.subf %98, %112 : vector<64x64xf32>
    %cst_50 = arith.constant 9.99999974E-6 : f32
    %114 = vector.broadcast %cst_50 : f32 to vector<64x1xf32>
    %115 = arith.addf %111, %114 : vector<64x1xf32>
    %116 = math.rsqrt %115 : vector<64x1xf32>
    %117 = vector.broadcast %116 : vector<64x1xf32> to vector<64x64xf32>
    %118 = arith.mulf %113, %117 : vector<64x64xf32>
    %119 = vector.broadcast %99 : vector<1x64xf32> to vector<64x64xf32>
    %120 = arith.mulf %118, %119 : vector<64x64xf32>
    %121 = vector.broadcast %100 : vector<1x64xf32> to vector<64x64xf32>
    %122 = arith.addf %120, %121 : vector<64x64xf32>
    %123 = arith.truncf %122 : vector<64x64xf32> to vector<64x64xbf16>
    %c0_51 = arith.constant 0 : index
    %c0_52 = arith.constant 0 : index
    %124 = vector.load %arg15[%c0_51, %c0_52] : memref<64x256xbf16, #tpu.memory_space<vmem>>, vector<64x256xbf16>
    %cst_53 = arith.constant dense<0.000000e+00> : vector<64x256xf32>
    %125 = tpu.matmul %123, %124, %cst_53 {dimension_numbers = #tpu.dot_dimension_numbers<[1], [0], [0], [1], [0, 0, 1, 1], [], []>} : vector<64x64xbf16>, vector<64x256xbf16>, vector<64x256xf32> -> vector<64x256xf32>
    %c0_54 = arith.constant 0 : index
    %c0_55 = arith.constant 0 : index
    %126 = vector.load %arg16[%c0_54, %c0_55] : memref<1x256xf32, #tpu.memory_space<vmem>>, vector<1x256xf32>
    %127 = vector.broadcast %126 : vector<1x256xf32> to vector<64x256xf32>
    %128 = arith.addf %125, %127 : vector<64x256xf32>
    %129 = arith.mulf %128, %128 : vector<64x256xf32>
    %130 = arith.mulf %128, %129 : vector<64x256xf32>
    %cst_56 = arith.constant 4.471500e-02 : f32
    %131 = vector.broadcast %cst_56 : f32 to vector<64x256xf32>
    %132 = arith.mulf %131, %130 : vector<64x256xf32>
    %133 = arith.addf %128, %132 : vector<64x256xf32>
    %cst_57 = arith.constant 0.797884583 : f32
    %134 = vector.broadcast %cst_57 : f32 to vector<64x256xf32>
    %135 = arith.mulf %134, %133 : vector<64x256xf32>
    %136 = math.tanh %135 : vector<64x256xf32>
    %cst_58 = arith.constant 1.000000e+00 : f32
    %137 = vector.broadcast %cst_58 : f32 to vector<64x256xf32>
    %138 = arith.addf %137, %136 : vector<64x256xf32>
    %cst_59 = arith.constant 5.000000e-01 : f32
    %139 = vector.broadcast %cst_59 : f32 to vector<64x256xf32>
    %140 = arith.mulf %139, %138 : vector<64x256xf32>
    %141 = arith.mulf %128, %140 : vector<64x256xf32>
    %142 = arith.truncf %141 : vector<64x256xf32> to vector<64x256xbf16>
    %c0_60 = arith.constant 0 : index
    %c0_61 = arith.constant 0 : index
    %143 = vector.load %arg17[%c0_60, %c0_61] : memref<256x64xbf16, #tpu.memory_space<vmem>>, vector<256x64xbf16>
    %cst_62 = arith.constant dense<0.000000e+00> : vector<64x64xf32>
    %144 = tpu.matmul %142, %143, %cst_62 {dimension_numbers = #tpu.dot_dimension_numbers<[1], [0], [0], [1], [0, 0, 1, 1], [], []>} : vector<64x256xbf16>, vector<256x64xbf16>, vector<64x64xf32> -> vector<64x64xf32>
    %c0_63 = arith.constant 0 : index
    %c0_64 = arith.constant 0 : index
    %145 = vector.load %arg18[%c0_63, %c0_64] : memref<1x64xf32, #tpu.memory_space<vmem>>, vector<1x64xf32>
    %146 = vector.broadcast %145 : vector<1x64xf32> to vector<64x64xf32>
    %147 = arith.addf %144, %146 : vector<64x64xf32>
    %148 = arith.addf %98, %147 : vector<64x64xf32>
    %c0_65 = arith.constant 0 : index
    %c0_66 = arith.constant 0 : index
    %c0_67 = arith.constant 0 : index
    %149 = vector.load %arg19[%c0_65, %c0_66, %c0_67] : memref<1x64x64xf32, #tpu.memory_space<vmem>>, vector<1x64x64xf32>
    %150 = vector.shape_cast %149 : vector<1x64x64xf32> to vector<64x64xf32>
    %151 = vector.shape_cast %148 : vector<64x64xf32> to vector<1x64x64xf32>
    tpu.vector_store %arg19[%c0_65, %c0_66, %c0_67], %151 {strides = array<i32>} : memref<1x64x64xf32, #tpu.memory_space<vmem>>, vector<1x64x64xf32>,
    return
  }
  func.func @transform_0(%arg0: i32) -> (i32, i32, i32) {
    %c0_i32 = arith.constant 0 : i32
    %c0_i32_0 = arith.constant 0 : i32
    %c0_i32_1 = arith.constant 0 : i32
    return %arg0, %c0_i32, %c0_i32_0 : i32, i32, i32
  }
  func.func @transform_1(%arg0: i32) -> (i32, i32) {
    %c0_i32 = arith.constant 0 : i32
    %c0_i32_0 = arith.constant 0 : i32
    %c0_i32_1 = arith.constant 0 : i32
    return %c0_i32, %c0_i32_0 : i32, i32
  }
  func.func @transform_2(%arg0: i32) -> (i32, i32) {
    %c0_i32 = arith.constant 0 : i32
    %c0_i32_0 = arith.constant 0 : i32
    %c0_i32_1 = arith.constant 0 : i32
    return %c0_i32, %c0_i32_0 : i32, i32
  }
  func.func @transform_3(%arg0: i32) -> (i32, i32) {
    %c0_i32 = arith.constant 0 : i32
    %c0_i32_0 = arith.constant 0 : i32
    %c0_i32_1 = arith.constant 0 : i32
    return %c0_i32, %c0_i32_0 : i32, i32
  }
  func.func @transform_4(%arg0: i32) -> (i32, i32) {
    %c0_i32 = arith.constant 0 : i32
    %c0_i32_0 = arith.constant 0 : i32
    %c0_i32_1 = arith.constant 0 : i32
    return %c0_i32, %c0_i32_0 : i32, i32
  }
  func.func @transform_5(%arg0: i32) -> (i32, i32) {
    %c0_i32 = arith.constant 0 : i32
    %c0_i32_0 = arith.constant 0 : i32
    %c0_i32_1 = arith.constant 0 : i32
    return %c0_i32, %c0_i32_0 : i32, i32
  }
  func.func @transform_6(%arg0: i32) -> (i32, i32) {
    %c0_i32 = arith.constant 0 : i32
    %c0_i32_0 = arith.constant 0 : i32
    %c0_i32_1 = arith.constant 0 : i32
    return %c0_i32, %c0_i32_0 : i32, i32
  }
  func.func @transform_7(%arg0: i32) -> (i32, i32) {
    %c0_i32 = arith.constant 0 : i32
    %c0_i32_0 = arith.constant 0 : i32
    %c0_i32_1 = arith.constant 0 : i32
    return %c0_i32, %c0_i32_0 : i32, i32
  }
  func.func @transform_8(%arg0: i32) -> (i32, i32) {
    %c0_i32 = arith.constant 0 : i32
    %c0_i32_0 = arith.constant 0 : i32
    %c0_i32_1 = arith.constant 0 : i32
    return %c0_i32, %c0_i32_0 : i32, i32
  }
  func.func @transform_9(%arg0: i32) -> (i32, i32) {
    %c0_i32 = arith.constant 0 : i32
    %c0_i32_0 = arith.constant 0 : i32
    %c0_i32_1 = arith.constant 0 : i32
    return %c0_i32, %c0_i32_0 : i32, i32
  }
  func.func @transform_10(%arg0: i32) -> (i32, i32) {
    %c0_i32 = arith.constant 0 : i32
    %c0_i32_0 = arith.constant 0 : i32
    %c0_i32_1 = arith.constant 0 : i32
    return %c0_i32, %c0_i32_0 : i32, i32
  }
  func.func @transform_11(%arg0: i32) -> (i32, i32, i32, i32) {
    %c0_i32 = arith.constant 0 : i32
    %c0_i32_0 = arith.constant 0 : i32
    %c0_i32_1 = arith.constant 0 : i32
    %c0_i32_2 = arith.constant 0 : i32
    %c0_i32_3 = arith.constant 0 : i32
    return %c0_i32, %c0_i32_0, %c0_i32_1, %c0_i32_2 : i32, i32, i32, i32
  }
  func.func @transform_12(%arg0: i32) -> (i32, i32) {
    %c0_i32 = arith.constant 0 : i32
    %c0_i32_0 = arith.constant 0 : i32
    %c0_i32_1 = arith.constant 0 : i32
    return %c0_i32, %c0_i32_0 : i32, i32
  }
  func.func @transform_13(%arg0: i32) -> (i32, i32) {
    %c0_i32 = arith.constant 0 : i32
    %c0_i32_0 = arith.constant 0 : i32
    %c0_i32_1 = arith.constant 0 : i32
    return %c0_i32, %c0_i32_0 : i32, i32
  }
  func.func @transform_14(%arg0: i32) -> (i32, i32) {
    %c0_i32 = arith.constant 0 : i32
    %c0_i32_0 = arith.constant 0 : i32
    %c0_i32_1 = arith.constant 0 : i32
    return %c0_i32, %c0_i32_0 : i32, i32
  }
  func.func @transform_15(%arg0: i32) -> (i32, i32) {
    %c0_i32 = arith.constant 0 : i32
    %c0_i32_0 = arith.constant 0 : i32
    %c0_i32_1 = arith.constant 0 : i32
    return %c0_i32, %c0_i32_0 : i32, i32
  }
  func.func @transform_16(%arg0: i32) -> (i32, i32) {
    %c0_i32 = arith.constant 0 : i32
    %c0_i32_0 = arith.constant 0 : i32
    %c0_i32_1 = arith.constant 0 : i32
    return %c0_i32, %c0_i32_0 : i32, i32
  }
  func.func @transform_17(%arg0: i32) -> (i32, i32) {
    %c0_i32 = arith.constant 0 : i32
    %c0_i32_0 = arith.constant 0 : i32
    %c0_i32_1 = arith.constant 0 : i32
    return %c0_i32, %c0_i32_0 : i32, i32
  }
  func.func @transform_18(%arg0: i32) -> (i32, i32, i32) {
    %c0_i32 = arith.constant 0 : i32
    %c0_i32_0 = arith.constant 0 : i32
    %c0_i32_1 = arith.constant 0 : i32
    return %arg0, %c0_i32, %c0_i32_0 : i32, i32, i32
  }
}

module attributes {stable_mosaic.version = 11 : i64} {
  func.func @_linear_ln_kernel(%arg0: i32, %arg1: memref<32x256xf32, #tpu.memory_space<vmem>>, %arg2: memref<256x128xbf16, #tpu.memory_space<vmem>>, %arg3: memref<1x128xf32, #tpu.memory_space<vmem>>, %arg4: memref<1x128xf32, #tpu.memory_space<vmem>>, %arg5: memref<1x128xf32, #tpu.memory_space<vmem>>, %arg6: memref<32x128xf32, #tpu.memory_space<vmem>>) attributes {dimension_semantics = [#tpu.dimension_semantics<arbitrary>], iteration_bounds = array<i64: 1>, scalar_prefetch = 0 : i64, scratch_operands = 0 : i64, tpu.core_type = #tpu.core_type<tc>, window_params = [{pipeline_mode = #tpu.pipeline_mode<synchronous>, transform_indices = @transform_0, window_bounds = array<i64: 32, 256>}, {pipeline_mode = #tpu.pipeline_mode<synchronous>, transform_indices = @transform_1, window_bounds = array<i64: 256, 128>}, {pipeline_mode = #tpu.pipeline_mode<synchronous>, transform_indices = @transform_2, window_bounds = array<i64: 1, 128>}, {pipeline_mode = #tpu.pipeline_mode<synchronous>, transform_indices = @transform_3, window_bounds = array<i64: 1, 128>}, {pipeline_mode = #tpu.pipeline_mode<synchronous>, transform_indices = @transform_4, window_bounds = array<i64: 1, 128>}, {pipeline_mode = #tpu.pipeline_mode<synchronous>, transform_indices = @transform_5, window_bounds = array<i64: 32, 128>}]} {
    %c0 = arith.constant 0 : index
    %c0_0 = arith.constant 0 : index
    %0 = vector.load %arg1[%c0, %c0_0] : memref<32x256xf32, #tpu.memory_space<vmem>>, vector<32x256xf32>
    %1 = arith.truncf %0 : vector<32x256xf32> to vector<32x256xbf16>
    %c0_1 = arith.constant 0 : index
    %c0_2 = arith.constant 0 : index
    %2 = vector.load %arg2[%c0_1, %c0_2] : memref<256x128xbf16, #tpu.memory_space<vmem>>, vector<256x128xbf16>
    %cst = arith.constant dense<0.000000e+00> : vector<32x128xf32>
    %3 = tpu.matmul %1, %2, %cst {dimension_numbers = #tpu.dot_dimension_numbers<[1], [0], [0], [1], [0, 0, 1, 1], [], []>} : vector<32x256xbf16>, vector<256x128xbf16>, vector<32x128xf32> -> vector<32x128xf32>
    %c0_3 = arith.constant 0 : index
    %c0_4 = arith.constant 0 : index
    %4 = vector.load %arg3[%c0_3, %c0_4] : memref<1x128xf32, #tpu.memory_space<vmem>>, vector<1x128xf32>
    %5 = vector.broadcast %4 : vector<1x128xf32> to vector<32x128xf32>
    %6 = arith.addf %3, %5 : vector<32x128xf32>
    %c0_5 = arith.constant 0 : index
    %c0_6 = arith.constant 0 : index
    %7 = vector.load %arg4[%c0_5, %c0_6] : memref<1x128xf32, #tpu.memory_space<vmem>>, vector<1x128xf32>
    %c0_7 = arith.constant 0 : index
    %c0_8 = arith.constant 0 : index
    %8 = vector.load %arg5[%c0_7, %c0_8] : memref<1x128xf32, #tpu.memory_space<vmem>>, vector<1x128xf32>
    %cst_9 = arith.constant dense<0.000000e+00> : vector<32xf32>
    %9 = vector.multi_reduction <add>, %6, %cst_9 [1] : vector<32x128xf32> to vector<32xf32>
    %10 = vector.shape_cast %9 : vector<32xf32> to vector<32x1xf32>
    %cst_10 = arith.constant 1.280000e+02 : f32
    %11 = vector.broadcast %cst_10 : f32 to vector<32x1xf32>
    %12 = arith.divf %10, %11 : vector<32x1xf32>
    %13 = vector.broadcast %12 : vector<32x1xf32> to vector<32x128xf32>
    %14 = arith.subf %6, %13 : vector<32x128xf32>
    %15 = arith.mulf %14, %14 : vector<32x128xf32>
    %cst_11 = arith.constant dense<0.000000e+00> : vector<32xf32>
    %16 = vector.multi_reduction <add>, %15, %cst_11 [1] : vector<32x128xf32> to vector<32xf32>
    %17 = vector.shape_cast %16 : vector<32xf32> to vector<32x1xf32>
    %cst_12 = arith.constant 1.280000e+02 : f32
    %18 = vector.broadcast %cst_12 : f32 to vector<32x1xf32>
    %19 = arith.divf %17, %18 : vector<32x1xf32>
    %20 = vector.broadcast %12 : vector<32x1xf32> to vector<32x128xf32>
    %21 = arith.subf %6, %20 : vector<32x128xf32>
    %cst_13 = arith.constant 9.99999974E-6 : f32
    %22 = vector.broadcast %cst_13 : f32 to vector<32x1xf32>
    %23 = arith.addf %19, %22 : vector<32x1xf32>
    %24 = math.rsqrt %23 : vector<32x1xf32>
    %25 = vector.broadcast %24 : vector<32x1xf32> to vector<32x128xf32>
    %26 = arith.mulf %21, %25 : vector<32x128xf32>
    %27 = vector.broadcast %7 : vector<1x128xf32> to vector<32x128xf32>
    %28 = arith.mulf %26, %27 : vector<32x128xf32>
    %29 = vector.broadcast %8 : vector<1x128xf32> to vector<32x128xf32>
    %30 = arith.addf %28, %29 : vector<32x128xf32>
    %c0_14 = arith.constant 0 : index
    %c0_15 = arith.constant 0 : index
    %31 = vector.load %arg6[%c0_14, %c0_15] : memref<32x128xf32, #tpu.memory_space<vmem>>, vector<32x128xf32>
    tpu.vector_store %arg6[%c0_14, %c0_15], %30 {strides = array<i32>} : memref<32x128xf32, #tpu.memory_space<vmem>>, vector<32x128xf32>,
    return
  }
  func.func @transform_0(%arg0: i32) -> (i32, i32) {
    %c0_i32 = arith.constant 0 : i32
    %c0_i32_0 = arith.constant 0 : i32
    %c0_i32_1 = arith.constant 0 : i32
    return %c0_i32, %c0_i32_0 : i32, i32
  }
  func.func @transform_1(%arg0: i32) -> (i32, i32) {
    %c0_i32 = arith.constant 0 : i32
    %c0_i32_0 = arith.constant 0 : i32
    %c0_i32_1 = arith.constant 0 : i32
    return %c0_i32, %c0_i32_0 : i32, i32
  }
  func.func @transform_2(%arg0: i32) -> (i32, i32) {
    %c0_i32 = arith.constant 0 : i32
    %c0_i32_0 = arith.constant 0 : i32
    %c0_i32_1 = arith.constant 0 : i32
    return %c0_i32, %c0_i32_0 : i32, i32
  }
  func.func @transform_3(%arg0: i32) -> (i32, i32) {
    %c0_i32 = arith.constant 0 : i32
    %c0_i32_0 = arith.constant 0 : i32
    %c0_i32_1 = arith.constant 0 : i32
    return %c0_i32, %c0_i32_0 : i32, i32
  }
  func.func @transform_4(%arg0: i32) -> (i32, i32) {
    %c0_i32 = arith.constant 0 : i32
    %c0_i32_0 = arith.constant 0 : i32
    %c0_i32_1 = arith.constant 0 : i32
    return %c0_i32, %c0_i32_0 : i32, i32
  }
  func.func @transform_5(%arg0: i32) -> (i32, i32) {
    %c0_i32 = arith.constant 0 : i32
    %c0_i32_0 = arith.constant 0 : i32
    %c0_i32_1 = arith.constant 0 : i32
    return %c0_i32, %c0_i32_0 : i32, i32
  }
}

module attributes {stable_mosaic.version = 11 : i64} {
  func.func @_swin_block_kernel(%arg0: i32, %arg1: memref<1x16x128xf32, #tpu.memory_space<vmem>>, %arg2: memref<1x128xf32, #tpu.memory_space<vmem>>, %arg3: memref<1x128xf32, #tpu.memory_space<vmem>>, %arg4: memref<128x128xbf16, #tpu.memory_space<vmem>>, %arg5: memref<1x128xf32, #tpu.memory_space<vmem>>, %arg6: memref<128x128xbf16, #tpu.memory_space<vmem>>, %arg7: memref<1x128xf32, #tpu.memory_space<vmem>>, %arg8: memref<128x128xbf16, #tpu.memory_space<vmem>>, %arg9: memref<1x128xf32, #tpu.memory_space<vmem>>, %arg10: memref<128x128xbf16, #tpu.memory_space<vmem>>, %arg11: memref<1x128xf32, #tpu.memory_space<vmem>>, %arg12: memref<4x1x16x16xf32, #tpu.memory_space<vmem>>, %arg13: memref<1x128xf32, #tpu.memory_space<vmem>>, %arg14: memref<1x128xf32, #tpu.memory_space<vmem>>, %arg15: memref<128x512xbf16, #tpu.memory_space<vmem>>, %arg16: memref<1x512xf32, #tpu.memory_space<vmem>>, %arg17: memref<512x128xbf16, #tpu.memory_space<vmem>>, %arg18: memref<1x128xf32, #tpu.memory_space<vmem>>, %arg19: memref<1x16x128xf32, #tpu.memory_space<vmem>>) attributes {dimension_semantics = [#tpu.dimension_semantics<parallel>], iteration_bounds = array<i64: 2>, scalar_prefetch = 0 : i64, scratch_operands = 0 : i64, tpu.core_type = #tpu.core_type<tc>, window_params = [{transform_indices = @transform_0, window_bounds = array<i64: 1, 16, 128>}, {pipeline_mode = #tpu.pipeline_mode<synchronous>, transform_indices = @transform_1, window_bounds = array<i64: 1, 128>}, {pipeline_mode = #tpu.pipeline_mode<synchronous>, transform_indices = @transform_2, window_bounds = array<i64: 1, 128>}, {pipeline_mode = #tpu.pipeline_mode<synchronous>, transform_indices = @transform_3, window_bounds = array<i64: 128, 128>}, {pipeline_mode = #tpu.pipeline_mode<synchronous>, transform_indices = @transform_4, window_bounds = array<i64: 1, 128>}, {pipeline_mode = #tpu.pipeline_mode<synchronous>, transform_indices = @transform_5, window_bounds = array<i64: 128, 128>}, {pipeline_mode = #tpu.pipeline_mode<synchronous>, transform_indices = @transform_6, window_bounds = array<i64: 1, 128>}, {pipeline_mode = #tpu.pipeline_mode<synchronous>, transform_indices = @transform_7, window_bounds = array<i64: 128, 128>}, {pipeline_mode = #tpu.pipeline_mode<synchronous>, transform_indices = @transform_8, window_bounds = array<i64: 1, 128>}, {pipeline_mode = #tpu.pipeline_mode<synchronous>, transform_indices = @transform_9, window_bounds = array<i64: 128, 128>}, {pipeline_mode = #tpu.pipeline_mode<synchronous>, transform_indices = @transform_10, window_bounds = array<i64: 1, 128>}, {pipeline_mode = #tpu.pipeline_mode<synchronous>, transform_indices = @transform_11, window_bounds = array<i64: 4, 1, 16, 16>}, {pipeline_mode = #tpu.pipeline_mode<synchronous>, transform_indices = @transform_12, window_bounds = array<i64: 1, 128>}, {pipeline_mode = #tpu.pipeline_mode<synchronous>, transform_indices = @transform_13, window_bounds = array<i64: 1, 128>}, {pipeline_mode = #tpu.pipeline_mode<synchronous>, transform_indices = @transform_14, window_bounds = array<i64: 128, 512>}, {pipeline_mode = #tpu.pipeline_mode<synchronous>, transform_indices = @transform_15, window_bounds = array<i64: 1, 512>}, {pipeline_mode = #tpu.pipeline_mode<synchronous>, transform_indices = @transform_16, window_bounds = array<i64: 512, 128>}, {pipeline_mode = #tpu.pipeline_mode<synchronous>, transform_indices = @transform_17, window_bounds = array<i64: 1, 128>}, {transform_indices = @transform_18, window_bounds = array<i64: 1, 16, 128>}]} {
    %c0 = arith.constant 0 : index
    %c0_0 = arith.constant 0 : index
    %c0_1 = arith.constant 0 : index
    %0 = vector.load %arg1[%c0, %c0_0, %c0_1] : memref<1x16x128xf32, #tpu.memory_space<vmem>>, vector<1x16x128xf32>
    %1 = vector.shape_cast %0 : vector<1x16x128xf32> to vector<16x128xf32>
    %c0_2 = arith.constant 0 : index
    %c0_3 = arith.constant 0 : index
    %2 = vector.load %arg2[%c0_2, %c0_3] : memref<1x128xf32, #tpu.memory_space<vmem>>, vector<1x128xf32>
    %c0_4 = arith.constant 0 : index
    %c0_5 = arith.constant 0 : index
    %3 = vector.load %arg3[%c0_4, %c0_5] : memref<1x128xf32, #tpu.memory_space<vmem>>, vector<1x128xf32>
    %cst = arith.constant dense<0.000000e+00> : vector<16xf32>
    %4 = vector.multi_reduction <add>, %1, %cst [1] : vector<16x128xf32> to vector<16xf32>
    %5 = vector.shape_cast %4 : vector<16xf32> to vector<16x1xf32>
    %cst_6 = arith.constant 1.280000e+02 : f32
    %6 = vector.broadcast %cst_6 : f32 to vector<16x1xf32>
    %7 = arith.divf %5, %6 : vector<16x1xf32>
    %8 = vector.broadcast %7 : vector<16x1xf32> to vector<16x128xf32>
    %9 = arith.subf %1, %8 : vector<16x128xf32>
    %10 = arith.mulf %9, %9 : vector<16x128xf32>
    %cst_7 = arith.constant dense<0.000000e+00> : vector<16xf32>
    %11 = vector.multi_reduction <add>, %10, %cst_7 [1] : vector<16x128xf32> to vector<16xf32>
    %12 = vector.shape_cast %11 : vector<16xf32> to vector<16x1xf32>
    %cst_8 = arith.constant 1.280000e+02 : f32
    %13 = vector.broadcast %cst_8 : f32 to vector<16x1xf32>
    %14 = arith.divf %12, %13 : vector<16x1xf32>
    %15 = vector.broadcast %7 : vector<16x1xf32> to vector<16x128xf32>
    %16 = arith.subf %1, %15 : vector<16x128xf32>
    %cst_9 = arith.constant 9.99999974E-6 : f32
    %17 = vector.broadcast %cst_9 : f32 to vector<16x1xf32>
    %18 = arith.addf %14, %17 : vector<16x1xf32>
    %19 = math.rsqrt %18 : vector<16x1xf32>
    %20 = vector.broadcast %19 : vector<16x1xf32> to vector<16x128xf32>
    %21 = arith.mulf %16, %20 : vector<16x128xf32>
    %22 = vector.broadcast %2 : vector<1x128xf32> to vector<16x128xf32>
    %23 = arith.mulf %21, %22 : vector<16x128xf32>
    %24 = vector.broadcast %3 : vector<1x128xf32> to vector<16x128xf32>
    %25 = arith.addf %23, %24 : vector<16x128xf32>
    %26 = arith.truncf %25 : vector<16x128xf32> to vector<16x128xbf16>
    %c0_10 = arith.constant 0 : index
    %c0_11 = arith.constant 0 : index
    %27 = vector.load %arg4[%c0_10, %c0_11] : memref<128x128xbf16, #tpu.memory_space<vmem>>, vector<128x128xbf16>
    %cst_12 = arith.constant dense<0.000000e+00> : vector<16x128xf32>
    %28 = tpu.matmul %26, %27, %cst_12 {dimension_numbers = #tpu.dot_dimension_numbers<[1], [0], [0], [1], [0, 0, 1, 1], [], []>} : vector<16x128xbf16>, vector<128x128xbf16>, vector<16x128xf32> -> vector<16x128xf32>
    %c0_13 = arith.constant 0 : index
    %c0_14 = arith.constant 0 : index
    %29 = vector.load %arg5[%c0_13, %c0_14] : memref<1x128xf32, #tpu.memory_space<vmem>>, vector<1x128xf32>
    %30 = vector.broadcast %29 : vector<1x128xf32> to vector<16x128xf32>
    %31 = arith.addf %28, %30 : vector<16x128xf32>
    %c0_15 = arith.constant 0 : index
    %c0_16 = arith.constant 0 : index
    %32 = vector.load %arg6[%c0_15, %c0_16] : memref<128x128xbf16, #tpu.memory_space<vmem>>, vector<128x128xbf16>
    %cst_17 = arith.constant dense<0.000000e+00> : vector<16x128xf32>
    %33 = tpu.matmul %26, %32, %cst_17 {dimension_numbers = #tpu.dot_dimension_numbers<[1], [0], [0], [1], [0, 0, 1, 1], [], []>} : vector<16x128xbf16>, vector<128x128xbf16>, vector<16x128xf32> -> vector<16x128xf32>
    %c0_18 = arith.constant 0 : index
    %c0_19 = arith.constant 0 : index
    %34 = vector.load %arg7[%c0_18, %c0_19] : memref<1x128xf32, #tpu.memory_space<vmem>>, vector<1x128xf32>
    %35 = vector.broadcast %34 : vector<1x128xf32> to vector<16x128xf32>
    %36 = arith.addf %33, %35 : vector<16x128xf32>
    %c0_20 = arith.constant 0 : index
    %c0_21 = arith.constant 0 : index
    %37 = vector.load %arg8[%c0_20, %c0_21] : memref<128x128xbf16, #tpu.memory_space<vmem>>, vector<128x128xbf16>
    %cst_22 = arith.constant dense<0.000000e+00> : vector<16x128xf32>
    %38 = tpu.matmul %26, %37, %cst_22 {dimension_numbers = #tpu.dot_dimension_numbers<[1], [0], [0], [1], [0, 0, 1, 1], [], []>} : vector<16x128xbf16>, vector<128x128xbf16>, vector<16x128xf32> -> vector<16x128xf32>
    %c0_23 = arith.constant 0 : index
    %c0_24 = arith.constant 0 : index
    %39 = vector.load %arg9[%c0_23, %c0_24] : memref<1x128xf32, #tpu.memory_space<vmem>>, vector<1x128xf32>
    %40 = vector.broadcast %39 : vector<1x128xf32> to vector<16x128xf32>
    %41 = arith.addf %38, %40 : vector<16x128xf32>
    %42 = arith.truncf %31 : vector<16x128xf32> to vector<16x128xbf16>
    %43 = arith.truncf %36 : vector<16x128xf32> to vector<16x128xbf16>
    %44 = arith.truncf %41 : vector<16x128xf32> to vector<16x128xbf16>
    %c0_25 = arith.constant 0 : index
    %c0_26 = arith.constant 0 : index
    %c0_27 = arith.constant 0 : index
    %c0_28 = arith.constant 0 : index
    %45 = vector.load %arg12[%c0_25, %c0_26, %c0_27, %c0_28] : memref<4x1x16x16xf32, #tpu.memory_space<vmem>>, vector<4x1x16x16xf32>
    %46 = vector.extract_strided_slice %42 {offsets = [0, 0], sizes = [16, 32], strides = [1, 1]} : vector<16x128xbf16> to vector<16x32xbf16>
    %47 = vector.shape_cast %46 : vector<16x32xbf16> to vector<1x16x32xbf16>
    %48 = vector.extract_strided_slice %43 {offsets = [0, 0], sizes = [16, 32], strides = [1, 1]} : vector<16x128xbf16> to vector<16x32xbf16>
    %49 = vector.shape_cast %48 : vector<16x32xbf16> to vector<1x16x32xbf16>
    %50 = vector.extract_strided_slice %44 {offsets = [0, 0], sizes = [16, 32], strides = [1, 1]} : vector<16x128xbf16> to vector<16x32xbf16>
    %51 = vector.shape_cast %50 : vector<16x32xbf16> to vector<1x16x32xbf16>
    "tpu.trace_start"() <{level = 10 : i32, message = "wqd,wkd->wqk"}> : () -> ()
    %cst_29 = arith.constant dense<0.000000e+00> : vector<1x16x16xf32>
    %52 = tpu.matmul %47, %49, %cst_29 {dimension_numbers = #tpu.dot_dimension_numbers<[2], [2], [1], [1], [0, 0, 0, 1, 1, 1], [0], [0]>} : vector<1x16x32xbf16>, vector<1x16x32xbf16>, vector<1x16x16xf32> -> vector<1x16x16xf32>
    "tpu.trace_stop"() : () -> ()
    %53 = vector.extract_strided_slice %45 {offsets = [0, 0, 0, 0], sizes = [1, 1, 16, 16], strides = [1, 1, 1, 1]} : vector<4x1x16x16xf32> to vector<1x1x16x16xf32>
    %54 = vector.shape_cast %53 : vector<1x1x16x16xf32> to vector<1x16x16xf32>
    %55 = arith.addf %52, %54 : vector<1x16x16xf32>
    %cst_30 = arith.constant dense<0xFF800000> : vector<1x16xf32>
    %56 = vector.multi_reduction <maximumf>, %55, %cst_30 [2] : vector<1x16x16xf32> to vector<1x16xf32>
    %57 = vector.shape_cast %56 : vector<1x16xf32> to vector<1x16x1xf32>
    %58 = vector.broadcast %57 : vector<1x16x1xf32> to vector<1x16x16xf32>
    %59 = arith.subf %55, %58 : vector<1x16x16xf32>
    %60 = math.exp %59 : vector<1x16x16xf32>
    %cst_31 = arith.constant dense<0.000000e+00> : vector<1x16xf32>
    %61 = vector.multi_reduction <add>, %60, %cst_31 [2] : vector<1x16x16xf32> to vector<1x16xf32>
    %62 = vector.shape_cast %61 : vector<1x16xf32> to vector<1x16x1xf32>
    %63 = vector.broadcast %62 : vector<1x16x1xf32> to vector<1x16x16xf32>
    %64 = arith.divf %60, %63 : vector<1x16x16xf32>
    %65 = arith.truncf %64 : vector<1x16x16xf32> to vector<1x16x16xbf16>
    "tpu.trace_start"() <{level = 10 : i32, message = "wqk,wkd->wqd"}> : () -> ()
    %cst_32 = arith.constant dense<0.000000e+00> : vector<1x16x32xf32>
    %66 = tpu.matmul %65, %51, %cst_32 {dimension_numbers = #tpu.dot_dimension_numbers<[2], [1], [1], [2], [0, 0, 0, 1, 1, 2], [0], [0]>} : vector<1x16x16xbf16>, vector<1x16x32xbf16>, vector<1x16x32xf32> -> vector<1x16x32xf32>
    "tpu.trace_stop"() : () -> ()
    %67 = vector.shape_cast %66 : vector<1x16x32xf32> to vector<16x32xf32>
    %68 = arith.truncf %67 : vector<16x32xf32> to vector<16x32xbf16>
    %69 = vector.extract_strided_slice %42 {offsets = [0, 32], sizes = [16, 32], strides = [1, 1]} : vector<16x128xbf16> to vector<16x32xbf16>
    %70 = vector.shape_cast %69 : vector<16x32xbf16> to vector<1x16x32xbf16>
    %71 = vector.extract_strided_slice %43 {offsets = [0, 32], sizes = [16, 32], strides = [1, 1]} : vector<16x128xbf16> to vector<16x32xbf16>
    %72 = vector.shape_cast %71 : vector<16x32xbf16> to vector<1x16x32xbf16>
    %73 = vector.extract_strided_slice %44 {offsets = [0, 32], sizes = [16, 32], strides = [1, 1]} : vector<16x128xbf16> to vector<16x32xbf16>
    %74 = vector.shape_cast %73 : vector<16x32xbf16> to vector<1x16x32xbf16>
    "tpu.trace_start"() <{level = 10 : i32, message = "wqd,wkd->wqk"}> : () -> ()
    %cst_33 = arith.constant dense<0.000000e+00> : vector<1x16x16xf32>
    %75 = tpu.matmul %70, %72, %cst_33 {dimension_numbers = #tpu.dot_dimension_numbers<[2], [2], [1], [1], [0, 0, 0, 1, 1, 1], [0], [0]>} : vector<1x16x32xbf16>, vector<1x16x32xbf16>, vector<1x16x16xf32> -> vector<1x16x16xf32>
    "tpu.trace_stop"() : () -> ()
    %76 = vector.extract_strided_slice %45 {offsets = [1, 0, 0, 0], sizes = [1, 1, 16, 16], strides = [1, 1, 1, 1]} : vector<4x1x16x16xf32> to vector<1x1x16x16xf32>
    %77 = vector.shape_cast %76 : vector<1x1x16x16xf32> to vector<1x16x16xf32>
    %78 = arith.addf %75, %77 : vector<1x16x16xf32>
    %cst_34 = arith.constant dense<0xFF800000> : vector<1x16xf32>
    %79 = vector.multi_reduction <maximumf>, %78, %cst_34 [2] : vector<1x16x16xf32> to vector<1x16xf32>
    %80 = vector.shape_cast %79 : vector<1x16xf32> to vector<1x16x1xf32>
    %81 = vector.broadcast %80 : vector<1x16x1xf32> to vector<1x16x16xf32>
    %82 = arith.subf %78, %81 : vector<1x16x16xf32>
    %83 = math.exp %82 : vector<1x16x16xf32>
    %cst_35 = arith.constant dense<0.000000e+00> : vector<1x16xf32>
    %84 = vector.multi_reduction <add>, %83, %cst_35 [2] : vector<1x16x16xf32> to vector<1x16xf32>
    %85 = vector.shape_cast %84 : vector<1x16xf32> to vector<1x16x1xf32>
    %86 = vector.broadcast %85 : vector<1x16x1xf32> to vector<1x16x16xf32>
    %87 = arith.divf %83, %86 : vector<1x16x16xf32>
    %88 = arith.truncf %87 : vector<1x16x16xf32> to vector<1x16x16xbf16>
    "tpu.trace_start"() <{level = 10 : i32, message = "wqk,wkd->wqd"}> : () -> ()
    %cst_36 = arith.constant dense<0.000000e+00> : vector<1x16x32xf32>
    %89 = tpu.matmul %88, %74, %cst_36 {dimension_numbers = #tpu.dot_dimension_numbers<[2], [1], [1], [2], [0, 0, 0, 1, 1, 2], [0], [0]>} : vector<1x16x16xbf16>, vector<1x16x32xbf16>, vector<1x16x32xf32> -> vector<1x16x32xf32>
    "tpu.trace_stop"() : () -> ()
    %90 = vector.shape_cast %89 : vector<1x16x32xf32> to vector<16x32xf32>
    %91 = arith.truncf %90 : vector<16x32xf32> to vector<16x32xbf16>
    %92 = vector.extract_strided_slice %42 {offsets = [0, 64], sizes = [16, 32], strides = [1, 1]} : vector<16x128xbf16> to vector<16x32xbf16>
    %93 = vector.shape_cast %92 : vector<16x32xbf16> to vector<1x16x32xbf16>
    %94 = vector.extract_strided_slice %43 {offsets = [0, 64], sizes = [16, 32], strides = [1, 1]} : vector<16x128xbf16> to vector<16x32xbf16>
    %95 = vector.shape_cast %94 : vector<16x32xbf16> to vector<1x16x32xbf16>
    %96 = vector.extract_strided_slice %44 {offsets = [0, 64], sizes = [16, 32], strides = [1, 1]} : vector<16x128xbf16> to vector<16x32xbf16>
    %97 = vector.shape_cast %96 : vector<16x32xbf16> to vector<1x16x32xbf16>
    "tpu.trace_start"() <{level = 10 : i32, message = "wqd,wkd->wqk"}> : () -> ()
    %cst_37 = arith.constant dense<0.000000e+00> : vector<1x16x16xf32>
    %98 = tpu.matmul %93, %95, %cst_37 {dimension_numbers = #tpu.dot_dimension_numbers<[2], [2], [1], [1], [0, 0, 0, 1, 1, 1], [0], [0]>} : vector<1x16x32xbf16>, vector<1x16x32xbf16>, vector<1x16x16xf32> -> vector<1x16x16xf32>
    "tpu.trace_stop"() : () -> ()
    %99 = vector.extract_strided_slice %45 {offsets = [2, 0, 0, 0], sizes = [1, 1, 16, 16], strides = [1, 1, 1, 1]} : vector<4x1x16x16xf32> to vector<1x1x16x16xf32>
    %100 = vector.shape_cast %99 : vector<1x1x16x16xf32> to vector<1x16x16xf32>
    %101 = arith.addf %98, %100 : vector<1x16x16xf32>
    %cst_38 = arith.constant dense<0xFF800000> : vector<1x16xf32>
    %102 = vector.multi_reduction <maximumf>, %101, %cst_38 [2] : vector<1x16x16xf32> to vector<1x16xf32>
    %103 = vector.shape_cast %102 : vector<1x16xf32> to vector<1x16x1xf32>
    %104 = vector.broadcast %103 : vector<1x16x1xf32> to vector<1x16x16xf32>
    %105 = arith.subf %101, %104 : vector<1x16x16xf32>
    %106 = math.exp %105 : vector<1x16x16xf32>
    %cst_39 = arith.constant dense<0.000000e+00> : vector<1x16xf32>
    %107 = vector.multi_reduction <add>, %106, %cst_39 [2] : vector<1x16x16xf32> to vector<1x16xf32>
    %108 = vector.shape_cast %107 : vector<1x16xf32> to vector<1x16x1xf32>
    %109 = vector.broadcast %108 : vector<1x16x1xf32> to vector<1x16x16xf32>
    %110 = arith.divf %106, %109 : vector<1x16x16xf32>
    %111 = arith.truncf %110 : vector<1x16x16xf32> to vector<1x16x16xbf16>
    "tpu.trace_start"() <{level = 10 : i32, message = "wqk,wkd->wqd"}> : () -> ()
    %cst_40 = arith.constant dense<0.000000e+00> : vector<1x16x32xf32>
    %112 = tpu.matmul %111, %97, %cst_40 {dimension_numbers = #tpu.dot_dimension_numbers<[2], [1], [1], [2], [0, 0, 0, 1, 1, 2], [0], [0]>} : vector<1x16x16xbf16>, vector<1x16x32xbf16>, vector<1x16x32xf32> -> vector<1x16x32xf32>
    "tpu.trace_stop"() : () -> ()
    %113 = vector.shape_cast %112 : vector<1x16x32xf32> to vector<16x32xf32>
    %114 = arith.truncf %113 : vector<16x32xf32> to vector<16x32xbf16>
    %115 = vector.extract_strided_slice %42 {offsets = [0, 96], sizes = [16, 32], strides = [1, 1]} : vector<16x128xbf16> to vector<16x32xbf16>
    %116 = vector.shape_cast %115 : vector<16x32xbf16> to vector<1x16x32xbf16>
    %117 = vector.extract_strided_slice %43 {offsets = [0, 96], sizes = [16, 32], strides = [1, 1]} : vector<16x128xbf16> to vector<16x32xbf16>
    %118 = vector.shape_cast %117 : vector<16x32xbf16> to vector<1x16x32xbf16>
    %119 = vector.extract_strided_slice %44 {offsets = [0, 96], sizes = [16, 32], strides = [1, 1]} : vector<16x128xbf16> to vector<16x32xbf16>
    %120 = vector.shape_cast %119 : vector<16x32xbf16> to vector<1x16x32xbf16>
    "tpu.trace_start"() <{level = 10 : i32, message = "wqd,wkd->wqk"}> : () -> ()
    %cst_41 = arith.constant dense<0.000000e+00> : vector<1x16x16xf32>
    %121 = tpu.matmul %116, %118, %cst_41 {dimension_numbers = #tpu.dot_dimension_numbers<[2], [2], [1], [1], [0, 0, 0, 1, 1, 1], [0], [0]>} : vector<1x16x32xbf16>, vector<1x16x32xbf16>, vector<1x16x16xf32> -> vector<1x16x16xf32>
    "tpu.trace_stop"() : () -> ()
    %122 = vector.extract_strided_slice %45 {offsets = [3, 0, 0, 0], sizes = [1, 1, 16, 16], strides = [1, 1, 1, 1]} : vector<4x1x16x16xf32> to vector<1x1x16x16xf32>
    %123 = vector.shape_cast %122 : vector<1x1x16x16xf32> to vector<1x16x16xf32>
    %124 = arith.addf %121, %123 : vector<1x16x16xf32>
    %cst_42 = arith.constant dense<0xFF800000> : vector<1x16xf32>
    %125 = vector.multi_reduction <maximumf>, %124, %cst_42 [2] : vector<1x16x16xf32> to vector<1x16xf32>
    %126 = vector.shape_cast %125 : vector<1x16xf32> to vector<1x16x1xf32>
    %127 = vector.broadcast %126 : vector<1x16x1xf32> to vector<1x16x16xf32>
    %128 = arith.subf %124, %127 : vector<1x16x16xf32>
    %129 = math.exp %128 : vector<1x16x16xf32>
    %cst_43 = arith.constant dense<0.000000e+00> : vector<1x16xf32>
    %130 = vector.multi_reduction <add>, %129, %cst_43 [2] : vector<1x16x16xf32> to vector<1x16xf32>
    %131 = vector.shape_cast %130 : vector<1x16xf32> to vector<1x16x1xf32>
    %132 = vector.broadcast %131 : vector<1x16x1xf32> to vector<1x16x16xf32>
    %133 = arith.divf %129, %132 : vector<1x16x16xf32>
    %134 = arith.truncf %133 : vector<1x16x16xf32> to vector<1x16x16xbf16>
    "tpu.trace_start"() <{level = 10 : i32, message = "wqk,wkd->wqd"}> : () -> ()
    %cst_44 = arith.constant dense<0.000000e+00> : vector<1x16x32xf32>
    %135 = tpu.matmul %134, %120, %cst_44 {dimension_numbers = #tpu.dot_dimension_numbers<[2], [1], [1], [2], [0, 0, 0, 1, 1, 2], [0], [0]>} : vector<1x16x16xbf16>, vector<1x16x32xbf16>, vector<1x16x32xf32> -> vector<1x16x32xf32>
    "tpu.trace_stop"() : () -> ()
    %136 = vector.shape_cast %135 : vector<1x16x32xf32> to vector<16x32xf32>
    %137 = arith.truncf %136 : vector<16x32xf32> to vector<16x32xbf16>
    %138 = tpu.concatenate %68, %91, %114, %137 in 1 : vector<16x32xbf16>, vector<16x32xbf16>, vector<16x32xbf16>, vector<16x32xbf16> -> vector<16x128xbf16>
    %c0_45 = arith.constant 0 : index
    %c0_46 = arith.constant 0 : index
    %139 = vector.load %arg10[%c0_45, %c0_46] : memref<128x128xbf16, #tpu.memory_space<vmem>>, vector<128x128xbf16>
    %cst_47 = arith.constant dense<0.000000e+00> : vector<16x128xf32>
    %140 = tpu.matmul %138, %139, %cst_47 {dimension_numbers = #tpu.dot_dimension_numbers<[1], [0], [0], [1], [0, 0, 1, 1], [], []>} : vector<16x128xbf16>, vector<128x128xbf16>, vector<16x128xf32> -> vector<16x128xf32>
    %c0_48 = arith.constant 0 : index
    %c0_49 = arith.constant 0 : index
    %141 = vector.load %arg11[%c0_48, %c0_49] : memref<1x128xf32, #tpu.memory_space<vmem>>, vector<1x128xf32>
    %142 = vector.broadcast %141 : vector<1x128xf32> to vector<16x128xf32>
    %143 = arith.addf %140, %142 : vector<16x128xf32>
    %144 = arith.addf %1, %143 : vector<16x128xf32>
    %c0_50 = arith.constant 0 : index
    %c0_51 = arith.constant 0 : index
    %145 = vector.load %arg13[%c0_50, %c0_51] : memref<1x128xf32, #tpu.memory_space<vmem>>, vector<1x128xf32>
    %c0_52 = arith.constant 0 : index
    %c0_53 = arith.constant 0 : index
    %146 = vector.load %arg14[%c0_52, %c0_53] : memref<1x128xf32, #tpu.memory_space<vmem>>, vector<1x128xf32>
    %cst_54 = arith.constant dense<0.000000e+00> : vector<16xf32>
    %147 = vector.multi_reduction <add>, %144, %cst_54 [1] : vector<16x128xf32> to vector<16xf32>
    %148 = vector.shape_cast %147 : vector<16xf32> to vector<16x1xf32>
    %cst_55 = arith.constant 1.280000e+02 : f32
    %149 = vector.broadcast %cst_55 : f32 to vector<16x1xf32>
    %150 = arith.divf %148, %149 : vector<16x1xf32>
    %151 = vector.broadcast %150 : vector<16x1xf32> to vector<16x128xf32>
    %152 = arith.subf %144, %151 : vector<16x128xf32>
    %153 = arith.mulf %152, %152 : vector<16x128xf32>
    %cst_56 = arith.constant dense<0.000000e+00> : vector<16xf32>
    %154 = vector.multi_reduction <add>, %153, %cst_56 [1] : vector<16x128xf32> to vector<16xf32>
    %155 = vector.shape_cast %154 : vector<16xf32> to vector<16x1xf32>
    %cst_57 = arith.constant 1.280000e+02 : f32
    %156 = vector.broadcast %cst_57 : f32 to vector<16x1xf32>
    %157 = arith.divf %155, %156 : vector<16x1xf32>
    %158 = vector.broadcast %150 : vector<16x1xf32> to vector<16x128xf32>
    %159 = arith.subf %144, %158 : vector<16x128xf32>
    %cst_58 = arith.constant 9.99999974E-6 : f32
    %160 = vector.broadcast %cst_58 : f32 to vector<16x1xf32>
    %161 = arith.addf %157, %160 : vector<16x1xf32>
    %162 = math.rsqrt %161 : vector<16x1xf32>
    %163 = vector.broadcast %162 : vector<16x1xf32> to vector<16x128xf32>
    %164 = arith.mulf %159, %163 : vector<16x128xf32>
    %165 = vector.broadcast %145 : vector<1x128xf32> to vector<16x128xf32>
    %166 = arith.mulf %164, %165 : vector<16x128xf32>
    %167 = vector.broadcast %146 : vector<1x128xf32> to vector<16x128xf32>
    %168 = arith.addf %166, %167 : vector<16x128xf32>
    %169 = arith.truncf %168 : vector<16x128xf32> to vector<16x128xbf16>
    %c0_59 = arith.constant 0 : index
    %c0_60 = arith.constant 0 : index
    %170 = vector.load %arg15[%c0_59, %c0_60] : memref<128x512xbf16, #tpu.memory_space<vmem>>, vector<128x512xbf16>
    %cst_61 = arith.constant dense<0.000000e+00> : vector<16x512xf32>
    %171 = tpu.matmul %169, %170, %cst_61 {dimension_numbers = #tpu.dot_dimension_numbers<[1], [0], [0], [1], [0, 0, 1, 1], [], []>} : vector<16x128xbf16>, vector<128x512xbf16>, vector<16x512xf32> -> vector<16x512xf32>
    %c0_62 = arith.constant 0 : index
    %c0_63 = arith.constant 0 : index
    %172 = vector.load %arg16[%c0_62, %c0_63] : memref<1x512xf32, #tpu.memory_space<vmem>>, vector<1x512xf32>
    %173 = vector.broadcast %172 : vector<1x512xf32> to vector<16x512xf32>
    %174 = arith.addf %171, %173 : vector<16x512xf32>
    %175 = arith.mulf %174, %174 : vector<16x512xf32>
    %176 = arith.mulf %174, %175 : vector<16x512xf32>
    %cst_64 = arith.constant 4.471500e-02 : f32
    %177 = vector.broadcast %cst_64 : f32 to vector<16x512xf32>
    %178 = arith.mulf %177, %176 : vector<16x512xf32>
    %179 = arith.addf %174, %178 : vector<16x512xf32>
    %cst_65 = arith.constant 0.797884583 : f32
    %180 = vector.broadcast %cst_65 : f32 to vector<16x512xf32>
    %181 = arith.mulf %180, %179 : vector<16x512xf32>
    %182 = math.tanh %181 : vector<16x512xf32>
    %cst_66 = arith.constant 1.000000e+00 : f32
    %183 = vector.broadcast %cst_66 : f32 to vector<16x512xf32>
    %184 = arith.addf %183, %182 : vector<16x512xf32>
    %cst_67 = arith.constant 5.000000e-01 : f32
    %185 = vector.broadcast %cst_67 : f32 to vector<16x512xf32>
    %186 = arith.mulf %185, %184 : vector<16x512xf32>
    %187 = arith.mulf %174, %186 : vector<16x512xf32>
    %188 = arith.truncf %187 : vector<16x512xf32> to vector<16x512xbf16>
    %c0_68 = arith.constant 0 : index
    %c0_69 = arith.constant 0 : index
    %189 = vector.load %arg17[%c0_68, %c0_69] : memref<512x128xbf16, #tpu.memory_space<vmem>>, vector<512x128xbf16>
    %cst_70 = arith.constant dense<0.000000e+00> : vector<16x128xf32>
    %190 = tpu.matmul %188, %189, %cst_70 {dimension_numbers = #tpu.dot_dimension_numbers<[1], [0], [0], [1], [0, 0, 1, 1], [], []>} : vector<16x512xbf16>, vector<512x128xbf16>, vector<16x128xf32> -> vector<16x128xf32>
    %c0_71 = arith.constant 0 : index
    %c0_72 = arith.constant 0 : index
    %191 = vector.load %arg18[%c0_71, %c0_72] : memref<1x128xf32, #tpu.memory_space<vmem>>, vector<1x128xf32>
    %192 = vector.broadcast %191 : vector<1x128xf32> to vector<16x128xf32>
    %193 = arith.addf %190, %192 : vector<16x128xf32>
    %194 = arith.addf %144, %193 : vector<16x128xf32>
    %c0_73 = arith.constant 0 : index
    %c0_74 = arith.constant 0 : index
    %c0_75 = arith.constant 0 : index
    %195 = vector.load %arg19[%c0_73, %c0_74, %c0_75] : memref<1x16x128xf32, #tpu.memory_space<vmem>>, vector<1x16x128xf32>
    %196 = vector.shape_cast %195 : vector<1x16x128xf32> to vector<16x128xf32>
    %197 = vector.shape_cast %194 : vector<16x128xf32> to vector<1x16x128xf32>
    tpu.vector_store %arg19[%c0_73, %c0_74, %c0_75], %197 {strides = array<i32>} : memref<1x16x128xf32, #tpu.memory_space<vmem>>, vector<1x16x128xf32>,
    return
  }
  func.func @transform_0(%arg0: i32) -> (i32, i32, i32) {
    %c0_i32 = arith.constant 0 : i32
    %c0_i32_0 = arith.constant 0 : i32
    %c0_i32_1 = arith.constant 0 : i32
    return %arg0, %c0_i32, %c0_i32_0 : i32, i32, i32
  }
  func.func @transform_1(%arg0: i32) -> (i32, i32) {
    %c0_i32 = arith.constant 0 : i32
    %c0_i32_0 = arith.constant 0 : i32
    %c0_i32_1 = arith.constant 0 : i32
    return %c0_i32, %c0_i32_0 : i32, i32
  }
  func.func @transform_2(%arg0: i32) -> (i32, i32) {
    %c0_i32 = arith.constant 0 : i32
    %c0_i32_0 = arith.constant 0 : i32
    %c0_i32_1 = arith.constant 0 : i32
    return %c0_i32, %c0_i32_0 : i32, i32
  }
  func.func @transform_3(%arg0: i32) -> (i32, i32) {
    %c0_i32 = arith.constant 0 : i32
    %c0_i32_0 = arith.constant 0 : i32
    %c0_i32_1 = arith.constant 0 : i32
    return %c0_i32, %c0_i32_0 : i32, i32
  }
  func.func @transform_4(%arg0: i32) -> (i32, i32) {
    %c0_i32 = arith.constant 0 : i32
    %c0_i32_0 = arith.constant 0 : i32
    %c0_i32_1 = arith.constant 0 : i32
    return %c0_i32, %c0_i32_0 : i32, i32
  }
  func.func @transform_5(%arg0: i32) -> (i32, i32) {
    %c0_i32 = arith.constant 0 : i32
    %c0_i32_0 = arith.constant 0 : i32
    %c0_i32_1 = arith.constant 0 : i32
    return %c0_i32, %c0_i32_0 : i32, i32
  }
  func.func @transform_6(%arg0: i32) -> (i32, i32) {
    %c0_i32 = arith.constant 0 : i32
    %c0_i32_0 = arith.constant 0 : i32
    %c0_i32_1 = arith.constant 0 : i32
    return %c0_i32, %c0_i32_0 : i32, i32
  }
  func.func @transform_7(%arg0: i32) -> (i32, i32) {
    %c0_i32 = arith.constant 0 : i32
    %c0_i32_0 = arith.constant 0 : i32
    %c0_i32_1 = arith.constant 0 : i32
    return %c0_i32, %c0_i32_0 : i32, i32
  }
  func.func @transform_8(%arg0: i32) -> (i32, i32) {
    %c0_i32 = arith.constant 0 : i32
    %c0_i32_0 = arith.constant 0 : i32
    %c0_i32_1 = arith.constant 0 : i32
    return %c0_i32, %c0_i32_0 : i32, i32
  }
  func.func @transform_9(%arg0: i32) -> (i32, i32) {
    %c0_i32 = arith.constant 0 : i32
    %c0_i32_0 = arith.constant 0 : i32
    %c0_i32_1 = arith.constant 0 : i32
    return %c0_i32, %c0_i32_0 : i32, i32
  }
  func.func @transform_10(%arg0: i32) -> (i32, i32) {
    %c0_i32 = arith.constant 0 : i32
    %c0_i32_0 = arith.constant 0 : i32
    %c0_i32_1 = arith.constant 0 : i32
    return %c0_i32, %c0_i32_0 : i32, i32
  }
  func.func @transform_11(%arg0: i32) -> (i32, i32, i32, i32) {
    %c0_i32 = arith.constant 0 : i32
    %c0_i32_0 = arith.constant 0 : i32
    %c0_i32_1 = arith.constant 0 : i32
    %c0_i32_2 = arith.constant 0 : i32
    %c0_i32_3 = arith.constant 0 : i32
    return %c0_i32, %c0_i32_0, %c0_i32_1, %c0_i32_2 : i32, i32, i32, i32
  }
  func.func @transform_12(%arg0: i32) -> (i32, i32) {
    %c0_i32 = arith.constant 0 : i32
    %c0_i32_0 = arith.constant 0 : i32
    %c0_i32_1 = arith.constant 0 : i32
    return %c0_i32, %c0_i32_0 : i32, i32
  }
  func.func @transform_13(%arg0: i32) -> (i32, i32) {
    %c0_i32 = arith.constant 0 : i32
    %c0_i32_0 = arith.constant 0 : i32
    %c0_i32_1 = arith.constant 0 : i32
    return %c0_i32, %c0_i32_0 : i32, i32
  }
  func.func @transform_14(%arg0: i32) -> (i32, i32) {
    %c0_i32 = arith.constant 0 : i32
    %c0_i32_0 = arith.constant 0 : i32
    %c0_i32_1 = arith.constant 0 : i32
    return %c0_i32, %c0_i32_0 : i32, i32
  }
  func.func @transform_15(%arg0: i32) -> (i32, i32) {
    %c0_i32 = arith.constant 0 : i32
    %c0_i32_0 = arith.constant 0 : i32
    %c0_i32_1 = arith.constant 0 : i32
    return %c0_i32, %c0_i32_0 : i32, i32
  }
  func.func @transform_16(%arg0: i32) -> (i32, i32) {
    %c0_i32 = arith.constant 0 : i32
    %c0_i32_0 = arith.constant 0 : i32
    %c0_i32_1 = arith.constant 0 : i32
    return %c0_i32, %c0_i32_0 : i32, i32
  }
  func.func @transform_17(%arg0: i32) -> (i32, i32) {
    %c0_i32 = arith.constant 0 : i32
    %c0_i32_0 = arith.constant 0 : i32
    %c0_i32_1 = arith.constant 0 : i32
    return %c0_i32, %c0_i32_0 : i32, i32
  }
  func.func @transform_18(%arg0: i32) -> (i32, i32, i32) {
    %c0_i32 = arith.constant 0 : i32
    %c0_i32_0 = arith.constant 0 : i32
    %c0_i32_1 = arith.constant 0 : i32
    return %arg0, %c0_i32, %c0_i32_0 : i32, i32, i32
  }
}

module attributes {stable_mosaic.version = 11 : i64} {
  func.func @_norm_decoder_kernel(%arg0: i32, %arg1: memref<32x128xf32, #tpu.memory_space<vmem>>, %arg2: memref<1x128xf32, #tpu.memory_space<vmem>>, %arg3: memref<1x128xf32, #tpu.memory_space<vmem>>, %arg4: memref<128x192xbf16, #tpu.memory_space<vmem>>, %arg5: memref<1x192xf32, #tpu.memory_space<vmem>>, %arg6: memref<32x192xf32, #tpu.memory_space<vmem>>) attributes {dimension_semantics = [#tpu.dimension_semantics<arbitrary>], iteration_bounds = array<i64: 1>, scalar_prefetch = 0 : i64, scratch_operands = 0 : i64, tpu.core_type = #tpu.core_type<tc>, window_params = [{pipeline_mode = #tpu.pipeline_mode<synchronous>, transform_indices = @transform_0, window_bounds = array<i64: 32, 128>}, {pipeline_mode = #tpu.pipeline_mode<synchronous>, transform_indices = @transform_1, window_bounds = array<i64: 1, 128>}, {pipeline_mode = #tpu.pipeline_mode<synchronous>, transform_indices = @transform_2, window_bounds = array<i64: 1, 128>}, {pipeline_mode = #tpu.pipeline_mode<synchronous>, transform_indices = @transform_3, window_bounds = array<i64: 128, 192>}, {pipeline_mode = #tpu.pipeline_mode<synchronous>, transform_indices = @transform_4, window_bounds = array<i64: 1, 192>}, {pipeline_mode = #tpu.pipeline_mode<synchronous>, transform_indices = @transform_5, window_bounds = array<i64: 32, 192>}]} {
    %c0 = arith.constant 0 : index
    %c0_0 = arith.constant 0 : index
    %0 = vector.load %arg1[%c0, %c0_0] : memref<32x128xf32, #tpu.memory_space<vmem>>, vector<32x128xf32>
    %c0_1 = arith.constant 0 : index
    %c0_2 = arith.constant 0 : index
    %1 = vector.load %arg2[%c0_1, %c0_2] : memref<1x128xf32, #tpu.memory_space<vmem>>, vector<1x128xf32>
    %c0_3 = arith.constant 0 : index
    %c0_4 = arith.constant 0 : index
    %2 = vector.load %arg3[%c0_3, %c0_4] : memref<1x128xf32, #tpu.memory_space<vmem>>, vector<1x128xf32>
    %cst = arith.constant dense<0.000000e+00> : vector<32xf32>
    %3 = vector.multi_reduction <add>, %0, %cst [1] : vector<32x128xf32> to vector<32xf32>
    %4 = vector.shape_cast %3 : vector<32xf32> to vector<32x1xf32>
    %cst_5 = arith.constant 1.280000e+02 : f32
    %5 = vector.broadcast %cst_5 : f32 to vector<32x1xf32>
    %6 = arith.divf %4, %5 : vector<32x1xf32>
    %7 = vector.broadcast %6 : vector<32x1xf32> to vector<32x128xf32>
    %8 = arith.subf %0, %7 : vector<32x128xf32>
    %9 = arith.mulf %8, %8 : vector<32x128xf32>
    %cst_6 = arith.constant dense<0.000000e+00> : vector<32xf32>
    %10 = vector.multi_reduction <add>, %9, %cst_6 [1] : vector<32x128xf32> to vector<32xf32>
    %11 = vector.shape_cast %10 : vector<32xf32> to vector<32x1xf32>
    %cst_7 = arith.constant 1.280000e+02 : f32
    %12 = vector.broadcast %cst_7 : f32 to vector<32x1xf32>
    %13 = arith.divf %11, %12 : vector<32x1xf32>
    %14 = vector.broadcast %6 : vector<32x1xf32> to vector<32x128xf32>
    %15 = arith.subf %0, %14 : vector<32x128xf32>
    %cst_8 = arith.constant 9.99999974E-6 : f32
    %16 = vector.broadcast %cst_8 : f32 to vector<32x1xf32>
    %17 = arith.addf %13, %16 : vector<32x1xf32>
    %18 = math.rsqrt %17 : vector<32x1xf32>
    %19 = vector.broadcast %18 : vector<32x1xf32> to vector<32x128xf32>
    %20 = arith.mulf %15, %19 : vector<32x128xf32>
    %21 = vector.broadcast %1 : vector<1x128xf32> to vector<32x128xf32>
    %22 = arith.mulf %20, %21 : vector<32x128xf32>
    %23 = vector.broadcast %2 : vector<1x128xf32> to vector<32x128xf32>
    %24 = arith.addf %22, %23 : vector<32x128xf32>
    %25 = arith.truncf %24 : vector<32x128xf32> to vector<32x128xbf16>
    %c0_9 = arith.constant 0 : index
    %c0_10 = arith.constant 0 : index
    %26 = vector.load %arg4[%c0_9, %c0_10] : memref<128x192xbf16, #tpu.memory_space<vmem>>, vector<128x192xbf16>
    %cst_11 = arith.constant dense<0.000000e+00> : vector<32x192xf32>
    %27 = tpu.matmul %25, %26, %cst_11 {dimension_numbers = #tpu.dot_dimension_numbers<[1], [0], [0], [1], [0, 0, 1, 1], [], []>} : vector<32x128xbf16>, vector<128x192xbf16>, vector<32x192xf32> -> vector<32x192xf32>
    %c0_12 = arith.constant 0 : index
    %c0_13 = arith.constant 0 : index
    %28 = vector.load %arg5[%c0_12, %c0_13] : memref<1x192xf32, #tpu.memory_space<vmem>>, vector<1x192xf32>
    %29 = vector.broadcast %28 : vector<1x192xf32> to vector<32x192xf32>
    %30 = arith.addf %27, %29 : vector<32x192xf32>
    %c0_14 = arith.constant 0 : index
    %c0_15 = arith.constant 0 : index
    %31 = vector.load %arg6[%c0_14, %c0_15] : memref<32x192xf32, #tpu.memory_space<vmem>>, vector<32x192xf32>
    tpu.vector_store %arg6[%c0_14, %c0_15], %30 {strides = array<i32>} : memref<32x192xf32, #tpu.memory_space<vmem>>, vector<32x192xf32>,
    return
  }
  func.func @transform_0(%arg0: i32) -> (i32, i32) {
    %c0_i32 = arith.constant 0 : i32
    %c0_i32_0 = arith.constant 0 : i32
    %c0_i32_1 = arith.constant 0 : i32
    return %c0_i32, %c0_i32_0 : i32, i32
  }
  func.func @transform_1(%arg0: i32) -> (i32, i32) {
    %c0_i32 = arith.constant 0 : i32
    %c0_i32_0 = arith.constant 0 : i32
    %c0_i32_1 = arith.constant 0 : i32
    return %c0_i32, %c0_i32_0 : i32, i32
  }
  func.func @transform_2(%arg0: i32) -> (i32, i32) {
    %c0_i32 = arith.constant 0 : i32
    %c0_i32_0 = arith.constant 0 : i32
    %c0_i32_1 = arith.constant 0 : i32
    return %c0_i32, %c0_i32_0 : i32, i32
  }
  func.func @transform_3(%arg0: i32) -> (i32, i32) {
    %c0_i32 = arith.constant 0 : i32
    %c0_i32_0 = arith.constant 0 : i32
    %c0_i32_1 = arith.constant 0 : i32
    return %c0_i32, %c0_i32_0 : i32, i32
  }
  func.func @transform_4(%arg0: i32) -> (i32, i32) {
    %c0_i32 = arith.constant 0 : i32
    %c0_i32_0 = arith.constant 0 : i32
    %c0_i32_1 = arith.constant 0 : i32
    return %c0_i32, %c0_i32_0 : i32, i32
  }
  func.func @transform_5(%arg0: i32) -> (i32, i32) {
    %c0_i32 = arith.constant 0 : i32
    %c0_i32_0 = arith.constant 0 : i32
    %c0_i32_1 = arith.constant 0 : i32
    return %c0_i32, %c0_i32_0 : i32, i32
  }
}

module attributes {stable_mosaic.version = 11 : i64} {
  func.func @_l1_masked_loss_kernel(%arg0: memref<128x48xf32, #tpu.memory_space<vmem>>, %arg1: memref<128x48xf32, #tpu.memory_space<vmem>>, %arg2: memref<128x1xf32, #tpu.memory_space<vmem>>, %arg3: memref<1xf32, #tpu.memory_space<smem>>) attributes {dimension_semantics = [], scalar_prefetch = 0 : i64, scratch_operands = 0 : i64, tpu.core_type = #tpu.core_type<tc>} {
    %c0 = arith.constant 0 : index
    %c0_0 = arith.constant 0 : index
    %0 = vector.load %arg2[%c0, %c0_0] : memref<128x1xf32, #tpu.memory_space<vmem>>, vector<128x1xf32>
    %c0_1 = arith.constant 0 : index
    %c0_2 = arith.constant 0 : index
    %1 = vector.load %arg0[%c0_1, %c0_2] : memref<128x48xf32, #tpu.memory_space<vmem>>, vector<128x48xf32>
    %c0_3 = arith.constant 0 : index
    %c0_4 = arith.constant 0 : index
    %2 = vector.load %arg1[%c0_3, %c0_4] : memref<128x48xf32, #tpu.memory_space<vmem>>, vector<128x48xf32>
    %3 = arith.subf %1, %2 : vector<128x48xf32>
    %4 = math.absf %3 : vector<128x48xf32>
    %5 = vector.broadcast %0 : vector<128x1xf32> to vector<128x48xf32>
    %6 = arith.mulf %4, %5 : vector<128x48xf32>
    %7 = vector.shape_cast %6 : vector<128x48xf32> to vector<1x128x48xf32>
    %cst = arith.constant dense<0.000000e+00> : vector<1xf32>
    %8 = vector.multi_reduction <add>, %7, %cst [1, 2] : vector<1x128x48xf32> to vector<1xf32>
    %9 = vector.shape_cast %8 : vector<1xf32> to vector<1x1x1xf32>
    %10 = vector.extract %9[0, 0, 0] : f32 from vector<1x1x1xf32>
    %11 = vector.shape_cast %0 : vector<128x1xf32> to vector<1x128x1xf32>
    %cst_5 = arith.constant dense<0.000000e+00> : vector<1xf32>
    %12 = vector.multi_reduction <add>, %11, %cst_5 [1, 2] : vector<1x128x1xf32> to vector<1xf32>
    %13 = vector.shape_cast %12 : vector<1xf32> to vector<1x1x1xf32>
    %14 = vector.extract %13[0, 0, 0] : f32 from vector<1x1x1xf32>
    %cst_6 = arith.constant 4.800000e+01 : f32
    %15 = arith.mulf %14, %cst_6 : f32
    %16 = arith.divf %10, %15 : f32
    %c0_7 = arith.constant 0 : index
    %17 = memref.load %arg3[%c0_7] : memref<1xf32, #tpu.memory_space<smem>>
    memref.store %16, %arg3[%c0_7] : memref<1xf32, #tpu.memory_space<smem>>
    return
  }
}

</mosaic_0001>

<bundles_post_ra>
// kernel: simmim_forward.8
= control target key start
LH: loop header
LB: loop body
LE: loop exit
PB: predicated region body
PF: predicated region fallthrough
CT: control target
= control target key end

     0   :  { %v819_v1 = vmov 0   ;;  %vm82_vm0 = vcmask 392192   ;;  %vm206_vm1 = vcmask 523264   ;;  %s1392_s1 = inlined_call_operand.vmem [shape: bf16[48,64], index: 1, kind: input, shape index: {}]   ;;  %s1393_s0 = inlined_call_operand.vmem [shape: f32[128,48], index: 0, kind: input, shape index: {}]   ;;  %s1394_s5 = inlined_call_operand.vmem [shape: f32[128,1], index: 5, kind: input, shape index: {}]   ;;  %s1395_s2 = inlined_call_operand.vmem [shape: f32[1,64], index: 2, kind: input, shape index: {}]   ;;  %s1396_s3 = inlined_call_operand.vmem [shape: f32[1,64], index: 3, kind: input, shape index: {}]   ;;  %s1397_s4 = inlined_call_operand.vmem [shape: f32[1,64], index: 4, kind: input, shape index: {}]   ;;  %s1398_s6 = inlined_call_operand.vmem [shape: f32[1,64], index: 6, kind: input, shape index: {}]   ;;  %s1399_s7 = inlined_call_operand.vmem [shape: f32[128,64], index: 7, kind: output, shape index: {}]  }
   0x1   :  { %v784_v0 = vld [vmem:[%s1392_s1] sm:$0xff]   ;;  %783 = vset.pattern.permute.xlu1 %v819_v1  ;;  %782 = vset.pattern.permute.xlu0 %v819_v1  ;;  %v785_v2 = vld [vmem:[%s1392_s1 + $0x8] sm:$0xff]   ;;  %v786_v6 = vld [vmem:[%s1392_s1 + $0x10] sm:$0xff]  }
   0x2   :  { %753 = vmatprep.subr.bf16.mxu0 %v784_v0  ;;  %775 = vmatprep.subr.bf16.mxu1 %v784_v0  ;;  %v27_v3 = vld [vmem:[%s1393_s0] sm:$0xff]  ;;  %v28_v4 = vld [vmem:[%s1393_s0 + $0x8] sm:$0xff]  ;;  %v29_v10 = vld [vmem:[%s1393_s0 + $0x10] sm:$0xff] }
   0x3   :  { %754 = vmatpush3.bf16.msra.mxu0 %v784_v0  ;;  %778 = vmatpush3.bf16.msra.mxu1 %v784_v0  ;;  %v35_v5 = vld [vmem:[%s1393_s0 + $0x40] sm:$0xff]  ;;  %v43_v7 = vpack.c.bf16 %v28_v4, %v27_v3  ;;  %v36_v8 = vld [vmem:[%s1393_s0 + $0x48] sm:$0xff]  ;;  %v30_v11 = vld [vmem:[%s1393_s0 + $0x18] sm:$0xff] }
   0x4   :  { %755 = vmatprep.subr.bf16.mxu0 %v785_v2  ;;  %776 = vmatprep.subr.bf16.mxu1 %v785_v2  ;;  %v47_v9 = vpack.c.bf16 %v36_v8, %v35_v5  ;;  %v37_v12 = vld [vmem:[%s1393_s0 + $0x50] sm:$0xff]  ;;  %v38_v13 = vld [vmem:[%s1393_s0 + $0x58] sm:$0xff]  ;;  %v31_v14 = vld [vmem:[%s1393_s0 + $0x20] sm:$0xff]  ;;  %v44_v21 = vpack.c.bf16 %v30_v11, %v29_v10 }
   0x5   :  { %759 = vmatprep.mubr.msk.bf16.mxu0 %vm82_vm0, %v43_v7  ;;  %v32_v15 = vld [vmem:[%s1393_s0 + $0x28] sm:$0xff]  ;;  %v39_v16 = vld [vmem:[%s1393_s0 + $0x60] sm:$0xff]  ;;  %v913_v20 = vld [vmem:[%s1394_s5 + $0x10] sm:$0xff]  ;;  %v48_v22 = vpack.c.bf16 %v38_v13, %v37_v12 }
   0x6   :  { %v40_v17 = vld [vmem:[%s1393_s0 + $0x68] sm:$0xff]  ;;  %767 = vmatprep.mubr.msk.bf16.mxu1 %vm82_vm0, %v47_v9  ;;  %v45_v23 = vpack.c.bf16 %v32_v15, %v31_v14  ;;  %v478_v25 = vsub.f32 1.0, %v913_v20  ;;  %v460_v26 = vld [vmem:[%s1394_s5] sm:$0xff]  ;;  %v463_v27 = vld [vmem:[%s1394_s5 + $0x18] sm:$0xff] }
   0x7   :  { %756 = vmatpush3.bf16.msra.mxu0 %v785_v2  ;;  %779 = vmatpush3.bf16.msra.mxu1 %v785_v2  ;;  %v461_v18 = vld [vmem:[%s1394_s5 + $0x8] sm:$0xff]  ;;  %v49_v24 = vpack.c.bf16 %v40_v17, %v39_v16  ;;  %v476_v28 = vsub.f32 1.0, %v460_v26  ;;  %v33_v30 = vld [vmem:[%s1393_s0 + $0x30] sm:$0xff]  ;;  %v34_v31 = vld [vmem:[%s1393_s0 + $0x38] sm:$0xff]  ;;  %v479_v34 = vsub.f32 1.0, %v463_v27 }
   0x8   :  { %757 = vmatprep.subr.bf16.mxu0 %v786_v6  ;;  %777 = vmatprep.subr.bf16.mxu1 %v786_v6  ;;  %v477_v19 = vsub.f32 1.0, %v461_v18  ;;  %v469_v29 = vld [vmem:[%s1394_s5 + $0x48] sm:$0xff]  ;;  %v41_v32 = vld [vmem:[%s1393_s0 + $0x70] sm:$0xff]  ;;  %v42_v33 = vld [vmem:[%s1393_s0 + $0x78] sm:$0xff]  ;;  %v46_v38 = vpack.c.bf16 %v34_v31, %v33_v30 }
   0x9   :  { %494 = vperm.xlu0 %782, %v476_v28   ;;  %v485_v35 = vsub.f32 1.0, %v469_v29  ;;  %v464_v36 = vld [vmem:[%s1394_s5 + $0x20] sm:$0xff]  ;;  %v471_v37 = vld [vmem:[%s1394_s5 + $0x58] sm:$0xff]  ;;  %v50_v39 = vpack.c.bf16 %v42_v33, %v41_v32  ;;  %v465_v42 = vld [vmem:[%s1394_s5 + $0x28] sm:$0xff] }
   0xa   :  { %499 = vperm.xlu1 %783, %v477_v19   ;;  %v480_v40 = vsub.f32 1.0, %v464_v36  ;;  %v487_v41 = vsub.f32 1.0, %v471_v37  ;;  %v953_v43 = vld [vmem:[%s1394_s5 + $0x68] sm:$0xff]  ;;  %v481_v44 = vsub.f32 1.0, %v465_v42  ;;  %v466_v46 = vld [vmem:[%s1394_s5 + $0x30] sm:$0xff]  ;;  %v964_v47 = vld [vmem:[%s1394_s5 + $0x78] sm:$0xff] }
   0xb   :  { %758 = vmatpush3.bf16.msra.mxu0 %v786_v6  ;;  %780 = vmatpush3.bf16.msra.mxu1 %v786_v6  ;;  %v489_v45 = vsub.f32 1.0, %v953_v43  ;;  %v482_v48 = vsub.f32 1.0, %v466_v46  ;;  %v491_v49 = vsub.f32 1.0, %v964_v47  ;;  %v467_v50 = vld [vmem:[%s1394_s5 + $0x38] sm:$0xff]  ;;  %v468_v52 = vld [vmem:[%s1394_s5 + $0x40] sm:$0xff]  ;;  %v470_v54 = vld [vmem:[%s1394_s5 + $0x50] sm:$0xff] }
   0xc   :  { %v483_v51 = vsub.f32 1.0, %v467_v50  ;;  %v484_v53 = vsub.f32 1.0, %v468_v52  ;;  %v486_v55 = vsub.f32 1.0, %v470_v54  ;;  %v979_v56 = vld [vmem:[%s1394_s5 + $0x60] sm:$0xff]  ;;  %v985_v58 = vld [vmem:[%s1394_s5 + $0x70] sm:$0xff] }
   0xd   :  { %539 = vperm.xlu0 %782, %v485_v35   ;;  %v488_v57 = vsub.f32 1.0, %v979_v56  ;;  %v490_v59 = vsub.f32 1.0, %v985_v58  ;;  %v727_v60 = vld [vmem:[%s1395_s2] ss:$0 sm:$0xff] }
   0xe   :  { %760 = vmatmul.mubr.msk.bf16.vlgmr.msra.gmra.mrb[0].mxu0 %vm82_vm0, %v44_v21  ;;  %768 = vmatmul.mubr.msk.bf16.vlgmr.msra.gmra.mrb[0].mxu1 %vm82_vm0, %v48_v22 }
   0xf   :  { %763 = vmatprep.mubr.msk.bf16.mxu0 %vm82_vm0, %v45_v23  ;;  %771 = vmatprep.mubr.msk.bf16.mxu1 %vm82_vm0, %v49_v24 }
  0x10   :  { %504 = vperm.xlu1 %783, %v478_v25  }
  0x11   :  { %549 = vperm.xlu0 %782, %v487_v41  }
  0x14   :  { %509 = vperm.xlu1 %783, %v479_v34  }
  0x15   :  { %559 = vperm.xlu0 %782, %v489_v45  }
  0x16   :  { %764 = vmatmul.mubr.msk.bf16.gmra.mrb[4].mxu0 %vm82_vm0, %v46_v38  ;;  %772 = vmatmul.mubr.msk.bf16.gmra.mrb[4].mxu1 %vm82_vm0, %v50_v39 }
  0x18   :  { %514 = vperm.xlu1 %783, %v480_v40  }
  0x19   :  { %569 = vperm.xlu0 %782, %v491_v49  }
  0x1c   :  { %519 = vperm.xlu1 %783, %v481_v44  }
  0x1d   :  { %602 = vperm.xlu0 %782, %v461_v18  }
  0x20   :  { %524 = vperm.xlu1 %783, %v482_v48  }
  0x21   :  { %612 = vperm.xlu0 %782, %v463_v27  }
  0x24   :  { %529 = vperm.xlu1 %783, %v483_v51  }
  0x25   :  { %622 = vperm.xlu0 %782, %v465_v42  }
  0x28   :  { %534 = vperm.xlu1 %783, %v484_v53  }
  0x29   :  { %632 = vperm.xlu0 %782, %v467_v50  }
  0x2c   :  { %544 = vperm.xlu1 %783, %v486_v55  }
  0x2d   :  { %642 = vperm.xlu0 %782, %v469_v29  }
  0x30   :  { %554 = vperm.xlu1 %783, %v488_v57  }
  0x31   :  { %652 = vperm.xlu0 %782, %v471_v37  }
  0x34   :  { %564 = vperm.xlu1 %783, %v490_v59  }
  0x38   :  { %597 = vperm.xlu1 %783, %v460_v26  }
  0x3c   :  { %607 = vperm.xlu1 %783, %v913_v20  }
  0x40   :  { %617 = vperm.xlu1 %783, %v464_v36  }
  0x44   :  { %627 = vperm.xlu1 %783, %v466_v46  }
  0x48   :  { %637 = vperm.xlu1 %783, %v468_v52  }
  0x4c   :  { %647 = vperm.xlu1 %783, %v470_v54  }
  0x88   :  { %v1072_v54 = vpop.permute.xlu0 %494 }
  0x89   :  { %v1056_v46 = vpop.permute.xlu1 %499 }
  0x8c   :  { %v1076_v57 = vpop.permute.xlu0 %539 }
  0x8f   :  { %v1059_v48 = vpop.permute.xlu1 %504 }
  0x90   :  { %v1080_v59 = vpop.permute.xlu0 %549 }
  0x93   :  { %v1062_v49 = vpop.permute.xlu1 %509 }
  0x97   :  { %v1064_v50 = vpop.permute.xlu1 %514 }
  0x9b   :  { %v1066_v51 = vpop.permute.xlu1 %519 }
  0x9f   :  { %v1068_v52 = vpop.permute.xlu1 %524 }
  0xa3   :  { %v1070_v53 = vpop.permute.xlu1 %529 }
  0xa7   :  { %v1074_v55 = vpop.permute.xlu1 %534 }
  0xe1   :  { %v761_v61 = vpop.f32.mrb[0].mxu0  ;;  %v769_v62 = vpop.f32.mrb[0].mxu1 }
  0xe2   :  { %v992_v63 = vadd.f32 %v761_v61, %v727_v60  ;;  %v994_v0 = vadd.f32 %v769_v62, %v727_v60  ;;  %v141_v1 = vpop.f32.mrb[1].mxu0  ;;  %v173_v2 = vpop.f32.mrb[1].mxu1 }
  0xe3   :  { %v762_v3 = vpop.f32.mrb[2].mxu0  ;;  %v770_v4 = vpop.f32.mrb[2].mxu1  ;;  %v996_v5 = vadd.f32 %v727_v60, %v141_v1  ;;  %v1004_v11 = vadd.f32 %v727_v60, %v173_v2 }
  0xe4   :  { %v998_v6 = vadd.f32 %v762_v3, %v727_v60  ;;  %v144_v7 = vpop.f32.mrb[3].mxu0  ;;  %v176_v8 = vpop.f32.mrb[3].mxu1  ;;  %v237_v9 = vsel %vm206_vm1, %v994_v0, 0.0  ;;  %v213_v10 = vsel %vm206_vm1, %v992_v63, 0.0  ;;  %v1006_v12 = vadd.f32 %v770_v4, %v727_v60 }
  0xe5   :  { %238 = vadd.xlane.f32.xlu0 %v237_v9  ;;  %214 = vadd.xlane.f32.xlu1 %v213_v10  ;;  %v207_v14 = vsel %vm206_vm1, %v996_v5, 0.0  ;;  %v1012_v21 = vadd.f32 %v727_v60, %v144_v7  ;;  %v1014_v22 = vadd.f32 %v727_v60, %v176_v8  ;;  %v231_v24 = vsel %vm206_vm1, %v1004_v11, 0.0 }
  0xe6   :  { %v216_v13 = vsel %vm206_vm1, %v998_v6, 0.0  ;;  %v240_v23 = vsel %vm206_vm1, %v1006_v12, 0.0 }
  0xe7   :  { %v234_v29 = vsel %vm206_vm1, %v1014_v22, 0.0  ;;  %v210_v30 = vsel %vm206_vm1, %v1012_v21, 0.0 }
  0xe9   :  { %217 = vadd.xlane.f32.xlu1 %v216_v13  ;;  %208 = vadd.xlane.f32.xlu0 %v207_v14  ;;  %v765_v15 = vpop.f32.mrb[4].mxu0  ;;  %v773_v16 = vpop.f32.mrb[4].mxu1 }
  0xea   :  { %v157_v17 = vpop.f32.mrb[5].mxu0  ;;  %v189_v18 = vpop.f32.mrb[5].mxu1  ;;  %v1020_v27 = vadd.f32 %v765_v15, %v727_v60  ;;  %v1028_v31 = vadd.f32 %v773_v16, %v727_v60 }
  0xeb   :  { %v766_v19 = vpop.f32.mrb[6].mxu0  ;;  %v774_v20 = vpop.f32.mrb[6].mxu1  ;;  %v1040_v37 = vadd.f32 %v727_v60, %v157_v17  ;;  %v1044_v39 = vadd.f32 %v727_v60, %v189_v18 }
  0xec   :  { %v160_v25 = vpop.f32.mrb[7].mxu0  ;;  %v192_v26 = vpop.f32.mrb[7].mxu1  ;;  %v1022_v28 = vadd.f32 %v766_v19, %v727_v60  ;;  %v1030_v32 = vadd.f32 %v774_v20, %v727_v60  ;;  %v225_v34 = vsel %vm206_vm1, %v1020_v27, 0.0  ;;  %v249_v36 = vsel %vm206_vm1, %v1028_v31, 0.0 }
  0xed   :  { %241 = vadd.xlane.f32.xlu1 %v240_v23  ;;  %232 = vadd.xlane.f32.xlu0 %v231_v24  ;;  %v1042_v38 = vadd.f32 %v727_v60, %v160_v25  ;;  %v1046_v40 = vadd.f32 %v727_v60, %v192_v26  ;;  %v219_v42 = vsel %vm206_vm1, %v1040_v37, 0.0  ;;  %v243_v45 = vsel %vm206_vm1, %v1044_v39, 0.0  ;;  %v1084_v60 = vpop.permute.xlu0 %559 }
  0xee   :  { %v228_v33 = vsel %vm206_vm1, %v1022_v28, 0.0  ;;  %v252_v35 = vsel %vm206_vm1, %v1030_v32, 0.0  ;;  %1400 = vst [vmem:[#allocation2_spill] sm:$0xff] %v1084_v60 }
  0xef   :  { %v222_v41 = vsel %vm206_vm1, %v1042_v38, 0.0  ;;  %v246_v44 = vsel %vm206_vm1, %v1046_v40, 0.0 }
  0xf1   :  { %235 = vadd.xlane.f32.xlu1 %v234_v29  ;;  %211 = vadd.xlane.f32.xlu0 %v210_v30  ;;  %v1088_v62 = vpop.permute.xlu0 %569 }
  0xf5   :  { %229 = vadd.xlane.f32.xlu1 %v228_v33  ;;  %226 = vadd.xlane.f32.xlu0 %v225_v34  ;;  %v1092_v2 = vpop.permute.xlu0 %602 }
  0xf9   :  { %253 = vadd.xlane.f32.xlu1 %v252_v35  ;;  %250 = vadd.xlane.f32.xlu0 %v249_v36  ;;  %v1096_v4 = vpop.permute.xlu0 %612 }
  0xfd   :  { %223 = vadd.xlane.f32.xlu1 %v222_v41  ;;  %220 = vadd.xlane.f32.xlu0 %v219_v42  ;;  %v1100_v8 = vpop.permute.xlu0 %622 }
 0x101   :  { %247 = vadd.xlane.f32.xlu1 %v246_v44  ;;  %244 = vadd.xlane.f32.xlu0 %v243_v45  ;;  %v1104_v10 = vpop.permute.xlu0 %632 }
 0x105   :  { %v1108_v14 = vpop.permute.xlu0 %642 }
 0x109   :  { %v1112_v16 = vpop.permute.xlu0 %652 }
 0x112   :  { %657 = vperm.xlu1 %783, %v979_v56   ;;  %v1078_v56 = vpop.permute.xlu1 %544 }
 0x117   :  { %662 = vperm.xlu0 %782, %v953_v43   ;;  %v1082_v43 = vpop.permute.xlu1 %554 }
 0x11b   :  { %v1086_v61 = vpop.permute.xlu1 %564 }
 0x11f   :  { %v1090_v1 = vpop.permute.xlu1 %597 }
 0x123   :  { %v1094_v3 = vpop.permute.xlu1 %607 }
 0x127   :  { %v1098_v7 = vpop.permute.xlu1 %617 }
 0x12b   :  { %v1102_v9 = vpop.permute.xlu1 %627 }
 0x12f   :  { %v1106_v13 = vpop.permute.xlu1 %637 }
 0x133   :  { %v1110_v15 = vpop.permute.xlu1 %647 }
 0x172   :  { %v239_v17 = vpop.xlane.xlu0 %238  ;;  %v215_v18 = vpop.xlane.xlu1 %214 }
 0x173   :  { %v266_v19 = vmul.f32 0.015625, %v239_v17  ;;  %v258_v20 = vmul.f32 0.015625, %v215_v18 }
 0x175   :  { %v1115_v23 = vsub.f32 %v994_v0, %v266_v19  ;;  %v1118_v24 = vsub.f32 %v992_v63, %v258_v20 }
 0x176   :  { %v218_v25 = vpop.xlane.xlu1 %217  ;;  %v209_v26 = vpop.xlane.xlu0 %208 }
 0x177   :  { %v259_v29 = vmul.f32 0.015625, %v218_v25  ;;  %v256_v30 = vmul.f32 0.015625, %v209_v26  ;;  %v290_v33 = vmul.f32 %v1118_v24, %v1118_v24  ;;  %v298_v0 = vmul.f32 %v1115_v23, %v1115_v23 }
 0x179   :  { %v1123_v34 = vsub.f32 %v998_v6, %v259_v29  ;;  %v1126_v35 = vsub.f32 %v996_v5, %v256_v30  ;;  %v310_v36 = vsel %vm206_vm1, %v290_v33, 0.0  ;;  %v334_v19 = vsel %vm206_vm1, %v298_v0, 0.0 }
 0x17a   :  { %v242_v63 = vpop.xlane.xlu1 %241  ;;  %311 = vadd.xlane.f32.xlu0 %v310_v36  ;;  %v233_v41 = vpop.xlane.xlu0 %232 }
 0x17b   :  { %v267_v42 = vmul.f32 0.015625, %v242_v63  ;;  %v264_v44 = vmul.f32 0.015625, %v233_v41  ;;  %v291_v45 = vmul.f32 %v1123_v34, %v1123_v34  ;;  %v288_v6 = vmul.f32 %v1126_v35, %v1126_v35 }
 0x17d   :  { %v1136_v17 = vsub.f32 %v1006_v12, %v267_v42  ;;  %v1139_v5 = vsub.f32 %v1004_v11, %v264_v44  ;;  %v313_v18 = vsel %vm206_vm1, %v291_v45, 0.0  ;;  %v304_v33 = vsel %vm206_vm1, %v288_v6, 0.0 }
 0x17e   :  { %v236_v20 = vpop.xlane.xlu1 %235  ;;  %314 = vadd.xlane.f32.xlu1 %v313_v18  ;;  %335 = vadd.xlane.f32.xlu0 %v334_v19  ;;  %v212_v25 = vpop.xlane.xlu0 %211 }
 0x17f   :  { %v265_v26 = vmul.f32 0.015625, %v236_v20  ;;  %v257_v29 = vmul.f32 0.015625, %v212_v25  ;;  %v299_v30 = vmul.f32 %v1136_v17, %v1136_v17  ;;  %v296_v0 = vmul.f32 %v1139_v5, %v1139_v5 }
 0x181   :  { %v1147_v12 = vsub.f32 %v1014_v22, %v265_v26  ;;  %v1150_v11 = vsub.f32 %v1012_v21, %v257_v29  ;;  %v337_v36 = vsel %vm206_vm1, %v299_v30, 0.0  ;;  %v328_v18 = vsel %vm206_vm1, %v296_v0, 0.0 }
 0x182   :  { %v230_v63 = vpop.xlane.xlu1 %229  ;;  %338 = vadd.xlane.f32.xlu1 %v337_v36  ;;  %305 = vadd.xlane.f32.xlu0 %v304_v33  ;;  %v227_v41 = vpop.xlane.xlu0 %226 }
 0x183   :  { %v263_v42 = vmul.f32 0.015625, %v230_v63  ;;  %v262_v44 = vmul.f32 0.015625, %v227_v41  ;;  %v289_v45 = vmul.f32 %v1150_v11, %v1150_v11  ;;  %v297_v22 = vmul.f32 %v1147_v12, %v1147_v12 }
 0x185   :  { %v1160_v21 = vsub.f32 %v1022_v28, %v263_v42  ;;  %v1163_v6 = vsub.f32 %v1020_v27, %v262_v44  ;;  %v307_v19 = vsel %vm206_vm1, %v289_v45, 0.0  ;;  %v331_v33 = vsel %vm206_vm1, %v297_v22, 0.0 }
 0x186   :  { %v254_v20 = vpop.xlane.xlu1 %253  ;;  %329 = vadd.xlane.f32.xlu0 %v328_v18  ;;  %308 = vadd.xlane.f32.xlu1 %v307_v19  ;;  %v251_v25 = vpop.xlane.xlu0 %250 }
 0x187   :  { %v271_v26 = vmul.f32 0.015625, %v254_v20  ;;  %v270_v29 = vmul.f32 0.015625, %v251_v25  ;;  %v294_v30 = vmul.f32 %v1163_v6, %v1163_v6  ;;  %v295_v0 = vmul.f32 %v1160_v21, %v1160_v21 }
 0x189   :  { %v1171_v28 = vsub.f32 %v1030_v32, %v271_v26  ;;  %v1174_v27 = vsub.f32 %v1028_v31, %v270_v29  ;;  %v322_v36 = vsel %vm206_vm1, %v294_v30, 0.0  ;;  %v325_v18 = vsel %vm206_vm1, %v295_v0, 0.0 }
 0x18a   :  { %v224_v63 = vpop.xlane.xlu1 %223  ;;  %332 = vadd.xlane.f32.xlu1 %v331_v33  ;;  %323 = vadd.xlane.f32.xlu0 %v322_v36  ;;  %v221_v41 = vpop.xlane.xlu0 %220 }
 0x18b   :  { %v261_v42 = vmul.f32 0.015625, %v224_v63  ;;  %v260_v44 = vmul.f32 0.015625, %v221_v41  ;;  %v302_v45 = vmul.f32 %v1174_v27, %v1174_v27  ;;  %v303_v32 = vmul.f32 %v1171_v28, %v1171_v28 }
 0x18d   :  { %v1184_v31 = vsub.f32 %v1042_v38, %v261_v42  ;;  %v1187_v22 = vsub.f32 %v1040_v37, %v260_v44  ;;  %v346_v19 = vsel %vm206_vm1, %v302_v45, 0.0  ;;  %v349_v33 = vsel %vm206_vm1, %v303_v32, 0.0 }
 0x18e   :  { %v248_v20 = vpop.xlane.xlu1 %247  ;;  %326 = vadd.xlane.f32.xlu1 %v325_v18  ;;  %347 = vadd.xlane.f32.xlu0 %v346_v19  ;;  %v245_v25 = vpop.xlane.xlu0 %244 }
 0x18f   :  { %v269_v26 = vmul.f32 0.015625, %v248_v20  ;;  %v268_v29 = vmul.f32 0.015625, %v245_v25  ;;  %v292_v30 = vmul.f32 %v1187_v22, %v1187_v22  ;;  %v293_v0 = vmul.f32 %v1184_v31, %v1184_v31 }
 0x191   :  { %v1195_v38 = vsub.f32 %v1046_v40, %v269_v26  ;;  %v1198_v37 = vsub.f32 %v1044_v39, %v268_v29  ;;  %v316_v36 = vsel %vm206_vm1, %v292_v30, 0.0  ;;  %v319_v41 = vsel %vm206_vm1, %v293_v0, 0.0 }
 0x192   :  { %350 = vadd.xlane.f32.xlu1 %v349_v33  ;;  %317 = vadd.xlane.f32.xlu0 %v316_v36  ;;  %v1214_v45 = vpop.permute.xlu1 %657 }
 0x193   :  { %v300_v63 = vmul.f32 %v1198_v37, %v1198_v37  ;;  %v301_v40 = vmul.f32 %v1195_v38, %v1195_v38 }
 0x195   :  { %v340_v42 = vsel %vm206_vm1, %v300_v63, 0.0  ;;  %v343_v39 = vsel %vm206_vm1, %v301_v40, 0.0 }
 0x196   :  { %320 = vadd.xlane.f32.xlu1 %v319_v41  ;;  %341 = vadd.xlane.f32.xlu0 %v340_v42  ;;  %v1212_v44 = vpop.permute.xlu0 %662 }
 0x19a   :  { %344 = vadd.xlane.f32.xlu1 %v343_v39 }
 0x1ab   :  { %667 = vperm.xlu1 %783, %v985_v58  }
 0x1ac   :  { %672 = vperm.xlu0 %782, %v964_v47  }
 0x207   :  { %v312_v32 = vpop.xlane.xlu0 %311 }
 0x208   :  { %v354_v18 = vmul.f32 0.015625, %v312_v32 }
 0x20a   :  { %v370_v19 = vadd.f32 1e-05, %v354_v18 }
 0x20b   :  { %v315_v20 = vpop.xlane.xlu1 %314  ;;  %v336_v25 = vpop.xlane.xlu0 %335 }
 0x20c   :  { %787 = vrsqrt.f32 %v370_v19  ;;  %v355_v26 = vmul.f32 0.015625, %v315_v20  ;;  %v362_v29 = vmul.f32 0.015625, %v336_v25  ;;  %v1219_v19 = vld [vmem:[%s1396_s3] ss:$0 sm:$0xff] }
 0x20e   :  { %v371_v30 = vadd.f32 1e-05, %v355_v26  ;;  %v378_v33 = vadd.f32 1e-05, %v362_v29 }
 0x20f   :  { %v339_v36 = vpop.xlane.xlu1 %338  ;;  %v306_v0 = vpop.xlane.xlu0 %305 }
 0x210   :  { %789 = vrsqrt.f32 %v371_v30  ;;  %v363_v58 = vmul.f32 0.015625, %v339_v36  ;;  %v352_v63 = vmul.f32 0.015625, %v306_v0 }
 0x211   :  { %791 = vrsqrt.f32 %v378_v33  ;;  %v1225_v33 = vld [vmem:[%s1397_s4] ss:$0 sm:$0xff] }
 0x212   :  { %v379_v47 = vadd.f32 1e-05, %v363_v58  ;;  %v368_v41 = vadd.f32 1e-05, %v352_v63 }
 0x213   :  { %v309_v42 = vpop.xlane.xlu1 %308  ;;  %v330_v40 = vpop.xlane.xlu0 %329 }
 0x214   :  { %793 = vrsqrt.f32 %v379_v47  ;;  %v353_v39 = vmul.f32 0.015625, %v309_v42  ;;  %v360_v32 = vmul.f32 0.015625, %v330_v40  ;;  %v1231_v47 = vld [vmem:[%s1398_s6] ss:$0 sm:$0xff] }
 0x215   :  { %795 = vrsqrt.f32 %v368_v41  ;;  %v1235_v40 = vmul.f32 %v1231_v47, %v1092_v2 }
 0x216   :  { %v788_v18 = vpop.eup %787  ;;  %v369_v20 = vadd.f32 1e-05, %v353_v39  ;;  %v376_v25 = vadd.f32 1e-05, %v360_v32 }
 0x217   :  { %v402_v26 = vmul.f32 %v788_v18, %v1118_v24  ;;  %v333_v29 = vpop.xlane.xlu1 %332  ;;  %v324_v30 = vpop.xlane.xlu0 %323 }
 0x218   :  { %797 = vrsqrt.f32 %v369_v20  ;;  %v361_v36 = vmul.f32 0.015625, %v333_v29  ;;  %v358_v0 = vmul.f32 0.015625, %v324_v30  ;;  %v677_v30 = vmul.f32 %v1231_v47, %v1094_v3 }
 0x219   :  { %v424_v58 = vmul.f32 %v1219_v19, %v402_v26  ;;  %799 = vrsqrt.f32 %v376_v25 }
 0x21a   :  { %v790_v63 = vpop.eup %789  ;;  %v377_v24 = vadd.f32 1e-05, %v361_v36  ;;  %v374_v41 = vadd.f32 1e-05, %v358_v0 }
 0x21b   :  { %v792_v42 = vpop.eup %791  ;;  %v446_v39 = vadd.f32 %v1225_v33, %v424_v58  ;;  %v403_v32 = vmul.f32 %v790_v63, %v1123_v34  ;;  %v327_v18 = vpop.xlane.xlu1 %326  ;;  %v678_v58 = vmul.f32 %v1231_v47, %v1096_v4 }
 0x21c   :  { %v348_v20 = vpop.xlane.xlu0 %347  ;;  %v410_v25 = vmul.f32 %v792_v42, %v1115_v23  ;;  %801 = vrsqrt.f32 %v377_v24  ;;  %v359_v26 = vmul.f32 0.015625, %v327_v18  ;;  %v686_v24 = vmul.f32 %v1231_v47, %v1112_v16 }
 0x21d   :  { %v366_v29 = vmul.f32 0.015625, %v348_v20  ;;  %v574_v36 = vmul.f32 %v1059_v48, %v446_v39  ;;  %v425_v0 = vmul.f32 %v1219_v19, %v403_v32  ;;  %803 = vrsqrt.f32 %v374_v41 }
 0x21e   :  { %v794_v2 = vpop.eup %793  ;;  %v432_v34 = vmul.f32 %v1219_v19, %v410_v25  ;;  %v375_v63 = vadd.f32 1e-05, %v359_v26  ;;  %v685_v26 = vmul.f32 %v1231_v47, %v1110_v15 }
 0x21f   :  { %v382_v60 = vadd.f32 1e-05, %v366_v29  ;;  %v796_v23 = vpop.eup %795  ;;  %v693_v42 = vadd.f32 %v677_v30, %v574_v36  ;;  %v447_v3 = vadd.f32 %v1225_v33, %v425_v0  ;;  %v411_v48 = vmul.f32 %v794_v2, %v1136_v17  ;;  %v351_v39 = vpop.xlane.xlu1 %350 }
 0x220   :  { %v318_v32 = vpop.xlane.xlu0 %317  ;;  %v454_v41 = vadd.f32 %v1225_v33, %v432_v34  ;;  %v400_v18 = vmul.f32 %v796_v23, %v1126_v35  ;;  %805 = vrsqrt.f32 %v375_v63  ;;  %v367_v4 = vmul.f32 0.015625, %v351_v39 }
 0x221   :  { %709 = vst.msk [vmem:[%s1399_s7 + $0x10] sm:$0xff] %vm206_vm1, %v693_v42  ;;  %v575_v16 = vmul.f32 %v1062_v49, %v447_v3  ;;  %v433_v20 = vmul.f32 %v1219_v19, %v411_v48  ;;  %807 = vrsqrt.f32 %v382_v60  ;;  %v356_v25 = vmul.f32 0.015625, %v318_v32 }
 0x222   :  { %v798_v17 = vpop.eup %797  ;;  %v582_v29 = vmul.f32 %v1078_v56, %v454_v41  ;;  %v422_v35 = vmul.f32 %v1219_v19, %v400_v18  ;;  %v383_v30 = vadd.f32 1e-05, %v367_v4  ;;  %v675_v48 = vmul.f32 %v1231_v47, %v1090_v1 }
 0x223   :  { %v800_v36 = vpop.eup %799  ;;  %v694_v0 = vadd.f32 %v678_v58, %v575_v16  ;;  %v455_v2 = vadd.f32 %v1225_v33, %v433_v20  ;;  %v401_v34 = vmul.f32 %v798_v17, %v1150_v11  ;;  %v372_v49 = vadd.f32 1e-05, %v356_v25  ;;  %v321_v63 = vpop.xlane.xlu1 %320 }
 0x224   :  { %v342_v23 = vpop.xlane.xlu0 %341  ;;  %v701_v60 = vadd.f32 %v685_v26, %v582_v29  ;;  %v444_v42 = vadd.f32 %v1225_v33, %v422_v35  ;;  %v408_v3 = vmul.f32 %v800_v36, %v1139_v5  ;;  %809 = vrsqrt.f32 %v383_v30 }
 0x225   :  { %710 = vst.msk [vmem:[%s1399_s7 + $0x18] sm:$0xff] %vm206_vm1, %v694_v0  ;;  %v583_v56 = vmul.f32 %v1080_v59, %v455_v2  ;;  %v423_v15 = vmul.f32 %v1219_v19, %v401_v34  ;;  %811 = vrsqrt.f32 %v372_v49  ;;  %v357_v11 = vmul.f32 0.015625, %v321_v63 }
 0x226   :  { %v802_v58 = vpop.eup %801  ;;  %717 = vst.msk [vmem:[%s1399_s7 + $0x50] sm:$0xff] %vm206_vm1, %v701_v60  ;;  %v572_v5 = vmul.f32 %v1072_v54, %v444_v42  ;;  %v430_v39 = vmul.f32 %v1219_v19, %v408_v3  ;;  %v364_v32 = vmul.f32 0.015625, %v342_v23  ;;  %v683_v35 = vmul.f32 %v1231_v47, %v1106_v13 }
 0x227   :  { %v804_v41 = vpop.eup %803  ;;  %v702_v59 = vadd.f32 %v686_v24, %v583_v56  ;;  %v445_v18 = vadd.f32 %v1225_v33, %v423_v15  ;;  %v409_v4 = vmul.f32 %v802_v58, %v1147_v12  ;;  %v373_v16 = vadd.f32 1e-05, %v357_v11  ;;  %v345_v20 = vpop.xlane.xlu1 %344 }
 0x228   :  { %v691_v25 = vadd.f32 %v675_v48, %v572_v5  ;;  %v452_v1 = vadd.f32 %v1225_v33, %v430_v39  ;;  %v406_v17 = vmul.f32 %v804_v41, %v1163_v6  ;;  %v380_v26 = vadd.f32 1e-05, %v364_v32 }
 0x229   :  { %718 = vst.msk [vmem:[%s1399_s7 + $0x58] sm:$0xff] %vm206_vm1, %v702_v59  ;;  %v573_v54 = vmul.f32 %v1056_v46, %v445_v18  ;;  %v431_v24 = vmul.f32 %v1219_v19, %v409_v4  ;;  %813 = vrsqrt.f32 %v373_v16  ;;  %v365_v29 = vmul.f32 0.015625, %v345_v20 }
 0x22a   :  { %v806_v12 = vpop.eup %805  ;;  %707 = vst.msk [vmem:[%s1399_s7] sm:$0xff] %vm206_vm1, %v691_v25  ;;  %v580_v6 = vmul.f32 %v1074_v55, %v452_v1  ;;  %v428_v30 = vmul.f32 %v1219_v19, %v406_v17  ;;  %815 = vrsqrt.f32 %v380_v26  ;;  %v684_v23 = vmul.f32 %v1231_v47, %v1108_v14 }
 0x22b   :  { %v808_v36 = vpop.eup %807  ;;  %v692_v46 = vadd.f32 %v1235_v40, %v573_v54  ;;  %v453_v0 = vadd.f32 %v1225_v33, %v431_v24  ;;  %v407_v2 = vmul.f32 %v806_v12, %v1160_v21  ;;  %v381_v34 = vadd.f32 1e-05, %v365_v29  ;;  %v668_v56 = vpop.permute.xlu1 %667 }
 0x22c   :  { %v699_v49 = vadd.f32 %v683_v35, %v580_v6  ;;  %v450_v13 = vadd.f32 %v1225_v33, %v428_v30  ;;  %v414_v63 = vmul.f32 %v808_v36, %v1174_v27  ;;  %v681_v60 = vmul.f32 %v1231_v47, %v1102_v9  ;;  %v673_v39 = vpop.permute.xlu0 %672 }
 0x22d   :  { %708 = vst.msk [vmem:[%s1399_s7 + $0x8] sm:$0xff] %vm206_vm1, %v692_v46  ;;  %v581_v55 = vmul.f32 %v1076_v57, %v453_v0  ;;  %v429_v40 = vmul.f32 %v1219_v19, %v407_v2  ;;  %817 = vrsqrt.f32 %v381_v34  ;;  %v682_v48 = vmul.f32 %v1231_v47, %v1104_v10 }
 0x22e   :  { %v810_v21 = vpop.eup %809  ;;  %715 = vst.msk [vmem:[%s1399_s7 + $0x40] sm:$0xff] %vm206_vm1, %v699_v49  ;;  %v578_v14 = vmul.f32 %v1068_v52, %v450_v13  ;;  %v436_v27 = vmul.f32 %v1219_v19, %v414_v63  ;;  %v689_v10 = vmul.f32 %v1231_v47, %v668_v56  ;;  %v690_v25 = vmul.f32 %v1231_v47, %v673_v39 }
 0x22f   :  { %v812_v42 = vpop.eup %811  ;;  %v700_v3 = vadd.f32 %v684_v23, %v581_v55  ;;  %v451_v57 = vadd.f32 %v1225_v33, %v429_v40  ;;  %v415_v15 = vmul.f32 %v810_v21, %v1171_v28  ;;  %v679_v1 = vmul.f32 %v1231_v47, %v1098_v7 }
 0x230   :  { %v697_v11 = vadd.f32 %v681_v60, %v578_v14  ;;  %v404_v58 = vmul.f32 %v812_v42, %v1187_v22  ;;  %v458_v9 = vadd.f32 %v1225_v33, %v436_v27 }
 0x231   :  { %716 = vst.msk [vmem:[%s1399_s7 + $0x48] sm:$0xff] %vm206_vm1, %v700_v3  ;;  %v579_v52 = vmul.f32 %v1070_v53, %v451_v57  ;;  %v437_v5 = vmul.f32 %v1219_v19, %v415_v15 }
 0x232   :  { %713 = vst.msk [vmem:[%s1399_s7 + $0x30] sm:$0xff] %vm206_vm1, %v697_v11  ;;  %v426_v28 = vmul.f32 %v1219_v19, %v404_v58  ;;  %v586_v22 = vmul.f32 %v1086_v61, %v458_v9 }
 0x233   :  { %v814_v32 = vpop.eup %813  ;;  %v698_v41 = vadd.f32 %v682_v48, %v579_v52  ;;  %v459_v59 = vadd.f32 %v1225_v33, %v437_v5 }
 0x234   :  { %v816_v18 = vpop.eup %815  ;;  %v448_v53 = vadd.f32 %v1225_v33, %v426_v28  ;;  %v405_v4 = vmul.f32 %v814_v32, %v1184_v31  ;;  %v705_v16 = vadd.f32 %v689_v10, %v586_v22 }
 0x235   :  { %714 = vst.msk [vmem:[%s1399_s7 + $0x38] sm:$0xff] %vm206_vm1, %v698_v41  ;;  %v412_v61 = vmul.f32 %v816_v18, %v1198_v37  ;;  %v587_v20 = vmul.f32 %v1088_v62, %v459_v59 }
 0x236   :  { %v576_v17 = vmul.f32 %v1064_v50, %v448_v53  ;;  %v427_v26 = vmul.f32 %v1219_v19, %v405_v4  ;;  %721 = vst.msk [vmem:[%s1399_s7 + $0x70] sm:$0xff] %vm206_vm1, %v705_v16  ;;  %v680_v50 = vmul.f32 %v1231_v47, %v1100_v8  ;;  %v688_v8 = vmul.f32 %v1231_v47, %v1212_v44 }
 0x237   :  { %v818_v31 = vpop.eup %817  ;;  %v434_v54 = vmul.f32 %v1219_v19, %v412_v61  ;;  %v706_v37 = vadd.f32 %v690_v25, %v587_v20 }
 0x238   :  { %v695_v24 = vadd.f32 %v679_v1, %v576_v17  ;;  %v449_v62 = vadd.f32 %v1225_v33, %v427_v26  ;;  %v413_v29 = vmul.f32 %v818_v31, %v1195_v38  ;;  %v687_v38 = vmul.f32 %v1231_v47, %v1214_v45 }
 0x239   :  { %v456_v7 = vadd.f32 %v1225_v33, %v434_v54  ;;  %722 = vst.msk [vmem:[%s1399_s7 + $0x78] sm:$0xff] %vm206_vm1, %v706_v37 }
 0x23a   :  { %711 = vst.msk [vmem:[%s1399_s7 + $0x20] sm:$0xff] %vm206_vm1, %v695_v24  ;;  %v577_v12 = vmul.f32 %v1066_v51, %v449_v62  ;;  %v435_v35 = vmul.f32 %v1219_v19, %v413_v29  ;;  %v1401_v51 = vld [vmem:[#allocation2_spill] sm:$0xff] }
 0x23b   :  { %v584_v6 = vmul.f32 %v1082_v43, %v456_v7 }
 0x23c   :  { %v696_v30 = vadd.f32 %v680_v50, %v577_v12  ;;  %v457_v36 = vadd.f32 %v1225_v33, %v435_v35 }
 0x23d   :  { %v703_v46 = vadd.f32 %v687_v38, %v584_v6 }
 0x23e   :  { %712 = vst.msk [vmem:[%s1399_s7 + $0x28] sm:$0xff] %vm206_vm1, %v696_v30  ;;  %v585_v0 = vmul.f32 %v1401_v51, %v457_v36 }
 0x23f   :  { %719 = vst.msk [vmem:[%s1399_s7 + $0x60] sm:$0xff] %vm206_vm1, %v703_v46 }
 0x240   :  { %v704_v43 = vadd.f32 %v688_v8, %v585_v0 }
 0x242   :  { %720 = vst.msk [vmem:[%s1399_s7 + $0x68] sm:$0xff] %vm206_vm1, %v704_v43 }

// kernel: simmim_forward.9
= control target key start
LH: loop header
LB: loop body
LE: loop exit
PB: predicated region body
PF: predicated region fallthrough
CT: control target
= control target key end

     0   :  { %s3552_s27 = smov 0   ;;  %s4342_s0 = inlined_call_operand.vmem [shape: f32[2,64,64], index: 0, kind: input, shape index: {}]   ;;  %s4343_s1 = inlined_call_operand.vmem [shape: f32[1,64], index: 1, kind: input, shape index: {}]   ;;  %s4344_s2 = inlined_call_operand.vmem [shape: f32[1,64], index: 2, kind: input, shape index: {}]   ;;  %s4345_s3 = inlined_call_operand.vmem [shape: bf16[64,64], index: 3, kind: input, shape index: {}]   ;;  %s4346_s4 = inlined_call_operand.vmem [shape: f32[1,64], index: 4, kind: input, shape index: {}]   ;;  %s4347_s5 = inlined_call_operand.vmem [shape: bf16[64,64], index: 5, kind: input, shape index: {}]   ;;  %s4348_s6 = inlined_call_operand.vmem [shape: f32[1,64], index: 6, kind: input, shape index: {}]   ;;  %s4349_s7 = inlined_call_operand.vmem [shape: bf16[64,64], index: 7, kind: input, shape index: {}]   ;;  %s4350_s8 = inlined_call_operand.vmem [shape: f32[1,64], index: 8, kind: input, shape index: {}]   ;;  %s4351_s9 = inlined_call_operand.vmem [shape: bf16[64,64], index: 9, kind: input, shape index: {}]   ;;  %s4352_s10 = inlined_call_operand.vmem [shape: f32[1,64], index: 10, kind: input, shape index: {}]   ;;  %s4353_s11 = inlined_call_operand.vmem [shape: f32[2,4,16,16], index: 11, kind: input, shape index: {}]   ;;  %s4354_s12 = inlined_call_operand.vmem [shape: f32[1,64], index: 12, kind: input, shape index: {}]   ;;  %s4355_s13 = inlined_call_operand.vmem [shape: f32[1,64], index: 13, kind: input, shape index: {}]   ;;  %s4356_s14 = inlined_call_operand.vmem [shape: bf16[64,256], index: 14, kind: input, shape index: {}]   ;;  %s4357_s15 = inlined_call_operand.vmem [shape: f32[1,256], index: 15, kind: input, shape index: {}]   ;;  %s4358_s16 = inlined_call_operand.vmem [shape: bf16[256,64], index: 16, kind: input, shape index: {}]   ;;  %s4359_s17 = inlined_call_operand.vmem [shape: f32[1,64], index: 17, kind: input, shape index: {}]   ;;  %s4360_s18 = inlined_call_operand.vmem [shape: f32[2,64,64], index: 18, kind: output, shape index: {}]  }
   0x1   :  { %4361 = sst [smem:[#allocation2_spill]] %s4342_s0 }
   0x2   :  { %4362 = sst [smem:[#allocation3_spill]] %s4343_s1 }
   0x3   :  { %4363 = sst [smem:[#allocation4_spill]] %s4344_s2 }
   0x4 LB: > { %s2889_s28 = sadd.s32 4294967295, %s3450_s27   ;;  %p2893_p0 = scmp.ge.s32.totalorder %s3450_s27, 1  ;;  %s3450_s27 = sphi %s3552_s27, %s28_s27  }
   0x5   : > { %p512_p1 = scmp.lt.s32.totalorder %s3450_s27, 3 }
   0x7   : > { %p513_p2 = pnand %p2893_p0, %p512_p1 }
   0x8   : > { %p566_p3 = scmp.lt.s32.totalorder (!%p513_p2), %s2889_s28, 1  ;;  %vm587_vm0 = vcmask (!%p513_p2), 523264   ;;  %s4364_s19 = sld [smem:[#allocation2_spill]] (!%p513_p2)  ;;  %v3264_v56 = vld [vmem:[%s4345_s3] sm:$0xff] (!%p513_p2)   ;;  %v3266_v58 = vld [vmem:[%s4345_s3 + $0x8] sm:$0xff] (!%p513_p2)   ;;  %v3268_v60 = vld [vmem:[%s4345_s3 + $0x10] sm:$0xff] (!%p513_p2)  }
   0x9   : > { %516 = sbr.rel (%p513_p2) target bundleno = 3129 (0xc39), region = 92  ;;  %v3265_v57 = vld [vmem:[%s4349_s7] sm:$0xff] (!%p513_p2)   ;;  %3091 = vmatprep.subr.bf16.mxu1 (!%p513_p2), %v3264_v56  ;;  %v3267_v59 = vld [vmem:[%s4349_s7 + $0x8] sm:$0xff] (!%p513_p2)   ;;  %v3269_v61 = vld [vmem:[%s4349_s7 + $0x10] sm:$0xff] (!%p513_p2)   ;;  %s4365_s0 = sld [smem:[#allocation3_spill]] (!%p513_p2)  ;;  %vm3453_vm1 = vmmov (!%p513_p2), 0  }
   0xa   : > { %3123 = vmatprep.subr.bf16.mxu0 (!%p513_p2), %v3265_v57  ;;  %3092 = vmatpush3.bf16.msra.mxu1 (!%p513_p2), %v3264_v56  ;;  %v3270_v62 = vld [vmem:[%s4345_s3 + $0x18] sm:$0xff] (!%p513_p2)   ;;  %s4366_s21 = sld [smem:[#allocation4_spill]] (!%p513_p2)  ;;  %vm1077_vm2 = vcmask (!%p513_p2), 261120   ;;  %vm1266_vm3 = vcmask (!%p513_p2), 130048   ;;  %s3454_s30 = smov (!%p513_p2), 96  }
   0xb   : > { %3124 = vmatpush3.bf16.msra.mxu0 (!%p513_p2), %v3265_v57  ;;  %3093 = vmatprep.subr.bf16.mxu1 (!%p513_p2), %v3266_v58  ;;  %v3271_v63 = vld [vmem:[%s4349_s7 + $0x18] sm:$0xff] (!%p513_p2)  }
   0xc   : > { %3125 = vmatprep.subr.bf16.mxu0 (!%p513_p2), %v3267_v59 }
   0xe   : > { %3094 = vmatpush3.bf16.msra.mxu1 (!%p513_p2), %v3266_v58 }
   0xf   : > { %3126 = vmatpush3.bf16.msra.mxu0 (!%p513_p2), %v3267_v59  ;;  %3095 = vmatprep.subr.bf16.mxu1 (!%p513_p2), %v3268_v60 }
  0x10   : > { %s4368_s28 = smov (!%p566_p3, %s2889_s28), 1  ;;  %3127 = vmatprep.subr.bf16.mxu0 %v3269_v61 }
  0x11   : > { %s2985_s29 = sshll.u32 %s4368_s28, 6 }
  0x12   : > { %s3568_s1 = scalar_lea.vmem %s4364_s19, %s2985_s29  ;;  %3096 = vmatpush3.bf16.msra.mxu1 %v3268_v60  ;;  %s4313_s22 = scalar_lea.vmem %s4360_s18, %s2985_s29 }
  0x13   : > { %v577_v0 = vld [vmem:[%s3568_s1] sm:$0xff]  ;;  %v579_v1 = vld [vmem:[%s3568_s1 + $0x10] sm:$0xff]  ;;  %v578_v2 = vld [vmem:[%s3568_s1 + $0x8] sm:$0xff]  ;;  %3128 = vmatpush3.bf16.msra.mxu0 %v3269_v61  ;;  %3097 = vmatprep.subr.bf16.mxu1 %v3270_v62 }
  0x14   : > { %v588_v3 = vsel %vm587_vm0, %v577_v0, 0.0  ;;  %v594_v4 = vsel %vm587_vm0, %v579_v1, 0.0  ;;  %v580_v5 = vld [vmem:[%s3568_s1 + $0x18] sm:$0xff]  ;;  %v581_v6 = vld [vmem:[%s3568_s1 + $0x20] sm:$0xff]  ;;  %v582_v7 = vld [vmem:[%s3568_s1 + $0x28] sm:$0xff]  ;;  %v591_v8 = vsel %vm587_vm0, %v578_v2, 0.0  ;;  %3129 = vmatprep.subr.bf16.mxu0 %v3271_v63 }
  0x15   : > { %589 = vadd.xlane.f32.xlu0 %v588_v3  ;;  %595 = vadd.xlane.f32.xlu1 %v594_v4  ;;  %v597_v9 = vsel %vm587_vm0, %v580_v5, 0.0  ;;  %v600_v10 = vsel %vm587_vm0, %v581_v6, 0.0  ;;  %v603_v11 = vsel %vm587_vm0, %v582_v7, 0.0  ;;  %v583_v12 = vld [vmem:[%s3568_s1 + $0x30] sm:$0xff]  ;;  %v584_v13 = vld [vmem:[%s3568_s1 + $0x38] sm:$0xff] }
  0x16   : > { %v606_v14 = vsel %vm587_vm0, %v583_v12, 0.0  ;;  %v609_v15 = vsel %vm587_vm0, %v584_v13, 0.0  ;;  %3098 = vmatpush3.bf16.msra.mxu1 %v3270_v62  ;;  %v3274_v62 = vld [vmem:[%s4347_s5 + $0x10] sm:$0xff]  }
  0x17   : > { %3130 = vmatpush3.bf16.msra.mxu0 %v3271_v63 }
  0x19   : > { %592 = vadd.xlane.f32.xlu0 %v591_v8  ;;  %598 = vadd.xlane.f32.xlu1 %v597_v9 }
  0x1d   : > { %601 = vadd.xlane.f32.xlu0 %v600_v10  ;;  %604 = vadd.xlane.f32.xlu1 %v603_v11 }
  0x21   : > { %607 = vadd.xlane.f32.xlu0 %v606_v14  ;;  %610 = vadd.xlane.f32.xlu1 %v609_v15 }
  0xa2   : > { %v590_v16 = vpop.xlane.xlu0 %589  ;;  %v596_v17 = vpop.xlane.xlu1 %595 }
  0xa3   : > { %v613_v18 = vmul.f32 0.015625, %v590_v16  ;;  %v615_v19 = vmul.f32 0.015625, %v596_v17 }
  0xa5   : > { %v3586_v20 = vsub.f32 %v577_v0, %v613_v18  ;;  %v3588_v21 = vsub.f32 %v579_v1, %v615_v19  ;;  %v3653_v0 = vld [vmem:[%s4347_s5] sm:$0xff]  }
  0xa6   : > { %v593_v22 = vpop.xlane.xlu0 %592  ;;  %v599_v23 = vpop.xlane.xlu1 %598  ;;  %3107 = vmatprep.subr.bf16.mxu1 %v3653_v0 }
  0xa7   : > { %v614_v24 = vmul.f32 0.015625, %v593_v22  ;;  %v616_v25 = vmul.f32 0.015625, %v599_v23  ;;  %v629_v26 = vmul.f32 %v3586_v20, %v3586_v20  ;;  %v631_v27 = vmul.f32 %v3588_v21, %v3588_v21 }
  0xa9   : > { %v3594_v28 = vsub.f32 %v578_v2, %v614_v24  ;;  %v3596_v29 = vsub.f32 %v580_v5, %v616_v25  ;;  %v637_v30 = vsel %vm587_vm0, %v629_v26, 0.0  ;;  %v643_v33 = vsel %vm587_vm0, %v631_v27, 0.0 }
  0xaa   : > { %638 = vadd.xlane.f32.xlu0 %v637_v30  ;;  %v602_v31 = vpop.xlane.xlu0 %601  ;;  %v605_v32 = vpop.xlane.xlu1 %604  ;;  %v2898_v30 = vld [vmem:[%s4365_s0] ss:$0 sm:$0xff] }
  0xab   : > { %v617_v34 = vmul.f32 0.015625, %v602_v31  ;;  %v618_v35 = vmul.f32 0.015625, %v605_v32  ;;  %v630_v36 = vmul.f32 %v3594_v28, %v3594_v28  ;;  %v632_v37 = vmul.f32 %v3596_v29, %v3596_v29 }
  0xad   : > { %v3604_v38 = vsub.f32 %v581_v6, %v617_v34  ;;  %v3606_v39 = vsub.f32 %v582_v7, %v618_v35  ;;  %v640_v40 = vsel %vm587_vm0, %v630_v36, 0.0  ;;  %v646_v43 = vsel %vm587_vm0, %v632_v37, 0.0 }
  0xae   : > { %644 = vadd.xlane.f32.xlu0 %v643_v33  ;;  %641 = vadd.xlane.f32.xlu1 %v640_v40  ;;  %v608_v41 = vpop.xlane.xlu0 %607  ;;  %v611_v42 = vpop.xlane.xlu1 %610 }
  0xaf   : > { %v619_v44 = vmul.f32 0.015625, %v608_v41  ;;  %v620_v45 = vmul.f32 0.015625, %v611_v42  ;;  %v633_v46 = vmul.f32 %v3604_v38, %v3604_v38  ;;  %v634_v47 = vmul.f32 %v3606_v39, %v3606_v39 }
  0xb1   : > { %v3614_v48 = vsub.f32 %v583_v12, %v619_v44  ;;  %v3616_v49 = vsub.f32 %v584_v13, %v620_v45  ;;  %v649_v50 = vsel %vm587_vm0, %v633_v46, 0.0  ;;  %v652_v51 = vsel %vm587_vm0, %v634_v47, 0.0 }
  0xb2   : > { %647 = vadd.xlane.f32.xlu1 %v646_v43  ;;  %650 = vadd.xlane.f32.xlu0 %v649_v50 }
  0xb3   : > { %v635_v52 = vmul.f32 %v3614_v48, %v3614_v48  ;;  %v636_v53 = vmul.f32 %v3616_v49, %v3616_v49 }
  0xb5   : > { %v655_v54 = vsel %vm587_vm0, %v635_v52, 0.0  ;;  %v658_v55 = vsel %vm587_vm0, %v636_v53, 0.0 }
  0xb6   : > { %653 = vadd.xlane.f32.xlu1 %v652_v51  ;;  %656 = vadd.xlane.f32.xlu0 %v655_v54 }
  0xba   : > { %659 = vadd.xlane.f32.xlu1 %v658_v55 }
 0x137   : > { %v639_v1 = vpop.xlane.xlu0 %638 }
 0x138   : > { %v661_v2 = vmul.f32 0.015625, %v639_v1 }
 0x13a   : > { %v669_v3 = vadd.f32 1e-05, %v661_v2  ;;  %v3452_v2 = vmov 0.0  }
 0x13b   : > { %v642_v4 = vpop.xlane.xlu1 %641  ;;  %v645_v5 = vpop.xlane.xlu0 %644  ;;  %3151 = vmatprep.subr.bf16.mxu0 %v3452_v2 }
 0x13c   : > { %3308 = vrsqrt.f32 %v669_v3  ;;  %v662_v6 = vmul.f32 0.015625, %v642_v4  ;;  %v663_v7 = vmul.f32 0.015625, %v645_v5  ;;  %v2900_v4 = vld [vmem:[%s4346_s4] ss:$0 sm:$0xff] }
 0x13e   : > { %v670_v8 = vadd.f32 1e-05, %v662_v6  ;;  %v671_v9 = vadd.f32 1e-05, %v663_v7  ;;  %v2918_v6 = vld [vmem:[%s4350_s8] ss:$0 sm:$0xff] }
 0x13f   : > { %v648_v10 = vpop.xlane.xlu1 %647  ;;  %v651_v11 = vpop.xlane.xlu0 %650 }
 0x140   : > { %3310 = vrsqrt.f32 %v670_v8  ;;  %v664_v12 = vmul.f32 0.015625, %v648_v10  ;;  %v665_v13 = vmul.f32 0.015625, %v651_v11 }
 0x141   : > { %3312 = vrsqrt.f32 %v671_v9 }
 0x142   : > { %v672_v14 = vadd.f32 1e-05, %v664_v12  ;;  %v673_v15 = vadd.f32 1e-05, %v665_v13 }
 0x143   : > { %v654_v16 = vpop.xlane.xlu1 %653  ;;  %v657_v17 = vpop.xlane.xlu0 %656 }
 0x144   : > { %3314 = vrsqrt.f32 %v672_v14  ;;  %v666_v18 = vmul.f32 0.015625, %v654_v16  ;;  %v667_v19 = vmul.f32 0.015625, %v657_v17 }
 0x145   : > { %3316 = vrsqrt.f32 %v673_v15 }
 0x146   : > { %v3309_v22 = vpop.eup %3308  ;;  %v674_v23 = vadd.f32 1e-05, %v666_v18  ;;  %v675_v24 = vadd.f32 1e-05, %v667_v19 }
 0x147   : > { %v660_v25 = vpop.xlane.xlu1 %659  ;;  %v685_v26 = vmul.f32 %v3309_v22, %v3586_v20  ;;  %v2899_v20 = vld [vmem:[%s4366_s21] ss:$0 sm:$0xff]  ;;  %s3455_s21 = smov 32  }
 0x148   : > { %3318 = vrsqrt.f32 %v674_v23  ;;  %v668_v27 = vmul.f32 0.015625, %v660_v25 }
 0x149   : > { %3320 = vrsqrt.f32 %v675_v24  ;;  %v699_v35 = vmul.f32 %v2898_v30, %v685_v26 }
 0x14a   : > { %v3311_v31 = vpop.eup %3310  ;;  %v676_v32 = vadd.f32 1e-05, %v668_v27 }
 0x14b   : > { %v3313_v33 = vpop.eup %3312  ;;  %v686_v34 = vmul.f32 %v3311_v31, %v3594_v28  ;;  %v713_v43 = vadd.f32 %v2899_v20, %v699_v35 }
 0x14c   : > { %v687_v36 = vmul.f32 %v3313_v33, %v3588_v21  ;;  %3322 = vrsqrt.f32 %v676_v32 }
 0x14d   : > { %v700_v37 = vmul.f32 %v2898_v30, %v686_v34 }
 0x14e   : > { %v3315_v40 = vpop.eup %3314  ;;  %v701_v45 = vmul.f32 %v2898_v30, %v687_v36 }
 0x14f   : > { %v3317_v41 = vpop.eup %3316  ;;  %v688_v42 = vmul.f32 %v3315_v40, %v3596_v29  ;;  %v714_v44 = vadd.f32 %v2899_v20, %v700_v37 }
 0x150   : > { %v689_v46 = vmul.f32 %v3317_v41, %v3604_v38  ;;  %v715_v53 = vadd.f32 %v2899_v20, %v701_v45  ;;  %v3273_v38 = vld [vmem:[%s4347_s5 + $0x8] sm:$0xff]  }
 0x151   : > { %v721_v47 = vpack.c.bf16 %v714_v44, %v713_v43  ;;  %v702_v28 = vmul.f32 %v2898_v30, %v688_v42 }
 0x152   : > { %v3319_v50 = vpop.eup %3318  ;;  %v703_v51 = vmul.f32 %v2898_v30, %v689_v46 }
 0x153   : > { %v3321_v21 = vpop.eup %3320  ;;  %v690_v52 = vmul.f32 %v3319_v50, %v3606_v39  ;;  %3099 = vmatprep.mubr.msk.bf16.mxu1 %vm587_vm0, %v721_v47  ;;  %3131 = vmatprep.mubr.msk.bf16.mxu0 %vm587_vm0, %v721_v47  ;;  %v716_v54 = vadd.f32 %v2899_v20, %v702_v28 }
 0x154   : > { %v691_v29 = vmul.f32 %v3321_v21, %v3614_v48  ;;  %v717_v58 = vadd.f32 %v2899_v20, %v703_v51  ;;  %v2909_v21 = vld [vmem:[%s4348_s6] ss:$0 sm:$0xff] }
 0x155   : > { %v722_v55 = vpack.c.bf16 %v716_v54, %v715_v53  ;;  %v704_v56 = vmul.f32 %v2898_v30, %v690_v52 }
 0x156   : > { %v3323_v57 = vpop.eup %3322  ;;  %v705_v60 = vmul.f32 %v2898_v30, %v691_v29 }
 0x157   : > { %v692_v59 = vmul.f32 %v3323_v57, %v3616_v49  ;;  %3100 = vmatmul.mubr.msk.bf16.vlgmr.msra.gmra.mrb[0].mxu1 %vm587_vm0, %v722_v55  ;;  %3132 = vmatmul.mubr.msk.bf16.vlgmr.msra.gmra.mrb[0].mxu0 %vm587_vm0, %v722_v55  ;;  %v718_v39 = vadd.f32 %v2899_v20, %v704_v56 }
 0x158   : > { %3108 = vmatpush3.bf16.msra.mxu1 %v3653_v0  ;;  %v719_v49 = vadd.f32 %v2899_v20, %v705_v60  ;;  %v3275_v0 = vld [vmem:[%s4347_s5 + $0x18] sm:$0xff]  }
 0x159   : > { %v723_v61 = vpack.c.bf16 %v718_v39, %v717_v58  ;;  %3109 = vmatprep.subr.bf16.mxu1 %v3273_v38  ;;  %v706_v48 = vmul.f32 %v2898_v30, %v692_v59 }
 0x15b   : > { %3103 = vmatprep.mubr.msk.bf16.mxu1 %vm587_vm0, %v723_v61  ;;  %3135 = vmatprep.mubr.msk.bf16.mxu0 %vm587_vm0, %v723_v61  ;;  %v720_v63 = vadd.f32 %v2899_v20, %v706_v48 }
 0x15c   : > { %3110 = vmatpush3.bf16.msra.mxu1 %v3273_v38 }
 0x15d   : > { %v724_v1 = vpack.c.bf16 %v720_v63, %v719_v49  ;;  %3111 = vmatprep.subr.bf16.mxu1 %v3274_v62 }
 0x15f   : > { %3104 = vmatmul.mubr.msk.bf16.gmra.mrb[4].mxu1 %vm587_vm0, %v724_v1  ;;  %3136 = vmatmul.mubr.msk.bf16.gmra.mrb[4].mxu0 %vm587_vm0, %v724_v1 }
 0x160   : > { %3112 = vmatpush3.bf16.msra.mxu1 %v3274_v62  ;;  %3115 = vmatprep.mubr.msk.bf16.mxu1 %vm587_vm0, %v721_v47 }
 0x161   : > { %3113 = vmatprep.subr.bf16.mxu1 %v3275_v0  ;;  %3153 = vmatprep.mubr.msk.bf16.mxu0 %vm3453_vm1, %v3452_v2 }
 0x164   : > { %3114 = vmatpush3.bf16.msra.mxu1 %v3275_v0 }
 0x165   : > { %3139 = vmatprep.subr.bf16.mxu1 %v3452_v2 }
 0x167   : > { %3116 = vmatmul.mubr.msk.bf16.vlgmr.msra.gmra.mrb[8].mxu1 %vm587_vm0, %v722_v55 }
 0x168   : > { %3119 = vmatprep.mubr.msk.bf16.mxu1 %vm587_vm0, %v723_v61 }
 0x16f   : > { %3120 = vmatmul.mubr.msk.bf16.gmra.mrb[12].mxu1 %vm587_vm0, %v724_v1 }
 0x170   : > { %3141 = vmatprep.mubr.msk.bf16.mxu1 %vm3453_vm1, %v3452_v2 }
 0x22a   : > { %v3101_v3 = vpop.f32.mrb[0].mxu1  ;;  %v3133_v5 = vpop.f32.mrb[0].mxu0 }
 0x22b   : > { %v810_v7 = vpop.f32.mrb[1].mxu1  ;;  %v1018_v8 = vpop.f32.mrb[1].mxu0  ;;  %v819_v11 = vadd.f32 %v3101_v3, %v2900_v4  ;;  %v1027_v12 = vadd.f32 %v3133_v5, %v2918_v6 }
 0x22c   : > { %v3102_v9 = vpop.f32.mrb[2].mxu1  ;;  %v3134_v10 = vpop.f32.mrb[2].mxu0  ;;  %v811_v17 = vadd.f32 %v2900_v4, %v810_v7  ;;  %v1019_v18 = vadd.f32 %v2918_v6, %v1018_v8  ;;  %v1061_v7 = vld [vmem:[%s4353_s11] sm:$0xff] }
 0x22d   : > { %v822_v13 = vadd.f32 %v3102_v9, %v2900_v4  ;;  %v1030_v14 = vadd.f32 %v3134_v10, %v2918_v6  ;;  %v813_v15 = vpop.f32.mrb[3].mxu1  ;;  %v1021_v16 = vpop.f32.mrb[3].mxu0  ;;  %v1062_v9 = vld [vmem:[%s4353_s11 + $0x8] sm:$0xff] }
 0x22e   : > { %v814_v19 = vadd.f32 %v2900_v4, %v813_v15  ;;  %v1022_v22 = vadd.f32 %v2918_v6, %v1021_v16 }
 0x22f   : > { %v3704_v23 = vpack.c.bf16 %v822_v13, %v819_v11  ;;  %v3706_v24 = vpack.c.bf16 %v1030_v14, %v1027_v12 }
 0x230   : > { %v3708_v25 = vpack.c.bf16 %v814_v19, %v811_v17  ;;  %v3710_v26 = vpack.c.bf16 %v1022_v22, %v1019_v18  ;;  %v1063_v17 = vld [vmem:[%s4353_s11 + $0x10] sm:$0xff]  ;;  %v1065_v19 = vld [vmem:[%s4353_s11 + $0x20] sm:$0xff] }
 0x232   : > { %v3105_v27 = vpop.f32.mrb[4].mxu1  ;;  %v3137_v30 = vpop.f32.mrb[4].mxu0 }
 0x233   : > { %v1043_v31 = vadd.f32 %v3137_v30, %v2918_v6  ;;  %v826_v32 = vpop.f32.mrb[5].mxu1  ;;  %v1034_v33 = vpop.f32.mrb[5].mxu0  ;;  %v835_v20 = vadd.f32 %v3105_v27, %v2900_v4  ;;  %v1064_v27 = vld [vmem:[%s4353_s11 + $0x18] sm:$0xff] }
 0x234   : > { %v1035_v34 = vadd.f32 %v2918_v6, %v1034_v33  ;;  %v3106_v35 = vpop.f32.mrb[6].mxu1  ;;  %v3138_v36 = vpop.f32.mrb[6].mxu0  ;;  %v827_v43 = vadd.f32 %v2900_v4, %v826_v32 }
 0x235   : > { %v838_v37 = vadd.f32 %v3106_v35, %v2900_v4  ;;  %v1046_v40 = vadd.f32 %v3138_v36, %v2918_v6  ;;  %v829_v41 = vpop.f32.mrb[7].mxu1  ;;  %v1037_v42 = vpop.f32.mrb[7].mxu0 }
 0x236   : > { %v830_v44 = vadd.f32 %v2900_v4, %v829_v41  ;;  %v1038_v45 = vadd.f32 %v2918_v6, %v1037_v42 }
 0x237   : > { %v3712_v46 = vpack.c.bf16 %v838_v37, %v835_v20  ;;  %v3714_v47 = vpack.c.bf16 %v1046_v40, %v1043_v31 }
 0x238   : > { %v3716_v28 = vpack.c.bf16 %v830_v44, %v827_v43  ;;  %v3718_v50 = vpack.c.bf16 %v1038_v45, %v1035_v34  ;;  %v1066_v34 = vld [vmem:[%s4353_s11 + $0x28] sm:$0xff]  ;;  %v1067_v44 = vld [vmem:[%s4353_s11 + $0x30] sm:$0xff] }
 0x23a   : > { %v3117_v51 = vpop.f32.mrb[8].mxu1 }
 0x23b   : > { %v914_v52 = vpop.f32.mrb[9].mxu1  ;;  %v923_v54 = vadd.f32 %v3117_v51, %v2909_v21 }
 0x23c   : > { %v3118_v53 = vpop.f32.mrb[10].mxu1  ;;  %v915_v56 = vadd.f32 %v2909_v21, %v914_v52 }
 0x23d   : > { %v926_v29 = vadd.f32 %v3118_v53, %v2909_v21  ;;  %v917_v55 = vpop.f32.mrb[11].mxu1 }
 0x23e   : > { %v918_v38 = vadd.f32 %v2909_v21, %v917_v55 }
 0x23f   : > { %v3723_v57 = vpack.c.bf16 %v926_v29, %v923_v54 }
 0x240   : > { %v3725_v58 = vpack.c.bf16 %v918_v38, %v915_v56 }
 0x241   : > { %v1129_v4 = vsel %vm1077_vm2, %v3723_v57, 0 }
 0x242   : > { %v3121_v59 = vpop.f32.mrb[12].mxu1  ;;  %v1082_v39 = vsel %vm1077_vm2, %v3725_v58, 0 }
 0x243   : > { %v930_v60 = vpop.f32.mrb[13].mxu1  ;;  %3140 = vmatpush3.bf16.xpose.msra.mxu1 %v1082_v39  ;;  %v939_v48 = vadd.f32 %v3121_v59, %v2909_v21 }
 0x244   : > { %v3122_v61 = vpop.f32.mrb[14].mxu1  ;;  %3145 = vmatprep.subr.bf16.mxu1 %v3452_v2  ;;  %v931_v63 = vadd.f32 %v2909_v21, %v930_v60 }
 0x245   : > { %v942_v62 = vadd.f32 %v3122_v61, %v2909_v21  ;;  %v933_v49 = vpop.f32.mrb[15].mxu1 }
 0x246   : > { %v934_v1 = vadd.f32 %v2909_v21, %v933_v49  ;;  %v1068_v21 = vld [vmem:[%s4353_s11 + $0x38] sm:$0xff] }
 0x247   : > { %v3730_v0 = vpack.c.bf16 %v942_v62, %v939_v48 }
 0x248   : > { %v3732_v3 = vpack.c.bf16 %v934_v1, %v931_v63 }
 0x249   : > { %v1223_v6 = vsel %vm1077_vm2, %v3730_v0, 0 }
 0x24a   : > { %3142 = vmatmul.mubr.msk.bf16.vlgmr.msra.gmra.mrb[16].mxu1 %vm1077_vm2, %v3708_v25  ;;  %v1176_v5 = vsel %vm1077_vm2, %v3732_v3, 0 }
 0x24b   : > { %3146 = vmatpush3.bf16.xpose.msra.mxu1 %v1129_v4  ;;  %3152 = vmatpush3.bf16.xpose.msra.mxu0 %v1176_v5 }
 0x24c   : > { %3147 = vmatprep.mubr.msk.bf16.mxu1 %vm3453_vm1, %v3452_v2  ;;  %3157 = vmatprep.subr.bf16.mxu1 %v3452_v2 }
 0x24d   : > { %3163 = vmatprep.subr.bf16.mxu0 %v3452_v2 }
 0x252   : > { %3148 = vmatmul.mubr.msk.bf16.vlgmr.msra.gmra.mrb[20].mxu1 %vm1077_vm2, %v3704_v23  ;;  %3154 = vmatmul.mubr.msk.bf16.vlgmr.msra.gmra.mrb[8].mxu0 %vm1077_vm2, %v3716_v28 }
 0x253   : > { %3158 = vmatpush3.bf16.xpose.msra.mxu1 %v1223_v6  ;;  %3164 = vmatpush3.bf16.msra.mxu0 %v3710_v26 }
 0x254   : > { %3159 = vmatprep.mubr.msk.bf16.mxu1 %vm3453_vm1, %v3452_v2  ;;  %3169 = vmatprep.subr.bf16.mxu1 %v3452_v2 }
 0x255   : > { %3165 = vmatprep.mubr.msk.bf16.mxu0 %vm3453_vm1, %v3452_v2  ;;  %3175 = vmatprep.subr.bf16.mxu0 %v3452_v2 }
 0x25a   : > { %3160 = vmatmul.mubr.msk.bf16.vlgmr.msra.gmra.mrb[24].mxu1 %vm1077_vm2, %v3712_v46 }
 0x25b   : > { %3170 = vmatpush3.bf16.msra.mxu1 %v3706_v24  ;;  %3171 = vmatprep.mubr.msk.bf16.mxu1 %vm3453_vm1, %v3452_v2 }
 0x25c   : > { %3181 = vmatprep.subr.bf16.mxu1 %v3452_v2 }
 0x31d   : > { %v1118_v8 = vpop.f32.mrb[16].mxu1 }
 0x31e   : > { %v1119_v10 = vadd.f32 %v1118_v8, %v1061_v7  ;;  %v3143_v11 = vpop.f32.mrb[17].mxu1 }
 0x31f   : > { %v1121_v12 = vpop.f32.mrb[18].mxu1 }
 0x320   : > { %v1122_v13 = vadd.f32 %v1121_v12, %v1062_v9  ;;  %v3144_v14 = vpop.f32.mrb[19].mxu1  ;;  %v1267_v15 = vsel %vm1266_vm3, %v1119_v10, -inf }
 0x321   : > { %1268 = vmax.xlane.f32.xlu0 %v1267_v15 }
 0x322   : > { %v1270_v16 = vsel %vm1266_vm3, %v1122_v13, -inf }
 0x323   : > { %1271 = vmax.xlane.f32.xlu1 %v1270_v16 }
 0x325   : > { %v1165_v18 = vpop.f32.mrb[20].mxu1  ;;  %v1212_v22 = vpop.f32.mrb[8].mxu0 }
 0x326   : > { %v1166_v30 = vadd.f32 %v1165_v18, %v1063_v17  ;;  %v3149_v31 = vpop.f32.mrb[21].mxu1  ;;  %v3155_v32 = vpop.f32.mrb[9].mxu0  ;;  %v1213_v36 = vadd.f32 %v1212_v22, %v1065_v19 }
 0x327   : > { %v1168_v33 = vpop.f32.mrb[22].mxu1  ;;  %v1215_v35 = vpop.f32.mrb[10].mxu0 }
 0x328   : > { %v1169_v20 = vadd.f32 %v1168_v33, %v1064_v27  ;;  %v3150_v37 = vpop.f32.mrb[23].mxu1  ;;  %v3156_v40 = vpop.f32.mrb[11].mxu0  ;;  %v1273_v41 = vsel %vm1266_vm3, %v1166_v30, -inf  ;;  %v1216_v42 = vadd.f32 %v1215_v35, %v1066_v34  ;;  %v1279_v45 = vsel %vm1266_vm3, %v1213_v36, -inf }
 0x329   : > { %1274 = vmax.xlane.f32.xlu0 %v1273_v41 }
 0x32a   : > { %v1276_v43 = vsel %vm1266_vm3, %v1169_v20, -inf  ;;  %v1282_v54 = vsel %vm1266_vm3, %v1216_v42, -inf }
 0x32b   : > { %1277 = vmax.xlane.f32.xlu1 %v1276_v43 }
 0x32d   : > { %v1259_v51 = vpop.f32.mrb[24].mxu1  ;;  %1280 = vmax.xlane.f32.xlu0 %v1279_v45 }
 0x32e   : > { %v1260_v52 = vadd.f32 %v1259_v51, %v1067_v44  ;;  %v3161_v53 = vpop.f32.mrb[25].mxu1 }
 0x32f   : > { %v1262_v29 = vpop.f32.mrb[26].mxu1  ;;  %1283 = vmax.xlane.f32.xlu1 %v1282_v54 }
 0x330   : > { %v1263_v55 = vadd.f32 %v1262_v29, %v1068_v21  ;;  %v3162_v56 = vpop.f32.mrb[27].mxu1  ;;  %v1285_v38 = vsel %vm1266_vm3, %v1260_v52, -inf }
 0x331   : > { %1286 = vmax.xlane.f32.xlu0 %v1285_v38 }
 0x332   : > { %v1288_v59 = vsel %vm1266_vm3, %v1263_v55, -inf }
 0x333   : > { %1289 = vmax.xlane.f32.xlu1 %v1288_v59 }
 0x3ae   : > { %v1269_v39 = vpop.xlane.xlu0 %1268 }
 0x3af   : > { %v1291_v60 = vsub.f32 %v1119_v10, %v1269_v39 }
 0x3b0   : > { %v1272_v61 = vpop.xlane.xlu1 %1271 }
 0x3b1   : > { %v1299_v48 = vmul.f32 1.442695, %v1291_v60  ;;  %v1292_v62 = vsub.f32 %v1122_v13, %v1272_v61 }
 0x3b3   : > { %3324 = vpow2.f32 %v1299_v48  ;;  %v1301_v49 = vmul.f32 1.442695, %v1292_v62 }
 0x3b5   : > { %3326 = vpow2.f32 %v1301_v49 }
 0x3b6   : > { %v1275_v63 = vpop.xlane.xlu0 %1274 }
 0x3b7   : > { %v1293_v1 = vsub.f32 %v1166_v30, %v1275_v63 }
 0x3b8   : > { %v1278_v4 = vpop.xlane.xlu1 %1277 }
 0x3b9   : > { %v1303_v5 = vmul.f32 1.442695, %v1293_v1  ;;  %v1294_v6 = vsub.f32 %v1169_v20, %v1278_v4 }
 0x3ba   : > { %v1281_v7 = vpop.xlane.xlu0 %1280 }
 0x3bb   : > { %3328 = vpow2.f32 %v1303_v5  ;;  %v1305_v8 = vmul.f32 1.442695, %v1294_v6  ;;  %v1295_v9 = vsub.f32 %v1213_v36, %v1281_v7 }
 0x3bc   : > { %v1284_v11 = vpop.xlane.xlu1 %1283 }
 0x3bd   : > { %v3325_v12 = vpop.eup %3324  ;;  %3330 = vpow2.f32 %v1305_v8  ;;  %v1307_v14 = vmul.f32 1.442695, %v1295_v9  ;;  %v1296_v10 = vsub.f32 %v1216_v42, %v1284_v11 }
 0x3be   : > { %v1287_v15 = vpop.xlane.xlu0 %1286  ;;  %v1315_v13 = vsel %vm1266_vm3, %v3325_v12, 0.0 }
 0x3bf   : > { %v3327_v16 = vpop.eup %3326  ;;  %3332 = vpow2.f32 %v1307_v14  ;;  %v1309_v17 = vmul.f32 1.442695, %v1296_v10  ;;  %v1297_v18 = vsub.f32 %v1260_v52, %v1287_v15  ;;  %1316 = vadd.xlane.f32.xlu0 %v1315_v13 }
 0x3c0   : > { %v1318_v19 = vsel %vm1266_vm3, %v3327_v16, 0.0  ;;  %v1290_v40 = vpop.xlane.xlu1 %1289 }
 0x3c1   : > { %3334 = vpow2.f32 %v1309_v17  ;;  %v1311_v22 = vmul.f32 1.442695, %v1297_v18  ;;  %1319 = vadd.xlane.f32.xlu1 %v1318_v19  ;;  %v1298_v41 = vsub.f32 %v1263_v55, %v1290_v40 }
 0x3c3   : > { %3336 = vpow2.f32 %v1311_v22  ;;  %v1313_v42 = vmul.f32 1.442695, %v1298_v41  ;;  %v1069_v41 = vld [vmem:[%s4353_s11 + $0x40] sm:$0xff] }
 0x3c5   : > { %v3329_v27 = vpop.eup %3328  ;;  %3338 = vpow2.f32 %v1313_v42 }
 0x3c6   : > { %v1321_v30 = vsel %vm1266_vm3, %v3329_v27, 0.0 }
 0x3c7   : > { %v3331_v31 = vpop.eup %3330  ;;  %1322 = vadd.xlane.f32.xlu0 %v1321_v30 }
 0x3c8   : > { %v1324_v32 = vsel %vm1266_vm3, %v3331_v31, 0.0 }
 0x3c9   : > { %v3333_v33 = vpop.eup %3332  ;;  %1325 = vadd.xlane.f32.xlu1 %v1324_v32 }
 0x3ca   : > { %v1327_v34 = vsel %vm1266_vm3, %v3333_v33, 0.0 }
 0x3cb   : > { %v3335_v35 = vpop.eup %3334  ;;  %1328 = vadd.xlane.f32.xlu0 %v1327_v34 }
 0x3cc   : > { %v1330_v36 = vsel %vm1266_vm3, %v3335_v35, 0.0 }
 0x3cd   : > { %v3801_v20 = vpop.eup %3336  ;;  %1331 = vadd.xlane.f32.xlu1 %v1330_v36 }
 0x3ce   : > { %v1333_v37 = vsel %vm1266_vm3, %v3801_v20, 0.0 }
 0x3cf   : > { %1334 = vadd.xlane.f32.xlu0 %v1333_v37  ;;  %v3813_v43 = vpop.eup %3338 }
 0x3d0   : > { %v1336_v44 = vsel %vm1266_vm3, %v3813_v43, 0.0 }
 0x3de   : > { %1596 = vrot.lane.b32.xlu1 %v3723_v57, %s3454_s30 }
 0x3e5   : > { %1543 = vrot.lane.b32.xlu0 %v3725_v58, %s3454_s30 }
 0x3e9   : > { %1649 = vrot.lane.b32.xlu0 %v3732_v3, %s3454_s30 }
 0x3ed   : > { %1646 = vrot.lane.b32.xlu0 %v3716_v28, %s3454_s30 }
 0x402   : > { %1337 = vadd.xlane.f32.xlu1 %v1336_v44 }
 0x413   : > { %1540 = vrot.lane.b32.xlu1 %v3708_v25, %s3454_s30 }
 0x417   : > { %1593 = vrot.lane.b32.xlu1 %v3704_v23, %s3454_s30 }
 0x41b   : > { %1702 = vrot.lane.b32.xlu1 %v3730_v0, %s3454_s30 }
 0x41f   : > { %1699 = vrot.lane.b32.xlu1 %v3712_v46, %s3454_s30 }
 0x44c   : > { %v1317_v28 = vpop.xlane.xlu0 %1316 }
 0x44d   : > { %3340 = vrcp.f32 %v1317_v28 }
 0x44e   : > { %v1320_v57 = vpop.xlane.xlu1 %1319 }
 0x44f   : > { %3342 = vrcp.f32 %v1320_v57 }
 0x454   : > { %v1323_v58 = vpop.xlane.xlu0 %1322 }
 0x455   : > { %3344 = vrcp.f32 %v1323_v58 }
 0x456   : > { %v1326_v3 = vpop.xlane.xlu1 %1325 }
 0x457   : > { %v3341_v45 = vpop.eup %3340  ;;  %3346 = vrcp.f32 %v1326_v3 }
 0x458   : > { %v1329_v51 = vpop.xlane.xlu0 %1328  ;;  %v1340_v21 = vmul.f32 %v3341_v45, %v3325_v12 }
 0x459   : > { %v3343_v25 = vpop.eup %3342  ;;  %3348 = vrcp.f32 %v1329_v51 }
 0x45a   : > { %v1342_v23 = vmul.f32 %v3343_v25, %v3327_v16  ;;  %v1332_v52 = vpop.xlane.xlu1 %1331 }
 0x45b   : > { %3350 = vrcp.f32 %v1332_v52 }
 0x45c   : > { %v1355_v0 = vpack.c.bf16 %v1342_v23, %v1340_v21  ;;  %v1335_v54 = vpop.xlane.xlu0 %1334  ;;  %v1074_v21 = vld [vmem:[%s4353_s11 + $0x68] sm:$0xff] }
 0x45d   : > { %3352 = vrcp.f32 %v1335_v54 }
 0x45e   : > { %3166 = vmatmul.mubr.msk.bf16.vlgmr.msra.gmra.mrb[12].mxu0 %vm1266_vm3, %v1355_v0  ;;  %v1597_v49 = vpop.permute.xlu1 %1596 }
 0x45f   : > { %v3345_v46 = vpop.eup %3344  ;;  %3176 = vmatpush3.bf16.msra.mxu0 %v3718_v50  ;;  %3177 = vmatprep.mubr.msk.bf16.mxu0 %vm3453_vm1, %v3452_v2  ;;  %v1602_v10 = vsel %vm1077_vm2, %v1597_v49, 0 }
 0x460   : > { %3187 = vmatprep.subr.bf16.mxu0 %v3452_v2  ;;  %v1344_v29 = vmul.f32 %v3345_v46, %v3329_v27  ;;  %v1544_v61 = vpop.permute.xlu0 %1543 }
 0x461   : > { %v3347_v53 = vpop.eup %3346  ;;  %v1549_v62 = vsel %vm1077_vm2, %v1544_v61, 0 }
 0x462   : > { %v1346_v55 = vmul.f32 %v3347_v53, %v3331_v31 }
 0x463   : > { %v3349_v56 = vpop.eup %3348 }
 0x464   : > { %v1356_v38 = vpack.c.bf16 %v1346_v55, %v1344_v29  ;;  %v1348_v39 = vmul.f32 %v3349_v56, %v3333_v33  ;;  %v1650_v1 = vpop.permute.xlu0 %1649 }
 0x465   : > { %v3351_v59 = vpop.eup %3350  ;;  %v1655_v5 = vsel %vm1077_vm2, %v1650_v1, 0 }
 0x466   : > { %v1350_v60 = vmul.f32 %v3351_v59, %v3335_v35  ;;  %3172 = vmatmul.mubr.msk.bf16.vlgmr.msra.gmra.mrb[28].mxu1 %vm1266_vm3, %v1356_v38  ;;  %v1071_v59 = vld [vmem:[%s4353_s11 + $0x50] sm:$0xff] }
 0x467   : > { %3182 = vmatpush3.bf16.msra.mxu1 %v3714_v47  ;;  %3183 = vmatprep.mubr.msk.bf16.mxu1 %vm3453_vm1, %v3452_v2  ;;  %v3353_v6 = vpop.eup %3352 }
 0x468   : > { %v1357_v48 = vpack.c.bf16 %v1350_v60, %v1348_v39  ;;  %3193 = vmatprep.subr.bf16.mxu1 %v3452_v2  ;;  %v1352_v8 = vmul.f32 %v3353_v6, %v3801_v20  ;;  %v1647_v9 = vpop.permute.xlu0 %1646  ;;  %v1072_v60 = vld [vmem:[%s4353_s11 + $0x58] sm:$0xff] }
 0x46a   : > { %3178 = vmatmul.mubr.msk.bf16.vlgmr.msra.gmra.mrb[16].mxu0 %vm1266_vm3, %v1357_v48 }
 0x46b   : > { %3188 = vmatpush3.bf16.xpose.msra.mxu0 %v1549_v62  ;;  %3189 = vmatprep.mubr.msk.bf16.mxu0 %vm3453_vm1, %v3452_v2 }
 0x46c   : > { %3199 = vmatprep.subr.bf16.mxu0 %v3452_v2 }
 0x48f   : > { %v1338_v63 = vpop.xlane.xlu1 %1337 }
 0x490   : > { %3354 = vrcp.f32 %v1338_v63 }
 0x493   : > { %v1541_v4 = vpop.permute.xlu1 %1540 }
 0x494   : > { %3190 = vmatmul.mubr.msk.bf16.vlgmr.msra.gmra.mrb[20].mxu0 %vm1077_vm2, %v1541_v4  ;;  %v1073_v4 = vld [vmem:[%s4353_s11 + $0x60] sm:$0xff] }
 0x495   : > { %3200 = vmatpush3.bf16.xpose.msra.mxu0 %v1655_v5  ;;  %3201 = vmatprep.mubr.msk.bf16.mxu0 %vm3453_vm1, %v3452_v2 }
 0x496   : > { %3211 = vmatprep.subr.bf16.mxu0 %v3452_v2 }
 0x497   : > { %v1594_v14 = vpop.permute.xlu1 %1593 }
 0x49a   : > { %v3355_v7 = vpop.eup %3354 }
 0x49b   : > { %v1354_v11 = vmul.f32 %v3355_v7, %v3813_v43  ;;  %v1703_v15 = vpop.permute.xlu1 %1702  ;;  %v1070_v43 = vld [vmem:[%s4353_s11 + $0x48] sm:$0xff]  ;;  %v1075_v7 = vld [vmem:[%s4353_s11 + $0x70] sm:$0xff] }
 0x49c   : > { %3202 = vmatmul.mubr.msk.bf16.vlgmr.msra.gmra.mrb[24].mxu0 %vm1077_vm2, %v1647_v9  ;;  %v1708_v13 = vsel %vm1077_vm2, %v1703_v15, 0  ;;  %v1076_v9 = vld [vmem:[%s4353_s11 + $0x78] sm:$0xff] }
 0x49d   : > { %v1358_v12 = vpack.c.bf16 %v1354_v11, %v1352_v8  ;;  %3213 = vmatprep.mubr.msk.bf16.mxu0 %vm3453_vm1, %v3452_v2 }
 0x49f   : > { %3184 = vmatmul.mubr.msk.bf16.vlgmr.msra.gmra.mrb[32].mxu1 %vm1266_vm3, %v1358_v12  ;;  %v1700_v16 = vpop.permute.xlu1 %1699 }
 0x4a0   : > { %3194 = vmatpush3.bf16.xpose.msra.mxu1 %v1602_v10  ;;  %3195 = vmatprep.mubr.msk.bf16.mxu1 %vm3453_vm1, %v3452_v2 }
 0x4a1   : > { %3205 = vmatprep.subr.bf16.mxu1 %v3452_v2 }
 0x4a7   : > { %3196 = vmatmul.mubr.msk.bf16.vlgmr.msra.gmra.mrb[36].mxu1 %vm1077_vm2, %v1594_v14 }
 0x4a8   : > { %3206 = vmatpush3.bf16.xpose.msra.mxu1 %v1708_v13  ;;  %3207 = vmatprep.mubr.msk.bf16.mxu1 %vm3453_vm1, %v3452_v2 }
 0x4a9   : > { %3217 = vmatprep.subr.bf16.mxu1 %v3452_v2 }
 0x4af   : > { %3208 = vmatmul.mubr.msk.bf16.vlgmr.msra.gmra.mrb[40].mxu1 %vm1077_vm2, %v1700_v16 }
 0x4b0   : > { %3219 = vmatprep.mubr.msk.bf16.mxu1 %vm3453_vm1, %v3452_v2 }
 0x531   : > { %v3863_v17 = vpop.f32.mrb[12].mxu0 }
 0x532   : > { %v3167_v18 = vpop.f32.mrb[13].mxu0 }
 0x533   : > { %v3865_v19 = vpop.f32.mrb[14].mxu0 }
 0x534   : > { %v1535_v22 = vpack.c.bf16 %v3865_v19, %v3863_v17  ;;  %v3168_v27 = vpop.f32.mrb[15].mxu0  ;;  %v2943_v19 = vld [vmem:[%s4352_s10] ss:$0 sm:$0xff] }
 0x539   : > { %v3869_v30 = vpop.f32.mrb[28].mxu1 }
 0x53a   : > { %v3173_v31 = vpop.f32.mrb[29].mxu1 }
 0x53b   : > { %v3871_v32 = vpop.f32.mrb[30].mxu1 }
 0x53c   : > { %v1536_v33 = vpack.c.bf16 %v3871_v32, %v3869_v30  ;;  %v3174_v34 = vpop.f32.mrb[31].mxu1 }
 0x53d   : > { %v3875_v35 = vpop.f32.mrb[16].mxu0 }
 0x53e   : > { %v3179_v36 = vpop.f32.mrb[17].mxu0 }
 0x53f   : > { %v3877_v20 = vpop.f32.mrb[18].mxu0 }
 0x540   : > { %v1537_v37 = vpack.c.bf16 %v3877_v20, %v3875_v35  ;;  %v3180_v40 = vpop.f32.mrb[19].mxu0 }
 0x567   : > { %v1585_v42 = vpop.f32.mrb[20].mxu0 }
 0x568   : > { %v1586_v44 = vadd.f32 %v1585_v42, %v1069_v41  ;;  %v3191_v28 = vpop.f32.mrb[21].mxu0 }
 0x569   : > { %v1588_v57 = vpop.f32.mrb[22].mxu0 }
 0x56a   : > { %v1589_v58 = vadd.f32 %v1588_v57, %v1070_v43  ;;  %v3192_v3 = vpop.f32.mrb[23].mxu0  ;;  %v1751_v45 = vsel %vm1266_vm3, %v1586_v44, -inf }
 0x56b   : > { %1752 = vmax.xlane.f32.xlu0 %v1751_v45 }
 0x56c   : > { %v1754_v51 = vsel %vm1266_vm3, %v1589_v58, -inf }
 0x56d   : > { %1755 = vmax.xlane.f32.xlu1 %v1754_v51 }
 0x56f   : > { %v1691_v25 = vpop.f32.mrb[24].mxu0 }
 0x570   : > { %v3203_v23 = vpop.f32.mrb[25].mxu0  ;;  %v1692_v5 = vadd.f32 %v1691_v25, %v1073_v4 }
 0x571   : > { %v1694_v52 = vpop.f32.mrb[26].mxu0 }
 0x572   : > { %v1695_v0 = vadd.f32 %v1694_v52, %v1074_v21  ;;  %v3892_v46 = vpop.f32.mrb[32].mxu1  ;;  %v3204_v53 = vpop.f32.mrb[27].mxu0  ;;  %v1763_v13 = vsel %vm1266_vm3, %v1692_v5, -inf }
 0x573   : > { %v3185_v54 = vpop.f32.mrb[33].mxu1 }
 0x574   : > { %v3894_v29 = vpop.f32.mrb[34].mxu1  ;;  %v1766_v55 = vsel %vm1266_vm3, %v1695_v0, -inf }
 0x575   : > { %v1538_v56 = vpack.c.bf16 %v3894_v29, %v3892_v46  ;;  %v3186_v38 = vpop.f32.mrb[35].mxu1  ;;  %1767 = vmax.xlane.f32.xlu1 %v1766_v55  ;;  %v3437_v29 = vld [vmem:[%s3568_s1 + $0x10] sm:$0xff] }
 0x57a   : > { %v1638_v39 = vpop.f32.mrb[36].mxu1 }
 0x57b   : > { %v1639_v61 = vadd.f32 %v1638_v39, %v1071_v59  ;;  %v3197_v48 = vpop.f32.mrb[37].mxu1 }
 0x57c   : > { %v1641_v62 = vpop.f32.mrb[38].mxu1 }
 0x57d   : > { %v1642_v49 = vadd.f32 %v1641_v62, %v1072_v60  ;;  %v3198_v63 = vpop.f32.mrb[39].mxu1  ;;  %v1757_v1 = vsel %vm1266_vm3, %v1639_v61, -inf }
 0x57e   : > { %1758 = vmax.xlane.f32.xlu0 %v1757_v1 }
 0x57f   : > { %v1760_v6 = vsel %vm1266_vm3, %v1642_v49, -inf }
 0x582   : > { %v1744_v8 = vpop.f32.mrb[40].mxu1  ;;  %1761 = vmax.xlane.f32.xlu0 %v1760_v6 }
 0x583   : > { %v3209_v11 = vpop.f32.mrb[41].mxu1  ;;  %v1745_v14 = vadd.f32 %v1744_v8, %v1075_v7 }
 0x584   : > { %v1747_v12 = vpop.f32.mrb[42].mxu1 }
 0x585   : > { %v1748_v10 = vadd.f32 %v1747_v12, %v1076_v9  ;;  %v3210_v15 = vpop.f32.mrb[43].mxu1  ;;  %v1769_v18 = vsel %vm1266_vm3, %v1745_v14, -inf }
 0x586   : > { %1764 = vmax.xlane.f32.xlu0 %v1763_v13 }
 0x587   : > { %v1772_v16 = vsel %vm1266_vm3, %v1748_v10, -inf }
 0x588   : > { %1773 = vmax.xlane.f32.xlu1 %v1772_v16 }
 0x58a   : > { %1770 = vmax.xlane.f32.xlu0 %v1769_v18 }
 0x5f8   : > { %v1753_v27 = vpop.xlane.xlu0 %1752 }
 0x5f9   : > { %v1775_v31 = vsub.f32 %v1586_v44, %v1753_v27 }
 0x5fa   : > { %v1756_v34 = vpop.xlane.xlu1 %1755 }
 0x5fb   : > { %v1783_v36 = vmul.f32 1.442695, %v1775_v31  ;;  %v1776_v40 = vsub.f32 %v1589_v58, %v1756_v34 }
 0x5fd   : > { %3356 = vpow2.f32 %v1783_v36  ;;  %v1785_v41 = vmul.f32 1.442695, %v1776_v40 }
 0x5ff   : > { %3358 = vpow2.f32 %v1785_v41 }
 0x602   : > { %v1768_v3 = vpop.xlane.xlu1 %1767 }
 0x603   : > { %v1780_v51 = vsub.f32 %v1695_v0, %v1768_v3 }
 0x605   : > { %v1793_v23 = vmul.f32 1.442695, %v1780_v51 }
 0x607   : > { %v3919_v42 = vpop.eup %3356 }
 0x608   : > { %v1799_v43 = vsel %vm1266_vm3, %v3919_v42, 0.0 }
 0x609   : > { %v3923_v28 = vpop.eup %3358  ;;  %1800 = vadd.xlane.f32.xlu0 %v1799_v43 }
 0x60a   : > { %v1802_v57 = vsel %vm1266_vm3, %v3923_v28, 0.0 }
 0x60b   : > { %v1759_v45 = vpop.xlane.xlu0 %1758  ;;  %1803 = vadd.xlane.f32.xlu1 %v1802_v57 }
 0x60c   : > { %v1777_v44 = vsub.f32 %v1639_v61, %v1759_v45 }
 0x60e   : > { %v1787_v58 = vmul.f32 1.442695, %v1777_v44 }
 0x60f   : > { %v1762_v25 = vpop.xlane.xlu0 %1761 }
 0x610   : > { %3360 = vpow2.f32 %v1787_v58  ;;  %v1778_v21 = vsub.f32 %v1642_v49, %v1762_v25 }
 0x612   : > { %v1789_v52 = vmul.f32 1.442695, %v1778_v21 }
 0x613   : > { %v1765_v53 = vpop.xlane.xlu0 %1764 }
 0x614   : > { %3362 = vpow2.f32 %v1789_v52  ;;  %v1779_v54 = vsub.f32 %v1692_v5, %v1765_v53 }
 0x615   : > { %3364 = vpow2.f32 %v1793_v23  ;;  %v1774_v6 = vpop.xlane.xlu1 %1773 }
 0x616   : > { %v1791_v55 = vmul.f32 1.442695, %v1779_v54  ;;  %v1782_v7 = vsub.f32 %v1748_v10, %v1774_v6 }
 0x617   : > { %v1771_v38 = vpop.xlane.xlu0 %1770 }
 0x618   : > { %3366 = vpow2.f32 %v1791_v55  ;;  %v1781_v59 = vsub.f32 %v1745_v14, %v1771_v38  ;;  %v1797_v8 = vmul.f32 1.442695, %v1782_v7  ;;  %v3276_v55 = vld [vmem:[%s4351_s9] sm:$0xff]   ;;  %v3278_v38 = vld [vmem:[%s4351_s9 + $0x10] sm:$0xff]  }
 0x61a   : > { %v3361_v39 = vpop.eup %3360  ;;  %v1795_v60 = vmul.f32 1.442695, %v1781_v59  ;;  %v3279_v59 = vld [vmem:[%s4351_s9 + $0x18] sm:$0xff]  }
 0x61b   : > { %v1805_v48 = vsel %vm1266_vm3, %v3361_v39, 0.0 }
 0x61c   : > { %3368 = vpow2.f32 %v1795_v60  ;;  %1806 = vadd.xlane.f32.xlu0 %v1805_v48 }
 0x61d   : > { %3370 = vpow2.f32 %v1797_v8 }
 0x61e   : > { %v3363_v0 = vpop.eup %3362 }
 0x61f   : > { %v1808_v61 = vsel %vm1266_vm3, %v3363_v0, 0.0  ;;  %v3365_v62 = vpop.eup %3364 }
 0x620   : > { %1809 = vadd.xlane.f32.xlu1 %v1808_v61  ;;  %v1814_v1 = vsel %vm1266_vm3, %v3365_v62, 0.0 }
 0x622   : > { %v3367_v49 = vpop.eup %3366 }
 0x623   : > { %v1811_v63 = vsel %vm1266_vm3, %v3367_v49, 0.0 }
 0x624   : > { %1812 = vadd.xlane.f32.xlu0 %v1811_v63  ;;  %1815 = vadd.xlane.f32.xlu1 %v1814_v1 }
 0x626   : > { %v3369_v4 = vpop.eup %3368 }
 0x627   : > { %v1817_v5 = vsel %vm1266_vm3, %v3369_v4, 0.0  ;;  %v3371_v9 = vpop.eup %3370 }
 0x628   : > { %1818 = vadd.xlane.f32.xlu0 %v1817_v5  ;;  %v1820_v11 = vsel %vm1266_vm3, %v3371_v9, 0.0 }
 0x635   : > { %1892 = vrot.lane.b32.xlu1 %v3706_v24, %s3454_s30 }
 0x639   : > { %1940 = vrot.lane.b32.xlu1 %v3718_v50, %s3454_s30 }
 0x63e   : > { %1844 = vrot.lane.b32.xlu0 %v3710_v26, %s3454_s30 }
 0x65d   : > { %1821 = vadd.xlane.f32.xlu1 %v1820_v11 }
 0x66e   : > { %1988 = vrot.lane.b32.xlu1 %v3714_v47, %s3454_s30 }
 0x696   : > { %v1801_v12 = vpop.xlane.xlu0 %1800 }
 0x698   : > { %v1804_v14 = vpop.xlane.xlu1 %1803 }
 0x699   : > { %3372 = vrcp.f32 %v1804_v14 }
 0x69a   : > { %3374 = vrcp.f32 %v1801_v12 }
 0x6a3   : > { %v3373_v10 = vpop.eup %3372 }
 0x6a4   : > { %v3375_v13 = vpop.eup %3374  ;;  %v1826_v47 = vmul.f32 %v3373_v10, %v3923_v28 }
 0x6a5   : > { %v1824_v34 = vmul.f32 %v3375_v13, %v3919_v42 }
 0x6a7   : > { %v1839_v43 = vpack.c.bf16 %v1826_v47, %v1824_v34  ;;  %v3438_v34 = vld [vmem:[%s3568_s1 + $0x8] sm:$0xff] }
 0x6a9   : > { %v1807_v24 = vpop.xlane.xlu0 %1806 }
 0x6aa   : > { %3376 = vrcp.f32 %v1807_v24 }
 0x6ad   : > { %v1810_v50 = vpop.xlane.xlu1 %1809 }
 0x6ae   : > { %3378 = vrcp.f32 %v1810_v50 }
 0x6b1   : > { %v1813_v26 = vpop.xlane.xlu0 %1812  ;;  %v1816_v15 = vpop.xlane.xlu1 %1815 }
 0x6b2   : > { %3380 = vrcp.f32 %v1813_v26 }
 0x6b3   : > { %3382 = vrcp.f32 %v1816_v15 }
 0x6b4   : > { %v3377_v27 = vpop.eup %3376 }
 0x6b5   : > { %v1819_v16 = vpop.xlane.xlu0 %1818  ;;  %v1893_v18 = vpop.permute.xlu1 %1892  ;;  %v1828_v36 = vmul.f32 %v3377_v27, %v3361_v39  ;;  %v3436_v27 = vld [vmem:[%s3568_s1] sm:$0xff] }
 0x6b6   : > { %3218 = vmatpush3.bf16.msra.mxu1 %v1893_v18  ;;  %3384 = vrcp.f32 %v1819_v16 }
 0x6b7   : > { %3229 = vmatprep.subr.bf16.mxu1 %v3452_v2 }
 0x6b8   : > { %v3379_v31 = vpop.eup %3378 }
 0x6b9   : > { %v1830_v40 = vmul.f32 %v3379_v31, %v3363_v0  ;;  %v1845_v41 = vpop.permute.xlu0 %1844  ;;  %v1941_v44 = vpop.permute.xlu1 %1940 }
 0x6ba   : > { %3212 = vmatpush3.bf16.msra.mxu0 %v1845_v41 }
 0x6bb   : > { %v1840_v57 = vpack.c.bf16 %v1830_v40, %v1828_v36  ;;  %3223 = vmatprep.subr.bf16.mxu0 %v3452_v2 }
 0x6bc   : > { %v3381_v3 = vpop.eup %3380 }
 0x6bd   : > { %v3383_v45 = vpop.eup %3382  ;;  %3214 = vmatmul.mubr.msk.bf16.vlgmr.msra.gmra.mrb[28].mxu0 %vm1266_vm3, %v1839_v43  ;;  %3220 = vmatmul.mubr.msk.bf16.vlgmr.msra.gmra.mrb[44].mxu1 %vm1266_vm3, %v1840_v57  ;;  %v1832_v42 = vmul.f32 %v3381_v3, %v3367_v49  ;;  %v3439_v43 = vld [vmem:[%s3568_s1 + $0x18] sm:$0xff] }
 0x6be   : > { %3224 = vmatpush3.bf16.msra.mxu0 %v1941_v44  ;;  %3225 = vmatprep.mubr.msk.bf16.mxu0 %vm3453_vm1, %v3452_v2  ;;  %v1834_v28 = vmul.f32 %v3383_v45, %v3365_v62 }
 0x6bf   : > { %3231 = vmatprep.mubr.msk.bf16.mxu1 %vm3453_vm1, %v3452_v2  ;;  %v3277_v2 = vld [vmem:[%s4351_s9 + $0x8] sm:$0xff]   ;;  %3235 = vmatprep.subr.bf16.mxu0 %v3276_v55 }
 0x6c0   : > { %v1841_v51 = vpack.c.bf16 %v1834_v28, %v1832_v42  ;;  %v3385_v21 = vpop.eup %3384 }
 0x6c1   : > { %v1836_v52 = vmul.f32 %v3385_v21, %v3369_v4 }
 0x6c5   : > { %3226 = vmatmul.mubr.msk.bf16.vlgmr.msra.gmra.mrb[32].mxu0 %vm1266_vm3, %v1841_v51 }
 0x6c6   : > { %3236 = vmatpush3.bf16.msra.mxu0 %v3276_v55 }
 0x6c7   : > { %3237 = vmatprep.subr.bf16.mxu0 %v3277_v2 }
 0x6ca   : > { %3238 = vmatpush3.bf16.msra.mxu0 %v3277_v2  ;;  %v3442_v2 = vld [vmem:[%s3568_s1 + $0x28] sm:$0xff] }
 0x6cb   : > { %3239 = vmatprep.subr.bf16.mxu0 %v3278_v38 }
 0x6ce   : > { %3240 = vmatpush3.bf16.msra.mxu0 %v3278_v38 }
 0x6cf   : > { %3241 = vmatprep.subr.bf16.mxu0 %v3279_v59 }
 0x6d2   : > { %3242 = vmatpush3.bf16.msra.mxu0 %v3279_v59 }
 0x6ea   : > { %v1822_v58 = vpop.xlane.xlu1 %1821 }
 0x6eb   : > { %3386 = vrcp.f32 %v1822_v58 }
 0x6ee   : > { %v1989_v25 = vpop.permute.xlu1 %1988 }
 0x6ef   : > { %3230 = vmatpush3.bf16.msra.mxu1 %v1989_v25 }
 0x6f5   : > { %v3387_v23 = vpop.eup %3386 }
 0x6f6   : > { %v1838_v53 = vmul.f32 %v3387_v23, %v3371_v9  ;;  %v3440_v23 = vld [vmem:[%s3568_s1 + $0x20] sm:$0xff] }
 0x6f8   : > { %v1842_v54 = vpack.c.bf16 %v1838_v53, %v1836_v52 }
 0x6fa   : > { %3232 = vmatmul.mubr.msk.bf16.vlgmr.msra.gmra.mrb[48].mxu1 %vm1266_vm3, %v1842_v54  ;;  %v3441_v54 = vld [vmem:[%s3568_s1 + $0x30] sm:$0xff] }
 0x790   : > { %v1884_v39 = vpop.f32.mrb[28].mxu0  ;;  %v1932_v60 = vpop.f32.mrb[44].mxu1 }
 0x791   : > { %v3215_v48 = vpop.f32.mrb[29].mxu0  ;;  %v3221_v0 = vpop.f32.mrb[45].mxu1 }
 0x792   : > { %v1887_v61 = vpop.f32.mrb[30].mxu0  ;;  %v1935_v62 = vpop.f32.mrb[46].mxu1 }
 0x793   : > { %v2035_v49 = vpack.c.bf16 %v1887_v61, %v1884_v39  ;;  %v2036_v63 = vpack.c.bf16 %v1935_v62, %v1932_v60  ;;  %v3216_v1 = vpop.f32.mrb[31].mxu0  ;;  %v3222_v4 = vpop.f32.mrb[47].mxu1  ;;  %v3443_v39 = vld [vmem:[%s3568_s1 + $0x38] sm:$0xff] }
 0x795   : > { %2045 = vrot.lane.b32.xlu1 %v2036_v63, %s3455_s21  ;;  %2043 = vrot.lane.b32.xlu0 %v2035_v49, %s3455_s21 }
 0x798   : > { %v1980_v5 = vpop.f32.mrb[32].mxu0 }
 0x799   : > { %v3227_v6 = vpop.f32.mrb[33].mxu0 }
 0x79a   : > { %v1983_v7 = vpop.f32.mrb[34].mxu0 }
 0x79b   : > { %v2037_v8 = vpack.c.bf16 %v1983_v7, %v1980_v5  ;;  %v3228_v9 = vpop.f32.mrb[35].mxu0 }
 0x79d   : > { %2047 = vrot.lane.b32.xlu0 %v2037_v8, %s3455_s21 }
 0x7cd   : > { %v2028_v11 = vpop.f32.mrb[48].mxu1 }
 0x7ce   : > { %v3233_v12 = vpop.f32.mrb[49].mxu1 }
 0x7cf   : > { %v2031_v14 = vpop.f32.mrb[50].mxu1 }
 0x7d0   : > { %v2038_v24 = vpack.c.bf16 %v2031_v14, %v2028_v11  ;;  %v3234_v50 = vpop.f32.mrb[51].mxu1 }
 0x7d2   : > { %2049 = vrot.lane.b32.xlu1 %v2038_v24, %s3455_s21 }
 0x807   : > { %v2046_v26 = vpop.permute.xlu1 %2045  ;;  %v2044_v15 = vpop.permute.xlu0 %2043 }
 0x808   : > { %v2056_v10 = vsel %vm1077_vm2, %v1536_v33, %v2046_v26  ;;  %v2053_v13 = vsel %vm1077_vm2, %v1535_v22, %v2044_v15 }
 0x809   : > { %3243 = vmatprep.mubr.msk.bf16.mxu0 %vm587_vm0, %v2053_v13 }
 0x80a   : > { %3244 = vmatmul.mubr.msk.bf16.vlgmr.msra.gmra.mrb[36].mxu0 %vm587_vm0, %v2056_v10 }
 0x80f   : > { %v2048_v16 = vpop.permute.xlu0 %2047 }
 0x810   : > { %v2059_v18 = vsel %vm1077_vm2, %v1537_v37, %v2048_v16 }
 0x811   : > { %3247 = vmatprep.mubr.msk.bf16.mxu0 %vm587_vm0, %v2059_v18  ;;  %v3282_v18 = vld [vmem:[%s4356_s14 + $0x4] ss:$8 sps:$4 sm:$0xff]  }
 0x812   : > { %2393 = vmatprep.subr.bf16.mxu1 %v3282_v18 }
 0x844   : > { %v2050_v30 = vpop.permute.xlu1 %2049 }
 0x845   : > { %v2062_v17 = vsel %vm1077_vm2, %v1538_v56, %v2050_v30  ;;  %v3280_v30 = vld [vmem:[%s4356_s14] ss:$8 sps:$4 sm:$0xff]  }
 0x846   : > { %3248 = vmatmul.mubr.msk.bf16.gmra.mrb[40].mxu0 %vm587_vm0, %v2062_v17  ;;  %2394 = vmatpush1.bf16.msra.mxu1 %v3280_v30  ;;  %v3285_v17 = vld [vmem:[%s4356_s14 + $0x14] ss:$8 sps:$4 sm:$0xff]  }
 0x847   : > { %2395 = vmatprep.subr.bf16.mxu1 %v3285_v17 }
 0x8dd   : > { %v3245_v22 = vpop.f32.mrb[36].mxu0 }
 0x8de   : > { %v2144_v32 = vpop.f32.mrb[37].mxu0  ;;  %v2153_v33 = vadd.f32 %v3245_v22, %v2943_v19  ;;  %v3288_v22 = vld [vmem:[%s4356_s14 + $0x24] ss:$8 sps:$4 sm:$0xff]  }
 0x8df   : > { %v2145_v35 = vadd.f32 %v2943_v19, %v2144_v32  ;;  %v3246_v20 = vpop.f32.mrb[38].mxu0  ;;  %v3286_v32 = vld [vmem:[%s4356_s14 + $0x20] ss:$8 sps:$4 sm:$0xff]  }
 0x8e0   : > { %v2147_v37 = vpop.f32.mrb[39].mxu0  ;;  %v3992_v31 = vadd.f32 %v3437_v29, %v2153_v33  ;;  %v2156_v56 = vadd.f32 %v3246_v20, %v2943_v19  ;;  %v3291_v33 = vld [vmem:[%s4356_s14 + $0x34] ss:$8 sps:$4 sm:$0xff]   ;;  %v3456_v20 = vmov 0  }
 0x8e1   : > { %v3989_v47 = vadd.f32 %v3436_v27, %v2145_v35  ;;  %v2148_v46 = vadd.f32 %v2943_v19, %v2147_v37  ;;  %v3289_v35 = vld [vmem:[%s4356_s14 + $0x30] ss:$8 sps:$4 sm:$0xff]   ;;  %2425 = vmatprep.mubr.bf16.mxu1 %v3456_v20 }
 0x8e2   : > { %v4002_v57 = vadd.f32 %v3439_v43, %v2156_v56  ;;  %v2191_v3 = vsel %vm587_vm0, %v3992_v31, 0.0 }
 0x8e3   : > { %v3995_v36 = vadd.f32 %v3438_v34, %v2148_v46  ;;  %v2185_v40 = vsel %vm587_vm0, %v3989_v47, 0.0 }
 0x8e4   : > { %2186 = vadd.xlane.f32.xlu0 %v2185_v40  ;;  %v2194_v45 = vsel %vm587_vm0, %v4002_v57, 0.0 }
 0x8e5   : > { %v2188_v41 = vsel %vm587_vm0, %v3995_v36, 0.0 }
 0x8e6   : > { %2189 = vadd.xlane.f32.xlu1 %v2188_v41 }
 0x8e8   : > { %2192 = vadd.xlane.f32.xlu0 %v2191_v3 }
 0x8ec   : > { %2195 = vadd.xlane.f32.xlu0 %v2194_v45 }
 0x919   : > { %v3249_v44 = vpop.f32.mrb[40].mxu0 }
 0x91a   : > { %v2169_v42 = vadd.f32 %v3249_v44, %v2943_v19  ;;  %v2160_v28 = vpop.f32.mrb[41].mxu0 }
 0x91b   : > { %v2161_v51 = vadd.f32 %v2943_v19, %v2160_v28  ;;  %v3250_v58 = vpop.f32.mrb[42].mxu0 }
 0x91c   : > { %v2172_v25 = vadd.f32 %v3250_v58, %v2943_v19  ;;  %v2163_v21 = vpop.f32.mrb[43].mxu0  ;;  %v4012_v55 = vadd.f32 %v3441_v54, %v2169_v42 }
 0x91d   : > { %v4009_v52 = vadd.f32 %v3440_v23, %v2161_v51  ;;  %v2164_v53 = vadd.f32 %v2943_v19, %v2163_v21  ;;  %v3283_v19 = vld [vmem:[%s4356_s14 + $0x10] ss:$8 sps:$4 sm:$0xff]  }
 0x91e   : > { %v4020_v60 = vadd.f32 %v3443_v39, %v2172_v25  ;;  %v2203_v0 = vsel %vm587_vm0, %v4012_v55, 0.0  ;;  %2396 = vmatpush1.bf16.msra.mxu1 %v3283_v19 }
 0x91f   : > { %v4015_v38 = vadd.f32 %v3442_v2, %v2164_v53  ;;  %v2197_v59 = vsel %vm587_vm0, %v4009_v52, 0.0  ;;  %2397 = vmatprep.subr.bf16.mxu1 %v3288_v22 }
 0x920   : > { %2198 = vadd.xlane.f32.xlu0 %v2197_v59  ;;  %v2206_v61 = vsel %vm587_vm0, %v4020_v60, 0.0 }
 0x921   : > { %v2200_v48 = vsel %vm587_vm0, %v4015_v38, 0.0 }
 0x922   : > { %2201 = vadd.xlane.f32.xlu1 %v2200_v48  ;;  %2398 = vmatpush1.bf16.msra.mxu1 %v3286_v32 }
 0x923   : > { %2399 = vmatprep.subr.bf16.mxu1 %v3291_v33 }
 0x924   : > { %2204 = vadd.xlane.f32.xlu0 %v2203_v0 }
 0x926   : > { %2207 = vadd.xlane.f32.xlu1 %v2206_v61  ;;  %2400 = vmatpush1.bf16.msra.mxu1 %v3289_v35 }
 0x971   : > { %v2187_v62 = vpop.xlane.xlu0 %2186 }
 0x972   : > { %v2209_v49 = vmul.f32 0.015625, %v2187_v62 }
 0x973   : > { %v2190_v63 = vpop.xlane.xlu1 %2189 }
 0x974   : > { %v4029_v1 = vsub.f32 %v3989_v47, %v2209_v49  ;;  %v2210_v4 = vmul.f32 0.015625, %v2190_v63 }
 0x975   : > { %v2193_v5 = vpop.xlane.xlu0 %2192 }
 0x976   : > { %v4032_v6 = vsub.f32 %v3995_v36, %v2210_v4  ;;  %v2211_v7 = vmul.f32 0.015625, %v2193_v5  ;;  %v2225_v8 = vmul.f32 %v4029_v1, %v4029_v1 }
 0x978   : > { %v4037_v9 = vsub.f32 %v3992_v31, %v2211_v7  ;;  %v2233_v11 = vsel %vm587_vm0, %v2225_v8, 0.0  ;;  %v2226_v12 = vmul.f32 %v4032_v6, %v4032_v6  ;;  %v2952_v8 = vld [vmem:[%s4354_s12] ss:$0 sm:$0xff] }
 0x979   : > { %2234 = vadd.xlane.f32.xlu0 %v2233_v11  ;;  %v2196_v14 = vpop.xlane.xlu0 %2195 }
 0x97a   : > { %v2212_v24 = vmul.f32 0.015625, %v2196_v14  ;;  %v2236_v50 = vsel %vm587_vm0, %v2226_v12, 0.0  ;;  %v2227_v26 = vmul.f32 %v4037_v9, %v4037_v9 }
 0x97b   : > { %2237 = vadd.xlane.f32.xlu1 %v2236_v50 }
 0x97c   : > { %v4046_v15 = vsub.f32 %v4002_v57, %v2212_v24  ;;  %v2239_v10 = vsel %vm587_vm0, %v2227_v26, 0.0  ;;  %v2953_v26 = vld [vmem:[%s4355_s13] ss:$0 sm:$0xff] }
 0x97d   : > { %2240 = vadd.xlane.f32.xlu0 %v2239_v10 }
 0x97e   : > { %v2228_v13 = vmul.f32 %v4046_v15, %v4046_v15 }
 0x980   : > { %v2242_v16 = vsel %vm587_vm0, %v2228_v13, 0.0 }
 0x981   : > { %2243 = vadd.xlane.f32.xlu1 %v2242_v16 }
 0x9ad   : > { %v2199_v37 = vpop.xlane.xlu0 %2198 }
 0x9ae   : > { %v2213_v27 = vmul.f32 0.015625, %v2199_v37 }
 0x9af   : > { %v2202_v46 = vpop.xlane.xlu1 %2201 }
 0x9b0   : > { %v4078_v29 = vsub.f32 %v4009_v52, %v2213_v27  ;;  %v2214_v56 = vmul.f32 0.015625, %v2202_v46 }
 0x9b1   : > { %v2205_v34 = vpop.xlane.xlu0 %2204 }
 0x9b2   : > { %v4081_v40 = vsub.f32 %v4015_v38, %v2214_v56  ;;  %v2215_v41 = vmul.f32 0.015625, %v2205_v34  ;;  %v2229_v43 = vmul.f32 %v4078_v29, %v4078_v29 }
 0x9b3   : > { %v2208_v3 = vpop.xlane.xlu1 %2207 }
 0x9b4   : > { %v4086_v45 = vsub.f32 %v4012_v55, %v2215_v41  ;;  %v2216_v44 = vmul.f32 0.015625, %v2208_v3  ;;  %v2245_v42 = vsel %vm587_vm0, %v2229_v43, 0.0  ;;  %v2230_v28 = vmul.f32 %v4081_v40, %v4081_v40 }
 0x9b5   : > { %2246 = vadd.xlane.f32.xlu0 %v2245_v42 }
 0x9b6   : > { %v4092_v51 = vsub.f32 %v4020_v60, %v2216_v44  ;;  %v2248_v58 = vsel %vm587_vm0, %v2230_v28, 0.0  ;;  %v2231_v25 = vmul.f32 %v4086_v45, %v4086_v45 }
 0x9b7   : > { %2249 = vadd.xlane.f32.xlu1 %v2248_v58 }
 0x9b8   : > { %v2251_v21 = vsel %vm587_vm0, %v2231_v25, 0.0  ;;  %v2232_v23 = vmul.f32 %v4092_v51, %v4092_v51 }
 0x9b9   : > { %2252 = vadd.xlane.f32.xlu0 %v2251_v21 }
 0x9ba   : > { %v2254_v53 = vsel %vm587_vm0, %v2232_v23, 0.0 }
 0x9bb   : > { %2255 = vadd.xlane.f32.xlu1 %v2254_v53 }
 0xa06   : > { %v2235_v54 = vpop.xlane.xlu0 %2234 }
 0xa07   : > { %v2257_v2 = vmul.f32 0.015625, %v2235_v54 }
 0xa08   : > { %v2238_v59 = vpop.xlane.xlu1 %2237 }
 0xa09   : > { %v2265_v39 = vadd.f32 1e-05, %v2257_v2  ;;  %v2258_v48 = vmul.f32 0.015625, %v2238_v59 }
 0xa0a   : > { %v2241_v0 = vpop.xlane.xlu0 %2240 }
 0xa0b   : > { %3388 = vrsqrt.f32 %v2265_v39  ;;  %v2266_v61 = vadd.f32 1e-05, %v2258_v48  ;;  %v2259_v62 = vmul.f32 0.015625, %v2241_v0 }
 0xa0d   : > { %3390 = vrsqrt.f32 %v2266_v61  ;;  %v2267_v49 = vadd.f32 1e-05, %v2259_v62 }
 0xa0e   : > { %v2244_v63 = vpop.xlane.xlu1 %2243 }
 0xa0f   : > { %3392 = vrsqrt.f32 %v2267_v49  ;;  %v2260_v4 = vmul.f32 0.015625, %v2244_v63  ;;  %v3294_v63 = vld [vmem:[%s4358_s16 + $0x48] sm:$0xff]  }
 0xa11   : > { %v2268_v5 = vadd.f32 1e-05, %v2260_v4  ;;  %v3296_v4 = vld [vmem:[%s4358_s16 + $0x50] sm:$0xff]  }
 0xa13   : > { %3394 = vrsqrt.f32 %v2268_v5  ;;  %v3297_v5 = vld [vmem:[%s4358_s16 + $0x10] sm:$0xff]  }
 0xa15   : > { %v3389_v7 = vpop.eup %3388 }
 0xa16   : > { %v2281_v11 = vmul.f32 %v3389_v7, %v4029_v1  ;;  %v3298_v7 = vld [vmem:[%s4358_s16 + $0x58] sm:$0xff]  }
 0xa17   : > { %v3391_v12 = vpop.eup %3390 }
 0xa18   : > { %v2295_v14 = vmul.f32 %v2952_v8, %v2281_v11  ;;  %v2282_v24 = vmul.f32 %v3391_v12, %v4032_v6  ;;  %v3300_v11 = vld [vmem:[%s4358_s16 + $0x60] sm:$0xff]  }
 0xa19   : > { %v3393_v50 = vpop.eup %3392  ;;  %v3301_v12 = vld [vmem:[%s4358_s16 + $0x20] sm:$0xff]  }
 0xa1a   : > { %v2296_v10 = vmul.f32 %v2952_v8, %v2282_v24  ;;  %v2283_v13 = vmul.f32 %v3393_v50, %v4037_v9  ;;  %v2309_v16 = vadd.f32 %v2953_v26, %v2295_v14  ;;  %v3302_v14 = vld [vmem:[%s4358_s16 + $0x68] sm:$0xff]   ;;  %v3304_v50 = vld [vmem:[%s4358_s16 + $0x70] sm:$0xff]  }
 0xa1b   : > { %v3303_v24 = vld [vmem:[%s4358_s16 + $0x28] sm:$0xff]  }
 0xa1c   : > { %v2310_v18 = vadd.f32 %v2953_v26, %v2296_v10  ;;  %v2297_v1 = vmul.f32 %v2952_v8, %v2283_v13  ;;  %v3306_v10 = vld [vmem:[%s4358_s16 + $0x78] sm:$0xff]  }
 0xa1d   : > { %v3395_v30 = vpop.eup %3394  ;;  %v3307_v13 = vld [vmem:[%s4358_s16 + $0x38] sm:$0xff]  }
 0xa1e   : > { %v2284_v17 = vmul.f32 %v3395_v30, %v4046_v15  ;;  %v2317_v19 = vpack.c.bf16 %v2310_v18, %v2309_v16  ;;  %v2311_v32 = vadd.f32 %v2953_v26, %v2297_v1  ;;  %v2331_v16 = vlaneseq }
 0xa20   : > { %2962 = vmatmul.mubr.msk.bf16.vlgmr.msra.gmra.mrb[52].mxu1 %vm587_vm0, %v2317_v19  ;;  %v2298_v22 = vmul.f32 %v2952_v8, %v2284_v17  ;;  %v2332_v18 = vshrl.u32 %v2331_v16, 7  ;;  %v2329_v17 = vld [vmem:[%s4357_s15] sm:$0x3] }
 0xa21   : > { %2435 = vmatprep.mubr.bf16.mxu1 %v3456_v20 }
 0xa22   : > { %v2312_v6 = vadd.f32 %v2953_v26, %v2298_v22  ;;  %v2333_v30 = vsub.s32 0, %v2332_v18  ;;  %v2337_v19 = vsub.s32 1, %v2332_v18 }
 0xa24   : > { %v2318_v33 = vpack.c.bf16 %v2312_v6, %v2311_v32  ;;  %v4173_v1 = vrot.slane %v2329_v17, %v2333_v30  ;;  %v4175_v22 = vrot.slane %v2329_v17, %v2337_v19 }
 0xa28   : > { %2963 = vmatmul.mubr.msk.bf16.gmra.mrb[56].mxu1 %vm587_vm0, %v2318_v33 }
 0xa29   : > { %2445 = vmatprep.mubr.bf16.mxu1 %v3456_v20 }
 0xa42   : > { %v2247_v9 = vpop.xlane.xlu0 %2246 }
 0xa43   : > { %v2261_v35 = vmul.f32 0.015625, %v2247_v9 }
 0xa44   : > { %v2250_v37 = vpop.xlane.xlu1 %2249 }
 0xa45   : > { %v2269_v27 = vadd.f32 1e-05, %v2261_v35  ;;  %v2262_v46 = vmul.f32 0.015625, %v2250_v37 }
 0xa46   : > { %v2253_v15 = vpop.xlane.xlu0 %2252 }
 0xa47   : > { %3396 = vrsqrt.f32 %v2269_v27  ;;  %v2270_v56 = vadd.f32 1e-05, %v2262_v46  ;;  %v2263_v34 = vmul.f32 0.015625, %v2253_v15 }
 0xa48   : > { %v2256_v41 = vpop.xlane.xlu1 %2255 }
 0xa49   : > { %3398 = vrsqrt.f32 %v2270_v56  ;;  %v2271_v43 = vadd.f32 1e-05, %v2263_v34  ;;  %v2264_v3 = vmul.f32 0.015625, %v2256_v41 }
 0xa4b   : > { %3400 = vrsqrt.f32 %v2271_v43  ;;  %v2272_v44 = vadd.f32 1e-05, %v2264_v3 }
 0xa4d   : > { %3402 = vrsqrt.f32 %v2272_v44 }
 0xa51   : > { %v3397_v42 = vpop.eup %3396 }
 0xa52   : > { %v2285_v28 = vmul.f32 %v3397_v42, %v4078_v29 }
 0xa53   : > { %v3399_v58 = vpop.eup %3398 }
 0xa54   : > { %v2286_v25 = vmul.f32 %v3399_v58, %v4081_v40  ;;  %v2299_v21 = vmul.f32 %v2952_v8, %v2285_v28 }
 0xa55   : > { %v3401_v23 = vpop.eup %3400 }
 0xa56   : > { %v2300_v53 = vmul.f32 %v2952_v8, %v2286_v25  ;;  %v2287_v2 = vmul.f32 %v3401_v23, %v4086_v45  ;;  %v2313_v39 = vadd.f32 %v2953_v26, %v2299_v21  ;;  %v3292_v45 = vld [vmem:[%s4358_s16 + $0x40] sm:$0xff]  }
 0xa57   : > { %v3403_v54 = vpop.eup %3402  ;;  %3051 = vmatprep.subr.bf16.mxu0 %v3292_v45 }
 0xa58   : > { %v2288_v59 = vmul.f32 %v3403_v54, %v4092_v51  ;;  %v2314_v48 = vadd.f32 %v2953_v26, %v2300_v53  ;;  %v2301_v62 = vmul.f32 %v2952_v8, %v2287_v2  ;;  %v3293_v51 = vld [vmem:[%s4358_s16] sm:$0xff]  }
 0xa59   : > { %3052 = vmatpush3.bf16.msra.mxu0 %v3293_v51 }
 0xa5a   : > { %v2319_v0 = vpack.c.bf16 %v2314_v48, %v2313_v39  ;;  %v2302_v61 = vmul.f32 %v2952_v8, %v2288_v59  ;;  %v2315_v49 = vadd.f32 %v2953_v26, %v2301_v62  ;;  %3053 = vmatprep.subr.bf16.mxu0 %v3294_v63  ;;  %v3299_v8 = vld [vmem:[%s4358_s16 + $0x18] sm:$0xff]  }
 0xa5c   : > { %2964 = vmatmul.mubr.msk.bf16.gmra.mrb[60].mxu1 %vm587_vm0, %v2319_v0  ;;  %v2316_v29 = vadd.f32 %v2953_v26, %v2302_v61  ;;  %v3305_v26 = vld [vmem:[%s4358_s16 + $0x30] sm:$0xff]  }
 0xa5d   : > { %2455 = vmatprep.mubr.bf16.mxu1 %v3456_v20  ;;  %v3295_v20 = vld [vmem:[%s4358_s16 + $0x8] sm:$0xff]  }
 0xa5e   : > { %v2320_v40 = vpack.c.bf16 %v2316_v29, %v2315_v49  ;;  %3054 = vmatpush3.bf16.msra.mxu0 %v3295_v20 }
 0xa5f   : > { %3055 = vmatprep.subr.bf16.mxu0 %v3296_v4 }
 0xa62   : > { %3056 = vmatpush3.bf16.msra.mxu0 %v3297_v5 }
 0xa63   : > { %3057 = vmatprep.subr.bf16.mxu0 %v3298_v7 }
 0xa64   : > { %2965 = vmatmul.mubr.msk.bf16.gmra.mrb[64].mxu1 %vm587_vm0, %v2320_v40 }
 0xa66   : > { %3058 = vmatpush3.bf16.msra.mxu0 %v3299_v8 }
 0xa67   : > { %3059 = vmatprep.subr.bf16.mxu0 %v3300_v11 }
 0xa6a   : > { %3060 = vmatpush3.bf16.msra.mxu0 %v3301_v12 }
 0xa6b   : > { %3061 = vmatprep.subr.bf16.mxu0 %v3302_v14 }
 0xa6e   : > { %3062 = vmatpush3.bf16.msra.mxu0 %v3303_v24 }
 0xa6f   : > { %3063 = vmatprep.subr.bf16.mxu0 %v3304_v50 }
 0xa72   : > { %3064 = vmatpush3.bf16.msra.mxu0 %v3305_v26 }
 0xa73   : > { %3065 = vmatprep.subr.bf16.mxu0 %v3306_v10 }
 0xa76   : > { %3066 = vmatpush3.bf16.msra.mxu0 %v3307_v13 }
 0xaf3   : > { %v2427_v6 = vpop.f32.mrb[52].mxu1 }
 0xaf4   : > { %v4178_v32 = vadd.f32 %v2427_v6, %v4173_v1  ;;  %v2429_v33 = vpop.f32.mrb[53].mxu1 }
 0xaf5   : > { %v4181_v9 = vadd.f32 %v2429_v33, %v4175_v22  ;;  %v2431_v35 = vpop.f32.mrb[54].mxu1 }
 0xaf6   : > { %v2466_v37 = vmul.f32 %v4178_v32, %v4178_v32  ;;  %v4186_v27 = vadd.f32 %v2431_v35, %v4173_v1  ;;  %v2433_v46 = vpop.f32.mrb[55].mxu1 }
 0xaf7   : > { %v2467_v15 = vmul.f32 %v4181_v9, %v4181_v9  ;;  %v4191_v56 = vadd.f32 %v2433_v46, %v4175_v22 }
 0xaf8   : > { %v2482_v34 = vmul.f32 %v2466_v37, %v4178_v32  ;;  %v2468_v41 = vmul.f32 %v4186_v27, %v4186_v27 }
 0xaf9   : > { %v2483_v43 = vmul.f32 %v2467_v15, %v4181_v9  ;;  %v2469_v3 = vmul.f32 %v4191_v56, %v4191_v56 }
 0xafa   : > { %v2498_v44 = vmul.f32 0.044715, %v2482_v34  ;;  %v2484_v42 = vmul.f32 %v2468_v41, %v4186_v27 }
 0xafb   : > { %v2499_v28 = vmul.f32 0.044715, %v2483_v43  ;;  %v2485_v58 = vmul.f32 %v2469_v3, %v4191_v56  ;;  %v2437_v25 = vpop.f32.mrb[56].mxu1 }
 0xafc   : > { %v2514_v21 = vadd.f32 %v2498_v44, %v4178_v32  ;;  %v2500_v23 = vmul.f32 0.044715, %v2484_v42  ;;  %v4203_v53 = vadd.f32 %v2437_v25, %v4173_v1  ;;  %v2439_v54 = vpop.f32.mrb[57].mxu1 }
 0xafd   : > { %v2515_v2 = vadd.f32 %v2499_v28, %v4181_v9  ;;  %v2501_v59 = vmul.f32 0.044715, %v2485_v58  ;;  %v4207_v39 = vadd.f32 %v2439_v54, %v4175_v22  ;;  %v2441_v48 = vpop.f32.mrb[58].mxu1 }
 0xafe   : > { %v2530_v0 = vmul.f32 0.7978846, %v2514_v21  ;;  %v2516_v61 = vadd.f32 %v2500_v23, %v4186_v27  ;;  %v2470_v62 = vmul.f32 %v4203_v53, %v4203_v53  ;;  %v4213_v29 = vadd.f32 %v2441_v48, %v4173_v1  ;;  %v2443_v49 = vpop.f32.mrb[59].mxu1 }
 0xaff   : > { %v2531_v40 = vmul.f32 0.7978846, %v2515_v2  ;;  %v2517_v45 = vadd.f32 %v2501_v59, %v4191_v56  ;;  %v2471_v51 = vmul.f32 %v4207_v39, %v4207_v39  ;;  %v4219_v63 = vadd.f32 %v2443_v49, %v4175_v22 }
 0xb00   : > { %3404 = vtanh.f32 %v2530_v0  ;;  %v2532_v20 = vmul.f32 0.7978846, %v2516_v61  ;;  %v2486_v4 = vmul.f32 %v2470_v62, %v4203_v53  ;;  %v2472_v5 = vmul.f32 %v4213_v29, %v4213_v29 }
 0xb01   : > { %3406 = vtanh.f32 %v2531_v40  ;;  %v2533_v7 = vmul.f32 0.7978846, %v2517_v45  ;;  %v2487_v8 = vmul.f32 %v2471_v51, %v4207_v39  ;;  %v2473_v11 = vmul.f32 %v4219_v63, %v4219_v63 }
 0xb02   : > { %3408 = vtanh.f32 %v2532_v20  ;;  %v2502_v12 = vmul.f32 0.044715, %v2486_v4  ;;  %v2488_v14 = vmul.f32 %v2472_v5, %v4213_v29 }
 0xb03   : > { %3410 = vtanh.f32 %v2533_v7  ;;  %v2503_v24 = vmul.f32 0.044715, %v2487_v8  ;;  %v2489_v50 = vmul.f32 %v2473_v11, %v4219_v63 }
 0xb04   : > { %v2518_v26 = vadd.f32 %v2502_v12, %v4203_v53  ;;  %v2504_v10 = vmul.f32 0.044715, %v2488_v14 }
 0xb05   : > { %v2519_v13 = vadd.f32 %v2503_v24, %v4207_v39  ;;  %v2505_v16 = vmul.f32 0.044715, %v2489_v50 }
 0xb06   : > { %v2534_v18 = vmul.f32 0.7978846, %v2518_v26  ;;  %v2520_v30 = vadd.f32 %v2504_v10, %v4213_v29 }
 0xb07   : > { %v2535_v17 = vmul.f32 0.7978846, %v2519_v13  ;;  %v2521_v19 = vadd.f32 %v2505_v16, %v4219_v63 }
 0xb08   : > { %3412 = vtanh.f32 %v2534_v18  ;;  %v2536_v6 = vmul.f32 0.7978846, %v2520_v30 }
 0xb09   : > { %3414 = vtanh.f32 %v2535_v17  ;;  %v2537_v33 = vmul.f32 0.7978846, %v2521_v19 }
 0xb0a   : > { %v3405_v35 = vpop.eup %3404  ;;  %3416 = vtanh.f32 %v2536_v6 }
 0xb0b   : > { %v3407_v37 = vpop.eup %3406  ;;  %v2562_v46 = vadd.f32 1.0, %v3405_v35  ;;  %3418 = vtanh.f32 %v2537_v33 }
 0xb0c   : > { %v3409_v15 = vpop.eup %3408  ;;  %v2563_v34 = vadd.f32 1.0, %v3407_v37 }
 0xb0d   : > { %v3411_v41 = vpop.eup %3410  ;;  %v2578_v43 = vmul.f32 0.5, %v2562_v46  ;;  %v2564_v3 = vadd.f32 1.0, %v3409_v15 }
 0xb0e   : > { %v2565_v44 = vadd.f32 1.0, %v3411_v41  ;;  %v2579_v42 = vmul.f32 0.5, %v2563_v34 }
 0xb0f   : > { %v2580_v28 = vmul.f32 0.5, %v2564_v3  ;;  %v2594_v25 = vmul.f32 %v2578_v43, %v4178_v32 }
 0xb10   : > { %v2581_v58 = vmul.f32 0.5, %v2565_v44  ;;  %v2595_v54 = vmul.f32 %v2579_v42, %v4181_v9 }
 0xb11   : > { %v2596_v21 = vmul.f32 %v2580_v28, %v4186_v27 }
 0xb12   : > { %v3413_v23 = vpop.eup %3412  ;;  %v2597_v2 = vmul.f32 %v2581_v58, %v4191_v56 }
 0xb13   : > { %v3415_v59 = vpop.eup %3414  ;;  %v2610_v48 = vpack.c.bf16 %v2596_v21, %v2594_v25  ;;  %v2566_v0 = vadd.f32 1.0, %v3413_v23 }
 0xb14   : > { %v3417_v61 = vpop.eup %3416  ;;  %v2611_v62 = vpack.c.bf16 %v2597_v2, %v2595_v54  ;;  %v2567_v49 = vadd.f32 1.0, %v3415_v59 }
 0xb15   : > { %v3419_v40 = vpop.eup %3418  ;;  %v2568_v45 = vadd.f32 1.0, %v3417_v61  ;;  %v2582_v51 = vmul.f32 0.5, %v2566_v0 }
 0xb16   : > { %2785 = vmatprep.mubr.bf16.mxu0 %v2611_v62  ;;  %v2569_v20 = vadd.f32 1.0, %v3419_v40  ;;  %v2583_v4 = vmul.f32 0.5, %v2567_v49 }
 0xb17   : > { %2786 = vmatmul.mubr.bf16.vlgmr.msra.gmra.mrb[44].mxu0 %v2610_v48  ;;  %v2584_v32 = vmul.f32 0.5, %v2568_v45  ;;  %v2598_v5 = vmul.f32 %v2582_v51, %v4203_v53 }
 0xb18   : > { %v2585_v27 = vmul.f32 0.5, %v2569_v20  ;;  %v2599_v56 = vmul.f32 %v2583_v4, %v4207_v39 }
 0xb19   : > { %v2600_v9 = vmul.f32 %v2584_v32, %v4213_v29 }
 0xb1a   : > { %v2601_v7 = vmul.f32 %v2585_v27, %v4219_v63 }
 0xb1b   : > { %v2612_v8 = vpack.c.bf16 %v2600_v9, %v2598_v5 }
 0xb1c   : > { %v2613_v11 = vpack.c.bf16 %v2601_v7, %v2599_v56 }
 0xb1e   : > { %2793 = vmatprep.mubr.bf16.mxu0 %v2613_v11 }
 0xb1f   : > { %2794 = vmatmul.mubr.bf16.gmra.mrb[48].mxu0 %v2612_v8 }
 0xb2f   : > { %v2447_v12 = vpop.f32.mrb[60].mxu1 }
 0xb30   : > { %v4242_v14 = vadd.f32 %v2447_v12, %v4173_v1  ;;  %v2449_v24 = vpop.f32.mrb[61].mxu1 }
 0xb31   : > { %v4245_v50 = vadd.f32 %v2449_v24, %v4175_v22  ;;  %v2451_v26 = vpop.f32.mrb[62].mxu1 }
 0xb32   : > { %v2474_v53 = vmul.f32 %v4242_v14, %v4242_v14  ;;  %v4250_v39 = vadd.f32 %v2451_v26, %v4173_v1  ;;  %v2453_v29 = vpop.f32.mrb[63].mxu1 }
 0xb33   : > { %v2475_v63 = vmul.f32 %v4245_v50, %v4245_v50  ;;  %v4255_v10 = vadd.f32 %v2453_v29, %v4175_v22 }
 0xb34   : > { %v2490_v13 = vmul.f32 %v2474_v53, %v4242_v14  ;;  %v2476_v16 = vmul.f32 %v4250_v39, %v4250_v39 }
 0xb35   : > { %v2491_v18 = vmul.f32 %v2475_v63, %v4245_v50  ;;  %v2477_v30 = vmul.f32 %v4255_v10, %v4255_v10 }
 0xb36   : > { %v2506_v17 = vmul.f32 0.044715, %v2490_v13  ;;  %v2492_v19 = vmul.f32 %v2476_v16, %v4250_v39 }
 0xb37   : > { %v2507_v6 = vmul.f32 0.044715, %v2491_v18  ;;  %v2493_v33 = vmul.f32 %v2477_v30, %v4255_v10  ;;  %v2457_v35 = vpop.f32.mrb[64].mxu1 }
 0xb38   : > { %v2522_v37 = vadd.f32 %v2506_v17, %v4242_v14  ;;  %v2508_v46 = vmul.f32 0.044715, %v2492_v19  ;;  %v4267_v15 = vadd.f32 %v2457_v35, %v4173_v1  ;;  %v2459_v34 = vpop.f32.mrb[65].mxu1 }
 0xb39   : > { %v2523_v41 = vadd.f32 %v2507_v6, %v4245_v50  ;;  %v2509_v43 = vmul.f32 0.044715, %v2493_v33  ;;  %v4271_v3 = vadd.f32 %v2459_v34, %v4175_v22  ;;  %v2461_v44 = vpop.f32.mrb[66].mxu1 }
 0xb3a   : > { %v2538_v42 = vmul.f32 0.7978846, %v2522_v37  ;;  %v2524_v28 = vadd.f32 %v2508_v46, %v4250_v39  ;;  %v2478_v58 = vmul.f32 %v4267_v15, %v4267_v15  ;;  %v4277_v25 = vadd.f32 %v2461_v44, %v4173_v1  ;;  %v2463_v21 = vpop.f32.mrb[67].mxu1 }
 0xb3b   : > { %v2539_v23 = vmul.f32 0.7978846, %v2523_v41  ;;  %v2525_v54 = vadd.f32 %v2509_v43, %v4255_v10  ;;  %v2479_v2 = vmul.f32 %v4271_v3, %v4271_v3  ;;  %v4283_v59 = vadd.f32 %v2463_v21, %v4175_v22 }
 0xb3c   : > { %3420 = vtanh.f32 %v2538_v42  ;;  %v2540_v48 = vmul.f32 0.7978846, %v2524_v28  ;;  %v2494_v0 = vmul.f32 %v2478_v58, %v4267_v15  ;;  %v2480_v61 = vmul.f32 %v4277_v25, %v4277_v25 }
 0xb3d   : > { %3422 = vtanh.f32 %v2539_v23  ;;  %v2541_v1 = vmul.f32 0.7978846, %v2525_v54  ;;  %v2495_v62 = vmul.f32 %v2479_v2, %v4271_v3  ;;  %v2481_v49 = vmul.f32 %v4283_v59, %v4283_v59 }
 0xb3e   : > { %3424 = vtanh.f32 %v2540_v48  ;;  %v2510_v40 = vmul.f32 0.044715, %v2494_v0  ;;  %v2496_v45 = vmul.f32 %v2480_v61, %v4277_v25 }
 0xb3f   : > { %3426 = vtanh.f32 %v2541_v1  ;;  %v2511_v22 = vmul.f32 0.044715, %v2495_v62  ;;  %v2497_v51 = vmul.f32 %v2481_v49, %v4283_v59  ;;  %v2966_v49 = vld [vmem:[%s4359_s17] ss:$0 sm:$0xff] }
 0xb40   : > { %v2526_v20 = vadd.f32 %v2510_v40, %v4267_v15  ;;  %v2512_v4 = vmul.f32 0.044715, %v2496_v45 }
 0xb41   : > { %v2527_v32 = vadd.f32 %v2511_v22, %v4271_v3  ;;  %v2513_v27 = vmul.f32 0.044715, %v2497_v51 }
 0xb42   : > { %v2542_v5 = vmul.f32 0.7978846, %v2526_v20  ;;  %v2528_v9 = vadd.f32 %v2512_v4, %v4277_v25 }
 0xb43   : > { %v2543_v56 = vmul.f32 0.7978846, %v2527_v32  ;;  %v2529_v7 = vadd.f32 %v2513_v27, %v4283_v59 }
 0xb44   : > { %3428 = vtanh.f32 %v2542_v5  ;;  %v2544_v8 = vmul.f32 0.7978846, %v2528_v9 }
 0xb45   : > { %3430 = vtanh.f32 %v2543_v56  ;;  %v2545_v11 = vmul.f32 0.7978846, %v2529_v7 }
 0xb46   : > { %v3421_v12 = vpop.eup %3420  ;;  %3432 = vtanh.f32 %v2544_v8 }
 0xb47   : > { %v3423_v24 = vpop.eup %3422  ;;  %3434 = vtanh.f32 %v2545_v11  ;;  %v2570_v26 = vadd.f32 1.0, %v3421_v12 }
 0xb48   : > { %v3425_v53 = vpop.eup %3424  ;;  %v2571_v29 = vadd.f32 1.0, %v3423_v24 }
 0xb49   : > { %v3427_v63 = vpop.eup %3426  ;;  %v2572_v13 = vadd.f32 1.0, %v3425_v53  ;;  %v2586_v16 = vmul.f32 0.5, %v2570_v26 }
 0xb4a   : > { %v2573_v18 = vadd.f32 1.0, %v3427_v63  ;;  %v2587_v30 = vmul.f32 0.5, %v2571_v29 }
 0xb4b   : > { %v2588_v17 = vmul.f32 0.5, %v2572_v13  ;;  %v2602_v6 = vmul.f32 %v2586_v16, %v4242_v14 }
 0xb4c   : > { %v2589_v19 = vmul.f32 0.5, %v2573_v18  ;;  %v2603_v37 = vmul.f32 %v2587_v30, %v4245_v50 }
 0xb4d   : > { %v2604_v33 = vmul.f32 %v2588_v17, %v4250_v39 }
 0xb4e   : > { %v3429_v35 = vpop.eup %3428  ;;  %v2605_v46 = vmul.f32 %v2589_v19, %v4255_v10 }
 0xb4f   : > { %v3431_v34 = vpop.eup %3430  ;;  %v2614_v41 = vpack.c.bf16 %v2604_v33, %v2602_v6  ;;  %v2574_v43 = vadd.f32 1.0, %v3429_v35 }
 0xb50   : > { %v3433_v44 = vpop.eup %3432  ;;  %v2615_v42 = vpack.c.bf16 %v2605_v46, %v2603_v37  ;;  %v2575_v28 = vadd.f32 1.0, %v3431_v34 }
 0xb51   : > { %v3435_v58 = vpop.eup %3434  ;;  %v2576_v21 = vadd.f32 1.0, %v3433_v44  ;;  %v2590_v23 = vmul.f32 0.5, %v2574_v43 }
 0xb52   : > { %2801 = vmatprep.mubr.bf16.mxu0 %v2615_v42  ;;  %v2577_v54 = vadd.f32 1.0, %v3435_v58  ;;  %v2591_v2 = vmul.f32 0.5, %v2575_v28 }
 0xb53   : > { %2802 = vmatmul.mubr.bf16.gmra.mrb[52].mxu0 %v2614_v41  ;;  %v2592_v14 = vmul.f32 0.5, %v2576_v21  ;;  %v2606_v48 = vmul.f32 %v2590_v23, %v4267_v15 }
 0xb54   : > { %v2593_v39 = vmul.f32 0.5, %v2577_v54  ;;  %v2607_v10 = vmul.f32 %v2591_v2, %v4271_v3 }
 0xb55   : > { %v2608_v50 = vmul.f32 %v2592_v14, %v4277_v25 }
 0xb56   : > { %v2609_v0 = vmul.f32 %v2593_v39, %v4283_v59 }
 0xb57   : > { %v2616_v61 = vpack.c.bf16 %v2608_v50, %v2606_v48 }
 0xb58   : > { %v2617_v1 = vpack.c.bf16 %v2609_v0, %v2607_v10 }
 0xb5a   : > { %2809 = vmatprep.mubr.bf16.mxu0 %v2617_v1 }
 0xb5b   : > { %2810 = vmatmul.mubr.bf16.gmra.mrb[56].mxu0 %v2616_v61 }
 0xbea   : > { %v3067_v62 = vpop.f32.mrb[44].mxu0 }
 0xbeb   : > { %v3068_v40 = vpop.f32.mrb[45].mxu0 }
 0xbec   : > { %v3069_v45 = vadd.f32 %v3068_v40, %v3067_v62  ;;  %v3070_v22 = vpop.f32.mrb[46].mxu0 }
 0xbed   : > { %v3071_v15 = vpop.f32.mrb[47].mxu0 }
 0xbee   : > { %v2788_v51 = vadd.f32 %v3069_v45, %v2966_v49  ;;  %v3072_v20 = vadd.f32 %v3071_v15, %v3070_v22 }
 0xbf0   : > { %v2818_v3 = vadd.f32 %v2788_v51, %v3989_v47  ;;  %v2791_v25 = vadd.f32 %v3072_v20, %v2966_v49 }
 0xbf2   : > { %2826 = vst.msk [vmem:[%s4313_s22] sm:$0xff] %vm587_vm0, %v2818_v3  ;;  %v2819_v59 = vadd.f32 %v2791_v25, %v3995_v36  ;;  %v3073_v4 = vpop.f32.mrb[48].mxu0 }
 0xbf3   : > { %v3074_v32 = vpop.f32.mrb[49].mxu0 }
 0xbf4   : > { %2827 = vst.msk [vmem:[%s4313_s22 + $0x8] sm:$0xff] %vm587_vm0, %v2819_v59  ;;  %v3075_v27 = vadd.f32 %v3074_v32, %v3073_v4  ;;  %v3076_v5 = vpop.f32.mrb[50].mxu0 }
 0xbf5   : > { %v3077_v9 = vpop.f32.mrb[51].mxu0 }
 0xbf6   : > { %v2796_v56 = vadd.f32 %v3075_v27, %v2966_v49  ;;  %v3078_v7 = vadd.f32 %v3077_v9, %v3076_v5 }
 0xbf8   : > { %v2820_v8 = vadd.f32 %v2796_v56, %v3992_v31  ;;  %v2799_v11 = vadd.f32 %v3078_v7, %v2966_v49 }
 0xbfa   : > { %2828 = vst.msk [vmem:[%s4313_s22 + $0x10] sm:$0xff] %vm587_vm0, %v2820_v8  ;;  %v2821_v47 = vadd.f32 %v2799_v11, %v4002_v57 }
 0xbfc   : > { %2829 = vst.msk [vmem:[%s4313_s22 + $0x18] sm:$0xff] %vm587_vm0, %v2821_v47 }
 0xc26   : > { %v3079_v36 = vpop.f32.mrb[52].mxu0 }
 0xc27   : > { %v3080_v12 = vpop.f32.mrb[53].mxu0 }
 0xc28   : > { %v3081_v24 = vadd.f32 %v3080_v12, %v3079_v36  ;;  %v3082_v26 = vpop.f32.mrb[54].mxu0 }
 0xc29   : > { %v3083_v53 = vpop.f32.mrb[55].mxu0 }
 0xc2a   : > { %v2804_v29 = vadd.f32 %v3081_v24, %v2966_v49  ;;  %v3084_v63 = vadd.f32 %v3083_v53, %v3082_v26 }
 0xc2c   : > { %v2822_v13 = vadd.f32 %v2804_v29, %v4009_v52  ;;  %v2807_v31 = vadd.f32 %v3084_v63, %v2966_v49 }
 0xc2e   : > { %2830 = vst.msk [vmem:[%s4313_s22 + $0x20] sm:$0xff] %vm587_vm0, %v2822_v13  ;;  %v2823_v16 = vadd.f32 %v2807_v31, %v4015_v38  ;;  %v3085_v18 = vpop.f32.mrb[56].mxu0 }
 0xc2f   : > { %v3086_v57 = vpop.f32.mrb[57].mxu0 }
 0xc30   : > { %2831 = vst.msk [vmem:[%s4313_s22 + $0x28] sm:$0xff] %vm587_vm0, %v2823_v16  ;;  %v3087_v30 = vadd.f32 %v3086_v57, %v3085_v18  ;;  %v3088_v17 = vpop.f32.mrb[58].mxu0 }
 0xc31   : > { %v3089_v19 = vpop.f32.mrb[59].mxu0 }
 0xc32   : > { %v2812_v6 = vadd.f32 %v3087_v30, %v2966_v49  ;;  %v3090_v33 = vadd.f32 %v3089_v19, %v3088_v17 }
 0xc34   : > { %v2824_v35 = vadd.f32 %v2812_v6, %v4012_v55  ;;  %v2815_v37 = vadd.f32 %v3090_v33, %v2966_v49 }
 0xc36   : > { %2832 = vst.msk [vmem:[%s4313_s22 + $0x30] sm:$0xff] %vm587_vm0, %v2824_v35  ;;  %v2825_v52 = vadd.f32 %v2815_v37, %v4020_v60 }
 0xc38   : > { %2833 = vst.msk [vmem:[%s4313_s22 + $0x38] sm:$0xff] %vm587_vm0, %v2825_v52 }
 0xc39 PF: > { %s28_s27 = sadd.s32 1, %s3450_s27  }
 0xc3a   : > { %p25_p4 = scmp.ge.s32.totalorder %s28_s27, 4  }
 0xc3c   :  { %27 = sbr.rel (!%p25_p4) target bundleno = 4 (0x4), region = 122 }

// kernel: simmim_forward.11
= control target key start
LH: loop header
LB: loop body
LE: loop exit
PB: predicated region body
PF: predicated region fallthrough
CT: control target
= control target key end

     0   :  { %s502_s1 = inlined_call_operand.vmem [shape: bf16[256,128], index: 1, kind: input, shape index: {}]   ;;  %s503_s0 = inlined_call_operand.vmem [shape: f32[32,256], index: 0, kind: input, shape index: {}]   ;;  %s504_s2 = inlined_call_operand.vmem [shape: f32[1,128], index: 2, kind: input, shape index: {}]   ;;  %s505_s3 = inlined_call_operand.vmem [shape: f32[1,128], index: 3, kind: input, shape index: {}]   ;;  %s506_s4 = inlined_call_operand.vmem [shape: f32[1,128], index: 4, kind: input, shape index: {}]   ;;  %s507_s5 = inlined_call_operand.vmem [shape: f32[32,128], index: 5, kind: output, shape index: {}]  }
   0x1   :  { %v355_v0 = vld [vmem:[%s502_s1 + $0x40] sm:$0xff]   ;;  %v357_v2 = vld [vmem:[%s502_s1 + $0x48] sm:$0xff]   ;;  %v359_v4 = vld [vmem:[%s502_s1 + $0x50] sm:$0xff]  }
   0x2   :  { %v356_v1 = vld [vmem:[%s502_s1] sm:$0xff]   ;;  %311 = vmatprep.subr.bf16.mxu0 %v355_v0  ;;  %339 = vmatprep.subr.bf16.mxu1 %v355_v0  ;;  %v358_v3 = vld [vmem:[%s502_s1 + $0x8] sm:$0xff]   ;;  %v360_v5 = vld [vmem:[%s502_s1 + $0x10] sm:$0xff]  }
   0x3   :  { %312 = vmatpush3.bf16.msra.mxu0 %v356_v1  ;;  %347 = vmatpush3.bf16.msra.mxu1 %v356_v1  ;;  %v361_v6 = vld [vmem:[%s502_s1 + $0x58] sm:$0xff]   ;;  %v363_v8 = vld [vmem:[%s502_s1 + $0x60] sm:$0xff]   ;;  %v365_v10 = vld [vmem:[%s502_s1 + $0x68] sm:$0xff]  }
   0x4   :  { %313 = vmatprep.subr.bf16.mxu0 %v357_v2  ;;  %340 = vmatprep.subr.bf16.mxu1 %v357_v2  ;;  %v362_v7 = vld [vmem:[%s502_s1 + $0x18] sm:$0xff]   ;;  %v364_v9 = vld [vmem:[%s502_s1 + $0x20] sm:$0xff]   ;;  %v22_v11 = vld [vmem:[%s503_s0 + $0x8] sm:$0xff] }
   0x5   :  { %v24_v12 = vld [vmem:[%s503_s0 + $0x18] sm:$0xff]  ;;  %v26_v13 = vld [vmem:[%s503_s0 + $0x28] sm:$0xff]  ;;  %v367_v18 = vld [vmem:[%s502_s1 + $0x70] sm:$0xff]  }
   0x6   :  { %v30_v14 = vpack.c.bf16 %v24_v12, %v22_v11  ;;  %v28_v15 = vld [vmem:[%s503_s0 + $0x38] sm:$0xff]  ;;  %v366_v17 = vld [vmem:[%s502_s1 + $0x28] sm:$0xff]   ;;  %v368_v19 = vld [vmem:[%s502_s1 + $0x30] sm:$0xff]  }
   0x7   :  { %314 = vmatpush3.bf16.msra.mxu0 %v358_v3  ;;  %348 = vmatpush3.bf16.msra.mxu1 %v358_v3  ;;  %v32_v16 = vpack.c.bf16 %v28_v15, %v26_v13  ;;  %v369_v20 = vld [vmem:[%s502_s1 + $0x78] sm:$0xff]   ;;  %v21_v22 = vld [vmem:[%s503_s0] sm:$0xff]  ;;  %v23_v23 = vld [vmem:[%s503_s0 + $0x10] sm:$0xff] }
   0x8   :  { %315 = vmatprep.subr.bf16.mxu0 %v359_v4  ;;  %341 = vmatprep.subr.bf16.mxu1 %v359_v4  ;;  %v370_v21 = vld [vmem:[%s502_s1 + $0x38] sm:$0xff]   ;;  %v25_v24 = vld [vmem:[%s503_s0 + $0x20] sm:$0xff]  ;;  %v27_v25 = vld [vmem:[%s503_s0 + $0x30] sm:$0xff]  ;;  %v29_v26 = vpack.c.bf16 %v23_v23, %v21_v22 }
   0x9   :  { %200 = vmatprep.mubr.bf16.mxu0 %v30_v14  ;;  %208 = vmatprep.mubr.bf16.mxu1 %v32_v16  ;;  %v31_v27 = vpack.c.bf16 %v27_v25, %v25_v24  ;;  %v292_v32 = vld [vmem:[%s504_s2] ss:$0 sm:$0xff] }
   0xa   :  { %v310_v12 = vld [vmem:[%s506_s4] ss:$0 sm:$0xff] }
   0xb   :  { %316 = vmatpush3.bf16.msra.mxu0 %v360_v5  ;;  %349 = vmatpush3.bf16.msra.mxu1 %v360_v5 }
   0xc   :  { %317 = vmatprep.subr.bf16.mxu0 %v361_v6  ;;  %342 = vmatprep.subr.bf16.mxu1 %v361_v6 }
   0xf   :  { %318 = vmatpush3.bf16.msra.mxu0 %v362_v7  ;;  %350 = vmatpush3.bf16.msra.mxu1 %v362_v7 }
  0x10   :  { %319 = vmatprep.subr.bf16.mxu0 %v363_v8  ;;  %343 = vmatprep.subr.bf16.mxu1 %v363_v8 }
  0x13   :  { %320 = vmatpush3.bf16.msra.mxu0 %v364_v9  ;;  %351 = vmatpush3.bf16.msra.mxu1 %v364_v9 }
  0x14   :  { %321 = vmatprep.subr.bf16.mxu0 %v365_v10  ;;  %344 = vmatprep.subr.bf16.mxu1 %v365_v10  ;;  %v309_v10 = vld [vmem:[%s505_s3] ss:$0 sm:$0xff] }
  0x17   :  { %322 = vmatpush3.bf16.msra.mxu0 %v366_v17  ;;  %352 = vmatpush3.bf16.msra.mxu1 %v366_v17 }
  0x18   :  { %323 = vmatprep.subr.bf16.mxu0 %v367_v18  ;;  %345 = vmatprep.subr.bf16.mxu1 %v367_v18 }
  0x1b   :  { %324 = vmatpush3.bf16.msra.mxu0 %v368_v19  ;;  %353 = vmatpush3.bf16.msra.mxu1 %v368_v19 }
  0x1c   :  { %325 = vmatprep.subr.bf16.mxu0 %v369_v20  ;;  %346 = vmatprep.subr.bf16.mxu1 %v369_v20 }
  0x1f   :  { %326 = vmatpush3.bf16.msra.mxu0 %v370_v21  ;;  %354 = vmatpush3.bf16.msra.mxu1 %v370_v21 }
  0x22   :  { %201 = vmatmul.mubr.bf16.vlgmr.msra.gmra.mrb[0].mxu0 %v29_v26  ;;  %209 = vmatmul.mubr.bf16.vlgmr.msra.gmra.mrb[0].mxu1 %v31_v27 }
  0xf5   :  { %v327_v28 = vpop.f32.mrb[0].mxu0  ;;  %v333_v29 = vpop.f32.mrb[0].mxu1 }
  0xf6   :  { %v328_v30 = vpop.f32.mrb[1].mxu0  ;;  %v334_v31 = vpop.f32.mrb[1].mxu1 }
  0xf7   :  { %v329_v33 = vadd.f32 %v328_v30, %v327_v28  ;;  %v335_v34 = vadd.f32 %v334_v31, %v333_v29  ;;  %v330_v35 = vpop.f32.mrb[2].mxu0  ;;  %v336_v36 = vpop.f32.mrb[2].mxu1 }
  0xf8   :  { %v331_v37 = vpop.f32.mrb[3].mxu0  ;;  %v337_v38 = vpop.f32.mrb[3].mxu1 }
  0xf9   :  { %v332_v39 = vadd.f32 %v331_v37, %v330_v35  ;;  %v338_v40 = vadd.f32 %v337_v38, %v336_v36  ;;  %v211_v41 = vadd.f32 %v335_v34, %v292_v32  ;;  %v203_v42 = vadd.f32 %v329_v33, %v292_v32 }
  0xfb   :  { %223 = vadd.xlane.f32.xlu1 %v211_v41  ;;  %219 = vadd.xlane.f32.xlu0 %v203_v42  ;;  %v214_v43 = vadd.f32 %v338_v40, %v292_v32  ;;  %v206_v44 = vadd.f32 %v332_v39, %v292_v32 }
  0xff   :  { %225 = vadd.xlane.f32.xlu1 %v214_v43  ;;  %221 = vadd.xlane.f32.xlu0 %v206_v44 }
 0x188   :  { %v224_v45 = vpop.xlane.xlu1 %223  ;;  %v220_v46 = vpop.xlane.xlu0 %219 }
 0x189   :  { %v230_v47 = vmul.f32 0.0078125, %v224_v45  ;;  %v228_v48 = vmul.f32 0.0078125, %v220_v46 }
 0x18b   :  { %v232_v49 = vsub.f32 %v203_v42, %v228_v48  ;;  %v234_v52 = vsub.f32 %v211_v41, %v230_v47 }
 0x18c   :  { %v226_v50 = vpop.xlane.xlu1 %225  ;;  %v222_v51 = vpop.xlane.xlu0 %221 }
 0x18d   :  { %v231_v53 = vmul.f32 0.0078125, %v226_v50  ;;  %v229_v54 = vmul.f32 0.0078125, %v222_v51  ;;  %v236_v55 = vmul.f32 %v232_v49, %v232_v49  ;;  %v238_v58 = vmul.f32 %v234_v52, %v234_v52 }
 0x18f   :  { %v233_v56 = vsub.f32 %v206_v44, %v229_v54  ;;  %240 = vadd.xlane.f32.xlu0 %v236_v55  ;;  %v235_v57 = vsub.f32 %v214_v43, %v231_v53 }
 0x191   :  { %v237_v59 = vmul.f32 %v233_v56, %v233_v56  ;;  %v239_v60 = vmul.f32 %v235_v57, %v235_v57 }
 0x193   :  { %244 = vadd.xlane.f32.xlu0 %v238_v58  ;;  %242 = vadd.xlane.f32.xlu1 %v237_v59 }
 0x197   :  { %246 = vadd.xlane.f32.xlu1 %v239_v60 }
 0x21c   :  { %v241_v61 = vpop.xlane.xlu0 %240 }
 0x21d   :  { %v248_v62 = vmul.f32 0.0078125, %v241_v61 }
 0x21f   :  { %v252_v63 = vadd.f32 1e-05, %v248_v62 }
 0x220   :  { %v243_v0 = vpop.xlane.xlu1 %242  ;;  %v245_v1 = vpop.xlane.xlu0 %244 }
 0x221   :  { %371 = vrsqrt.f32 %v252_v63  ;;  %v249_v2 = vmul.f32 0.0078125, %v243_v0  ;;  %v250_v3 = vmul.f32 0.0078125, %v245_v1 }
 0x223   :  { %v253_v4 = vadd.f32 1e-05, %v249_v2  ;;  %v254_v5 = vadd.f32 1e-05, %v250_v3 }
 0x224   :  { %v247_v6 = vpop.xlane.xlu1 %246 }
 0x225   :  { %373 = vrsqrt.f32 %v253_v4  ;;  %v251_v7 = vmul.f32 0.0078125, %v247_v6 }
 0x226   :  { %375 = vrsqrt.f32 %v254_v5 }
 0x227   :  { %v255_v8 = vadd.f32 1e-05, %v251_v7 }
 0x229   :  { %377 = vrsqrt.f32 %v255_v8 }
 0x22b   :  { %v372_v9 = vpop.eup %371 }
 0x22c   :  { %v260_v11 = vmul.f32 %v372_v9, %v232_v49 }
 0x22e   :  { %v270_v13 = vmul.f32 %v309_v10, %v260_v11 }
 0x22f   :  { %v374_v14 = vpop.eup %373 }
 0x230   :  { %v376_v15 = vpop.eup %375  ;;  %v280_v16 = vadd.f32 %v310_v12, %v270_v13  ;;  %v261_v17 = vmul.f32 %v374_v14, %v233_v56 }
 0x231   :  { %v262_v18 = vmul.f32 %v376_v15, %v234_v52 }
 0x232   :  { %284 = vst [vmem:[%s507_s5] sm:$0xff] %v280_v16  ;;  %v271_v19 = vmul.f32 %v309_v10, %v261_v17 }
 0x233   :  { %v378_v20 = vpop.eup %377  ;;  %v272_v21 = vmul.f32 %v309_v10, %v262_v18 }
 0x234   :  { %v281_v22 = vadd.f32 %v310_v12, %v271_v19  ;;  %v263_v23 = vmul.f32 %v378_v20, %v235_v57 }
 0x235   :  { %v282_v24 = vadd.f32 %v310_v12, %v272_v21 }
 0x236   :  { %285 = vst [vmem:[%s507_s5 + $0x8] sm:$0xff] %v281_v22  ;;  %v273_v25 = vmul.f32 %v309_v10, %v263_v23 }
 0x237   :  { %286 = vst [vmem:[%s507_s5 + $0x10] sm:$0xff] %v282_v24 }
 0x238   :  { %v283_v26 = vadd.f32 %v310_v12, %v273_v25 }
 0x23a   :  { %287 = vst [vmem:[%s507_s5 + $0x18] sm:$0xff] %v283_v26 }

// kernel: simmim_forward.14
= control target key start
LH: loop header
LB: loop body
LE: loop exit
PB: predicated region body
PF: predicated region fallthrough
CT: control target
= control target key end

     0   :  { %v335_v33 = vmov 0   ;;  %vm256_vm0 = vcmask 523264   ;;  %s483_s0 = inlined_call_operand.vmem [shape: f32[32,128], index: 0, kind: input, shape index: {}]   ;;  %s484_s3 = inlined_call_operand.vmem [shape: bf16[128,192], index: 3, kind: input, shape index: {}]   ;;  %s485_s1 = inlined_call_operand.vmem [shape: f32[1,128], index: 1, kind: input, shape index: {}]   ;;  %s486_s2 = inlined_call_operand.vmem [shape: f32[1,128], index: 2, kind: input, shape index: {}]   ;;  %s487_s4 = inlined_call_operand.vmem [shape: f32[1,192], index: 4, kind: input, shape index: {}]   ;;  %s488_s5 = inlined_call_operand.vmem [shape: f32[32,192], index: 5, kind: output, shape index: {}]  }
   0x1   :  { %v21_v0 = vld [vmem:[%s483_s0] sm:$0xff]  ;;  %v23_v1 = vld [vmem:[%s483_s0 + $0x10] sm:$0xff]  ;;  %v22_v2 = vld [vmem:[%s483_s0 + $0x8] sm:$0xff]  ;;  %234 = vmatprep.mubr.bf16.mxu0 %v335_v33  ;;  %244 = vmatprep.mubr.bf16.mxu1 %v335_v33 }
   0x2   :  { %27 = vadd.xlane.f32.xlu0 %v21_v0  ;;  %31 = vadd.xlane.f32.xlu1 %v23_v1  ;;  %v24_v3 = vld [vmem:[%s483_s0 + $0x18] sm:$0xff]  ;;  %v303_v4 = vld [vmem:[%s484_s3 + $0x4] ss:$8 sps:$4 sm:$0xff]   ;;  %v305_v5 = vld [vmem:[%s484_s3] ss:$8 sps:$4 sm:$0xff]  }
   0x3   :  { %202 = vmatprep.subr.bf16.mxu0 %v303_v4  ;;  %286 = vmatprep.subr.bf16.mxu1 %v303_v4  ;;  %v306_v6 = vld [vmem:[%s484_s3 + $0x14] ss:$8 sps:$4 sm:$0xff]   ;;  %v308_v23 = vld [vmem:[%s484_s3 + $0x10] ss:$8 sps:$4 sm:$0xff]   ;;  %v309_v24 = vld [vmem:[%s484_s3 + $0x24] ss:$8 sps:$4 sm:$0xff]  }
   0x4   :  { %203 = vmatpush1.bf16.msra.mxu0 %v305_v5  ;;  %294 = vmatpush1.bf16.msra.mxu1 %v305_v5  ;;  %v311_v25 = vld [vmem:[%s484_s3 + $0x20] ss:$8 sps:$4 sm:$0xff]   ;;  %v312_v26 = vld [vmem:[%s484_s3 + $0x34] ss:$8 sps:$4 sm:$0xff]   ;;  %v314_v27 = vld [vmem:[%s484_s3 + $0x30] ss:$8 sps:$4 sm:$0xff]   ;;  %v112_v5 = vlaneseq }
   0x5   :  { %204 = vmatprep.subr.bf16.mxu0 %v306_v6  ;;  %287 = vmatprep.subr.bf16.mxu1 %v306_v6  ;;  %v315_v28 = vld [vmem:[%s484_s3 + $0x44] ss:$8 sps:$4 sm:$0xff]   ;;  %v317_v29 = vld [vmem:[%s484_s3 + $0x40] ss:$8 sps:$4 sm:$0xff]   ;;  %v318_v30 = vld [vmem:[%s484_s3 + $0x54] ss:$8 sps:$4 sm:$0xff]  }
   0x6   :  { %29 = vadd.xlane.f32.xlu0 %v22_v2  ;;  %33 = vadd.xlane.f32.xlu1 %v24_v3  ;;  %v320_v31 = vld [vmem:[%s484_s3 + $0x50] ss:$8 sps:$4 sm:$0xff]   ;;  %v321_v32 = vld [vmem:[%s484_s3 + $0x64] ss:$8 sps:$4 sm:$0xff]   ;;  %v323_v34 = vld [vmem:[%s484_s3 + $0x60] ss:$8 sps:$4 sm:$0xff]  }
   0x7   :  { %v324_v35 = vld [vmem:[%s484_s3 + $0x74] ss:$8 sps:$4 sm:$0xff]   ;;  %v326_v36 = vld [vmem:[%s484_s3 + $0x70] ss:$8 sps:$4 sm:$0xff]   ;;  %v268_v51 = vld [vmem:[%s485_s1] ss:$0 sm:$0xff] }
   0x8   :  { %205 = vmatpush1.bf16.msra.mxu0 %v308_v23  ;;  %295 = vmatpush1.bf16.msra.mxu1 %v308_v23  ;;  %v269_v56 = vld [vmem:[%s486_s2] ss:$0 sm:$0xff]  ;;  %v113_v6 = vshrl.u32 %v112_v5, 7 }
   0x9   :  { %206 = vmatprep.subr.bf16.mxu0 %v309_v24  ;;  %288 = vmatprep.subr.bf16.mxu1 %v309_v24 }
   0xc   :  { %207 = vmatpush1.bf16.msra.mxu0 %v311_v25  ;;  %296 = vmatpush1.bf16.msra.mxu1 %v311_v25 }
   0xd   :  { %208 = vmatprep.subr.bf16.mxu0 %v312_v26  ;;  %289 = vmatprep.subr.bf16.mxu1 %v312_v26 }
  0x10   :  { %209 = vmatpush1.bf16.msra.mxu0 %v314_v27  ;;  %297 = vmatpush1.bf16.msra.mxu1 %v314_v27 }
  0x11   :  { %210 = vmatprep.subr.bf16.mxu0 %v315_v28  ;;  %290 = vmatprep.subr.bf16.mxu1 %v315_v28 }
  0x14   :  { %211 = vmatpush1.bf16.msra.mxu0 %v317_v29  ;;  %298 = vmatpush1.bf16.msra.mxu1 %v317_v29 }
  0x15   :  { %212 = vmatprep.subr.bf16.mxu0 %v318_v30  ;;  %291 = vmatprep.subr.bf16.mxu1 %v318_v30 }
  0x18   :  { %213 = vmatpush1.bf16.msra.mxu0 %v320_v31  ;;  %299 = vmatpush1.bf16.msra.mxu1 %v320_v31 }
  0x19   :  { %214 = vmatprep.subr.bf16.mxu0 %v321_v32  ;;  %292 = vmatprep.subr.bf16.mxu1 %v321_v32 }
  0x1c   :  { %215 = vmatpush1.bf16.msra.mxu0 %v323_v34  ;;  %300 = vmatpush1.bf16.msra.mxu1 %v323_v34 }
  0x1d   :  { %216 = vmatprep.subr.bf16.mxu0 %v324_v35  ;;  %293 = vmatprep.subr.bf16.mxu1 %v324_v35 }
  0x20   :  { %217 = vmatpush1.bf16.msra.mxu0 %v326_v36  ;;  %301 = vmatpush1.bf16.msra.mxu1 %v326_v36 }
  0x8f   :  { %v28_v7 = vpop.xlane.xlu0 %27  ;;  %v32_v8 = vpop.xlane.xlu1 %31 }
  0x90   :  { %v36_v9 = vmul.f32 0.0078125, %v28_v7  ;;  %v38_v10 = vmul.f32 0.0078125, %v32_v8  ;;  %v114_v7 = vsub.s32 0, %v113_v6  ;;  %v110_v8 = vld [vmem:[%s487_s4] sm:$0x3] }
  0x92   :  { %v387_v11 = vsub.f32 %v21_v0, %v36_v9  ;;  %v389_v12 = vsub.f32 %v23_v1, %v38_v10  ;;  %v118_v9 = vsub.s32 1, %v113_v6  ;;  %v115_v10 = vrot.slane %v110_v8, %v114_v7 }
  0x93   :  { %v30_v13 = vpop.xlane.xlu0 %29  ;;  %v34_v14 = vpop.xlane.xlu1 %33 }
  0x94   :  { %v37_v15 = vmul.f32 0.0078125, %v30_v13  ;;  %v44_v16 = vmul.f32 %v387_v11, %v387_v11  ;;  %v39_v17 = vmul.f32 0.0078125, %v34_v14  ;;  %v46_v20 = vmul.f32 %v389_v12, %v389_v12 }
  0x96   :  { %v393_v18 = vsub.f32 %v22_v2, %v37_v15  ;;  %48 = vadd.xlane.f32.xlu0 %v44_v16  ;;  %v395_v19 = vsub.f32 %v24_v3, %v39_v17 }
  0x98   :  { %v45_v21 = vmul.f32 %v393_v18, %v393_v18  ;;  %v47_v22 = vmul.f32 %v395_v19, %v395_v19 }
  0x9a   :  { %52 = vadd.xlane.f32.xlu0 %v46_v20  ;;  %50 = vadd.xlane.f32.xlu1 %v45_v21 }
  0x9e   :  { %54 = vadd.xlane.f32.xlu1 %v47_v22 }
 0x123   :  { %v49_v37 = vpop.xlane.xlu0 %48 }
 0x124   :  { %v56_v38 = vmul.f32 0.0078125, %v49_v37 }
 0x126   :  { %v60_v39 = vadd.f32 1e-05, %v56_v38 }
 0x127   :  { %v51_v40 = vpop.xlane.xlu1 %50  ;;  %v53_v41 = vpop.xlane.xlu0 %52 }
 0x128   :  { %327 = vrsqrt.f32 %v60_v39  ;;  %v57_v42 = vmul.f32 0.0078125, %v51_v40  ;;  %v58_v43 = vmul.f32 0.0078125, %v53_v41 }
 0x12a   :  { %v61_v44 = vadd.f32 1e-05, %v57_v42  ;;  %v62_v45 = vadd.f32 1e-05, %v58_v43 }
 0x12b   :  { %v55_v46 = vpop.xlane.xlu1 %54 }
 0x12c   :  { %329 = vrsqrt.f32 %v61_v44  ;;  %v59_v47 = vmul.f32 0.0078125, %v55_v46 }
 0x12d   :  { %331 = vrsqrt.f32 %v62_v45 }
 0x12e   :  { %v63_v48 = vadd.f32 1e-05, %v59_v47 }
 0x130   :  { %333 = vrsqrt.f32 %v63_v48 }
 0x132   :  { %v328_v49 = vpop.eup %327 }
 0x133   :  { %v68_v50 = vmul.f32 %v328_v49, %v387_v11  ;;  %v119_v11 = vrot.slane %v110_v8, %v118_v9 }
 0x135   :  { %v78_v55 = vmul.f32 %v268_v51, %v68_v50 }
 0x136   :  { %v330_v52 = vpop.eup %329 }
 0x137   :  { %v332_v53 = vpop.eup %331  ;;  %v69_v54 = vmul.f32 %v330_v52, %v393_v18  ;;  %v88_v60 = vadd.f32 %v269_v56, %v78_v55 }
 0x138   :  { %v70_v57 = vmul.f32 %v332_v53, %v389_v12 }
 0x139   :  { %v79_v58 = vmul.f32 %v268_v51, %v69_v54 }
 0x13a   :  { %v334_v59 = vpop.eup %333  ;;  %v80_v63 = vmul.f32 %v268_v51, %v70_v57 }
 0x13b   :  { %v89_v61 = vadd.f32 %v269_v56, %v79_v58  ;;  %v71_v62 = vmul.f32 %v334_v59, %v395_v19 }
 0x13c   :  { %v90_v2 = vadd.f32 %v269_v56, %v80_v63 }
 0x13d   :  { %v92_v0 = vpack.c.bf16 %v89_v61, %v88_v60  ;;  %v81_v1 = vmul.f32 %v268_v51, %v71_v62 }
 0x13f   :  { %235 = vmatmul.mubr.bf16.vlgmr.msra.gmra.mrb[0].mxu0 %v92_v0  ;;  %v91_v3 = vadd.f32 %v269_v56, %v81_v1 }
 0x141   :  { %v93_v4 = vpack.c.bf16 %v91_v3, %v90_v2 }
 0x143   :  { %245 = vmatmul.mubr.bf16.vlgmr.msra.gmra.mrb[0].mxu1 %v93_v4 }
 0x212   :  { %v236_v12 = vpop.f32.mrb[0].mxu0 }
 0x213   :  { %v237_v13 = vadd.f32 %v236_v12, %v115_v10  ;;  %v238_v14 = vpop.f32.mrb[1].mxu0 }
 0x214   :  { %v239_v15 = vadd.f32 %v238_v14, %v119_v11  ;;  %v240_v16 = vpop.f32.mrb[2].mxu0 }
 0x215   :  { %255 = vst [vmem:[%s488_s5] sm:$0xff] %v237_v13  ;;  %v241_v17 = vadd.f32 %v240_v16, %v115_v10  ;;  %v242_v18 = vpop.f32.mrb[3].mxu0 }
 0x216   :  { %257 = vst.msk [vmem:[%s488_s5 + $0x8] sm:$0xff] %vm256_vm0, %v239_v15  ;;  %v243_v19 = vadd.f32 %v242_v18, %v119_v11  ;;  %v246_v20 = vpop.f32.mrb[0].mxu1 }
 0x217   :  { %258 = vst [vmem:[%s488_s5 + $0x10] sm:$0xff] %v241_v17  ;;  %v247_v21 = vadd.f32 %v246_v20, %v115_v10  ;;  %v248_v22 = vpop.f32.mrb[1].mxu1 }
 0x218   :  { %259 = vst.msk [vmem:[%s488_s5 + $0x18] sm:$0xff] %vm256_vm0, %v243_v19  ;;  %v249_v23 = vadd.f32 %v248_v22, %v119_v11  ;;  %v250_v24 = vpop.f32.mrb[2].mxu1 }
 0x219   :  { %260 = vst [vmem:[%s488_s5 + $0x20] sm:$0xff] %v247_v21  ;;  %v251_v25 = vadd.f32 %v250_v24, %v115_v10  ;;  %v252_v26 = vpop.f32.mrb[3].mxu1 }
 0x21a   :  { %261 = vst.msk [vmem:[%s488_s5 + $0x28] sm:$0xff] %vm256_vm0, %v249_v23  ;;  %v253_v27 = vadd.f32 %v252_v26, %v119_v11 }
 0x21b   :  { %262 = vst [vmem:[%s488_s5 + $0x30] sm:$0xff] %v251_v25 }
 0x21c   :  { %263 = vst.msk [vmem:[%s488_s5 + $0x38] sm:$0xff] %vm256_vm0, %v253_v27 }

// kernel: simmim_forward.12
= control target key start
LH: loop header
LB: loop body
LE: loop exit
PB: predicated region body
PF: predicated region fallthrough
CT: control target
= control target key end

     0   :  { %s3051_s27 = smov 0   ;;  %s3640_s0 = inlined_call_operand.vmem [shape: f32[2,16,128], index: 0, kind: input, shape index: {}]   ;;  %s3641_s1 = inlined_call_operand.vmem [shape: f32[1,128], index: 1, kind: input, shape index: {}]   ;;  %s3642_s2 = inlined_call_operand.vmem [shape: f32[1,128], index: 2, kind: input, shape index: {}]   ;;  %s3643_s3 = inlined_call_operand.vmem [shape: bf16[128,128], index: 3, kind: input, shape index: {}]   ;;  %s3644_s4 = inlined_call_operand.vmem [shape: f32[1,128], index: 4, kind: input, shape index: {}]   ;;  %s3645_s5 = inlined_call_operand.vmem [shape: bf16[128,128], index: 5, kind: input, shape index: {}]   ;;  %s3646_s6 = inlined_call_operand.vmem [shape: f32[1,128], index: 6, kind: input, shape index: {}]   ;;  %s3647_s7 = inlined_call_operand.vmem [shape: bf16[128,128], index: 7, kind: input, shape index: {}]   ;;  %s3648_s8 = inlined_call_operand.vmem [shape: f32[1,128], index: 8, kind: input, shape index: {}]   ;;  %s3649_s9 = inlined_call_operand.vmem [shape: bf16[128,128], index: 9, kind: input, shape index: {}]   ;;  %s3650_s10 = inlined_call_operand.vmem [shape: f32[1,128], index: 10, kind: input, shape index: {}]   ;;  %s3651_s11 = inlined_call_operand.vmem [shape: f32[4,1,16,16], index: 11, kind: input, shape index: {}]   ;;  %s3652_s12 = inlined_call_operand.vmem [shape: f32[1,128], index: 12, kind: input, shape index: {}]   ;;  %s3653_s13 = inlined_call_operand.vmem [shape: f32[1,128], index: 13, kind: input, shape index: {}]   ;;  %s3654_s14 = inlined_call_operand.vmem [shape: bf16[128,512], index: 14, kind: input, shape index: {}]   ;;  %s3655_s15 = inlined_call_operand.vmem [shape: f32[1,512], index: 15, kind: input, shape index: {}]   ;;  %s3656_s16 = inlined_call_operand.vmem [shape: bf16[512,128], index: 16, kind: input, shape index: {}]   ;;  %s3657_s17 = inlined_call_operand.vmem [shape: f32[1,128], index: 17, kind: input, shape index: {}]   ;;  %s3658_s18 = inlined_call_operand.vmem [shape: f32[2,16,128], index: 18, kind: output, shape index: {}]  }
   0x1   :  { %3659 = sst [smem:[#allocation2_spill]] %s3640_s0 }
   0x2   :  { %3660 = sst [smem:[#allocation3_spill]] %s3641_s1 }
   0x3   :  { %3661 = sst [smem:[#allocation4_spill]] %s3642_s2 }
   0x4 LB: > { %s2408_s28 = sadd.s32 4294967295, %s2948_s27   ;;  %p2412_p0 = scmp.ge.s32.totalorder %s2948_s27, 1  ;;  %s2948_s27 = sphi %s3051_s27, %s28_s27  }
   0x5   : > { %p512_p1 = scmp.lt.s32.totalorder %s2948_s27, 3 }
   0x7   : > { %p513_p2 = pnand %p2412_p0, %p512_p1 }
   0x8   : > { %p566_p3 = scmp.lt.s32.totalorder (!%p513_p2), %s2408_s28, 1  ;;  %s3662_s19 = sld [smem:[#allocation2_spill]] (!%p513_p2)  ;;  %v2772_v2 = vld [vmem:[%s3643_s3] sm:$0xff] (!%p513_p2)   ;;  %v2774_v4 = vld [vmem:[%s3643_s3 + $0x8] sm:$0xff] (!%p513_p2)   ;;  %v2950_v5 = vmov (!%p513_p2), 0.0   ;;  %v2776_v15 = vld [vmem:[%s3643_s3 + $0x10] sm:$0xff] (!%p513_p2)  }
   0x9   : > { %516 = sbr.rel (%p513_p2) target bundleno = 4056 (0xfd8), region = 92  ;;  %v2773_v3 = vld [vmem:[%s3645_s5] sm:$0xff] (!%p513_p2)   ;;  %2630 = vmatprep.subr.bf16.mxu0 (!%p513_p2), %v2950_v5  ;;  %2650 = vmatprep.subr.bf16.mxu1 (!%p513_p2), %v2950_v5  ;;  %v2775_v14 = vld [vmem:[%s3645_s5 + $0x8] sm:$0xff] (!%p513_p2)   ;;  %v2777_v16 = vld [vmem:[%s3645_s5 + $0x10] sm:$0xff] (!%p513_p2)   ;;  %vm2951_vm0 = vmmov (!%p513_p2), 0   ;;  %s3663_s21 = sld [smem:[#allocation3_spill]] (!%p513_p2) }
   0xa   : > { %2631 = vmatpush3.bf16.msra.mxu0 (!%p513_p2), %v2772_v2  ;;  %2651 = vmatpush3.bf16.msra.mxu1 (!%p513_p2), %v2773_v3  ;;  %v2778_v17 = vld [vmem:[%s3643_s3 + $0x18] sm:$0xff] (!%p513_p2)   ;;  %v2780_v19 = vld [vmem:[%s3643_s3 + $0x20] sm:$0xff] (!%p513_p2)   ;;  %v2782_v21 = vld [vmem:[%s3643_s3 + $0x28] sm:$0xff] (!%p513_p2)   ;;  %s3664_s23 = sld [smem:[#allocation4_spill]] (!%p513_p2)  ;;  %vm968_vm1 = vcmask (!%p513_p2), 261120   ;;  %vm1016_vm2 = vcmask (!%p513_p2), 130048  }
   0xb   : > { %2632 = vmatprep.subr.bf16.mxu0 (!%p513_p2), %v2950_v5  ;;  %2652 = vmatprep.subr.bf16.mxu1 (!%p513_p2), %v2950_v5  ;;  %v2779_v18 = vld [vmem:[%s3645_s5 + $0x18] sm:$0xff] (!%p513_p2)   ;;  %v2781_v20 = vld [vmem:[%s3645_s5 + $0x20] sm:$0xff] (!%p513_p2)   ;;  %v2783_v22 = vld [vmem:[%s3645_s5 + $0x28] sm:$0xff] (!%p513_p2)   ;;  %s2952_s0 = smov (!%p513_p2), 96   ;;  %s2953_s2 = smov (!%p513_p2), 64   ;;  %vm1466_vm3 = vcmask (!%p513_p2), 523264  }
   0xc   : > { %2646 = vmatprep.mubr.msk.bf16.mxu0 (!%p513_p2), %vm2951_vm0, %v2950_v5  ;;  %2666 = vmatprep.mubr.msk.bf16.mxu1 (!%p513_p2), %vm2951_vm0, %v2950_v5  ;;  %v2784_v23 = vld [vmem:[%s3643_s3 + $0x30] sm:$0xff] (!%p513_p2)   ;;  %v2786_v25 = vld [vmem:[%s3643_s3 + $0x38] sm:$0xff] (!%p513_p2)   ;;  %v2788_v43 = vld [vmem:[%s3647_s7] sm:$0xff] (!%p513_p2)   ;;  %s2954_s30 = smov (!%p513_p2), 32   ;;  %vm1469_vm4 = vcmask (!%p513_p2), 785408  }
   0xd   : > { %v2785_v24 = vld [vmem:[%s3645_s5 + $0x30] sm:$0xff] (!%p513_p2)   ;;  %v2787_v26 = vld [vmem:[%s3645_s5 + $0x38] sm:$0xff] (!%p513_p2)   ;;  %v2789_v45 = vld [vmem:[%s3647_s7 + $0x8] sm:$0xff] (!%p513_p2)  }
   0xe   : > { %2633 = vmatpush3.bf16.msra.mxu0 (!%p513_p2), %v2774_v4  ;;  %2653 = vmatpush3.bf16.msra.mxu1 (!%p513_p2), %v2775_v14  ;;  %v2790_v46 = vld [vmem:[%s3647_s7 + $0x10] sm:$0xff] (!%p513_p2)   ;;  %v2791_v47 = vld [vmem:[%s3647_s7 + $0x18] sm:$0xff] (!%p513_p2)   ;;  %v2792_v48 = vld [vmem:[%s3647_s7 + $0x20] sm:$0xff] (!%p513_p2)  }
   0xf   : > { %2634 = vmatprep.subr.bf16.mxu0 (!%p513_p2), %v2950_v5  ;;  %2654 = vmatprep.subr.bf16.mxu1 (!%p513_p2), %v2950_v5  ;;  %v2417_v35 = vld [vmem:[%s3663_s21] ss:$0 sm:$0xff] (!%p513_p2)  ;;  %v2793_v49 = vld [vmem:[%s3647_s7 + $0x28] sm:$0xff] (!%p513_p2)   ;;  %v2794_v50 = vld [vmem:[%s3647_s7 + $0x30] sm:$0xff] (!%p513_p2)  }
  0x10   : > { %s3666_s28 = smov (!%p566_p3, %s2408_s28), 1  ;;  %v2418_v39 = vld [vmem:[%s3664_s23] ss:$0 sm:$0xff]  ;;  %v2795_v51 = vld [vmem:[%s3647_s7 + $0x38] sm:$0xff]  }
  0x11   : > { %s2532_s29 = sshll.u32 %s3666_s28, 4  ;;  %v2419_v52 = vld [vmem:[%s3644_s4] ss:$0 sm:$0xff] }
  0x12   : > { %s3067_s1 = scalar_lea.vmem %s3662_s19, %s2532_s29  ;;  %2635 = vmatpush3.bf16.msra.mxu0 %v2776_v15  ;;  %2655 = vmatpush3.bf16.msra.mxu1 %v2777_v16  ;;  %v2428_v54 = vld [vmem:[%s3646_s6] ss:$0 sm:$0xff]  ;;  %v961_v16 = vld [vmem:[%s3651_s11 + $0x8] sm:$0xff] }
  0x13   : > { %v577_v0 = vld [vmem:[%s3067_s1] sm:$0xff]  ;;  %v578_v1 = vld [vmem:[%s3067_s1 + $0x8] sm:$0xff]  ;;  %2636 = vmatprep.subr.bf16.mxu0 %v2950_v5  ;;  %2656 = vmatprep.subr.bf16.mxu1 %v2950_v5 }
  0x14   : > { %581 = vadd.xlane.f32.xlu0 %v577_v0  ;;  %v960_v14 = vld [vmem:[%s3651_s11] sm:$0xff] }
  0x16   : > { %2637 = vmatpush3.bf16.msra.mxu0 %v2778_v17  ;;  %2657 = vmatpush3.bf16.msra.mxu1 %v2779_v18 }
  0x17   : > { %2638 = vmatprep.subr.bf16.mxu0 %v2950_v5  ;;  %2658 = vmatprep.subr.bf16.mxu1 %v2950_v5 }
  0x18   : > { %583 = vadd.xlane.f32.xlu0 %v578_v1 }
  0x1a   : > { %2639 = vmatpush3.bf16.msra.mxu0 %v2780_v19  ;;  %2659 = vmatpush3.bf16.msra.mxu1 %v2781_v20 }
  0x1b   : > { %2640 = vmatprep.subr.bf16.mxu0 %v2950_v5  ;;  %2660 = vmatprep.subr.bf16.mxu1 %v2950_v5 }
  0x1e   : > { %2641 = vmatpush3.bf16.msra.mxu0 %v2782_v21  ;;  %2661 = vmatpush3.bf16.msra.mxu1 %v2783_v22 }
  0x1f   : > { %2642 = vmatprep.subr.bf16.mxu0 %v2950_v5  ;;  %2662 = vmatprep.subr.bf16.mxu1 %v2950_v5 }
  0x22   : > { %2643 = vmatpush3.bf16.msra.mxu0 %v2784_v23  ;;  %2663 = vmatpush3.bf16.msra.mxu1 %v2785_v24 }
  0x23   : > { %2644 = vmatprep.subr.bf16.mxu0 %v2950_v5  ;;  %2664 = vmatprep.subr.bf16.mxu1 %v2950_v5 }
  0x26   : > { %2645 = vmatpush3.bf16.msra.mxu0 %v2786_v25  ;;  %2665 = vmatpush3.bf16.msra.mxu1 %v2787_v26 }
  0x27   : > { %2670 = vmatprep.subr.bf16.mxu0 %v2950_v5  ;;  %2690 = vmatprep.subr.bf16.mxu1 %v2950_v5 }
  0xa1   : > { %v582_v6 = vpop.xlane.xlu0 %581 }
  0xa2   : > { %v586_v7 = vmul.f32 0.0078125, %v582_v6  ;;  %v2437_v6 = vld [vmem:[%s3648_s8] ss:$0 sm:$0xff] }
  0xa4   : > { %v588_v8 = vsub.f32 %v577_v0, %v586_v7 }
  0xa5   : > { %v584_v9 = vpop.xlane.xlu0 %583 }
  0xa6   : > { %v587_v10 = vmul.f32 0.0078125, %v584_v9  ;;  %v590_v11 = vmul.f32 %v588_v8, %v588_v8 }
  0xa8   : > { %v589_v12 = vsub.f32 %v578_v1, %v587_v10  ;;  %592 = vadd.xlane.f32.xlu1 %v590_v11 }
  0xaa   : > { %v591_v13 = vmul.f32 %v589_v12, %v589_v12 }
  0xac   : > { %594 = vadd.xlane.f32.xlu1 %v591_v13 }
 0x135   : > { %v593_v27 = vpop.xlane.xlu1 %592 }
 0x136   : > { %v596_v28 = vmul.f32 0.0078125, %v593_v27 }
 0x138   : > { %v598_v29 = vadd.f32 1e-05, %v596_v28 }
 0x139   : > { %v595_v30 = vpop.xlane.xlu1 %594 }
 0x13a   : > { %2884 = vrsqrt.f32 %v598_v29  ;;  %v597_v31 = vmul.f32 0.0078125, %v595_v30 }
 0x13c   : > { %v599_v32 = vadd.f32 1e-05, %v597_v31 }
 0x13e   : > { %2886 = vrsqrt.f32 %v599_v32 }
 0x144   : > { %v2885_v33 = vpop.eup %2884 }
 0x145   : > { %v602_v34 = vmul.f32 %v2885_v33, %v588_v8 }
 0x147   : > { %v610_v38 = vmul.f32 %v2417_v35, %v602_v34 }
 0x148   : > { %v2887_v36 = vpop.eup %2886 }
 0x149   : > { %v603_v37 = vmul.f32 %v2887_v36, %v589_v12  ;;  %v618_v41 = vadd.f32 %v2418_v39, %v610_v38 }
 0x14b   : > { %v611_v40 = vmul.f32 %v2417_v35, %v603_v37 }
 0x14d   : > { %v619_v42 = vadd.f32 %v2418_v39, %v611_v40 }
 0x14f   : > { %v620_v44 = vpack.c.bf16 %v619_v42, %v618_v41 }
 0x151   : > { %2647 = vmatmul.mubr.bf16.vlgmr.msra.gmra.mrb[0].mxu0 %v620_v44  ;;  %2667 = vmatmul.mubr.bf16.vlgmr.msra.gmra.mrb[0].mxu1 %v620_v44 }
 0x152   : > { %2671 = vmatpush3.bf16.msra.mxu0 %v2788_v43  ;;  %2686 = vmatprep.mubr.msk.bf16.mxu0 %vm2951_vm0, %v2950_v5 }
 0x153   : > { %2672 = vmatprep.subr.bf16.mxu0 %v2950_v5  ;;  %2692 = vmatprep.mubr.msk.bf16.mxu1 %vm2951_vm0, %v2950_v5 }
 0x156   : > { %2673 = vmatpush3.bf16.msra.mxu0 %v2789_v45 }
 0x157   : > { %2674 = vmatprep.subr.bf16.mxu0 %v2950_v5 }
 0x15a   : > { %2675 = vmatpush3.bf16.msra.mxu0 %v2790_v46 }
 0x15b   : > { %2676 = vmatprep.subr.bf16.mxu0 %v2950_v5 }
 0x15e   : > { %2677 = vmatpush3.bf16.msra.mxu0 %v2791_v47 }
 0x15f   : > { %2678 = vmatprep.subr.bf16.mxu0 %v2950_v5 }
 0x162   : > { %2679 = vmatpush3.bf16.msra.mxu0 %v2792_v48 }
 0x163   : > { %2680 = vmatprep.subr.bf16.mxu0 %v2950_v5 }
 0x166   : > { %2681 = vmatpush3.bf16.msra.mxu0 %v2793_v49  ;;  %v962_v49 = vld [vmem:[%s3651_s11 + $0x10] sm:$0xff] }
 0x167   : > { %2682 = vmatprep.subr.bf16.mxu0 %v2950_v5 }
 0x16a   : > { %2683 = vmatpush3.bf16.msra.mxu0 %v2794_v50 }
 0x16b   : > { %2684 = vmatprep.subr.bf16.mxu0 %v2950_v5 }
 0x16e   : > { %2685 = vmatpush3.bf16.msra.mxu0 %v2795_v51  ;;  %v963_v51 = vld [vmem:[%s3651_s11 + $0x18] sm:$0xff] }
 0x16f   : > { %2738 = vmatprep.subr.bf16.mxu0 %v2950_v5 }
 0x171   : > { %2687 = vmatmul.mubr.bf16.vlgmr.msra.gmra.mrb[4].mxu0 %v620_v44 }
 0x172   : > { %2754 = vmatprep.mubr.msk.bf16.mxu0 %vm2951_vm0, %v2950_v5 }
 0x224   : > { %v726_v53 = vpop.f32.mrb[0].mxu0  ;;  %v838_v55 = vpop.f32.mrb[0].mxu1 }
 0x225   : > { %v2648_v56 = vpop.f32.mrb[1].mxu0  ;;  %v2668_v57 = vpop.f32.mrb[1].mxu1  ;;  %v727_v60 = vadd.f32 %v2419_v52, %v726_v53  ;;  %v839_v61 = vadd.f32 %v2428_v54, %v838_v55 }
 0x226   : > { %v729_v58 = vpop.f32.mrb[2].mxu0  ;;  %v841_v59 = vpop.f32.mrb[2].mxu1 }
 0x227   : > { %v730_v62 = vadd.f32 %v2419_v52, %v729_v58  ;;  %v842_v63 = vadd.f32 %v2428_v54, %v841_v59  ;;  %v2649_v0 = vpop.f32.mrb[3].mxu0  ;;  %v2669_v1 = vpop.f32.mrb[3].mxu1 }
 0x229   : > { %v3191_v2 = vpack.c.bf16 %v730_v62, %v727_v60  ;;  %v3193_v3 = vpack.c.bf16 %v842_v63, %v839_v61 }
 0x22b   : > { %v973_v4 = vsel %vm968_vm1, %v3193_v3, 0 }
 0x22c   : > { %2691 = vmatpush3.bf16.xpose.msra.mxu1 %v973_v4 }
 0x22d   : > { %2696 = vmatprep.subr.bf16.mxu1 %v2950_v5 }
 0x233   : > { %2693 = vmatmul.mubr.msk.bf16.vlgmr.msra.gmra.mrb[4].mxu1 %vm968_vm1, %v3191_v2 }
 0x234   : > { %2698 = vmatprep.mubr.msk.bf16.mxu1 %vm2951_vm0, %v2950_v5 }
 0x244   : > { %v950_v7 = vpop.f32.mrb[4].mxu0 }
 0x245   : > { %v2688_v8 = vpop.f32.mrb[5].mxu0  ;;  %v951_v10 = vadd.f32 %v2437_v6, %v950_v7 }
 0x246   : > { %v953_v9 = vpop.f32.mrb[6].mxu0 }
 0x247   : > { %v954_v11 = vadd.f32 %v2437_v6, %v953_v9  ;;  %v2689_v12 = vpop.f32.mrb[7].mxu0 }
 0x249   : > { %v3205_v13 = vpack.c.bf16 %v954_v11, %v951_v10 }
 0x24b   : > { %2697 = vmatpush3.bf16.msra.mxu1 %v3205_v13 }
 0x24c   : > { %2702 = vmatprep.subr.bf16.mxu1 %v2950_v5 }
 0x306   : > { %v1009_v15 = vpop.f32.mrb[4].mxu1 }
 0x307   : > { %v1010_v17 = vadd.f32 %v1009_v15, %v960_v14  ;;  %v2694_v18 = vpop.f32.mrb[5].mxu1 }
 0x308   : > { %v1012_v19 = vpop.f32.mrb[6].mxu1 }
 0x309   : > { %v1013_v20 = vadd.f32 %v1012_v19, %v961_v16  ;;  %v2695_v21 = vpop.f32.mrb[7].mxu1  ;;  %v1017_v22 = vsel %vm1016_vm2, %v1010_v17, -inf }
 0x30a   : > { %1018 = vmax.xlane.f32.xlu0 %v1017_v22 }
 0x30b   : > { %v1020_v23 = vsel %vm1016_vm2, %v1013_v20, -inf }
 0x30c   : > { %1021 = vmax.xlane.f32.xlu1 %v1020_v23 }
 0x397   : > { %v1019_v24 = vpop.xlane.xlu0 %1018 }
 0x398   : > { %v1023_v25 = vsub.f32 %v1010_v17, %v1019_v24 }
 0x399   : > { %v1022_v26 = vpop.xlane.xlu1 %1021 }
 0x39a   : > { %v1025_v27 = vmul.f32 1.442695, %v1023_v25  ;;  %v1024_v28 = vsub.f32 %v1013_v20, %v1022_v26  ;;  %v964_v25 = vld [vmem:[%s3651_s11 + $0x20] sm:$0xff] }
 0x39c   : > { %2888 = vpow2.f32 %v1025_v27  ;;  %v1027_v29 = vmul.f32 1.442695, %v1024_v28  ;;  %v965_v27 = vld [vmem:[%s3651_s11 + $0x28] sm:$0xff] }
 0x39e   : > { %2890 = vpow2.f32 %v1027_v29 }
 0x3a6   : > { %v2889_v30 = vpop.eup %2888 }
 0x3a7   : > { %v1029_v31 = vsel %vm1016_vm2, %v2889_v30, 0.0 }
 0x3a8   : > { %v2891_v32 = vpop.eup %2890  ;;  %1030 = vadd.xlane.f32.xlu0 %v1029_v31 }
 0x3a9   : > { %v1032_v33 = vsel %vm1016_vm2, %v2891_v32, 0.0 }
 0x3aa   : > { %1033 = vadd.xlane.f32.xlu1 %v1032_v33 }
 0x3bb   : > { %1086 = vrot.lane.b32.xlu1 %v3191_v2, %s2952_s0 }
 0x3be   : > { %1089 = vrot.lane.b32.xlu0 %v3193_v3, %s2952_s0 }
 0x435   : > { %v1031_v34 = vpop.xlane.xlu0 %1030 }
 0x436   : > { %2892 = vrcp.f32 %v1031_v34 }
 0x437   : > { %v1034_v35 = vpop.xlane.xlu1 %1033 }
 0x438   : > { %2894 = vrcp.f32 %v1034_v35 }
 0x439   : > { %v1090_v40 = vpop.permute.xlu0 %1089 }
 0x43a   : > { %v1095_v42 = vsel %vm968_vm1, %v1090_v40, 0 }
 0x43b   : > { %v1087_v43 = vpop.permute.xlu1 %1086 }
 0x440   : > { %v2893_v36 = vpop.eup %2892 }
 0x441   : > { %v1036_v38 = vmul.f32 %v2893_v36, %v2889_v30 }
 0x442   : > { %v2895_v37 = vpop.eup %2894 }
 0x443   : > { %v1038_v39 = vmul.f32 %v2895_v37, %v2891_v32 }
 0x445   : > { %v1039_v41 = vpack.c.bf16 %v1038_v39, %v1036_v38 }
 0x447   : > { %2699 = vmatmul.mubr.msk.bf16.vlgmr.msra.gmra.mrb[8].mxu1 %vm1016_vm2, %v1039_v41 }
 0x448   : > { %2703 = vmatpush3.bf16.xpose.msra.mxu1 %v1095_v42  ;;  %2704 = vmatprep.mubr.msk.bf16.mxu1 %vm2951_vm0, %v2950_v5 }
 0x449   : > { %2708 = vmatprep.subr.bf16.mxu1 %v2950_v5 }
 0x44f   : > { %2705 = vmatmul.mubr.msk.bf16.vlgmr.msra.gmra.mrb[12].mxu1 %vm968_vm1, %v1087_v43 }
 0x450   : > { %2710 = vmatprep.mubr.msk.bf16.mxu1 %vm2951_vm0, %v2950_v5 }
 0x51a   : > { %v3231_v44 = vpop.f32.mrb[8].mxu1 }
 0x51b   : > { %v2700_v45 = vpop.f32.mrb[9].mxu1 }
 0x51c   : > { %v3233_v46 = vpop.f32.mrb[10].mxu1 }
 0x51d   : > { %v1084_v47 = vpack.c.bf16 %v3233_v46, %v3231_v44  ;;  %v2701_v48 = vpop.f32.mrb[11].mxu1  ;;  %v2941_v44 = vld [vmem:[%s3067_s1 + $0x8] sm:$0xff] }
 0x522   : > { %v1131_v50 = vpop.f32.mrb[12].mxu1 }
 0x523   : > { %v1132_v52 = vadd.f32 %v1131_v50, %v962_v49  ;;  %v2706_v53 = vpop.f32.mrb[13].mxu1 }
 0x524   : > { %v1134_v54 = vpop.f32.mrb[14].mxu1 }
 0x525   : > { %v1135_v55 = vadd.f32 %v1134_v54, %v963_v51  ;;  %v2707_v56 = vpop.f32.mrb[15].mxu1  ;;  %v1138_v57 = vsel %vm1016_vm2, %v1132_v52, -inf }
 0x526   : > { %1139 = vmax.xlane.f32.xlu1 %v1138_v57 }
 0x527   : > { %v1141_v58 = vsel %vm1016_vm2, %v1135_v55, -inf }
 0x528   : > { %1142 = vmax.xlane.f32.xlu0 %v1141_v58 }
 0x5b3   : > { %v1140_v59 = vpop.xlane.xlu1 %1139 }
 0x5b4   : > { %v1144_v60 = vsub.f32 %v1132_v52, %v1140_v59 }
 0x5b5   : > { %v1143_v61 = vpop.xlane.xlu0 %1142 }
 0x5b6   : > { %v1146_v62 = vmul.f32 1.442695, %v1144_v60  ;;  %v1145_v63 = vsub.f32 %v1135_v55, %v1143_v61 }
 0x5b8   : > { %2896 = vpow2.f32 %v1146_v62  ;;  %v1148_v0 = vmul.f32 1.442695, %v1145_v63  ;;  %v966_v62 = vld [vmem:[%s3651_s11 + $0x30] sm:$0xff] }
 0x5ba   : > { %2898 = vpow2.f32 %v1148_v0  ;;  %v967_v0 = vld [vmem:[%s3651_s11 + $0x38] sm:$0xff] }
 0x5c2   : > { %v2897_v1 = vpop.eup %2896 }
 0x5c3   : > { %v1150_v4 = vsel %vm1016_vm2, %v2897_v1, 0.0 }
 0x5c4   : > { %v2899_v6 = vpop.eup %2898  ;;  %1151 = vadd.xlane.f32.xlu0 %v1150_v4 }
 0x5c5   : > { %v1153_v7 = vsel %vm1016_vm2, %v2899_v6, 0.0 }
 0x5c6   : > { %1154 = vadd.xlane.f32.xlu1 %v1153_v7 }
 0x5d7   : > { %1212 = vrot.lane.b32.xlu1 %v3193_v3, %s2953_s2 }
 0x5da   : > { %1162 = vrot.lane.b32.xlu0 %v3205_v13, %s2952_s0 }
 0x5db   : > { %1210 = vrot.lane.b32.xlu1 %v3191_v2, %s2953_s2 }
 0x651   : > { %v1152_v8 = vpop.xlane.xlu0 %1151 }
 0x652   : > { %2900 = vrcp.f32 %v1152_v8 }
 0x653   : > { %v1155_v9 = vpop.xlane.xlu1 %1154 }
 0x654   : > { %2902 = vrcp.f32 %v1155_v9 }
 0x655   : > { %v1163_v10 = vpop.permute.xlu0 %1162 }
 0x656   : > { %2709 = vmatpush3.bf16.msra.mxu1 %v1163_v10 }
 0x657   : > { %2714 = vmatprep.subr.bf16.mxu1 %v2950_v5  ;;  %v1213_v16 = vpop.permute.xlu1 %1212 }
 0x658   : > { %v1218_v18 = vsel %vm968_vm1, %v1213_v16, 0 }
 0x65b   : > { %v1211_v19 = vpop.permute.xlu1 %1210 }
 0x65c   : > { %v2901_v11 = vpop.eup %2900 }
 0x65d   : > { %v1157_v14 = vmul.f32 %v2901_v11, %v2897_v1 }
 0x65e   : > { %v2903_v12 = vpop.eup %2902 }
 0x65f   : > { %v1159_v15 = vmul.f32 %v2903_v12, %v2899_v6 }
 0x661   : > { %v1160_v17 = vpack.c.bf16 %v1159_v15, %v1157_v14 }
 0x663   : > { %2711 = vmatmul.mubr.msk.bf16.vlgmr.msra.gmra.mrb[16].mxu1 %vm1016_vm2, %v1160_v17 }
 0x664   : > { %2715 = vmatpush3.bf16.xpose.msra.mxu1 %v1218_v18  ;;  %2716 = vmatprep.mubr.msk.bf16.mxu1 %vm2951_vm0, %v2950_v5 }
 0x665   : > { %2720 = vmatprep.subr.bf16.mxu1 %v2950_v5 }
 0x66b   : > { %2717 = vmatmul.mubr.msk.bf16.vlgmr.msra.gmra.mrb[20].mxu1 %vm968_vm1, %v1211_v19 }
 0x66c   : > { %2722 = vmatprep.mubr.msk.bf16.mxu1 %vm2951_vm0, %v2950_v5 }
 0x736   : > { %v3262_v20 = vpop.f32.mrb[16].mxu1 }
 0x737   : > { %v2712_v21 = vpop.f32.mrb[17].mxu1 }
 0x738   : > { %v3264_v22 = vpop.f32.mrb[18].mxu1 }
 0x739   : > { %v1209_v23 = vpack.c.bf16 %v3264_v22, %v3262_v20  ;;  %v2713_v24 = vpop.f32.mrb[19].mxu1  ;;  %v2796_v20 = vld [vmem:[%s3649_s9] sm:$0xff]   ;;  %v2798_v22 = vld [vmem:[%s3649_s9 + $0x10] sm:$0xff]  }
 0x73a   : > { %2739 = vmatpush3.bf16.msra.mxu0 %v2796_v20  ;;  %v2840_v20 = vld [vmem:[%s3654_s14 + $0xc0] ss:$16 sps:$4 sm:$0xff]  }
 0x73b   : > { %2740 = vmatprep.subr.bf16.mxu0 %v2950_v5 }
 0x73e   : > { %v1254_v26 = vpop.f32.mrb[20].mxu1 }
 0x73f   : > { %v1255_v28 = vadd.f32 %v1254_v26, %v964_v25  ;;  %v2718_v29 = vpop.f32.mrb[21].mxu1 }
 0x740   : > { %v1257_v30 = vpop.f32.mrb[22].mxu1 }
 0x741   : > { %v1258_v31 = vadd.f32 %v1257_v30, %v965_v27  ;;  %v2719_v32 = vpop.f32.mrb[23].mxu1  ;;  %v1261_v33 = vsel %vm1016_vm2, %v1255_v28, -inf }
 0x742   : > { %1262 = vmax.xlane.f32.xlu1 %v1261_v33  ;;  %v2800_v33 = vld [vmem:[%s3649_s9 + $0x20] sm:$0xff]  }
 0x743   : > { %v1264_v34 = vsel %vm1016_vm2, %v1258_v31, -inf }
 0x744   : > { %1265 = vmax.xlane.f32.xlu0 %v1264_v34  ;;  %v2801_v34 = vld [vmem:[%s3649_s9 + $0x28] sm:$0xff]  }
 0x753   : > { %1284 = vrot.lane.b32.xlu1 %v3205_v13, %s2953_s2 }
 0x757   : > { %1332 = vrot.lane.b32.xlu1 %v3191_v2, %s2954_s30 }
 0x7cf   : > { %v1263_v35 = vpop.xlane.xlu1 %1262 }
 0x7d0   : > { %v1267_v36 = vsub.f32 %v1255_v28, %v1263_v35  ;;  %v2802_v35 = vld [vmem:[%s3649_s9 + $0x30] sm:$0xff]  }
 0x7d1   : > { %v1266_v37 = vpop.xlane.xlu0 %1265 }
 0x7d2   : > { %v1269_v38 = vmul.f32 1.442695, %v1267_v36  ;;  %v1268_v39 = vsub.f32 %v1258_v31, %v1266_v37  ;;  %v2803_v36 = vld [vmem:[%s3649_s9 + $0x38] sm:$0xff]  }
 0x7d3   : > { %v1285_v40 = vpop.permute.xlu1 %1284 }
 0x7d4   : > { %2904 = vpow2.f32 %v1269_v38  ;;  %v1271_v41 = vmul.f32 1.442695, %v1268_v39  ;;  %2721 = vmatpush3.bf16.msra.mxu1 %v1285_v40 }
 0x7d5   : > { %2726 = vmatprep.subr.bf16.mxu1 %v2950_v5 }
 0x7d6   : > { %2906 = vpow2.f32 %v1271_v41 }
 0x7de   : > { %v2905_v42 = vpop.eup %2904 }
 0x7df   : > { %v1273_v43 = vsel %vm1016_vm2, %v2905_v42, 0.0 }
 0x7e0   : > { %v2907_v45 = vpop.eup %2906  ;;  %1274 = vadd.xlane.f32.xlu0 %v1273_v43 }
 0x7e1   : > { %v1276_v48 = vsel %vm1016_vm2, %v2907_v45, 0.0 }
 0x7e4   : > { %1277 = vadd.xlane.f32.xlu0 %v1276_v48 }
 0x7fa   : > { %1334 = vrot.lane.b32.xlu0 %v3193_v3, %s2954_s30  ;;  %v1333_v3 = vpop.permute.xlu1 %1332 }
 0x86d   : > { %v1275_v2 = vpop.xlane.xlu0 %1274 }
 0x86e   : > { %2908 = vrcp.f32 %v1275_v2 }
 0x871   : > { %v1278_v49 = vpop.xlane.xlu0 %1277 }
 0x872   : > { %2910 = vrcp.f32 %v1278_v49  ;;  %v2454_v49 = vld [vmem:[%s3650_s10] ss:$0 sm:$0xff] }
 0x875   : > { %v1335_v54 = vpop.permute.xlu0 %1334 }
 0x876   : > { %v1340_v56 = vsel %vm968_vm1, %v1335_v54, 0  ;;  %v2940_v54 = vld [vmem:[%s3067_s1] sm:$0xff] }
 0x878   : > { %v2909_v50 = vpop.eup %2908 }
 0x879   : > { %v1280_v52 = vmul.f32 %v2909_v50, %v2905_v42 }
 0x87c   : > { %v2911_v51 = vpop.eup %2910 }
 0x87d   : > { %v1282_v53 = vmul.f32 %v2911_v51, %v2907_v45 }
 0x87f   : > { %v1283_v55 = vpack.c.bf16 %v1282_v53, %v1280_v52 }
 0x881   : > { %2723 = vmatmul.mubr.msk.bf16.vlgmr.msra.gmra.mrb[24].mxu1 %vm1016_vm2, %v1283_v55 }
 0x882   : > { %2727 = vmatpush3.bf16.xpose.msra.mxu1 %v1340_v56  ;;  %2728 = vmatprep.mubr.msk.bf16.mxu1 %vm2951_vm0, %v2950_v5 }
 0x883   : > { %2732 = vmatprep.subr.bf16.mxu1 %v2950_v5 }
 0x889   : > { %2729 = vmatmul.mubr.msk.bf16.vlgmr.msra.gmra.mrb[28].mxu1 %vm968_vm1, %v1333_v3 }
 0x88a   : > { %2734 = vmatprep.mubr.msk.bf16.mxu1 %vm2951_vm0, %v2950_v5 }
 0x954   : > { %v1324_v57 = vpop.f32.mrb[24].mxu1 }
 0x955   : > { %v2724_v58 = vpop.f32.mrb[25].mxu1 }
 0x956   : > { %v1327_v59 = vpop.f32.mrb[26].mxu1  ;;  %v2807_v58 = vld [vmem:[%s3654_s14 + $0x8] ss:$16 sps:$4 sm:$0xff]  }
 0x957   : > { %v1331_v60 = vpack.c.bf16 %v1327_v59, %v1324_v57  ;;  %v2725_v61 = vpop.f32.mrb[27].mxu1  ;;  %v2806_v57 = vld [vmem:[%s3654_s14 + $0x4] ss:$16 sps:$4 sm:$0xff]   ;;  %v2809_v59 = vld [vmem:[%s3654_s14 + $0xc] ss:$16 sps:$4 sm:$0xff]  }
 0x958   : > { %v2815_v61 = vld [vmem:[%s3654_s14 + $0x2c] ss:$16 sps:$4 sm:$0xff]  }
 0x95c   : > { %v1376_v63 = vpop.f32.mrb[28].mxu1 }
 0x95d   : > { %v1377_v1 = vadd.f32 %v1376_v63, %v966_v62  ;;  %v2730_v4 = vpop.f32.mrb[29].mxu1  ;;  %v2810_v62 = vld [vmem:[%s3654_s14 + $0x20] ss:$16 sps:$4 sm:$0xff]   ;;  %v2813_v63 = vld [vmem:[%s3654_s14 + $0x28] ss:$16 sps:$4 sm:$0xff]  }
 0x95e   : > { %v1379_v6 = vpop.f32.mrb[30].mxu1 }
 0x95f   : > { %v1380_v7 = vadd.f32 %v1379_v6, %v967_v0  ;;  %v2731_v8 = vpop.f32.mrb[31].mxu1  ;;  %v1383_v9 = vsel %vm1016_vm2, %v1377_v1, -inf }
 0x960   : > { %1384 = vmax.xlane.f32.xlu1 %v1383_v9 }
 0x961   : > { %v1386_v10 = vsel %vm1016_vm2, %v1380_v7, -inf }
 0x962   : > { %1387 = vmax.xlane.f32.xlu0 %v1386_v10 }
 0x9ed   : > { %v1385_v11 = vpop.xlane.xlu1 %1384 }
 0x9ee   : > { %v1389_v12 = vsub.f32 %v1377_v1, %v1385_v11  ;;  %v2818_v11 = vld [vmem:[%s3654_s14 + $0x44] ss:$16 sps:$4 sm:$0xff]  }
 0x9ef   : > { %v1388_v14 = vpop.xlane.xlu0 %1387 }
 0x9f0   : > { %v1391_v15 = vmul.f32 1.442695, %v1389_v12  ;;  %v1390_v16 = vsub.f32 %v1380_v7, %v1388_v14  ;;  %v2821_v12 = vld [vmem:[%s3654_s14 + $0x4c] ss:$16 sps:$4 sm:$0xff]   ;;  %v2816_v14 = vld [vmem:[%s3654_s14 + $0x40] ss:$16 sps:$4 sm:$0xff]  }
 0x9f2   : > { %2912 = vpow2.f32 %v1391_v15  ;;  %v1393_v17 = vmul.f32 1.442695, %v1390_v16  ;;  %v2819_v15 = vld [vmem:[%s3654_s14 + $0x48] ss:$16 sps:$4 sm:$0xff]   ;;  %v2824_v16 = vld [vmem:[%s3654_s14 + $0x64] ss:$16 sps:$4 sm:$0xff]  }
 0x9f4   : > { %2914 = vpow2.f32 %v1393_v17  ;;  %v2827_v17 = vld [vmem:[%s3654_s14 + $0x6c] ss:$16 sps:$4 sm:$0xff]  }
 0x9fc   : > { %v2913_v18 = vpop.eup %2912 }
 0x9fd   : > { %v1395_v19 = vsel %vm1016_vm2, %v2913_v18, 0.0 }
 0x9fe   : > { %v2915_v21 = vpop.eup %2914  ;;  %1396 = vadd.xlane.f32.xlu0 %v1395_v19  ;;  %v2825_v19 = vld [vmem:[%s3654_s14 + $0x68] ss:$16 sps:$4 sm:$0xff]  }
 0x9ff   : > { %v1398_v24 = vsel %vm1016_vm2, %v2915_v21, 0.0 }
 0xa00   : > { %1399 = vadd.xlane.f32.xlu1 %v1398_v24  ;;  %v2833_v24 = vld [vmem:[%s3654_s14 + $0x8c] ss:$16 sps:$4 sm:$0xff]  }
 0xa11   : > { %1455 = vrot.lane.b32.xlu1 %v1209_v23, %s2954_s30  ;;  %v2799_v23 = vld [vmem:[%s3649_s9 + $0x18] sm:$0xff]  }
 0xa14   : > { %1406 = vrot.lane.b32.xlu0 %v3205_v13, %s2954_s30  ;;  %v2797_v13 = vld [vmem:[%s3649_s9 + $0x8] sm:$0xff]  }
 0xa15   : > { %1458 = vrot.lane.b32.xlu1 %v1331_v60, %s2953_s2  ;;  %2741 = vmatpush3.bf16.msra.mxu0 %v2797_v13  ;;  %v2812_v60 = vld [vmem:[%s3654_s14 + $0x24] ss:$16 sps:$4 sm:$0xff]   ;;  %v2843_v13 = vld [vmem:[%s3654_s14 + $0xc8] ss:$16 sps:$4 sm:$0xff]   ;;  %s575_s2 = scalar_lea.vmem %s3658_s18, %s2532_s29 }
 0xa16   : > { %2742 = vmatprep.subr.bf16.mxu0 %v2950_v5 }
 0xa19   : > { %2743 = vmatpush3.bf16.msra.mxu0 %v2798_v22  ;;  %v2848_v22 = vld [vmem:[%s3654_s14 + $0xe4] ss:$16 sps:$4 sm:$0xff]  }
 0xa1a   : > { %2744 = vmatprep.subr.bf16.mxu0 %v2950_v5 }
 0xa1d   : > { %2745 = vmatpush3.bf16.msra.mxu0 %v2799_v23  ;;  %v2851_v23 = vld [vmem:[%s3654_s14 + $0xec] ss:$16 sps:$4 sm:$0xff]  }
 0xa1e   : > { %2746 = vmatprep.subr.bf16.mxu0 %v2950_v5 }
 0xa21   : > { %2747 = vmatpush3.bf16.msra.mxu0 %v2800_v33  ;;  %v2846_v33 = vld [vmem:[%s3654_s14 + $0xe0] ss:$16 sps:$4 sm:$0xff]  }
 0xa22   : > { %2748 = vmatprep.subr.bf16.mxu0 %v2950_v5 }
 0xa25   : > { %2749 = vmatpush3.bf16.msra.mxu0 %v2801_v34  ;;  %v2849_v34 = vld [vmem:[%s3654_s14 + $0xe8] ss:$16 sps:$4 sm:$0xff]  }
 0xa26   : > { %2750 = vmatprep.subr.bf16.mxu0 %v2950_v5 }
 0xa29   : > { %2751 = vmatpush3.bf16.msra.mxu0 %v2802_v35  ;;  %v2955_v35 = vmov 0  }
 0xa2a   : > { %2752 = vmatprep.subr.bf16.mxu0 %v2950_v5 }
 0xa2d   : > { %2753 = vmatpush3.bf16.msra.mxu0 %v2803_v36 }
 0xa2e   : > { %1885 = vmatprep.subr.bf16.mxu0 %v2809_v59  ;;  %v2859_v59 = vld [vmem:[%s3656_s16 + $0x88] sm:$0xff]  }
 0xa8b   : > { %v1397_v25 = vpop.xlane.xlu0 %1396 }
 0xa8c   : > { %2916 = vrcp.f32 %v1397_v25  ;;  %v2828_v25 = vld [vmem:[%s3654_s14 + $0x80] ss:$16 sps:$4 sm:$0xff]  }
 0xa8d   : > { %v1400_v26 = vpop.xlane.xlu1 %1399 }
 0xa8e   : > { %2918 = vrcp.f32 %v1400_v26  ;;  %v2831_v26 = vld [vmem:[%s3654_s14 + $0x88] ss:$16 sps:$4 sm:$0xff]  }
 0xa8f   : > { %v1407_v27 = vpop.permute.xlu0 %1406 }
 0xa90   : > { %2733 = vmatpush3.bf16.msra.mxu1 %v1407_v27  ;;  %v2836_v27 = vld [vmem:[%s3654_s14 + $0xa4] ss:$16 sps:$4 sm:$0xff]  }
 0xa91   : > { %v1456_v42 = vpop.permute.xlu1 %1455  ;;  %1842 = vmatprep.subr.bf16.mxu1 %v2806_v57  ;;  %v2857_v57 = vld [vmem:[%s3656_s16 + $0xc8] sm:$0xff]  }
 0xa92   : > { %v1465_v45 = vsel %vm968_vm1, %v1084_v47, %v1456_v42  ;;  %v2804_v47 = vld [vmem:[%s3654_s14] ss:$16 sps:$4 sm:$0xff]  }
 0xa95   : > { %v1459_v43 = vpop.permute.xlu1 %1458 }
 0xa96   : > { %v2917_v28 = vpop.eup %2916  ;;  %v1468_v5 = vsel %vm1466_vm3, %v1465_v45, %v1459_v43  ;;  %v2463_v45 = vld [vmem:[%s3652_s12] ss:$0 sm:$0xff] }
 0xa97   : > { %v1402_v30 = vmul.f32 %v2917_v28, %v2913_v18  ;;  %v2822_v18 = vld [vmem:[%s3654_s14 + $0x60] ss:$16 sps:$4 sm:$0xff]   ;;  %v2839_v28 = vld [vmem:[%s3654_s14 + $0xac] ss:$16 sps:$4 sm:$0xff]  }
 0xa98   : > { %v2919_v29 = vpop.eup %2918 }
 0xa99   : > { %v1404_v31 = vmul.f32 %v2919_v29, %v2915_v21  ;;  %v2830_v21 = vld [vmem:[%s3654_s14 + $0x84] ss:$16 sps:$4 sm:$0xff]   ;;  %v2834_v29 = vld [vmem:[%s3654_s14 + $0xa0] ss:$16 sps:$4 sm:$0xff]  }
 0xa9b   : > { %v1405_v32 = vpack.c.bf16 %v1404_v31, %v1402_v30  ;;  %v2837_v30 = vld [vmem:[%s3654_s14 + $0xa8] ss:$16 sps:$4 sm:$0xff]   ;;  %v2842_v31 = vld [vmem:[%s3654_s14 + $0xc4] ss:$16 sps:$4 sm:$0xff]  }
 0xa9d   : > { %2735 = vmatmul.mubr.msk.bf16.vlgmr.msra.gmra.mrb[32].mxu1 %vm1016_vm2, %v1405_v32  ;;  %v2845_v32 = vld [vmem:[%s3654_s14 + $0xcc] ss:$16 sps:$4 sm:$0xff]  }
 0xa9e   : > { %1843 = vmatpush1.bf16.msra.mxu1 %v2804_v47  ;;  %1874 = vmatprep.mubr.bf16.mxu1 %v2955_v35  ;;  %v2856_v47 = vld [vmem:[%s3656_s16 + $0x48] sm:$0xff]  }
 0xa9f   : > { %1844 = vmatprep.subr.bf16.mxu1 %v2812_v60  ;;  %v2860_v60 = vld [vmem:[%s3656_s16 + $0x50] sm:$0xff]  }
 0xaa2   : > { %1845 = vmatpush1.bf16.msra.mxu1 %v2810_v62  ;;  %v2862_v62 = vld [vmem:[%s3656_s16 + $0x10] sm:$0xff]  }
 0xaa3   : > { %1846 = vmatprep.subr.bf16.mxu1 %v2818_v11  ;;  %v2872_v11 = vld [vmem:[%s3656_s16 + $0x68] sm:$0xff]  }
 0xaa6   : > { %1847 = vmatpush1.bf16.msra.mxu1 %v2816_v14  ;;  %v2874_v14 = vld [vmem:[%s3656_s16 + $0x28] sm:$0xff]  }
 0xaa7   : > { %1848 = vmatprep.subr.bf16.mxu1 %v2824_v16  ;;  %v2876_v16 = vld [vmem:[%s3656_s16 + $0x70] sm:$0xff]  }
 0xaaa   : > { %1849 = vmatpush1.bf16.msra.mxu1 %v2822_v18  ;;  %v2878_v18 = vld [vmem:[%s3656_s16 + $0x30] sm:$0xff]  }
 0xaab   : > { %1850 = vmatprep.subr.bf16.mxu1 %v2830_v21  ;;  %v2880_v21 = vld [vmem:[%s3656_s16 + $0x78] sm:$0xff]  }
 0xaae   : > { %1851 = vmatpush1.bf16.msra.mxu1 %v2828_v25  ;;  %v2882_v25 = vld [vmem:[%s3656_s16 + $0x38] sm:$0xff]  }
 0xaaf   : > { %1852 = vmatprep.subr.bf16.mxu1 %v2836_v27  ;;  %v1662_v27 = vlaneseq }
 0xab2   : > { %1853 = vmatpush1.bf16.msra.mxu1 %v2834_v29 }
 0xab3   : > { %1854 = vmatprep.subr.bf16.mxu1 %v2842_v31  ;;  %v1660_v31 = vld [vmem:[%s3655_s15] sm:$0xf] }
 0xab6   : > { %1855 = vmatpush1.bf16.msra.mxu1 %v2840_v20 }
 0xab7   : > { %1856 = vmatprep.subr.bf16.mxu1 %v2848_v22 }
 0xaba   : > { %1857 = vmatpush1.bf16.msra.mxu1 %v2846_v33 }
 0xb70   : > { %v1446_v37 = vpop.f32.mrb[32].mxu1 }
 0xb71   : > { %v2736_v38 = vpop.f32.mrb[33].mxu1 }
 0xb72   : > { %v1449_v39 = vpop.f32.mrb[34].mxu1 }
 0xb73   : > { %v1453_v40 = vpack.c.bf16 %v1449_v39, %v1446_v37  ;;  %v2737_v41 = vpop.f32.mrb[35].mxu1 }
 0xb75   : > { %1461 = vrot.lane.b32.xlu1 %v1453_v40, %s2952_s0 }
 0xbe7   : > { %v1462_v48 = vpop.permute.xlu1 %1461 }
 0xbe8   : > { %v1471_v2 = vsel %vm1469_vm4, %v1468_v5, %v1462_v48 }
 0xbe9   : > { %2755 = vmatmul.mubr.bf16.vlgmr.msra.gmra.mrb[8].mxu0 %v1471_v2 }
 0xbea   : > { %1886 = vmatpush1.bf16.msra.mxu0 %v2807_v58  ;;  %1917 = vmatprep.mubr.bf16.mxu0 %v2955_v35  ;;  %v2858_v58 = vld [vmem:[%s3656_s16 + $0x8] sm:$0xff]  }
 0xbeb   : > { %1887 = vmatprep.subr.bf16.mxu0 %v2815_v61  ;;  %v2861_v61 = vld [vmem:[%s3656_s16 + $0xd0] sm:$0xff]  }
 0xbee   : > { %1888 = vmatpush1.bf16.msra.mxu0 %v2813_v63  ;;  %v2863_v63 = vld [vmem:[%s3656_s16 + $0x90] sm:$0xff]  }
 0xbef   : > { %1889 = vmatprep.subr.bf16.mxu0 %v2821_v12  ;;  %v2873_v12 = vld [vmem:[%s3656_s16 + $0xe8] sm:$0xff]  }
 0xbf2   : > { %1890 = vmatpush1.bf16.msra.mxu0 %v2819_v15  ;;  %v2875_v15 = vld [vmem:[%s3656_s16 + $0xa8] sm:$0xff]  }
 0xbf3   : > { %1891 = vmatprep.subr.bf16.mxu0 %v2827_v17  ;;  %v2877_v17 = vld [vmem:[%s3656_s16 + $0xf0] sm:$0xff]  }
 0xbf6   : > { %1892 = vmatpush1.bf16.msra.mxu0 %v2825_v19  ;;  %v2879_v19 = vld [vmem:[%s3656_s16 + $0xb0] sm:$0xff]  }
 0xbf7   : > { %1893 = vmatprep.subr.bf16.mxu0 %v2833_v24  ;;  %v2881_v24 = vld [vmem:[%s3656_s16 + $0xf8] sm:$0xff]  }
 0xbfa   : > { %1894 = vmatpush1.bf16.msra.mxu0 %v2831_v26  ;;  %v2883_v26 = vld [vmem:[%s3656_s16 + $0xb8] sm:$0xff]  }
 0xbfb   : > { %1895 = vmatprep.subr.bf16.mxu0 %v2839_v28  ;;  %v1663_v28 = vshrl.u32 %v1662_v27, 7 }
 0xbfd   : > { %v1664_v29 = vsub.s32 0, %v1663_v28  ;;  %v1676_v20 = vsub.s32 3, %v1663_v28 }
 0xbfe   : > { %1896 = vmatpush1.bf16.msra.mxu0 %v2837_v30  ;;  %v1672_v30 = vsub.s32 2, %v1663_v28 }
 0xbff   : > { %1897 = vmatprep.subr.bf16.mxu0 %v2845_v32  ;;  %v1668_v32 = vsub.s32 1, %v1663_v28  ;;  %v1677_v33 = vrot.slane %v1660_v31, %v1676_v20 }
 0xc00   : > { %v1673_v22 = vrot.slane %v1660_v31, %v1672_v30 }
 0xc02   : > { %1898 = vmatpush1.bf16.msra.mxu0 %v2843_v13  ;;  %v1665_v13 = vrot.slane %v1660_v31, %v1664_v29 }
 0xc03   : > { %1899 = vmatprep.subr.bf16.mxu0 %v2851_v23  ;;  %v1669_v23 = vrot.slane %v1660_v31, %v1668_v32 }
 0xc06   : > { %1900 = vmatpush1.bf16.msra.mxu0 %v2849_v34 }
 0xcbc   : > { %v1578_v50 = vpop.f32.mrb[8].mxu0 }
 0xcbd   : > { %v1579_v51 = vadd.f32 %v2454_v49, %v1578_v50  ;;  %v2756_v52 = vpop.f32.mrb[9].mxu0 }
 0xcbe   : > { %v1581_v53 = vpop.f32.mrb[10].mxu0 }
 0xcbf   : > { %v3351_v55 = vadd.f32 %v2940_v54, %v1579_v51  ;;  %v1582_v56 = vadd.f32 %v2454_v49, %v1581_v53  ;;  %v2757_v3 = vpop.f32.mrb[11].mxu0  ;;  %v2464_v49 = vld [vmem:[%s3653_s13] ss:$0 sm:$0xff] }
 0xcc0   : > { %v2852_v54 = vld [vmem:[%s3656_s16 + $0x40] sm:$0xff]  }
 0xcc1   : > { %v3354_v46 = vadd.f32 %v2941_v44, %v1582_v56  ;;  %1589 = vadd.xlane.f32.xlu0 %v3351_v55  ;;  %v2853_v56 = vld [vmem:[%s3656_s16 + $0xc0] sm:$0xff]   ;;  %2586 = vmatprep.subr.bf16.mxu1 %v2852_v54 }
 0xcc2   : > { %v2854_v3 = vld [vmem:[%s3656_s16] sm:$0xff]   ;;  %2608 = vmatprep.subr.bf16.mxu0 %v2853_v56 }
 0xcc3   : > { %1591 = vadd.xlane.f32.xlu1 %v3354_v46  ;;  %v2855_v44 = vld [vmem:[%s3656_s16 + $0x80] sm:$0xff]  }
 0xd4e   : > { %v1590_v0 = vpop.xlane.xlu0 %1589 }
 0xd4f   : > { %v1593_v1 = vmul.f32 0.0078125, %v1590_v0  ;;  %v2864_v0 = vld [vmem:[%s3656_s16 + $0x58] sm:$0xff]  }
 0xd50   : > { %v1592_v4 = vpop.xlane.xlu1 %1591 }
 0xd51   : > { %v3383_v6 = vsub.f32 %v3351_v55, %v1593_v1  ;;  %v1594_v7 = vmul.f32 0.0078125, %v1592_v4  ;;  %v2865_v1 = vld [vmem:[%s3656_s16 + $0xd8] sm:$0xff]  }
 0xd52   : > { %v2866_v4 = vld [vmem:[%s3656_s16 + $0x18] sm:$0xff]  }
 0xd53   : > { %v3386_v8 = vsub.f32 %v3354_v46, %v1594_v7  ;;  %v1597_v9 = vmul.f32 %v3383_v6, %v3383_v6  ;;  %v2868_v7 = vld [vmem:[%s3656_s16 + $0x60] sm:$0xff]  }
 0xd55   : > { %1599 = vadd.xlane.f32.xlu0 %v1597_v9  ;;  %v1598_v10 = vmul.f32 %v3386_v8, %v3386_v8  ;;  %v2870_v9 = vld [vmem:[%s3656_s16 + $0x20] sm:$0xff]  }
 0xd59   : > { %1601 = vadd.xlane.f32.xlu0 %v1598_v10  ;;  %v2871_v10 = vld [vmem:[%s3656_s16 + $0xa0] sm:$0xff]  }
 0xde2   : > { %v1600_v36 = vpop.xlane.xlu0 %1599 }
 0xde3   : > { %v1603_v37 = vmul.f32 0.0078125, %v1600_v36 }
 0xde5   : > { %v1605_v38 = vadd.f32 1e-05, %v1603_v37 }
 0xde6   : > { %v1602_v39 = vpop.xlane.xlu0 %1601 }
 0xde7   : > { %2920 = vrsqrt.f32 %v1605_v38  ;;  %v1604_v40 = vmul.f32 0.0078125, %v1602_v39 }
 0xde9   : > { %v1606_v41 = vadd.f32 1e-05, %v1604_v40 }
 0xdeb   : > { %2922 = vrsqrt.f32 %v1606_v41 }
 0xdf1   : > { %v2921_v42 = vpop.eup %2920 }
 0xdf2   : > { %v1609_v43 = vmul.f32 %v2921_v42, %v3383_v6  ;;  %v2867_v6 = vld [vmem:[%s3656_s16 + $0x98] sm:$0xff]  }
 0xdf4   : > { %v1617_v2 = vmul.f32 %v2463_v45, %v1609_v43 }
 0xdf5   : > { %v2923_v5 = vpop.eup %2922 }
 0xdf6   : > { %v1610_v48 = vmul.f32 %v2923_v5, %v3386_v8  ;;  %v1625_v51 = vadd.f32 %v2464_v49, %v1617_v2  ;;  %v2869_v8 = vld [vmem:[%s3656_s16 + $0xe0] sm:$0xff]  }
 0xdf8   : > { %v1618_v50 = vmul.f32 %v2463_v45, %v1610_v48 }
 0xdfa   : > { %v1626_v52 = vadd.f32 %v2464_v49, %v1618_v50 }
 0xdfc   : > { %v1627_v53 = vpack.c.bf16 %v1626_v52, %v1625_v51 }
 0xdfe   : > { %1875 = vmatmul.mubr.bf16.vlgmr.msra.gmra.mrb[36].mxu1 %v1627_v53  ;;  %1918 = vmatmul.mubr.bf16.vlgmr.msra.gmra.mrb[12].mxu0 %v1627_v53 }
 0xdff   : > { %2587 = vmatpush3.bf16.msra.mxu1 %v2854_v3  ;;  %2609 = vmatpush3.bf16.msra.mxu0 %v2855_v44 }
 0xe00   : > { %2588 = vmatprep.subr.bf16.mxu1 %v2856_v47  ;;  %2610 = vmatprep.subr.bf16.mxu0 %v2857_v57 }
 0xe03   : > { %2589 = vmatpush3.bf16.msra.mxu1 %v2858_v58  ;;  %2611 = vmatpush3.bf16.msra.mxu0 %v2859_v59 }
 0xe04   : > { %2590 = vmatprep.subr.bf16.mxu1 %v2860_v60  ;;  %2612 = vmatprep.subr.bf16.mxu0 %v2861_v61 }
 0xe07   : > { %2591 = vmatpush3.bf16.msra.mxu1 %v2862_v62  ;;  %2613 = vmatpush3.bf16.msra.mxu0 %v2863_v63 }
 0xe08   : > { %2592 = vmatprep.subr.bf16.mxu1 %v2864_v0  ;;  %2614 = vmatprep.subr.bf16.mxu0 %v2865_v1 }
 0xe0b   : > { %2593 = vmatpush3.bf16.msra.mxu1 %v2866_v4  ;;  %2615 = vmatpush3.bf16.msra.mxu0 %v2867_v6 }
 0xe0c   : > { %2594 = vmatprep.subr.bf16.mxu1 %v2868_v7  ;;  %2616 = vmatprep.subr.bf16.mxu0 %v2869_v8 }
 0xe0f   : > { %2595 = vmatpush3.bf16.msra.mxu1 %v2870_v9  ;;  %2617 = vmatpush3.bf16.msra.mxu0 %v2871_v10 }
 0xe10   : > { %2596 = vmatprep.subr.bf16.mxu1 %v2872_v11  ;;  %2618 = vmatprep.subr.bf16.mxu0 %v2873_v12 }
 0xe13   : > { %2597 = vmatpush3.bf16.msra.mxu1 %v2874_v14  ;;  %2619 = vmatpush3.bf16.msra.mxu0 %v2875_v15 }
 0xe14   : > { %2598 = vmatprep.subr.bf16.mxu1 %v2876_v16  ;;  %2620 = vmatprep.subr.bf16.mxu0 %v2877_v17 }
 0xe17   : > { %2599 = vmatpush3.bf16.msra.mxu1 %v2878_v18  ;;  %2621 = vmatpush3.bf16.msra.mxu0 %v2879_v19 }
 0xe18   : > { %2600 = vmatprep.subr.bf16.mxu1 %v2880_v21  ;;  %2622 = vmatprep.subr.bf16.mxu0 %v2881_v24 }
 0xe1b   : > { %2601 = vmatpush3.bf16.msra.mxu1 %v2882_v25  ;;  %2623 = vmatpush3.bf16.msra.mxu0 %v2883_v26 }
 0xed1   : > { %v1876_v34 = vpop.f32.mrb[36].mxu1  ;;  %v1919_v35 = vpop.f32.mrb[12].mxu0 }
 0xed2   : > { %v3571_v36 = vadd.f32 %v1876_v34, %v1665_v13  ;;  %v3573_v37 = vadd.f32 %v1919_v35, %v1673_v22  ;;  %v1878_v38 = vpop.f32.mrb[37].mxu1  ;;  %v1921_v39 = vpop.f32.mrb[13].mxu0 }
 0xed3   : > { %v3575_v40 = vadd.f32 %v1878_v38, %v1669_v23  ;;  %v3577_v41 = vadd.f32 %v1921_v39, %v1677_v33  ;;  %v1880_v42 = vpop.f32.mrb[38].mxu1  ;;  %v1923_v43 = vpop.f32.mrb[14].mxu0 }
 0xed4   : > { %v1928_v45 = vmul.f32 %v3571_v36, %v3571_v36  ;;  %v1930_v5 = vmul.f32 %v3573_v37, %v3573_v37  ;;  %v3583_v48 = vadd.f32 %v1880_v42, %v1665_v13  ;;  %v3585_v2 = vadd.f32 %v1923_v43, %v1673_v22  ;;  %v1882_v49 = vpop.f32.mrb[39].mxu1  ;;  %v1925_v50 = vpop.f32.mrb[15].mxu0 }
 0xed5   : > { %v1929_v51 = vmul.f32 %v3575_v40, %v3575_v40  ;;  %v1931_v52 = vmul.f32 %v3577_v41, %v3577_v41  ;;  %v3591_v53 = vadd.f32 %v1882_v49, %v1669_v23  ;;  %v3593_v54 = vadd.f32 %v1925_v50, %v1677_v33 }
 0xed6   : > { %v1936_v56 = vmul.f32 %v1928_v45, %v3571_v36  ;;  %v1938_v3 = vmul.f32 %v1930_v5, %v3573_v37  ;;  %v1932_v44 = vmul.f32 %v3583_v48, %v3583_v48  ;;  %v1934_v47 = vmul.f32 %v3585_v2, %v3585_v2 }
 0xed7   : > { %v1937_v57 = vmul.f32 %v1929_v51, %v3575_v40  ;;  %v1939_v58 = vmul.f32 %v1931_v52, %v3577_v41  ;;  %v1933_v59 = vmul.f32 %v3591_v53, %v3591_v53  ;;  %v1935_v60 = vmul.f32 %v3593_v54, %v3593_v54 }
 0xed8   : > { %v1944_v61 = vmul.f32 0.044715, %v1936_v56  ;;  %v1946_v62 = vmul.f32 0.044715, %v1938_v3  ;;  %v1940_v63 = vmul.f32 %v1932_v44, %v3583_v48  ;;  %v1942_v0 = vmul.f32 %v1934_v47, %v3585_v2 }
 0xed9   : > { %v1945_v1 = vmul.f32 0.044715, %v1937_v57  ;;  %v1947_v4 = vmul.f32 0.044715, %v1939_v58  ;;  %v1941_v6 = vmul.f32 %v1933_v59, %v3591_v53  ;;  %v1943_v7 = vmul.f32 %v1935_v60, %v3593_v54 }
 0xeda   : > { %v1952_v8 = vadd.f32 %v1944_v61, %v3571_v36  ;;  %v1954_v9 = vadd.f32 %v1946_v62, %v3573_v37  ;;  %v1948_v10 = vmul.f32 0.044715, %v1940_v63  ;;  %v1950_v11 = vmul.f32 0.044715, %v1942_v0 }
 0xedb   : > { %v1953_v12 = vadd.f32 %v1945_v1, %v3575_v40  ;;  %v1955_v14 = vadd.f32 %v1947_v4, %v3577_v41  ;;  %v1949_v15 = vmul.f32 0.044715, %v1941_v6  ;;  %v1951_v16 = vmul.f32 0.044715, %v1943_v7 }
 0xedc   : > { %v1960_v17 = vmul.f32 0.7978846, %v1952_v8  ;;  %v1962_v18 = vmul.f32 0.7978846, %v1954_v9  ;;  %v1956_v19 = vadd.f32 %v1948_v10, %v3583_v48  ;;  %v1958_v21 = vadd.f32 %v1950_v11, %v3585_v2 }
 0xedd   : > { %v1961_v24 = vmul.f32 0.7978846, %v1953_v12  ;;  %v1963_v25 = vmul.f32 0.7978846, %v1955_v14  ;;  %v1957_v26 = vadd.f32 %v1949_v15, %v3591_v53  ;;  %v1959_v27 = vadd.f32 %v1951_v16, %v3593_v54 }
 0xede   : > { %2924 = vtanh.f32 %v1960_v17  ;;  %v1964_v28 = vmul.f32 0.7978846, %v1956_v19  ;;  %v1966_v29 = vmul.f32 0.7978846, %v1958_v21 }
 0xedf   : > { %2926 = vtanh.f32 %v1962_v18  ;;  %v1965_v30 = vmul.f32 0.7978846, %v1957_v26  ;;  %v1967_v31 = vmul.f32 0.7978846, %v1959_v27 }
 0xee0   : > { %2928 = vtanh.f32 %v1961_v24 }
 0xee1   : > { %2930 = vtanh.f32 %v1963_v25 }
 0xee2   : > { %2932 = vtanh.f32 %v1964_v28 }
 0xee3   : > { %2934 = vtanh.f32 %v1966_v29 }
 0xee4   : > { %2936 = vtanh.f32 %v1965_v30 }
 0xee5   : > { %2938 = vtanh.f32 %v1967_v31 }
 0xee8   : > { %v2925_v32 = vpop.eup %2924 }
 0xee9   : > { %v2927_v20 = vpop.eup %2926  ;;  %v1976_v13 = vadd.f32 1.0, %v2925_v32 }
 0xeea   : > { %v2929_v22 = vpop.eup %2928  ;;  %v1978_v23 = vadd.f32 1.0, %v2927_v20 }
 0xeeb   : > { %v2931_v33 = vpop.eup %2930  ;;  %v1977_v34 = vadd.f32 1.0, %v2929_v22  ;;  %v1984_v42 = vmul.f32 0.5, %v1976_v13 }
 0xeec   : > { %v2933_v35 = vpop.eup %2932  ;;  %v1979_v38 = vadd.f32 1.0, %v2931_v33  ;;  %v1986_v5 = vmul.f32 0.5, %v1978_v23 }
 0xeed   : > { %v2935_v39 = vpop.eup %2934  ;;  %v1980_v43 = vadd.f32 1.0, %v2933_v35  ;;  %v1985_v56 = vmul.f32 0.5, %v1977_v34  ;;  %v1992_v57 = vmul.f32 %v1984_v42, %v3571_v36 }
 0xeee   : > { %v2937_v45 = vpop.eup %2936  ;;  %v1982_v49 = vadd.f32 1.0, %v2935_v39  ;;  %v1987_v47 = vmul.f32 0.5, %v1979_v38  ;;  %v1994_v60 = vmul.f32 %v1986_v5, %v3573_v37 }
 0xeef   : > { %v2939_v50 = vpop.eup %2938  ;;  %v1988_v51 = vmul.f32 0.5, %v1980_v43  ;;  %v1981_v52 = vadd.f32 1.0, %v2937_v45  ;;  %v1993_v63 = vmul.f32 %v1985_v56, %v3575_v40  ;;  %v2497_v40 = vld [vmem:[%s3657_s17] ss:$0 sm:$0xff] }
 0xef0   : > { %v1990_v3 = vmul.f32 0.5, %v1982_v49  ;;  %v1983_v44 = vadd.f32 1.0, %v2939_v50  ;;  %v1995_v4 = vmul.f32 %v1987_v47, %v3577_v41 }
 0xef1   : > { %v1996_v58 = vmul.f32 %v1988_v51, %v3583_v48  ;;  %v1989_v59 = vmul.f32 0.5, %v1981_v52 }
 0xef2   : > { %v1998_v61 = vmul.f32 %v1990_v3, %v3585_v2  ;;  %v1991_v62 = vmul.f32 0.5, %v1983_v44 }
 0xef3   : > { %v1997_v0 = vmul.f32 %v1989_v59, %v3591_v53  ;;  %v2000_v1 = vpack.c.bf16 %v1996_v58, %v1992_v57 }
 0xef4   : > { %v1999_v6 = vmul.f32 %v1991_v62, %v3593_v54  ;;  %v2002_v7 = vpack.c.bf16 %v1998_v61, %v1994_v60 }
 0xef5   : > { %v2001_v8 = vpack.c.bf16 %v1997_v0, %v1993_v63 }
 0xef6   : > { %v2003_v36 = vpack.c.bf16 %v1999_v6, %v1995_v4 }
 0xef7   : > { %2299 = vmatprep.mubr.bf16.mxu1 %v2001_v8 }
 0xef8   : > { %2340 = vmatprep.mubr.bf16.mxu0 %v2003_v36  ;;  %2300 = vmatmul.mubr.bf16.vlgmr.msra.gmra.mrb[40].mxu1 %v2000_v1 }
 0xef9   : > { %2341 = vmatmul.mubr.bf16.vlgmr.msra.gmra.mrb[16].mxu0 %v2002_v7 }
 0xfcb   : > { %v2602_v37 = vpop.f32.mrb[40].mxu1 }
 0xfcc   : > { %v2624_v48 = vpop.f32.mrb[16].mxu0  ;;  %v2603_v2 = vpop.f32.mrb[41].mxu1 }
 0xfcd   : > { %v2604_v53 = vadd.f32 %v2603_v2, %v2602_v37  ;;  %v2625_v9 = vpop.f32.mrb[17].mxu0  ;;  %v2605_v41 = vpop.f32.mrb[42].mxu1 }
 0xfce   : > { %v2626_v10 = vadd.f32 %v2625_v9, %v2624_v48  ;;  %v2627_v54 = vpop.f32.mrb[18].mxu0  ;;  %v2606_v11 = vpop.f32.mrb[43].mxu1 }
 0xfcf   : > { %v2302_v12 = vadd.f32 %v2604_v53, %v2497_v40  ;;  %v2607_v14 = vadd.f32 %v2606_v11, %v2605_v41  ;;  %v2628_v15 = vpop.f32.mrb[19].mxu0 }
 0xfd0   : > { %v2629_v16 = vadd.f32 %v2628_v15, %v2627_v54 }
 0xfd1   : > { %v2343_v17 = vadd.f32 %v2626_v10, %v2302_v12  ;;  %v2305_v18 = vadd.f32 %v2607_v14, %v2497_v40 }
 0xfd3   : > { %v2349_v19 = vadd.f32 %v2343_v17, %v3351_v55  ;;  %v2346_v21 = vadd.f32 %v2629_v16, %v2305_v18 }
 0xfd5   : > { %2351 = vst [vmem:[%s575_s2] sm:$0xff] %v2349_v19  ;;  %v2350_v24 = vadd.f32 %v2346_v21, %v3354_v46 }
 0xfd7   : > { %2352 = vst [vmem:[%s575_s2 + $0x8] sm:$0xff] %v2350_v24 }
 0xfd8 PF: > { %s28_s27 = sadd.s32 1, %s2948_s27  }
 0xfd9   : > { %p25_p4 = scmp.ge.s32.totalorder %s28_s27, 4  }
 0xfdb   :  { %27 = sbr.rel (!%p25_p4) target bundleno = 4 (0x4), region = 122 }

// kernel: simmim_forward.15
= control target key start
LH: loop header
LB: loop body
LE: loop exit
PB: predicated region body
PF: predicated region fallthrough
CT: control target
= control target key end

     0   :  { %vm232_vm0 = vcmask 7168   ;;  %v317_v2 = vmov 0   ;;  %s527_s0 = inlined_call_operand.vmem [shape: f32[128,48], index: 0, kind: input, shape index: {}]   ;;  %s528_s1 = inlined_call_operand.vmem [shape: f32[128,48], index: 1, kind: input, shape index: {}]   ;;  %s529_s2 = inlined_call_operand.vmem [shape: f32[128,1], index: 2, kind: input, shape index: {}]   ;;  %s530_s3 = inlined_call_operand.hbm [shape: f32[1], index: 3, kind: output, shape index: {}]  }
   0x1   :  { %v17_v0 = vld [vmem:[%s529_s2 + $0x10] sm:$0xff]  ;;  %v15_v1 = vld [vmem:[%s529_s2] sm:$0xff]  ;;  %302 = vset.pattern.permute.xlu1 %v317_v2  ;;  %301 = vset.pattern.permute.xlu0 %v317_v2  ;;  %v16_v3 = vld [vmem:[%s529_s2 + $0x8] sm:$0xff] }
   0x2   :  { %107 = vperm.xlu1 %302, %v17_v0   ;;  %97 = vperm.xlu0 %301, %v15_v1   ;;  %v233_v4 = vsel %vm232_vm0, %v15_v1, 0.0  ;;  %v18_v5 = vld [vmem:[%s529_s2 + $0x18] sm:$0xff]  ;;  %v234_v6 = vsel %vm232_vm0, %v16_v3, 0.0  ;;  %v236_v8 = vsel %vm232_vm0, %v17_v0, 0.0  ;;  %v20_v9 = vld [vmem:[%s529_s2 + $0x28] sm:$0xff]  ;;  %v19_v10 = vld [vmem:[%s529_s2 + $0x20] sm:$0xff] }
   0x3   :  { %v235_v7 = vadd.f32 %v234_v6, %v233_v4  ;;  %v238_v12 = vsel %vm232_vm0, %v18_v5, 0.0  ;;  %v22_v13 = vld [vmem:[%s529_s2 + $0x38] sm:$0xff]  ;;  %v21_v14 = vld [vmem:[%s529_s2 + $0x30] sm:$0xff] }
   0x5   :  { %v237_v11 = vadd.f32 %v236_v8, %v235_v7 }
   0x6   :  { %112 = vperm.xlu1 %302, %v18_v5   ;;  %102 = vperm.xlu0 %301, %v16_v3  }
   0xa   :  { %122 = vperm.xlu1 %302, %v20_v9   ;;  %117 = vperm.xlu0 %301, %v19_v10  }
   0xb   :  { %8 = vsyncpa [#allocation3], 0  ;;  %v239_v15 = vadd.f32 %v238_v12, %v237_v11  ;;  %v240_v16 = vsel %vm232_vm0, %v19_v10, 0.0  ;;  %v24_v17 = vld [vmem:[%s529_s2 + $0x48] sm:$0xff]  ;;  %v23_v18 = vld [vmem:[%s529_s2 + $0x40] sm:$0xff]  ;;  %v242_v20 = vsel %vm232_vm0, %v20_v9, 0.0 }
   0xc   :  { %v26_v21 = vld [vmem:[%s529_s2 + $0x58] sm:$0xff]  ;;  %v25_v22 = vld [vmem:[%s529_s2 + $0x50] sm:$0xff]  ;;  %v244_v24 = vsel %vm232_vm0, %v21_v14, 0.0  ;;  %v28_v25 = vld [vmem:[%s529_s2 + $0x68] sm:$0xff]  ;;  %v246_v28 = vsel %vm232_vm0, %v22_v13, 0.0  ;;  %v248_v32 = vsel %vm232_vm0, %v23_v18, 0.0 }
   0xd   :  { %v241_v19 = vadd.f32 %v240_v16, %v239_v15  ;;  %v27_v26 = vld [vmem:[%s529_s2 + $0x60] sm:$0xff]  ;;  %v30_v29 = vld [vmem:[%s529_s2 + $0x78] sm:$0xff]  ;;  %v29_v30 = vld [vmem:[%s529_s2 + $0x70] sm:$0xff]  ;;  %v250_v34 = vsel %vm232_vm0, %v24_v17, 0.0  ;;  %v252_v36 = vsel %vm232_vm0, %v25_v22, 0.0  ;;  %v254_v38 = vsel %vm232_vm0, %v26_v21, 0.0 }
   0xe   :  { %132 = vperm.xlu1 %302, %v22_v13   ;;  %127 = vperm.xlu0 %301, %v21_v14   ;;  %v256_v40 = vsel %vm232_vm0, %v27_v26, 0.0  ;;  %v258_v42 = vsel %vm232_vm0, %v28_v25, 0.0  ;;  %v260_v44 = vsel %vm232_vm0, %v29_v30, 0.0  ;;  %v262_v46 = vsel %vm232_vm0, %v30_v29, 0.0  ;;  %v31_v48 = vld [vmem:[%s527_s0] sm:$0xff]  ;;  %v33_v50 = vld [vmem:[%s527_s0 + $0x10] sm:$0xff] }
   0xf   :  { %v243_v23 = vadd.f32 %v242_v20, %v241_v19  ;;  %v47_v49 = vld [vmem:[%s528_s1] sm:$0xff]  ;;  %v49_v51 = vld [vmem:[%s528_s1 + $0x10] sm:$0xff]  ;;  %v32_v52 = vld [vmem:[%s527_s0 + $0x8] sm:$0xff]  ;;  %vm191_vm1 = vcmask 392192   ;;  %s305_s29 = scalar_lea.hbm %s530_s3, 16 }
  0x10   :  { %v48_v53 = vld [vmem:[%s528_s1 + $0x8] sm:$0xff]  ;;  %v63_v54 = vsub.f32 %v31_v48, %v47_v49  ;;  %v34_v55 = vld [vmem:[%s527_s0 + $0x18] sm:$0xff]  ;;  %v65_v57 = vsub.f32 %v33_v50, %v49_v51  ;;  %v35_v59 = vld [vmem:[%s527_s0 + $0x20] sm:$0xff]  ;;  %p306_p0 = scmp.ne.s32.totalorder %s530_s3, %s305_s29  ;;  %p309_p1 = scmp.lt.u32.totalorder %s305_s29, %s530_s3 }
  0x11   :  { %v245_v27 = vadd.f32 %v244_v24, %v243_v23  ;;  %v50_v56 = vld [vmem:[%s528_s1 + $0x18] sm:$0xff]  ;;  %v64_v58 = vsub.f32 %v32_v52, %v48_v53  ;;  %v51_v60 = vld [vmem:[%s528_s1 + $0x20] sm:$0xff]  ;;  %v36_v1 = vld [vmem:[%s527_s0 + $0x28] sm:$0xff] }
  0x12   :  { %142 = vperm.xlu1 %302, %v24_v17   ;;  %137 = vperm.xlu0 %301, %v23_v18   ;;  %v79_v61 = vand.u32 2147483647, %v63_v54  ;;  %v66_v62 = vsub.f32 %v34_v55, %v50_v56  ;;  %v52_v2 = vld [vmem:[%s528_s1 + $0x28] sm:$0xff]  ;;  %v81_v3 = vand.u32 2147483647, %v65_v57  ;;  %v67_v5 = vsub.f32 %v35_v59, %v51_v60  ;;  %v37_v6 = vld [vmem:[%s527_s0 + $0x30] sm:$0xff]  ;;  %p311_p2 = pnand %p309_p1, %p306_p0 }
  0x13   :  { %v247_v31 = vadd.f32 %v246_v28, %v245_v27  ;;  %v80_v4 = vand.u32 2147483647, %v64_v58  ;;  %v53_v7 = vld [vmem:[%s528_s1 + $0x30] sm:$0xff]  ;;  %v68_v10 = vsub.f32 %v36_v1, %v52_v2  ;;  %v38_v11 = vld [vmem:[%s527_s0 + $0x38] sm:$0xff]  ;;  %v39_v20 = vld [vmem:[%s527_s0 + $0x40] sm:$0xff] }
  0x14   :  { %v82_v9 = vand.u32 2147483647, %v66_v62  ;;  %v54_v12 = vld [vmem:[%s528_s1 + $0x38] sm:$0xff]  ;;  %v83_v17 = vand.u32 2147483647, %v67_v5  ;;  %v69_v18 = vsub.f32 %v37_v6, %v53_v7  ;;  %v43_v52 = vld [vmem:[%s527_s0 + $0x60] sm:$0xff] }
  0x15   :  { %v249_v33 = vadd.f32 %v248_v32, %v247_v31  ;;  %v70_v19 = vsub.f32 %v38_v11, %v54_v12  ;;  %v59_v53 = vld [vmem:[%s528_s1 + $0x60] sm:$0xff]  ;;  %v60_v62 = vld [vmem:[%s528_s1 + $0x68] sm:$0xff]  ;;  %v61_v5 = vld [vmem:[%s528_s1 + $0x70] sm:$0xff] }
  0x16   :  { %152 = vperm.xlu1 %302, %v26_v21   ;;  %147 = vperm.xlu0 %301, %v25_v22   ;;  %v55_v21 = vld [vmem:[%s528_s1 + $0x40] sm:$0xff]  ;;  %v75_v2 = vsub.f32 %v43_v52, %v59_v53 }
  0x17   :  { %v251_v35 = vadd.f32 %v250_v34, %v249_v33  ;;  %v85_v33 = vand.u32 2147483647, %v69_v18  ;;  %v71_v34 = vsub.f32 %v39_v20, %v55_v21 }
  0x19   :  { %v253_v37 = vadd.f32 %v252_v36, %v251_v35  ;;  %v41_v36 = vld [vmem:[%s527_s0 + $0x50] sm:$0xff]  ;;  %v87_v49 = vand.u32 2147483647, %v71_v34 }
  0x1a   :  { %162 = vperm.xlu1 %302, %v28_v25   ;;  %157 = vperm.xlu0 %301, %v27_v26   ;;  %v84_v25 = vand.u32 2147483647, %v68_v10 }
  0x1b   :  { %v255_v39 = vadd.f32 %v254_v38, %v253_v37  ;;  %v57_v37 = vld [vmem:[%s528_s1 + $0x50] sm:$0xff] }
  0x1c   :  { %v73_v50 = vsub.f32 %v41_v36, %v57_v37 }
  0x1d   :  { %v257_v41 = vadd.f32 %v256_v40, %v255_v39  ;;  %v86_v40 = vand.u32 2147483647, %v70_v19 }
  0x1e   :  { %172 = vperm.xlu1 %302, %v30_v29   ;;  %167 = vperm.xlu0 %301, %v29_v30   ;;  %v40_v29 = vld [vmem:[%s527_s0 + $0x48] sm:$0xff]  ;;  %v89_v1 = vand.u32 2147483647, %v73_v50 }
  0x1f   :  { %v259_v43 = vadd.f32 %v258_v42, %v257_v41  ;;  %v56_v30 = vld [vmem:[%s528_s1 + $0x48] sm:$0xff] }
  0x20   :  { %v72_v41 = vsub.f32 %v40_v29, %v56_v30 }
  0x21   :  { %v261_v45 = vadd.f32 %v260_v44, %v259_v43 }
  0x22   :  { %v88_v56 = vand.u32 2147483647, %v72_v41 }
  0x23   :  { %v263_v47 = vadd.f32 %v262_v46, %v261_v45  ;;  %v42_v45 = vld [vmem:[%s527_s0 + $0x58] sm:$0xff] }
  0x24   :  { %v58_v46 = vld [vmem:[%s528_s1 + $0x58] sm:$0xff] }
  0x25   :  { %v74_v57 = vsub.f32 %v42_v45, %v58_v46 }
  0x42   :  { %264 = vadd.xlane.f32.xlu1 %v263_v47 }
  0x81   :  { %v108_v63 = vpop.permute.xlu1 %107  ;;  %v98_v0 = vpop.permute.xlu0 %97 }
  0x82   :  { %v175_v8 = vmul.f32 %v98_v0, %v79_v61  ;;  %v177_v15 = vmul.f32 %v108_v63, %v81_v3  ;;  %v44_v61 = vld [vmem:[%s527_s0 + $0x68] sm:$0xff] }
  0x84   :  { %v192_v22 = vsel %vm191_vm1, %v175_v8, 0.0  ;;  %v195_v31 = vsel %vm191_vm1, %v177_v15, 0.0  ;;  %v90_v8 = vand.u32 2147483647, %v74_v57 }
  0x85   :  { %v113_v13 = vpop.permute.xlu1 %112  ;;  %v103_v14 = vpop.permute.xlu0 %102 }
  0x86   :  { %v176_v16 = vmul.f32 %v103_v14, %v80_v4  ;;  %v178_v23 = vmul.f32 %v113_v13, %v82_v9  ;;  %v45_v4 = vld [vmem:[%s527_s0 + $0x70] sm:$0xff]  ;;  %v76_v9 = vsub.f32 %v44_v61, %v60_v62  ;;  %v46_v13 = vld [vmem:[%s527_s0 + $0x78] sm:$0xff] }
  0x87   :  { %v62_v14 = vld [vmem:[%s528_s1 + $0x78] sm:$0xff]  ;;  %v77_v18 = vsub.f32 %v45_v4, %v61_v5 }
  0x88   :  { %v193_v24 = vsel %vm191_vm1, %v176_v16, 0.0  ;;  %v197_v38 = vsel %vm191_vm1, %v178_v23, 0.0  ;;  %v78_v23 = vsub.f32 %v46_v13, %v62_v14 }
  0x89   :  { %v194_v26 = vadd.f32 %v193_v24, %v192_v22  ;;  %v123_v27 = vpop.permute.xlu1 %122  ;;  %v118_v28 = vpop.permute.xlu0 %117  ;;  %v92_v22 = vand.u32 2147483647, %v76_v9  ;;  %v93_v29 = vand.u32 2147483647, %v77_v18 }
  0x8a   :  { %v179_v32 = vmul.f32 %v118_v28, %v83_v17  ;;  %v180_v39 = vmul.f32 %v123_v27, %v84_v25  ;;  %v91_v17 = vand.u32 2147483647, %v75_v2 }
  0x8b   :  { %v196_v35 = vadd.f32 %v195_v31, %v194_v26 }
  0x8c   :  { %v199_v47 = vsel %vm191_vm1, %v179_v32, 0.0  ;;  %v201_v54 = vsel %vm191_vm1, %v180_v39, 0.0 }
  0x8d   :  { %v198_v42 = vadd.f32 %v197_v38, %v196_v35  ;;  %v133_v43 = vpop.permute.xlu1 %132  ;;  %v128_v44 = vpop.permute.xlu0 %127 }
  0x8e   :  { %v181_v48 = vmul.f32 %v128_v44, %v85_v33  ;;  %v182_v55 = vmul.f32 %v133_v43, %v86_v40  ;;  %v94_v33 = vand.u32 2147483647, %v78_v23 }
  0x8f   :  { %v200_v51 = vadd.f32 %v199_v47, %v198_v42 }
  0x90   :  { %v203_v63 = vsel %vm191_vm1, %v181_v48, 0.0  ;;  %v205_v6 = vsel %vm191_vm1, %v182_v55, 0.0 }
  0x91   :  { %v202_v58 = vadd.f32 %v201_v54, %v200_v51  ;;  %v143_v59 = vpop.permute.xlu1 %142  ;;  %v138_v60 = vpop.permute.xlu0 %137 }
  0x92   :  { %v183_v0 = vmul.f32 %v138_v60, %v87_v49  ;;  %v184_v7 = vmul.f32 %v143_v59, %v88_v56 }
  0x93   :  { %v204_v3 = vadd.f32 %v203_v63, %v202_v58 }
  0x94   :  { %v207_v15 = vsel %vm191_vm1, %v183_v0, 0.0  ;;  %v209_v20 = vsel %vm191_vm1, %v184_v7, 0.0 }
  0x95   :  { %v206_v10 = vadd.f32 %v205_v6, %v204_v3  ;;  %v153_v11 = vpop.permute.xlu1 %152  ;;  %v148_v12 = vpop.permute.xlu0 %147 }
  0x96   :  { %v185_v16 = vmul.f32 %v148_v12, %v89_v1  ;;  %v186_v21 = vmul.f32 %v153_v11, %v90_v8 }
  0x97   :  { %v208_v19 = vadd.f32 %v207_v15, %v206_v10 }
  0x98   :  { %v211_v27 = vsel %vm191_vm1, %v185_v16, 0.0  ;;  %v213_v31 = vsel %vm191_vm1, %v186_v21, 0.0 }
  0x99   :  { %v210_v24 = vadd.f32 %v209_v20, %v208_v19  ;;  %v163_v25 = vpop.permute.xlu1 %162  ;;  %v158_v26 = vpop.permute.xlu0 %157 }
  0x9a   :  { %v187_v28 = vmul.f32 %v158_v26, %v91_v17  ;;  %v188_v32 = vmul.f32 %v163_v25, %v92_v22 }
  0x9b   :  { %v212_v30 = vadd.f32 %v211_v27, %v210_v24 }
  0x9c   :  { %v215_v37 = vsel %vm191_vm1, %v187_v28, 0.0  ;;  %v217_v40 = vsel %vm191_vm1, %v188_v32, 0.0 }
  0x9d   :  { %v214_v34 = vadd.f32 %v213_v31, %v212_v30  ;;  %v173_v35 = vpop.permute.xlu1 %172  ;;  %v168_v36 = vpop.permute.xlu0 %167 }
  0x9e   :  { %v189_v38 = vmul.f32 %v168_v36, %v93_v29  ;;  %v190_v41 = vmul.f32 %v173_v35, %v94_v33 }
  0x9f   :  { %v216_v39 = vadd.f32 %v215_v37, %v214_v34 }
  0xa0   :  { %v219_v43 = vsel %vm191_vm1, %v189_v38, 0.0  ;;  %v221_v45 = vsel %vm191_vm1, %v190_v41, 0.0 }
  0xa1   :  { %v218_v42 = vadd.f32 %v217_v40, %v216_v39 }
  0xa3   :  { %v220_v44 = vadd.f32 %v219_v43, %v218_v42 }
  0xa5   :  { %v222_v46 = vadd.f32 %v221_v45, %v220_v44 }
  0xa7   :  { %223 = vadd.xlane.f32.xlu0 %v222_v46 }
  0xcf   :  { %v265_v47 = vpop.xlane.xlu1 %264 }
  0xd0   :  { %v266_v48 = vrot.slane %v265_v47, 4 }
  0xd2   :  { %v267_v49 = vadd.f32 %v266_v48, %v265_v47 }
  0xd4   :  { %v268_v50 = vrot.slane %v267_v49, 2 }
  0xd6   :  { %v269_v54 = vadd.f32 %v268_v50, %v267_v49 }
  0xd8   :  { %v270_v57 = vrot.slane %v269_v54, 1 }
  0xda   :  { %v271_v60 = vadd.f32 %v270_v57, %v269_v54 }
 0x134   :  { %v224_v51 = vpop.xlane.xlu0 %223 }
 0x135   :  { %v225_v52 = vrot.slane %v224_v51, 4 }
 0x137   :  { %v226_v53 = vadd.f32 %v225_v52, %v224_v51 }
 0x139   :  { %v227_v55 = vrot.slane %v226_v53, 2 }
 0x13b   :  { %v228_v56 = vadd.f32 %v227_v55, %v226_v53 }
 0x13d   :  { %v229_v58 = vrot.slane %v228_v56, 1 }
 0x13f   :  { %v230_v59 = vadd.f32 %v229_v58, %v228_v56 }
 0x141   :  { %293 = vpush %v230_v59 }
 0x142   :  { %295 = vpush %v271_v60 }
 0x172   :  { %s294_s0 = spop %293 }
 0x173   :  { %s296_s1 = spop %295 }
 0x174   :  { %s273_s24 = smul.f32 48.0, %s296_s1 }
 0x176   :  { %v274_v61 = vstv %s273_s24 }
 0x177   :  { %303 = vrcp.f32 %v274_v61 }
 0x181   :  { %v304_v62 = vpop.eup %303 }
 0x182   :  { %297 = vpush %v304_v62 }
 0x1b3   :  { %s298_s25 = spop %297 }
 0x1b4   :  { %s277_s26 = smul.f32 %s298_s25, %s294_s0 }
 0x1b6   :  { %279 = sst [smem:[#allocation2]] %s277_s26 }
 0x1b7   :  { %314 = shalt.err (!%p311_p2)
}
 0x1b8   :  { %s318_s7 = smov [#allocation2]  }
 0x1b9   :  { %287 = dma.smem_to_hbm %s318_s7, 16, %s530_s3, [#allocation3]  }
 0x1ba   :  { %315 = dma.done.wait [#allocation3], 16  }
 0x1bb   :  { %316 = vsyncadd [#allocation3], 4294967280 }
 0x1bc   :  { %291 = sfence }
 0x1bd   :  { %292 = vsyncpa [#allocation3], 1 }

</bundles_post_ra>
